<compile_context>
chip_gen: v7x
topology: tpu7x:2x2x1
jax: 0.10.0
libtpu: 0.0.40
codegen_flags: <defaults>
</compile_context>

<pallas_src>
import math

import numpy as np
import jax
import jax.numpy as jnp
from jax import lax
from jax.experimental import pallas as pl
from jax.experimental.pallas import tpu as pltpu

KS = 5                       # kernel_size
PAD = 2                      # int(dv * (ks - 1) / 2) with dv=1, ks=5
LEAKY_SLOPE = 0.1
BN_EPS = 1e-5
LANE = 128
COMPUTE_DTYPE = jnp.bfloat16   # MXU inputs; accumulation stays f32


def _round_up(x, m):
    return (x + m - 1) // m * m


def _plane_sizes(h, w):
    """Lane sizes of the flattened padded plane and of the output anchors."""
    wp = w + 2 * PAD
    hp = h + 2 * PAD
    a_out = _round_up(h * wp, LANE)                     # lane-dense anchor width
    s4p = _round_up(max(hp * wp, a_out + (KS - 1) * wp + (KS - 1)), LANE)
    return a_out, s4p


# ----------------------------- Pallas kernel ------------------------------- #

def _make_conv3d_kernel(*, h, w, d_out, dpad, tdp, c_in, c_out, a_out, s4p, fuse):
    """Conv3d (+ optional BN/LeakyReLU/residual, all folded) over one batch entry.

    x_ref:    [dpad, c_in, s4p]    padded input planes (bf16), resident per n
    w_ref:    [KS, c_out, krows]   folded weights (bf16), resident
    b_ref:    [c_out, 1]           folded bias (f32)
    m_ref:    [1, a_out]           anchor-validity mask (f32 {0,1})
    o_ref:    [tdp, c_out, s4p]    output tile, padded-plane layout (halos zeroed)
    slab_ref: [dpad, krows, a_out] per-input-plane shifted (im2col) slabs (bf16)
    """
    wp = w + 2 * PAD
    roff = PAD * wp + PAD          # in-plane offset of the "center" position
    krows = KS * KS * c_in

    def kernel(x_ref, w_ref, b_ref, m_ref, o_ref, slab_ref):
        dt = pl.program_id(1)

        # ---- im2col: build all shifted slabs once per batch entry (dt == 0) ----
        @pl.when(dt == 0)
        def _build_slabs():
            def build_one(p, carry):
                for kh in range(KS):
                    for kw in range(KS):
                        r = (kh * KS + kw) * c_in
                        t = kh * wp + kw
                        slab_ref[p, r:r + c_in, :] = x_ref[p, :, t:t + a_out]
                return carry
            lax.fori_loop(0, dpad, build_one, 0)

        col_ok = m_ref[...] > 0.5                 # [1, a_out] bool (drops halo lanes)
        bias = b_ref[...]                         # [c_out, 1]  f32

        # ---- one padded output depth plane per (unrolled) iteration ----
        for local in range(tdp):
            dp = dt * tdp + local                 # padded output depth index
            interior = jnp.logical_and(dp >= PAD, dp < d_out + PAD)

            # Zero the whole padded row first: depth-halo planes, left/right
            # halo columns and the lane tail stay zero for the next layer.
            o_ref[local, :, :] = jnp.zeros((c_out, s4p), o_ref.dtype)

            @pl.when(interior)
            def _compute(local=local, dp=dp):
                d = dp - PAD                      # unpadded output depth
                acc = jnp.zeros((c_out, a_out), jnp.float32)
                for kd in range(KS):              # K = 25*Cin contraction per dot
                    acc = acc + jnp.dot(w_ref[kd], slab_ref[d + kd],
                                        preferred_element_type=jnp.float32)
                y = acc + bias                    # conv bias + BN scale/shift folded
                if fuse:
                    y = jnp.where(y >= 0, y, LEAKY_SLOPE * y)   # LeakyReLU(0.1)
                    # Dropout(p=0.1) is identity in eval mode.
                    res = x_ref[dp, :, roff:roff + a_out].astype(jnp.float32)
                    y = y + res                   # residual add
                y = jnp.where(col_ok, y, 0.0)     # re-zero right-pad / tail anchors
                o_ref[local, :, roff:roff + a_out] = y.astype(o_ref.dtype)

    return kernel


def conv3d_layer_pallas(planes, w2, b2, colmask, *, h, w, out_dtype, fuse):
    """planes: [N, Dpad, Cin, S4P] bf16 (padded-plane layout) ->
       [N, Dpad, Cout, S4P] out_dtype (same padded layout, halos zeroed)."""
    n, dpad, c_in, s4p = planes.shape
    d_out = dpad - 2 * PAD
    c_out = w2.shape[1]
    a_out, s4p_chk = _plane_sizes(h, w)
    assert s4p == s4p_chk
    krows = KS * KS * c_in

    # Output-depth tile: largest value <= 8 dividing Dpad (several planes per step).
    tdp = min(8, dpad)
    while dpad % tdp:
        tdp -= 1
    ndt = dpad // tdp

    kernel = _make_conv3d_kernel(h=h, w=w, d_out=d_out, dpad=dpad, tdp=tdp,
                                 c_in=c_in, c_out=c_out, a_out=a_out,
                                 s4p=s4p, fuse=fuse)

    flops = 2 * n * d_out * (KS ** 3) * c_in * c_out * a_out
    bytes_accessed = int(
        planes.size * planes.dtype.itemsize                     # input read ~once
        + n * (w2.size * w2.dtype.itemsize + b2.size * 4)
        + n * dpad * c_out * s4p * jnp.dtype(out_dtype).itemsize)

    return pl.pallas_call(
        kernel,
        out_shape=jax.ShapeDtypeStruct((n, dpad, c_out, s4p), out_dtype),
        grid_spec=pltpu.PrefetchScalarGridSpec(
            num_scalar_prefetch=0,
            grid=(n, ndt),
            in_specs=[
                # Full padded-depth block; block index independent of dt so it
                # stays resident in VMEM across the whole depth sweep (1x read).
                pl.BlockSpec((None, dpad, c_in, s4p), lambda ni, dt: (ni, 0, 0, 0)),
                # Weights / bias / anchor mask fully resident (constant index).
                pl.BlockSpec((KS, c_out, krows), lambda ni, dt: (0, 0, 0)),
                pl.BlockSpec((c_out, 1), lambda ni, dt: (0, 0)),
                pl.BlockSpec((1, a_out), lambda ni, dt: (0, 0)),
            ],
            out_specs=pl.BlockSpec((None, tdp, c_out, s4p),
                                   lambda ni, dt: (ni, dt, 0, 0)),
            scratch_shapes=[pltpu.VMEM((dpad, krows, a_out), COMPUTE_DTYPE)],
        ),
        compiler_params=pltpu.CompilerParams(
            # N shards across TensorCores (v7x); dt reuses the per-n slab scratch.
            dimension_semantics=("parallel", "arbitrary"),
            vmem_limit_bytes=48 * 1024 * 1024,     # fits v7x's 64 MiB VMEM
        ),
        cost_estimate=pl.CostEstimate(flops=flops, transcendentals=0,
                                      bytes_accessed=bytes_accessed),
    )(planes, w2, b2, colmask)


# ------------------------------- glue (JAX) -------------------------------- #

def _bn_scale_shift(bn):
    scale = bn["gamma"] / jnp.sqrt(bn["var"] + BN_EPS)
    shift = bn["beta"] - bn["mean"] * scale
    return scale, shift


def _fold_layer(w, b, bn):
    """Fold eval-mode BN into conv weight/bias; layout [KS, Cout, KS*KS*Cin]."""
    c_out, c_in = w.shape[0], w.shape[1]
    scale, shift = _bn_scale_shift(bn)
    wk = jnp.transpose(w, (2, 0, 3, 4, 1))                  # [kd, Cout, kh, kw, Cin]
    wk = wk * scale[None, :, None, None, None]
    wk = wk.reshape(KS, c_out, KS * KS * c_in).astype(COMPUTE_DTYPE)
    b2 = (b * scale + shift).reshape(c_out, 1).astype(jnp.float32)
    return wk, b2


def _anchor_mask(h, w, a_out):
    """1.0 for anchors that are real output positions, 0.0 for pad/tail lanes."""
    wp = w + 2 * PAD
    a = np.arange(a_out)
    ok = (a < h * wp) & (a % wp < w)
    return np.asarray(ok, np.float32).reshape(1, a_out)


def _to_padded_planes(x, s4p):
    """[N, C, D, H, W] f32 -> zero-padded lane-flattened planes [N, D+4, C, S4P] bf16."""
    n, c, d, h, w = x.shape
    xt = jnp.transpose(x, (0, 2, 1, 3, 4))                  # N, D, C, H, W
    xp = jnp.pad(xt, ((0, 0), (PAD, PAD), (0, 0), (PAD, PAD), (PAD, PAD)))
    hp, wp = h + 2 * PAD, w + 2 * PAD
    xp = xp.reshape(n, d + 2 * PAD, c, hp * wp)             # contiguous merge: free
    xp = jnp.pad(xp, ((0, 0), (0, 0), (0, 0), (0, s4p - hp * wp)))
    return xp.astype(COMPUTE_DTYPE)


def _from_padded_planes(y, h, w):
    """[N, Dpad, C, S4P] padded-plane layout -> [N, C, D, H, W]."""
    n, dpad, c, _ = y.shape
    d = dpad - 2 * PAD
    hp, wp = h + 2 * PAD, w + 2 * PAD
    y = y[:, PAD:PAD + d, :, :hp * wp].reshape(n, d, c, hp, wp)
    y = y[:, :, :, PAD:PAD + h, PAD:PAD + w]
    return jnp.transpose(y, (0, 2, 1, 3, 4))                # NDCHW -> NCDHW


def resnet_forward_pallas(x, params):
    """x: [N, C, D, H, W] float32 -> [N, 1, D, H, W] float32 (eval forward)."""
    _, _, _, h, w = x.shape
    a_out, s4p = _plane_sizes(h, w)
    colmask = _anchor_mask(h, w, a_out)
    # Layout conversion only at entry; padded-plane layout kept between layers.
    planes = _to_padded_planes(x, s4p)
    for blk in params["blocks"]:
        w2, b2 = _fold_layer(blk["w"], blk["b"], blk["bn"])
        planes = conv3d_layer_pallas(planes, w2, b2, colmask, h=h, w=w,
                                     out_dtype=COMPUTE_DTYPE, fuse=True)
    w2, b2 = _fold_layer(params["out"]["w"], params["out"]["b"], params["out"]["bn"])
    y = conv3d_layer_pallas(planes, w2, b2, colmask, h=h, w=w,
                            out_dtype=jnp.float32, fuse=False)
    return _from_padded_planes(y, h, w)                     # conversion only at exit


# ------------------------------ params init -------------------------------- #

def init_params(key, channels):
    """Shapes follow the PyTorch module; xavier_uniform(gain=sqrt(2)) for conv weights."""
    num_layers = len(channels) - 1

    def conv_init(key, cin, cout):
        kw, kb = jax.random.split(key)
        fan_in = cin * KS ** 3
        fan_out = cout * KS ** 3
        bound_w = math.sqrt(2.0) * math.sqrt(6.0 / (fan_in + fan_out))
        wgt = jax.random.uniform(kw, (cout, cin, KS, KS, KS), jnp.float32,
                                 -bound_w, bound_w)
        bound_b = 1.0 / math.sqrt(fan_in)
        b = jax.random.uniform(kb, (cout,), jnp.float32, -bound_b, bound_b)
        return wgt, b

    def bn_init(cout):
        return dict(gamma=jnp.ones((cout,), jnp.float32),
                    beta=jnp.zeros((cout,), jnp.float32),
                    mean=jnp.zeros((cout,), jnp.float32),
                    var=jnp.ones((cout,), jnp.float32))

    params = {"blocks": []}
    for i in range(num_layers):
        key, sub = jax.random.split(key)
        wgt, b = conv_init(sub, channels[i], channels[i + 1])
        params["blocks"].append(dict(w=wgt, b=b, bn=bn_init(channels[i + 1])))
    key, sub = jax.random.split(key)
    wgt, b = conv_init(sub, channels[-1], 1)
    params["out"] = dict(w=wgt, b=b, bn=bn_init(1))
    return params


# --------------------------- pure-JAX reference ----------------------------- #

def resnet_forward_ref(x, params):
    def conv3d(x, w, b):
        y = jax.lax.conv_general_dilated(
            x, w, window_strides=(1, 1, 1),
            padding=[(PAD, PAD)] * 3,
            dimension_numbers=("NCDHW", "OIDHW", "NCDHW"),
            precision=jax.lax.Precision.HIGHEST)
        return y + b[None, :, None, None, None]

    def bn(x, p):
        scale, shift = _bn_scale_shift(p)
        return x * scale[None, :, None, None, None] + \
            shift[None, :, None, None, None]

    for blk in params["blocks"]:
        r = x
        y = conv3d(x, blk["w"], blk["b"])
        y = bn(y, blk["bn"])
        y = jnp.where(y >= 0, y, LEAKY_SLOPE * y)
        x = y + r
    y = conv3d(x, params["out"]["w"], params["out"]["b"])
    return bn(y, params["out"]["bn"])


# ----------------------------------- main ----------------------------------- #

if __name__ == "__main__":
    channels = [4, 4, 4]          # num_layers = 2; residual requires equal channels
    N, C, D, H, W = 2, channels[0], 8, 8, 8

    key = jax.random.PRNGKey(0)
    kx, kp = jax.random.split(key)
    x = jax.random.normal(kx, (N, C, D, H, W), jnp.float32)
    params = init_params(kp, channels)

    fwd = jax.jit(resnet_forward_pallas)
    out = jax.block_until_ready(fwd(x, params))
    assert out.shape == (N, 1, D, H, W), out.shape

    ref = jax.block_until_ready(resnet_forward_ref(x, params))
    # bf16 MXU inputs with f32 accumulation vs an f32 HIGHEST-precision
    # reference: compare max abs error against 2% of the output scale.
    err = float(jnp.max(jnp.abs(out - ref)))
    scale = float(jnp.max(jnp.abs(ref)))
    assert err <= 2e-2 * scale + 1e-3, (
        f"mismatch vs reference: max abs diff {err} (output scale {scale})")

    print("KERNEL_OK")
</pallas_src>

<mosaic_0001>
module attributes {stable_mosaic.version = 11 : i64} {
  func.func @kernel(%arg0: i32, %arg1: i32, %arg2: memref<1x12x4x256xbf16, #tpu.memory_space<vmem>>, %arg3: memref<5x4x100xbf16, #tpu.memory_space<vmem>>, %arg4: memref<4x1xf32, #tpu.memory_space<vmem>>, %arg5: memref<1x128xf32, #tpu.memory_space<vmem>>, %arg6: memref<1x6x4x256xbf16, #tpu.memory_space<vmem>>, %arg7: memref<12x100x128xbf16, #tpu.memory_space<vmem>>) attributes {dimension_semantics = [#tpu.dimension_semantics<parallel>, #tpu.dimension_semantics<arbitrary>], iteration_bounds = array<i64: 2, 2>, scalar_prefetch = 0 : i64, scratch_operands = 1 : i64, tpu.core_type = #tpu.core_type<tc>, window_params = [{transform_indices = @transform_0, window_bounds = array<i64: 1, 12, 4, 256>}, {pipeline_mode = #tpu.pipeline_mode<synchronous>, transform_indices = @transform_1, window_bounds = array<i64: 5, 4, 100>}, {pipeline_mode = #tpu.pipeline_mode<synchronous>, transform_indices = @transform_2, window_bounds = array<i64: 4, 1>}, {pipeline_mode = #tpu.pipeline_mode<synchronous>, transform_indices = @transform_3, window_bounds = array<i64: 1, 128>}, {transform_indices = @transform_4, window_bounds = array<i64: 1, 6, 4, 256>}]} {
    %c0_i32 = arith.constant 0 : i32
    %0 = arith.cmpi eq, %arg1, %c0_i32 : i32
    %1 = arith.extui %0 : i1 to i32
    %c0_i32_0 = arith.constant 0 : i32
    %2 = arith.cmpi ne, %1, %c0_i32_0 : i32
    scf.if %2 {
      %c0_i32_52 = arith.constant 0 : i32
      %c12_i32 = arith.constant 12 : i32
      %73 = arith.addi %c0_i32_52, %c12_i32 : i32
      %c1_i32_53 = arith.constant 1 : i32
      scf.for %arg8 = %c0_i32_52 to %73 step %c1_i32_53  : i32 {
        %c0_55 = arith.constant 0 : index
        %74 = arith.index_cast %arg8 : i32 to index
        %c0_56 = arith.constant 0 : index
        %c0_57 = arith.constant 0 : index
        %75 = vector.load %arg2[%c0_55, %74, %c0_56, %c0_57] : memref<1x12x4x256xbf16, #tpu.memory_space<vmem>>, vector<1x1x4x128xbf16>
        %76 = vector.shape_cast %75 : vector<1x1x4x128xbf16> to vector<4x128xbf16>
        %77 = arith.index_cast %arg8 : i32 to index
        %c0_58 = arith.constant 0 : index
        %c0_59 = arith.constant 0 : index
        %78 = vector.load %arg7[%77, %c0_58, %c0_59] : memref<12x100x128xbf16, #tpu.memory_space<vmem>>, vector<1x4x128xbf16>
        %79 = vector.shape_cast %78 : vector<1x4x128xbf16> to vector<4x128xbf16>
        %80 = vector.shape_cast %76 : vector<4x128xbf16> to vector<1x4x128xbf16>
        tpu.vector_store %arg7[%77, %c0_58, %c0_59], %80 {strides = array<i32>} : memref<12x100x128xbf16, #tpu.memory_space<vmem>>, vector<1x4x128xbf16>,
        %c0_60 = arith.constant 0 : index
        %81 = arith.index_cast %arg8 : i32 to index
        %c0_61 = arith.constant 0 : index
        %c1_62 = arith.constant 1 : index
        %82 = vector.load %arg2[%c0_60, %81, %c0_61, %c1_62] : memref<1x12x4x256xbf16, #tpu.memory_space<vmem>>, vector<1x1x4x128xbf16>
        %83 = vector.shape_cast %82 : vector<1x1x4x128xbf16> to vector<4x128xbf16>
        %84 = arith.index_cast %arg8 : i32 to index
        %c4_63 = arith.constant 4 : index
        %c0_64 = arith.constant 0 : index
        %85 = vector.load %arg7[%84, %c4_63, %c0_64] : memref<12x100x128xbf16, #tpu.memory_space<vmem>>, vector<1x4x128xbf16>
        %86 = vector.shape_cast %85 : vector<1x4x128xbf16> to vector<4x128xbf16>
        %87 = vector.shape_cast %83 : vector<4x128xbf16> to vector<1x4x128xbf16>
        tpu.vector_store %arg7[%84, %c4_63, %c0_64], %87 {strides = array<i32>} : memref<12x100x128xbf16, #tpu.memory_space<vmem>>, vector<1x4x128xbf16>,
        %c0_65 = arith.constant 0 : index
        %88 = arith.index_cast %arg8 : i32 to index
        %c0_66 = arith.constant 0 : index
        %c2_67 = arith.constant 2 : index
        %89 = vector.load %arg2[%c0_65, %88, %c0_66, %c2_67] : memref<1x12x4x256xbf16, #tpu.memory_space<vmem>>, vector<1x1x4x128xbf16>
        %90 = vector.shape_cast %89 : vector<1x1x4x128xbf16> to vector<4x128xbf16>
        %91 = arith.index_cast %arg8 : i32 to index
        %c8 = arith.constant 8 : index
        %c0_68 = arith.constant 0 : index
        %92 = vector.load %arg7[%91, %c8, %c0_68] : memref<12x100x128xbf16, #tpu.memory_space<vmem>>, vector<1x4x128xbf16>
        %93 = vector.shape_cast %92 : vector<1x4x128xbf16> to vector<4x128xbf16>
        %94 = vector.shape_cast %90 : vector<4x128xbf16> to vector<1x4x128xbf16>
        tpu.vector_store %arg7[%91, %c8, %c0_68], %94 {strides = array<i32>} : memref<12x100x128xbf16, #tpu.memory_space<vmem>>, vector<1x4x128xbf16>,
        %c0_69 = arith.constant 0 : index
        %95 = arith.index_cast %arg8 : i32 to index
        %c0_70 = arith.constant 0 : index
        %c3_71 = arith.constant 3 : index
        %96 = vector.load %arg2[%c0_69, %95, %c0_70, %c3_71] : memref<1x12x4x256xbf16, #tpu.memory_space<vmem>>, vector<1x1x4x128xbf16>
        %97 = vector.shape_cast %96 : vector<1x1x4x128xbf16> to vector<4x128xbf16>
        %98 = arith.index_cast %arg8 : i32 to index
        %c12 = arith.constant 12 : index
        %c0_72 = arith.constant 0 : index
        %99 = vector.load %arg7[%98, %c12, %c0_72] : memref<12x100x128xbf16, #tpu.memory_space<vmem>>, vector<1x4x128xbf16>
        %100 = vector.shape_cast %99 : vector<1x4x128xbf16> to vector<4x128xbf16>
        %101 = vector.shape_cast %97 : vector<4x128xbf16> to vector<1x4x128xbf16>
        tpu.vector_store %arg7[%98, %c12, %c0_72], %101 {strides = array<i32>} : memref<12x100x128xbf16, #tpu.memory_space<vmem>>, vector<1x4x128xbf16>,
        %c0_73 = arith.constant 0 : index
        %102 = arith.index_cast %arg8 : i32 to index
        %c0_74 = arith.constant 0 : index
        %c4_75 = arith.constant 4 : index
        %103 = vector.load %arg2[%c0_73, %102, %c0_74, %c4_75] : memref<1x12x4x256xbf16, #tpu.memory_space<vmem>>, vector<1x1x4x128xbf16>
        %104 = vector.shape_cast %103 : vector<1x1x4x128xbf16> to vector<4x128xbf16>
        %105 = arith.index_cast %arg8 : i32 to index
        %c16 = arith.constant 16 : index
        %c0_76 = arith.constant 0 : index
        %106 = vector.load %arg7[%105, %c16, %c0_76] : memref<12x100x128xbf16, #tpu.memory_space<vmem>>, vector<1x4x128xbf16>
        %107 = vector.shape_cast %106 : vector<1x4x128xbf16> to vector<4x128xbf16>
        %108 = vector.shape_cast %104 : vector<4x128xbf16> to vector<1x4x128xbf16>
        tpu.vector_store %arg7[%105, %c16, %c0_76], %108 {strides = array<i32>} : memref<12x100x128xbf16, #tpu.memory_space<vmem>>, vector<1x4x128xbf16>,
        %c0_77 = arith.constant 0 : index
        %109 = arith.index_cast %arg8 : i32 to index
        %c0_78 = arith.constant 0 : index
        %c12_79 = arith.constant 12 : index
        %110 = vector.load %arg2[%c0_77, %109, %c0_78, %c12_79] : memref<1x12x4x256xbf16, #tpu.memory_space<vmem>>, vector<1x1x4x128xbf16>
        %111 = vector.shape_cast %110 : vector<1x1x4x128xbf16> to vector<4x128xbf16>
        %112 = arith.index_cast %arg8 : i32 to index
        %c20 = arith.constant 20 : index
        %c0_80 = arith.constant 0 : index
        %113 = vector.load %arg7[%112, %c20, %c0_80] : memref<12x100x128xbf16, #tpu.memory_space<vmem>>, vector<1x4x128xbf16>
        %114 = vector.shape_cast %113 : vector<1x4x128xbf16> to vector<4x128xbf16>
        %115 = vector.shape_cast %111 : vector<4x128xbf16> to vector<1x4x128xbf16>
        tpu.vector_store %arg7[%112, %c20, %c0_80], %115 {strides = array<i32>} : memref<12x100x128xbf16, #tpu.memory_space<vmem>>, vector<1x4x128xbf16>,
        %c0_81 = arith.constant 0 : index
        %116 = arith.index_cast %arg8 : i32 to index
        %c0_82 = arith.constant 0 : index
        %c13 = arith.constant 13 : index
        %117 = vector.load %arg2[%c0_81, %116, %c0_82, %c13] : memref<1x12x4x256xbf16, #tpu.memory_space<vmem>>, vector<1x1x4x128xbf16>
        %118 = vector.shape_cast %117 : vector<1x1x4x128xbf16> to vector<4x128xbf16>
        %119 = arith.index_cast %arg8 : i32 to index
        %c24 = arith.constant 24 : index
        %c0_83 = arith.constant 0 : index
        %120 = vector.load %arg7[%119, %c24, %c0_83] : memref<12x100x128xbf16, #tpu.memory_space<vmem>>, vector<1x4x128xbf16>
        %121 = vector.shape_cast %120 : vector<1x4x128xbf16> to vector<4x128xbf16>
        %122 = vector.shape_cast %118 : vector<4x128xbf16> to vector<1x4x128xbf16>
        tpu.vector_store %arg7[%119, %c24, %c0_83], %122 {strides = array<i32>} : memref<12x100x128xbf16, #tpu.memory_space<vmem>>, vector<1x4x128xbf16>,
        %c0_84 = arith.constant 0 : index
        %123 = arith.index_cast %arg8 : i32 to index
        %c0_85 = arith.constant 0 : index
        %c14 = arith.constant 14 : index
        %124 = vector.load %arg2[%c0_84, %123, %c0_85, %c14] : memref<1x12x4x256xbf16, #tpu.memory_space<vmem>>, vector<1x1x4x128xbf16>
        %125 = vector.shape_cast %124 : vector<1x1x4x128xbf16> to vector<4x128xbf16>
        %126 = arith.index_cast %arg8 : i32 to index
        %c28 = arith.constant 28 : index
        %c0_86 = arith.constant 0 : index
        %127 = vector.load %arg7[%126, %c28, %c0_86] : memref<12x100x128xbf16, #tpu.memory_space<vmem>>, vector<1x4x128xbf16>
        %128 = vector.shape_cast %127 : vector<1x4x128xbf16> to vector<4x128xbf16>
        %129 = vector.shape_cast %125 : vector<4x128xbf16> to vector<1x4x128xbf16>
        tpu.vector_store %arg7[%126, %c28, %c0_86], %129 {strides = array<i32>} : memref<12x100x128xbf16, #tpu.memory_space<vmem>>, vector<1x4x128xbf16>,
        %c0_87 = arith.constant 0 : index
        %130 = arith.index_cast %arg8 : i32 to index
        %c0_88 = arith.constant 0 : index
        %c15 = arith.constant 15 : index
        %131 = vector.load %arg2[%c0_87, %130, %c0_88, %c15] : memref<1x12x4x256xbf16, #tpu.memory_space<vmem>>, vector<1x1x4x128xbf16>
        %132 = vector.shape_cast %131 : vector<1x1x4x128xbf16> to vector<4x128xbf16>
        %133 = arith.index_cast %arg8 : i32 to index
        %c32 = arith.constant 32 : index
        %c0_89 = arith.constant 0 : index
        %134 = vector.load %arg7[%133, %c32, %c0_89] : memref<12x100x128xbf16, #tpu.memory_space<vmem>>, vector<1x4x128xbf16>
        %135 = vector.shape_cast %134 : vector<1x4x128xbf16> to vector<4x128xbf16>
        %136 = vector.shape_cast %132 : vector<4x128xbf16> to vector<1x4x128xbf16>
        tpu.vector_store %arg7[%133, %c32, %c0_89], %136 {strides = array<i32>} : memref<12x100x128xbf16, #tpu.memory_space<vmem>>, vector<1x4x128xbf16>,
        %c0_90 = arith.constant 0 : index
        %137 = arith.index_cast %arg8 : i32 to index
        %c0_91 = arith.constant 0 : index
        %c16_92 = arith.constant 16 : index
        %138 = vector.load %arg2[%c0_90, %137, %c0_91, %c16_92] : memref<1x12x4x256xbf16, #tpu.memory_space<vmem>>, vector<1x1x4x128xbf16>
        %139 = vector.shape_cast %138 : vector<1x1x4x128xbf16> to vector<4x128xbf16>
        %140 = arith.index_cast %arg8 : i32 to index
        %c36 = arith.constant 36 : index
        %c0_93 = arith.constant 0 : index
        %141 = vector.load %arg7[%140, %c36, %c0_93] : memref<12x100x128xbf16, #tpu.memory_space<vmem>>, vector<1x4x128xbf16>
        %142 = vector.shape_cast %141 : vector<1x4x128xbf16> to vector<4x128xbf16>
        %143 = vector.shape_cast %139 : vector<4x128xbf16> to vector<1x4x128xbf16>
        tpu.vector_store %arg7[%140, %c36, %c0_93], %143 {strides = array<i32>} : memref<12x100x128xbf16, #tpu.memory_space<vmem>>, vector<1x4x128xbf16>,
        %c0_94 = arith.constant 0 : index
        %144 = arith.index_cast %arg8 : i32 to index
        %c0_95 = arith.constant 0 : index
        %c24_96 = arith.constant 24 : index
        %145 = vector.load %arg2[%c0_94, %144, %c0_95, %c24_96] : memref<1x12x4x256xbf16, #tpu.memory_space<vmem>>, vector<1x1x4x128xbf16>
        %146 = vector.shape_cast %145 : vector<1x1x4x128xbf16> to vector<4x128xbf16>
        %147 = arith.index_cast %arg8 : i32 to index
        %c40 = arith.constant 40 : index
        %c0_97 = arith.constant 0 : index
        %148 = vector.load %arg7[%147, %c40, %c0_97] : memref<12x100x128xbf16, #tpu.memory_space<vmem>>, vector<1x4x128xbf16>
        %149 = vector.shape_cast %148 : vector<1x4x128xbf16> to vector<4x128xbf16>
        %150 = vector.shape_cast %146 : vector<4x128xbf16> to vector<1x4x128xbf16>
        tpu.vector_store %arg7[%147, %c40, %c0_97], %150 {strides = array<i32>} : memref<12x100x128xbf16, #tpu.memory_space<vmem>>, vector<1x4x128xbf16>,
        %c0_98 = arith.constant 0 : index
        %151 = arith.index_cast %arg8 : i32 to index
        %c0_99 = arith.constant 0 : index
        %c25 = arith.constant 25 : index
        %152 = vector.load %arg2[%c0_98, %151, %c0_99, %c25] : memref<1x12x4x256xbf16, #tpu.memory_space<vmem>>, vector<1x1x4x128xbf16>
        %153 = vector.shape_cast %152 : vector<1x1x4x128xbf16> to vector<4x128xbf16>
        %154 = arith.index_cast %arg8 : i32 to index
        %c44 = arith.constant 44 : index
        %c0_100 = arith.constant 0 : index
        %155 = vector.load %arg7[%154, %c44, %c0_100] : memref<12x100x128xbf16, #tpu.memory_space<vmem>>, vector<1x4x128xbf16>
        %156 = vector.shape_cast %155 : vector<1x4x128xbf16> to vector<4x128xbf16>
        %157 = vector.shape_cast %153 : vector<4x128xbf16> to vector<1x4x128xbf16>
        tpu.vector_store %arg7[%154, %c44, %c0_100], %157 {strides = array<i32>} : memref<12x100x128xbf16, #tpu.memory_space<vmem>>, vector<1x4x128xbf16>,
        %c0_101 = arith.constant 0 : index
        %158 = arith.index_cast %arg8 : i32 to index
        %c0_102 = arith.constant 0 : index
        %c26 = arith.constant 26 : index
        %159 = vector.load %arg2[%c0_101, %158, %c0_102, %c26] : memref<1x12x4x256xbf16, #tpu.memory_space<vmem>>, vector<1x1x4x128xbf16>
        %160 = vector.shape_cast %159 : vector<1x1x4x128xbf16> to vector<4x128xbf16>
        %161 = arith.index_cast %arg8 : i32 to index
        %c48 = arith.constant 48 : index
        %c0_103 = arith.constant 0 : index
        %162 = vector.load %arg7[%161, %c48, %c0_103] : memref<12x100x128xbf16, #tpu.memory_space<vmem>>, vector<1x4x128xbf16>
        %163 = vector.shape_cast %162 : vector<1x4x128xbf16> to vector<4x128xbf16>
        %164 = vector.shape_cast %160 : vector<4x128xbf16> to vector<1x4x128xbf16>
        tpu.vector_store %arg7[%161, %c48, %c0_103], %164 {strides = array<i32>} : memref<12x100x128xbf16, #tpu.memory_space<vmem>>, vector<1x4x128xbf16>,
        %c0_104 = arith.constant 0 : index
        %165 = arith.index_cast %arg8 : i32 to index
        %c0_105 = arith.constant 0 : index
        %c27 = arith.constant 27 : index
        %166 = vector.load %arg2[%c0_104, %165, %c0_105, %c27] : memref<1x12x4x256xbf16, #tpu.memory_space<vmem>>, vector<1x1x4x128xbf16>
        %167 = vector.shape_cast %166 : vector<1x1x4x128xbf16> to vector<4x128xbf16>
        %168 = arith.index_cast %arg8 : i32 to index
        %c52 = arith.constant 52 : index
        %c0_106 = arith.constant 0 : index
        %169 = vector.load %arg7[%168, %c52, %c0_106] : memref<12x100x128xbf16, #tpu.memory_space<vmem>>, vector<1x4x128xbf16>
        %170 = vector.shape_cast %169 : vector<1x4x128xbf16> to vector<4x128xbf16>
        %171 = vector.shape_cast %167 : vector<4x128xbf16> to vector<1x4x128xbf16>
        tpu.vector_store %arg7[%168, %c52, %c0_106], %171 {strides = array<i32>} : memref<12x100x128xbf16, #tpu.memory_space<vmem>>, vector<1x4x128xbf16>,
        %c0_107 = arith.constant 0 : index
        %172 = arith.index_cast %arg8 : i32 to index
        %c0_108 = arith.constant 0 : index
        %c28_109 = arith.constant 28 : index
        %173 = vector.load %arg2[%c0_107, %172, %c0_108, %c28_109] : memref<1x12x4x256xbf16, #tpu.memory_space<vmem>>, vector<1x1x4x128xbf16>
        %174 = vector.shape_cast %173 : vector<1x1x4x128xbf16> to vector<4x128xbf16>
        %175 = arith.index_cast %arg8 : i32 to index
        %c56 = arith.constant 56 : index
        %c0_110 = arith.constant 0 : index
        %176 = vector.load %arg7[%175, %c56, %c0_110] : memref<12x100x128xbf16, #tpu.memory_space<vmem>>, vector<1x4x128xbf16>
        %177 = vector.shape_cast %176 : vector<1x4x128xbf16> to vector<4x128xbf16>
        %178 = vector.shape_cast %174 : vector<4x128xbf16> to vector<1x4x128xbf16>
        tpu.vector_store %arg7[%175, %c56, %c0_110], %178 {strides = array<i32>} : memref<12x100x128xbf16, #tpu.memory_space<vmem>>, vector<1x4x128xbf16>,
        %c0_111 = arith.constant 0 : index
        %179 = arith.index_cast %arg8 : i32 to index
        %c0_112 = arith.constant 0 : index
        %c36_113 = arith.constant 36 : index
        %180 = vector.load %arg2[%c0_111, %179, %c0_112, %c36_113] : memref<1x12x4x256xbf16, #tpu.memory_space<vmem>>, vector<1x1x4x128xbf16>
        %181 = vector.shape_cast %180 : vector<1x1x4x128xbf16> to vector<4x128xbf16>
        %182 = arith.index_cast %arg8 : i32 to index
        %c60 = arith.constant 60 : index
        %c0_114 = arith.constant 0 : index
        %183 = vector.load %arg7[%182, %c60, %c0_114] : memref<12x100x128xbf16, #tpu.memory_space<vmem>>, vector<1x4x128xbf16>
        %184 = vector.shape_cast %183 : vector<1x4x128xbf16> to vector<4x128xbf16>
        %185 = vector.shape_cast %181 : vector<4x128xbf16> to vector<1x4x128xbf16>
        tpu.vector_store %arg7[%182, %c60, %c0_114], %185 {strides = array<i32>} : memref<12x100x128xbf16, #tpu.memory_space<vmem>>, vector<1x4x128xbf16>,
        %c0_115 = arith.constant 0 : index
        %186 = arith.index_cast %arg8 : i32 to index
        %c0_116 = arith.constant 0 : index
        %c37 = arith.constant 37 : index
        %187 = vector.load %arg2[%c0_115, %186, %c0_116, %c37] : memref<1x12x4x256xbf16, #tpu.memory_space<vmem>>, vector<1x1x4x128xbf16>
        %188 = vector.shape_cast %187 : vector<1x1x4x128xbf16> to vector<4x128xbf16>
        %189 = arith.index_cast %arg8 : i32 to index
        %c64 = arith.constant 64 : index
        %c0_117 = arith.constant 0 : index
        %190 = vector.load %arg7[%189, %c64, %c0_117] : memref<12x100x128xbf16, #tpu.memory_space<vmem>>, vector<1x4x128xbf16>
        %191 = vector.shape_cast %190 : vector<1x4x128xbf16> to vector<4x128xbf16>
        %192 = vector.shape_cast %188 : vector<4x128xbf16> to vector<1x4x128xbf16>
        tpu.vector_store %arg7[%189, %c64, %c0_117], %192 {strides = array<i32>} : memref<12x100x128xbf16, #tpu.memory_space<vmem>>, vector<1x4x128xbf16>,
        %c0_118 = arith.constant 0 : index
        %193 = arith.index_cast %arg8 : i32 to index
        %c0_119 = arith.constant 0 : index
        %c38 = arith.constant 38 : index
        %194 = vector.load %arg2[%c0_118, %193, %c0_119, %c38] : memref<1x12x4x256xbf16, #tpu.memory_space<vmem>>, vector<1x1x4x128xbf16>
        %195 = vector.shape_cast %194 : vector<1x1x4x128xbf16> to vector<4x128xbf16>
        %196 = arith.index_cast %arg8 : i32 to index
        %c68 = arith.constant 68 : index
        %c0_120 = arith.constant 0 : index
        %197 = vector.load %arg7[%196, %c68, %c0_120] : memref<12x100x128xbf16, #tpu.memory_space<vmem>>, vector<1x4x128xbf16>
        %198 = vector.shape_cast %197 : vector<1x4x128xbf16> to vector<4x128xbf16>
        %199 = vector.shape_cast %195 : vector<4x128xbf16> to vector<1x4x128xbf16>
        tpu.vector_store %arg7[%196, %c68, %c0_120], %199 {strides = array<i32>} : memref<12x100x128xbf16, #tpu.memory_space<vmem>>, vector<1x4x128xbf16>,
        %c0_121 = arith.constant 0 : index
        %200 = arith.index_cast %arg8 : i32 to index
        %c0_122 = arith.constant 0 : index
        %c39 = arith.constant 39 : index
        %201 = vector.load %arg2[%c0_121, %200, %c0_122, %c39] : memref<1x12x4x256xbf16, #tpu.memory_space<vmem>>, vector<1x1x4x128xbf16>
        %202 = vector.shape_cast %201 : vector<1x1x4x128xbf16> to vector<4x128xbf16>
        %203 = arith.index_cast %arg8 : i32 to index
        %c72 = arith.constant 72 : index
        %c0_123 = arith.constant 0 : index
        %204 = vector.load %arg7[%203, %c72, %c0_123] : memref<12x100x128xbf16, #tpu.memory_space<vmem>>, vector<1x4x128xbf16>
        %205 = vector.shape_cast %204 : vector<1x4x128xbf16> to vector<4x128xbf16>
        %206 = vector.shape_cast %202 : vector<4x128xbf16> to vector<1x4x128xbf16>
        tpu.vector_store %arg7[%203, %c72, %c0_123], %206 {strides = array<i32>} : memref<12x100x128xbf16, #tpu.memory_space<vmem>>, vector<1x4x128xbf16>,
        %c0_124 = arith.constant 0 : index
        %207 = arith.index_cast %arg8 : i32 to index
        %c0_125 = arith.constant 0 : index
        %c40_126 = arith.constant 40 : index
        %208 = vector.load %arg2[%c0_124, %207, %c0_125, %c40_126] : memref<1x12x4x256xbf16, #tpu.memory_space<vmem>>, vector<1x1x4x128xbf16>
        %209 = vector.shape_cast %208 : vector<1x1x4x128xbf16> to vector<4x128xbf16>
        %210 = arith.index_cast %arg8 : i32 to index
        %c76 = arith.constant 76 : index
        %c0_127 = arith.constant 0 : index
        %211 = vector.load %arg7[%210, %c76, %c0_127] : memref<12x100x128xbf16, #tpu.memory_space<vmem>>, vector<1x4x128xbf16>
        %212 = vector.shape_cast %211 : vector<1x4x128xbf16> to vector<4x128xbf16>
        %213 = vector.shape_cast %209 : vector<4x128xbf16> to vector<1x4x128xbf16>
        tpu.vector_store %arg7[%210, %c76, %c0_127], %213 {strides = array<i32>} : memref<12x100x128xbf16, #tpu.memory_space<vmem>>, vector<1x4x128xbf16>,
        %c0_128 = arith.constant 0 : index
        %214 = arith.index_cast %arg8 : i32 to index
        %c0_129 = arith.constant 0 : index
        %c48_130 = arith.constant 48 : index
        %215 = vector.load %arg2[%c0_128, %214, %c0_129, %c48_130] : memref<1x12x4x256xbf16, #tpu.memory_space<vmem>>, vector<1x1x4x128xbf16>
        %216 = vector.shape_cast %215 : vector<1x1x4x128xbf16> to vector<4x128xbf16>
        %217 = arith.index_cast %arg8 : i32 to index
        %c80 = arith.constant 80 : index
        %c0_131 = arith.constant 0 : index
        %218 = vector.load %arg7[%217, %c80, %c0_131] : memref<12x100x128xbf16, #tpu.memory_space<vmem>>, vector<1x4x128xbf16>
        %219 = vector.shape_cast %218 : vector<1x4x128xbf16> to vector<4x128xbf16>
        %220 = vector.shape_cast %216 : vector<4x128xbf16> to vector<1x4x128xbf16>
        tpu.vector_store %arg7[%217, %c80, %c0_131], %220 {strides = array<i32>} : memref<12x100x128xbf16, #tpu.memory_space<vmem>>, vector<1x4x128xbf16>,
        %c0_132 = arith.constant 0 : index
        %221 = arith.index_cast %arg8 : i32 to index
        %c0_133 = arith.constant 0 : index
        %c49 = arith.constant 49 : index
        %222 = vector.load %arg2[%c0_132, %221, %c0_133, %c49] : memref<1x12x4x256xbf16, #tpu.memory_space<vmem>>, vector<1x1x4x128xbf16>
        %223 = vector.shape_cast %222 : vector<1x1x4x128xbf16> to vector<4x128xbf16>
        %224 = arith.index_cast %arg8 : i32 to index
        %c84 = arith.constant 84 : index
        %c0_134 = arith.constant 0 : index
        %225 = vector.load %arg7[%224, %c84, %c0_134] : memref<12x100x128xbf16, #tpu.memory_space<vmem>>, vector<1x4x128xbf16>
        %226 = vector.shape_cast %225 : vector<1x4x128xbf16> to vector<4x128xbf16>
        %227 = vector.shape_cast %223 : vector<4x128xbf16> to vector<1x4x128xbf16>
        tpu.vector_store %arg7[%224, %c84, %c0_134], %227 {strides = array<i32>} : memref<12x100x128xbf16, #tpu.memory_space<vmem>>, vector<1x4x128xbf16>,
        %c0_135 = arith.constant 0 : index
        %228 = arith.index_cast %arg8 : i32 to index
        %c0_136 = arith.constant 0 : index
        %c50 = arith.constant 50 : index
        %229 = vector.load %arg2[%c0_135, %228, %c0_136, %c50] : memref<1x12x4x256xbf16, #tpu.memory_space<vmem>>, vector<1x1x4x128xbf16>
        %230 = vector.shape_cast %229 : vector<1x1x4x128xbf16> to vector<4x128xbf16>
        %231 = arith.index_cast %arg8 : i32 to index
        %c88 = arith.constant 88 : index
        %c0_137 = arith.constant 0 : index
        %232 = vector.load %arg7[%231, %c88, %c0_137] : memref<12x100x128xbf16, #tpu.memory_space<vmem>>, vector<1x4x128xbf16>
        %233 = vector.shape_cast %232 : vector<1x4x128xbf16> to vector<4x128xbf16>
        %234 = vector.shape_cast %230 : vector<4x128xbf16> to vector<1x4x128xbf16>
        tpu.vector_store %arg7[%231, %c88, %c0_137], %234 {strides = array<i32>} : memref<12x100x128xbf16, #tpu.memory_space<vmem>>, vector<1x4x128xbf16>,
        %c0_138 = arith.constant 0 : index
        %235 = arith.index_cast %arg8 : i32 to index
        %c0_139 = arith.constant 0 : index
        %c51 = arith.constant 51 : index
        %236 = vector.load %arg2[%c0_138, %235, %c0_139, %c51] : memref<1x12x4x256xbf16, #tpu.memory_space<vmem>>, vector<1x1x4x128xbf16>
        %237 = vector.shape_cast %236 : vector<1x1x4x128xbf16> to vector<4x128xbf16>
        %238 = arith.index_cast %arg8 : i32 to index
        %c92 = arith.constant 92 : index
        %c0_140 = arith.constant 0 : index
        %239 = vector.load %arg7[%238, %c92, %c0_140] : memref<12x100x128xbf16, #tpu.memory_space<vmem>>, vector<1x4x128xbf16>
        %240 = vector.shape_cast %239 : vector<1x4x128xbf16> to vector<4x128xbf16>
        %241 = vector.shape_cast %237 : vector<4x128xbf16> to vector<1x4x128xbf16>
        tpu.vector_store %arg7[%238, %c92, %c0_140], %241 {strides = array<i32>} : memref<12x100x128xbf16, #tpu.memory_space<vmem>>, vector<1x4x128xbf16>,
        %c0_141 = arith.constant 0 : index
        %242 = arith.index_cast %arg8 : i32 to index
        %c0_142 = arith.constant 0 : index
        %c52_143 = arith.constant 52 : index
        %243 = vector.load %arg2[%c0_141, %242, %c0_142, %c52_143] : memref<1x12x4x256xbf16, #tpu.memory_space<vmem>>, vector<1x1x4x128xbf16>
        %244 = vector.shape_cast %243 : vector<1x1x4x128xbf16> to vector<4x128xbf16>
        %245 = arith.index_cast %arg8 : i32 to index
        %c96 = arith.constant 96 : index
        %c0_144 = arith.constant 0 : index
        %246 = vector.load %arg7[%245, %c96, %c0_144] : memref<12x100x128xbf16, #tpu.memory_space<vmem>>, vector<1x4x128xbf16>
        %247 = vector.shape_cast %246 : vector<1x4x128xbf16> to vector<4x128xbf16>
        %248 = vector.shape_cast %244 : vector<4x128xbf16> to vector<1x4x128xbf16>
        tpu.vector_store %arg7[%245, %c96, %c0_144], %248 {strides = array<i32>} : memref<12x100x128xbf16, #tpu.memory_space<vmem>>, vector<1x4x128xbf16>,
      }
      %c12_i32_54 = arith.constant 12 : i32
    } else {
    }
    %c0 = arith.constant 0 : index
    %c0_1 = arith.constant 0 : index
    %3 = vector.load %arg5[%c0, %c0_1] : memref<1x128xf32, #tpu.memory_space<vmem>>, vector<1x128xf32>
    %cst = arith.constant 5.000000e-01 : f32
    %4 = vector.broadcast %cst : f32 to vector<1x128xf32>
    %5 = arith.cmpf ogt, %3, %4 : vector<1x128xf32>
    %c0_2 = arith.constant 0 : index
    %c0_3 = arith.constant 0 : index
    %6 = vector.load %arg4[%c0_2, %c0_3] : memref<4x1xf32, #tpu.memory_space<vmem>>, vector<4x1xf32>
    %c6_i32 = arith.constant 6 : i32
    %7 = arith.muli %arg1, %c6_i32 : i32
    %c0_i32_4 = arith.constant 0 : i32
    %8 = arith.addi %7, %c0_i32_4 : i32
    %c2_i32 = arith.constant 2 : i32
    %9 = arith.cmpi sge, %8, %c2_i32 : i32
    %c10_i32 = arith.constant 10 : i32
    %10 = arith.cmpi slt, %8, %c10_i32 : i32
    %11 = arith.andi %9, %10 : i1
    %cst_5 = arith.constant 0.000000e+00 : bf16
    %12 = vector.broadcast %cst_5 : bf16 to vector<4x256xbf16>
    %c0_6 = arith.constant 0 : index
    %c0_7 = arith.constant 0 : index
    %c0_8 = arith.constant 0 : index
    %c0_9 = arith.constant 0 : index
    %13 = vector.load %arg6[%c0_6, %c0_7, %c0_8, %c0_9] : memref<1x6x4x256xbf16, #tpu.memory_space<vmem>>, vector<1x1x4x256xbf16>
    %14 = vector.shape_cast %13 : vector<1x1x4x256xbf16> to vector<4x256xbf16>
    %15 = vector.shape_cast %12 : vector<4x256xbf16> to vector<1x1x4x256xbf16>
    tpu.vector_store %arg6[%c0_6, %c0_7, %c0_8, %c0_9], %15 {strides = array<i32>} : memref<1x6x4x256xbf16, #tpu.memory_space<vmem>>, vector<1x1x4x256xbf16>,
    %16 = arith.extui %11 : i1 to i32
    %c0_i32_10 = arith.constant 0 : i32
    %17 = arith.cmpi ne, %16, %c0_i32_10 : i32
    scf.if %17 {
      %c2_i32_52 = arith.constant 2 : i32
      %73 = arith.subi %8, %c2_i32_52 : i32
      %cst_53 = arith.constant 0.000000e+00 : f32
      %74 = vector.broadcast %cst_53 : f32 to vector<4x128xf32>
      %c0_54 = arith.constant 0 : index
      %c0_55 = arith.constant 0 : index
      %c0_56 = arith.constant 0 : index
      %75 = vector.load %arg3[%c0_54, %c0_55, %c0_56] : memref<5x4x100xbf16, #tpu.memory_space<vmem>>, vector<1x4x100xbf16>
      %76 = vector.shape_cast %75 : vector<1x4x100xbf16> to vector<4x100xbf16>
      %c0_i32_57 = arith.constant 0 : i32
      %77 = arith.addi %73, %c0_i32_57 : i32
      %78 = arith.index_cast %77 : i32 to index
      %c0_58 = arith.constant 0 : index
      %c0_59 = arith.constant 0 : index
      %79 = vector.load %arg7[%78, %c0_58, %c0_59] : memref<12x100x128xbf16, #tpu.memory_space<vmem>>, vector<1x100x128xbf16>
      %80 = vector.shape_cast %79 : vector<1x100x128xbf16> to vector<100x128xbf16>
      %cst_60 = arith.constant dense<0.000000e+00> : vector<4x128xf32>
      %81 = tpu.matmul %76, %80, %cst_60 {dimension_numbers = #tpu.dot_dimension_numbers<[1], [0], [0], [1], [0, 0, 1, 1], [], []>} : vector<4x100xbf16>, vector<100x128xbf16>, vector<4x128xf32> -> vector<4x128xf32>
      %82 = arith.addf %74, %81 : vector<4x128xf32>
      %c1_61 = arith.constant 1 : index
      %c0_62 = arith.constant 0 : index
      %c0_63 = arith.constant 0 : index
      %83 = vector.load %arg3[%c1_61, %c0_62, %c0_63] : memref<5x4x100xbf16, #tpu.memory_space<vmem>>, vector<1x4x100xbf16>
      %84 = vector.shape_cast %83 : vector<1x4x100xbf16> to vector<4x100xbf16>
      %c1_i32_64 = arith.constant 1 : i32
      %85 = arith.addi %73, %c1_i32_64 : i32
      %86 = arith.index_cast %85 : i32 to index
      %c0_65 = arith.constant 0 : index
      %c0_66 = arith.constant 0 : index
      %87 = vector.load %arg7[%86, %c0_65, %c0_66] : memref<12x100x128xbf16, #tpu.memory_space<vmem>>, vector<1x100x128xbf16>
      %88 = vector.shape_cast %87 : vector<1x100x128xbf16> to vector<100x128xbf16>
      %cst_67 = arith.constant dense<0.000000e+00> : vector<4x128xf32>
      %89 = tpu.matmul %84, %88, %cst_67 {dimension_numbers = #tpu.dot_dimension_numbers<[1], [0], [0], [1], [0, 0, 1, 1], [], []>} : vector<4x100xbf16>, vector<100x128xbf16>, vector<4x128xf32> -> vector<4x128xf32>
      %90 = arith.addf %82, %89 : vector<4x128xf32>
      %c2_68 = arith.constant 2 : index
      %c0_69 = arith.constant 0 : index
      %c0_70 = arith.constant 0 : index
      %91 = vector.load %arg3[%c2_68, %c0_69, %c0_70] : memref<5x4x100xbf16, #tpu.memory_space<vmem>>, vector<1x4x100xbf16>
      %92 = vector.shape_cast %91 : vector<1x4x100xbf16> to vector<4x100xbf16>
      %c2_i32_71 = arith.constant 2 : i32
      %93 = arith.addi %73, %c2_i32_71 : i32
      %94 = arith.index_cast %93 : i32 to index
      %c0_72 = arith.constant 0 : index
      %c0_73 = arith.constant 0 : index
      %95 = vector.load %arg7[%94, %c0_72, %c0_73] : memref<12x100x128xbf16, #tpu.memory_space<vmem>>, vector<1x100x128xbf16>
      %96 = vector.shape_cast %95 : vector<1x100x128xbf16> to vector<100x128xbf16>
      %cst_74 = arith.constant dense<0.000000e+00> : vector<4x128xf32>
      %97 = tpu.matmul %92, %96, %cst_74 {dimension_numbers = #tpu.dot_dimension_numbers<[1], [0], [0], [1], [0, 0, 1, 1], [], []>} : vector<4x100xbf16>, vector<100x128xbf16>, vector<4x128xf32> -> vector<4x128xf32>
      %98 = arith.addf %90, %97 : vector<4x128xf32>
      %c3_75 = arith.constant 3 : index
      %c0_76 = arith.constant 0 : index
      %c0_77 = arith.constant 0 : index
      %99 = vector.load %arg3[%c3_75, %c0_76, %c0_77] : memref<5x4x100xbf16, #tpu.memory_space<vmem>>, vector<1x4x100xbf16>
      %100 = vector.shape_cast %99 : vector<1x4x100xbf16> to vector<4x100xbf16>
      %c3_i32_78 = arith.constant 3 : i32
      %101 = arith.addi %73, %c3_i32_78 : i32
      %102 = arith.index_cast %101 : i32 to index
      %c0_79 = arith.constant 0 : index
      %c0_80 = arith.constant 0 : index
      %103 = vector.load %arg7[%102, %c0_79, %c0_80] : memref<12x100x128xbf16, #tpu.memory_space<vmem>>, vector<1x100x128xbf16>
      %104 = vector.shape_cast %103 : vector<1x100x128xbf16> to vector<100x128xbf16>
      %cst_81 = arith.constant dense<0.000000e+00> : vector<4x128xf32>
      %105 = tpu.matmul %100, %104, %cst_81 {dimension_numbers = #tpu.dot_dimension_numbers<[1], [0], [0], [1], [0, 0, 1, 1], [], []>} : vector<4x100xbf16>, vector<100x128xbf16>, vector<4x128xf32> -> vector<4x128xf32>
      %106 = arith.addf %98, %105 : vector<4x128xf32>
      %c4_82 = arith.constant 4 : index
      %c0_83 = arith.constant 0 : index
      %c0_84 = arith.constant 0 : index
      %107 = vector.load %arg3[%c4_82, %c0_83, %c0_84] : memref<5x4x100xbf16, #tpu.memory_space<vmem>>, vector<1x4x100xbf16>
      %108 = vector.shape_cast %107 : vector<1x4x100xbf16> to vector<4x100xbf16>
      %c4_i32_85 = arith.constant 4 : i32
      %109 = arith.addi %73, %c4_i32_85 : i32
      %110 = arith.index_cast %109 : i32 to index
      %c0_86 = arith.constant 0 : index
      %c0_87 = arith.constant 0 : index
      %111 = vector.load %arg7[%110, %c0_86, %c0_87] : memref<12x100x128xbf16, #tpu.memory_space<vmem>>, vector<1x100x128xbf16>
      %112 = vector.shape_cast %111 : vector<1x100x128xbf16> to vector<100x128xbf16>
      %cst_88 = arith.constant dense<0.000000e+00> : vector<4x128xf32>
      %113 = tpu.matmul %108, %112, %cst_88 {dimension_numbers = #tpu.dot_dimension_numbers<[1], [0], [0], [1], [0, 0, 1, 1], [], []>} : vector<4x100xbf16>, vector<100x128xbf16>, vector<4x128xf32> -> vector<4x128xf32>
      %114 = arith.addf %106, %113 : vector<4x128xf32>
      %115 = vector.broadcast %6 : vector<4x1xf32> to vector<4x128xf32>
      %116 = arith.addf %114, %115 : vector<4x128xf32>
      %cst_89 = arith.constant 0.000000e+00 : f32
      %117 = vector.broadcast %cst_89 : f32 to vector<4x128xf32>
      %118 = arith.cmpf oge, %116, %117 : vector<4x128xf32>
      %cst_90 = arith.constant 1.000000e-01 : f32
      %119 = vector.broadcast %cst_90 : f32 to vector<4x128xf32>
      %120 = arith.mulf %119, %116 : vector<4x128xf32>
      %121 = arith.select %118, %116, %120 : vector<4x128xi1>, vector<4x128xf32>
      %c0_91 = arith.constant 0 : index
      %122 = arith.index_cast %8 : i32 to index
      %c0_92 = arith.constant 0 : index
      %c26 = arith.constant 26 : index
      %123 = vector.load %arg2[%c0_91, %122, %c0_92, %c26] : memref<1x12x4x256xbf16, #tpu.memory_space<vmem>>, vector<1x1x4x128xbf16>
      %124 = vector.shape_cast %123 : vector<1x1x4x128xbf16> to vector<4x128xbf16>
      %125 = arith.extf %124 : vector<4x128xbf16> to vector<4x128xf32>
      %126 = arith.addf %121, %125 : vector<4x128xf32>
      %cst_93 = arith.constant 0.000000e+00 : f32
      %127 = vector.shape_cast %5 : vector<1x128xi1> to vector<1x128xi1>
      %128 = vector.broadcast %127 : vector<1x128xi1> to vector<4x128xi1>
      %129 = vector.broadcast %cst_93 : f32 to vector<4x128xf32>
      %130 = arith.select %128, %126, %129 : vector<4x128xi1>, vector<4x128xf32>
      %131 = arith.truncf %130 : vector<4x128xf32> to vector<4x128xbf16>
      %c0_94 = arith.constant 0 : index
      %c0_95 = arith.constant 0 : index
      %c0_96 = arith.constant 0 : index
      %c26_97 = arith.constant 26 : index
      %132 = vector.load %arg6[%c0_94, %c0_95, %c0_96, %c26_97] : memref<1x6x4x256xbf16, #tpu.memory_space<vmem>>, vector<1x1x4x128xbf16>
      %133 = vector.shape_cast %132 : vector<1x1x4x128xbf16> to vector<4x128xbf16>
      %134 = vector.shape_cast %131 : vector<4x128xbf16> to vector<1x1x4x128xbf16>
      tpu.vector_store %arg6[%c0_94, %c0_95, %c0_96, %c26_97], %134 {strides = array<i32>} : memref<1x6x4x256xbf16, #tpu.memory_space<vmem>>, vector<1x1x4x128xbf16>,
    } else {
    }
    %c6_i32_11 = arith.constant 6 : i32
    %18 = arith.muli %arg1, %c6_i32_11 : i32
    %c1_i32 = arith.constant 1 : i32
    %19 = arith.addi %18, %c1_i32 : i32
    %c2_i32_12 = arith.constant 2 : i32
    %20 = arith.cmpi sge, %19, %c2_i32_12 : i32
    %c10_i32_13 = arith.constant 10 : i32
    %21 = arith.cmpi slt, %19, %c10_i32_13 : i32
    %22 = arith.andi %20, %21 : i1
    %cst_14 = arith.constant 0.000000e+00 : bf16
    %23 = vector.broadcast %cst_14 : bf16 to vector<4x256xbf16>
    %c0_15 = arith.constant 0 : index
    %c1 = arith.constant 1 : index
    %c0_16 = arith.constant 0 : index
    %c0_17 = arith.constant 0 : index
    %24 = vector.load %arg6[%c0_15, %c1, %c0_16, %c0_17] : memref<1x6x4x256xbf16, #tpu.memory_space<vmem>>, vector<1x1x4x256xbf16>
    %25 = vector.shape_cast %24 : vector<1x1x4x256xbf16> to vector<4x256xbf16>
    %26 = vector.shape_cast %23 : vector<4x256xbf16> to vector<1x1x4x256xbf16>
    tpu.vector_store %arg6[%c0_15, %c1, %c0_16, %c0_17], %26 {strides = array<i32>} : memref<1x6x4x256xbf16, #tpu.memory_space<vmem>>, vector<1x1x4x256xbf16>,
    %27 = arith.extui %22 : i1 to i32
    %c0_i32_18 = arith.constant 0 : i32
    %28 = arith.cmpi ne, %27, %c0_i32_18 : i32
    scf.if %28 {
      %c2_i32_52 = arith.constant 2 : i32
      %73 = arith.subi %19, %c2_i32_52 : i32
      %cst_53 = arith.constant 0.000000e+00 : f32
      %74 = vector.broadcast %cst_53 : f32 to vector<4x128xf32>
      %c0_54 = arith.constant 0 : index
      %c0_55 = arith.constant 0 : index
      %c0_56 = arith.constant 0 : index
      %75 = vector.load %arg3[%c0_54, %c0_55, %c0_56] : memref<5x4x100xbf16, #tpu.memory_space<vmem>>, vector<1x4x100xbf16>
      %76 = vector.shape_cast %75 : vector<1x4x100xbf16> to vector<4x100xbf16>
      %c0_i32_57 = arith.constant 0 : i32
      %77 = arith.addi %73, %c0_i32_57 : i32
      %78 = arith.index_cast %77 : i32 to index
      %c0_58 = arith.constant 0 : index
      %c0_59 = arith.constant 0 : index
      %79 = vector.load %arg7[%78, %c0_58, %c0_59] : memref<12x100x128xbf16, #tpu.memory_space<vmem>>, vector<1x100x128xbf16>
      %80 = vector.shape_cast %79 : vector<1x100x128xbf16> to vector<100x128xbf16>
      %cst_60 = arith.constant dense<0.000000e+00> : vector<4x128xf32>
      %81 = tpu.matmul %76, %80, %cst_60 {dimension_numbers = #tpu.dot_dimension_numbers<[1], [0], [0], [1], [0, 0, 1, 1], [], []>} : vector<4x100xbf16>, vector<100x128xbf16>, vector<4x128xf32> -> vector<4x128xf32>
      %82 = arith.addf %74, %81 : vector<4x128xf32>
      %c1_61 = arith.constant 1 : index
      %c0_62 = arith.constant 0 : index
      %c0_63 = arith.constant 0 : index
      %83 = vector.load %arg3[%c1_61, %c0_62, %c0_63] : memref<5x4x100xbf16, #tpu.memory_space<vmem>>, vector<1x4x100xbf16>
      %84 = vector.shape_cast %83 : vector<1x4x100xbf16> to vector<4x100xbf16>
      %c1_i32_64 = arith.constant 1 : i32
      %85 = arith.addi %73, %c1_i32_64 : i32
      %86 = arith.index_cast %85 : i32 to index
      %c0_65 = arith.constant 0 : index
      %c0_66 = arith.constant 0 : index
      %87 = vector.load %arg7[%86, %c0_65, %c0_66] : memref<12x100x128xbf16, #tpu.memory_space<vmem>>, vector<1x100x128xbf16>
      %88 = vector.shape_cast %87 : vector<1x100x128xbf16> to vector<100x128xbf16>
      %cst_67 = arith.constant dense<0.000000e+00> : vector<4x128xf32>
      %89 = tpu.matmul %84, %88, %cst_67 {dimension_numbers = #tpu.dot_dimension_numbers<[1], [0], [0], [1], [0, 0, 1, 1], [], []>} : vector<4x100xbf16>, vector<100x128xbf16>, vector<4x128xf32> -> vector<4x128xf32>
      %90 = arith.addf %82, %89 : vector<4x128xf32>
      %c2_68 = arith.constant 2 : index
      %c0_69 = arith.constant 0 : index
      %c0_70 = arith.constant 0 : index
      %91 = vector.load %arg3[%c2_68, %c0_69, %c0_70] : memref<5x4x100xbf16, #tpu.memory_space<vmem>>, vector<1x4x100xbf16>
      %92 = vector.shape_cast %91 : vector<1x4x100xbf16> to vector<4x100xbf16>
      %c2_i32_71 = arith.constant 2 : i32
      %93 = arith.addi %73, %c2_i32_71 : i32
      %94 = arith.index_cast %93 : i32 to index
      %c0_72 = arith.constant 0 : index
      %c0_73 = arith.constant 0 : index
      %95 = vector.load %arg7[%94, %c0_72, %c0_73] : memref<12x100x128xbf16, #tpu.memory_space<vmem>>, vector<1x100x128xbf16>
      %96 = vector.shape_cast %95 : vector<1x100x128xbf16> to vector<100x128xbf16>
      %cst_74 = arith.constant dense<0.000000e+00> : vector<4x128xf32>
      %97 = tpu.matmul %92, %96, %cst_74 {dimension_numbers = #tpu.dot_dimension_numbers<[1], [0], [0], [1], [0, 0, 1, 1], [], []>} : vector<4x100xbf16>, vector<100x128xbf16>, vector<4x128xf32> -> vector<4x128xf32>
      %98 = arith.addf %90, %97 : vector<4x128xf32>
      %c3_75 = arith.constant 3 : index
      %c0_76 = arith.constant 0 : index
      %c0_77 = arith.constant 0 : index
      %99 = vector.load %arg3[%c3_75, %c0_76, %c0_77] : memref<5x4x100xbf16, #tpu.memory_space<vmem>>, vector<1x4x100xbf16>
      %100 = vector.shape_cast %99 : vector<1x4x100xbf16> to vector<4x100xbf16>
      %c3_i32_78 = arith.constant 3 : i32
      %101 = arith.addi %73, %c3_i32_78 : i32
      %102 = arith.index_cast %101 : i32 to index
      %c0_79 = arith.constant 0 : index
      %c0_80 = arith.constant 0 : index
      %103 = vector.load %arg7[%102, %c0_79, %c0_80] : memref<12x100x128xbf16, #tpu.memory_space<vmem>>, vector<1x100x128xbf16>
      %104 = vector.shape_cast %103 : vector<1x100x128xbf16> to vector<100x128xbf16>
      %cst_81 = arith.constant dense<0.000000e+00> : vector<4x128xf32>
      %105 = tpu.matmul %100, %104, %cst_81 {dimension_numbers = #tpu.dot_dimension_numbers<[1], [0], [0], [1], [0, 0, 1, 1], [], []>} : vector<4x100xbf16>, vector<100x128xbf16>, vector<4x128xf32> -> vector<4x128xf32>
      %106 = arith.addf %98, %105 : vector<4x128xf32>
      %c4_82 = arith.constant 4 : index
      %c0_83 = arith.constant 0 : index
      %c0_84 = arith.constant 0 : index
      %107 = vector.load %arg3[%c4_82, %c0_83, %c0_84] : memref<5x4x100xbf16, #tpu.memory_space<vmem>>, vector<1x4x100xbf16>
      %108 = vector.shape_cast %107 : vector<1x4x100xbf16> to vector<4x100xbf16>
      %c4_i32_85 = arith.constant 4 : i32
      %109 = arith.addi %73, %c4_i32_85 : i32
      %110 = arith.index_cast %109 : i32 to index
      %c0_86 = arith.constant 0 : index
      %c0_87 = arith.constant 0 : index
      %111 = vector.load %arg7[%110, %c0_86, %c0_87] : memref<12x100x128xbf16, #tpu.memory_space<vmem>>, vector<1x100x128xbf16>
      %112 = vector.shape_cast %111 : vector<1x100x128xbf16> to vector<100x128xbf16>
      %cst_88 = arith.constant dense<0.000000e+00> : vector<4x128xf32>
      %113 = tpu.matmul %108, %112, %cst_88 {dimension_numbers = #tpu.dot_dimension_numbers<[1], [0], [0], [1], [0, 0, 1, 1], [], []>} : vector<4x100xbf16>, vector<100x128xbf16>, vector<4x128xf32> -> vector<4x128xf32>
      %114 = arith.addf %106, %113 : vector<4x128xf32>
      %115 = vector.broadcast %6 : vector<4x1xf32> to vector<4x128xf32>
      %116 = arith.addf %114, %115 : vector<4x128xf32>
      %cst_89 = arith.constant 0.000000e+00 : f32
      %117 = vector.broadcast %cst_89 : f32 to vector<4x128xf32>
      %118 = arith.cmpf oge, %116, %117 : vector<4x128xf32>
      %cst_90 = arith.constant 1.000000e-01 : f32
      %119 = vector.broadcast %cst_90 : f32 to vector<4x128xf32>
      %120 = arith.mulf %119, %116 : vector<4x128xf32>
      %121 = arith.select %118, %116, %120 : vector<4x128xi1>, vector<4x128xf32>
      %c0_91 = arith.constant 0 : index
      %122 = arith.index_cast %19 : i32 to index
      %c0_92 = arith.constant 0 : index
      %c26 = arith.constant 26 : index
      %123 = vector.load %arg2[%c0_91, %122, %c0_92, %c26] : memref<1x12x4x256xbf16, #tpu.memory_space<vmem>>, vector<1x1x4x128xbf16>
      %124 = vector.shape_cast %123 : vector<1x1x4x128xbf16> to vector<4x128xbf16>
      %125 = arith.extf %124 : vector<4x128xbf16> to vector<4x128xf32>
      %126 = arith.addf %121, %125 : vector<4x128xf32>
      %cst_93 = arith.constant 0.000000e+00 : f32
      %127 = vector.shape_cast %5 : vector<1x128xi1> to vector<1x128xi1>
      %128 = vector.broadcast %127 : vector<1x128xi1> to vector<4x128xi1>
      %129 = vector.broadcast %cst_93 : f32 to vector<4x128xf32>
      %130 = arith.select %128, %126, %129 : vector<4x128xi1>, vector<4x128xf32>
      %131 = arith.truncf %130 : vector<4x128xf32> to vector<4x128xbf16>
      %c0_94 = arith.constant 0 : index
      %c1_95 = arith.constant 1 : index
      %c0_96 = arith.constant 0 : index
      %c26_97 = arith.constant 26 : index
      %132 = vector.load %arg6[%c0_94, %c1_95, %c0_96, %c26_97] : memref<1x6x4x256xbf16, #tpu.memory_space<vmem>>, vector<1x1x4x128xbf16>
      %133 = vector.shape_cast %132 : vector<1x1x4x128xbf16> to vector<4x128xbf16>
      %134 = vector.shape_cast %131 : vector<4x128xbf16> to vector<1x1x4x128xbf16>
      tpu.vector_store %arg6[%c0_94, %c1_95, %c0_96, %c26_97], %134 {strides = array<i32>} : memref<1x6x4x256xbf16, #tpu.memory_space<vmem>>, vector<1x1x4x128xbf16>,
    } else {
    }
    %c6_i32_19 = arith.constant 6 : i32
    %29 = arith.muli %arg1, %c6_i32_19 : i32
    %c2_i32_20 = arith.constant 2 : i32
    %30 = arith.addi %29, %c2_i32_20 : i32
    %c2_i32_21 = arith.constant 2 : i32
    %31 = arith.cmpi sge, %30, %c2_i32_21 : i32
    %c10_i32_22 = arith.constant 10 : i32
    %32 = arith.cmpi slt, %30, %c10_i32_22 : i32
    %33 = arith.andi %31, %32 : i1
    %cst_23 = arith.constant 0.000000e+00 : bf16
    %34 = vector.broadcast %cst_23 : bf16 to vector<4x256xbf16>
    %c0_24 = arith.constant 0 : index
    %c2 = arith.constant 2 : index
    %c0_25 = arith.constant 0 : index
    %c0_26 = arith.constant 0 : index
    %35 = vector.load %arg6[%c0_24, %c2, %c0_25, %c0_26] : memref<1x6x4x256xbf16, #tpu.memory_space<vmem>>, vector<1x1x4x256xbf16>
    %36 = vector.shape_cast %35 : vector<1x1x4x256xbf16> to vector<4x256xbf16>
    %37 = vector.shape_cast %34 : vector<4x256xbf16> to vector<1x1x4x256xbf16>
    tpu.vector_store %arg6[%c0_24, %c2, %c0_25, %c0_26], %37 {strides = array<i32>} : memref<1x6x4x256xbf16, #tpu.memory_space<vmem>>, vector<1x1x4x256xbf16>,
    %38 = arith.extui %33 : i1 to i32
    %c0_i32_27 = arith.constant 0 : i32
    %39 = arith.cmpi ne, %38, %c0_i32_27 : i32
    scf.if %39 {
      %c2_i32_52 = arith.constant 2 : i32
      %73 = arith.subi %30, %c2_i32_52 : i32
      %cst_53 = arith.constant 0.000000e+00 : f32
      %74 = vector.broadcast %cst_53 : f32 to vector<4x128xf32>
      %c0_54 = arith.constant 0 : index
      %c0_55 = arith.constant 0 : index
      %c0_56 = arith.constant 0 : index
      %75 = vector.load %arg3[%c0_54, %c0_55, %c0_56] : memref<5x4x100xbf16, #tpu.memory_space<vmem>>, vector<1x4x100xbf16>
      %76 = vector.shape_cast %75 : vector<1x4x100xbf16> to vector<4x100xbf16>
      %c0_i32_57 = arith.constant 0 : i32
      %77 = arith.addi %73, %c0_i32_57 : i32
      %78 = arith.index_cast %77 : i32 to index
      %c0_58 = arith.constant 0 : index
      %c0_59 = arith.constant 0 : index
      %79 = vector.load %arg7[%78, %c0_58, %c0_59] : memref<12x100x128xbf16, #tpu.memory_space<vmem>>, vector<1x100x128xbf16>
      %80 = vector.shape_cast %79 : vector<1x100x128xbf16> to vector<100x128xbf16>
      %cst_60 = arith.constant dense<0.000000e+00> : vector<4x128xf32>
      %81 = tpu.matmul %76, %80, %cst_60 {dimension_numbers = #tpu.dot_dimension_numbers<[1], [0], [0], [1], [0, 0, 1, 1], [], []>} : vector<4x100xbf16>, vector<100x128xbf16>, vector<4x128xf32> -> vector<4x128xf32>
      %82 = arith.addf %74, %81 : vector<4x128xf32>
      %c1_61 = arith.constant 1 : index
      %c0_62 = arith.constant 0 : index
      %c0_63 = arith.constant 0 : index
      %83 = vector.load %arg3[%c1_61, %c0_62, %c0_63] : memref<5x4x100xbf16, #tpu.memory_space<vmem>>, vector<1x4x100xbf16>
      %84 = vector.shape_cast %83 : vector<1x4x100xbf16> to vector<4x100xbf16>
      %c1_i32_64 = arith.constant 1 : i32
      %85 = arith.addi %73, %c1_i32_64 : i32
      %86 = arith.index_cast %85 : i32 to index
      %c0_65 = arith.constant 0 : index
      %c0_66 = arith.constant 0 : index
      %87 = vector.load %arg7[%86, %c0_65, %c0_66] : memref<12x100x128xbf16, #tpu.memory_space<vmem>>, vector<1x100x128xbf16>
      %88 = vector.shape_cast %87 : vector<1x100x128xbf16> to vector<100x128xbf16>
      %cst_67 = arith.constant dense<0.000000e+00> : vector<4x128xf32>
      %89 = tpu.matmul %84, %88, %cst_67 {dimension_numbers = #tpu.dot_dimension_numbers<[1], [0], [0], [1], [0, 0, 1, 1], [], []>} : vector<4x100xbf16>, vector<100x128xbf16>, vector<4x128xf32> -> vector<4x128xf32>
      %90 = arith.addf %82, %89 : vector<4x128xf32>
      %c2_68 = arith.constant 2 : index
      %c0_69 = arith.constant 0 : index
      %c0_70 = arith.constant 0 : index
      %91 = vector.load %arg3[%c2_68, %c0_69, %c0_70] : memref<5x4x100xbf16, #tpu.memory_space<vmem>>, vector<1x4x100xbf16>
      %92 = vector.shape_cast %91 : vector<1x4x100xbf16> to vector<4x100xbf16>
      %c2_i32_71 = arith.constant 2 : i32
      %93 = arith.addi %73, %c2_i32_71 : i32
      %94 = arith.index_cast %93 : i32 to index
      %c0_72 = arith.constant 0 : index
      %c0_73 = arith.constant 0 : index
      %95 = vector.load %arg7[%94, %c0_72, %c0_73] : memref<12x100x128xbf16, #tpu.memory_space<vmem>>, vector<1x100x128xbf16>
      %96 = vector.shape_cast %95 : vector<1x100x128xbf16> to vector<100x128xbf16>
      %cst_74 = arith.constant dense<0.000000e+00> : vector<4x128xf32>
      %97 = tpu.matmul %92, %96, %cst_74 {dimension_numbers = #tpu.dot_dimension_numbers<[1], [0], [0], [1], [0, 0, 1, 1], [], []>} : vector<4x100xbf16>, vector<100x128xbf16>, vector<4x128xf32> -> vector<4x128xf32>
      %98 = arith.addf %90, %97 : vector<4x128xf32>
      %c3_75 = arith.constant 3 : index
      %c0_76 = arith.constant 0 : index
      %c0_77 = arith.constant 0 : index
      %99 = vector.load %arg3[%c3_75, %c0_76, %c0_77] : memref<5x4x100xbf16, #tpu.memory_space<vmem>>, vector<1x4x100xbf16>
      %100 = vector.shape_cast %99 : vector<1x4x100xbf16> to vector<4x100xbf16>
      %c3_i32_78 = arith.constant 3 : i32
      %101 = arith.addi %73, %c3_i32_78 : i32
      %102 = arith.index_cast %101 : i32 to index
      %c0_79 = arith.constant 0 : index
      %c0_80 = arith.constant 0 : index
      %103 = vector.load %arg7[%102, %c0_79, %c0_80] : memref<12x100x128xbf16, #tpu.memory_space<vmem>>, vector<1x100x128xbf16>
      %104 = vector.shape_cast %103 : vector<1x100x128xbf16> to vector<100x128xbf16>
      %cst_81 = arith.constant dense<0.000000e+00> : vector<4x128xf32>
      %105 = tpu.matmul %100, %104, %cst_81 {dimension_numbers = #tpu.dot_dimension_numbers<[1], [0], [0], [1], [0, 0, 1, 1], [], []>} : vector<4x100xbf16>, vector<100x128xbf16>, vector<4x128xf32> -> vector<4x128xf32>
      %106 = arith.addf %98, %105 : vector<4x128xf32>
      %c4_82 = arith.constant 4 : index
      %c0_83 = arith.constant 0 : index
      %c0_84 = arith.constant 0 : index
      %107 = vector.load %arg3[%c4_82, %c0_83, %c0_84] : memref<5x4x100xbf16, #tpu.memory_space<vmem>>, vector<1x4x100xbf16>
      %108 = vector.shape_cast %107 : vector<1x4x100xbf16> to vector<4x100xbf16>
      %c4_i32_85 = arith.constant 4 : i32
      %109 = arith.addi %73, %c4_i32_85 : i32
      %110 = arith.index_cast %109 : i32 to index
      %c0_86 = arith.constant 0 : index
      %c0_87 = arith.constant 0 : index
      %111 = vector.load %arg7[%110, %c0_86, %c0_87] : memref<12x100x128xbf16, #tpu.memory_space<vmem>>, vector<1x100x128xbf16>
      %112 = vector.shape_cast %111 : vector<1x100x128xbf16> to vector<100x128xbf16>
      %cst_88 = arith.constant dense<0.000000e+00> : vector<4x128xf32>
      %113 = tpu.matmul %108, %112, %cst_88 {dimension_numbers = #tpu.dot_dimension_numbers<[1], [0], [0], [1], [0, 0, 1, 1], [], []>} : vector<4x100xbf16>, vector<100x128xbf16>, vector<4x128xf32> -> vector<4x128xf32>
      %114 = arith.addf %106, %113 : vector<4x128xf32>
      %115 = vector.broadcast %6 : vector<4x1xf32> to vector<4x128xf32>
      %116 = arith.addf %114, %115 : vector<4x128xf32>
      %cst_89 = arith.constant 0.000000e+00 : f32
      %117 = vector.broadcast %cst_89 : f32 to vector<4x128xf32>
      %118 = arith.cmpf oge, %116, %117 : vector<4x128xf32>
      %cst_90 = arith.constant 1.000000e-01 : f32
      %119 = vector.broadcast %cst_90 : f32 to vector<4x128xf32>
      %120 = arith.mulf %119, %116 : vector<4x128xf32>
      %121 = arith.select %118, %116, %120 : vector<4x128xi1>, vector<4x128xf32>
      %c0_91 = arith.constant 0 : index
      %122 = arith.index_cast %30 : i32 to index
      %c0_92 = arith.constant 0 : index
      %c26 = arith.constant 26 : index
      %123 = vector.load %arg2[%c0_91, %122, %c0_92, %c26] : memref<1x12x4x256xbf16, #tpu.memory_space<vmem>>, vector<1x1x4x128xbf16>
      %124 = vector.shape_cast %123 : vector<1x1x4x128xbf16> to vector<4x128xbf16>
      %125 = arith.extf %124 : vector<4x128xbf16> to vector<4x128xf32>
      %126 = arith.addf %121, %125 : vector<4x128xf32>
      %cst_93 = arith.constant 0.000000e+00 : f32
      %127 = vector.shape_cast %5 : vector<1x128xi1> to vector<1x128xi1>
      %128 = vector.broadcast %127 : vector<1x128xi1> to vector<4x128xi1>
      %129 = vector.broadcast %cst_93 : f32 to vector<4x128xf32>
      %130 = arith.select %128, %126, %129 : vector<4x128xi1>, vector<4x128xf32>
      %131 = arith.truncf %130 : vector<4x128xf32> to vector<4x128xbf16>
      %c0_94 = arith.constant 0 : index
      %c2_95 = arith.constant 2 : index
      %c0_96 = arith.constant 0 : index
      %c26_97 = arith.constant 26 : index
      %132 = vector.load %arg6[%c0_94, %c2_95, %c0_96, %c26_97] : memref<1x6x4x256xbf16, #tpu.memory_space<vmem>>, vector<1x1x4x128xbf16>
      %133 = vector.shape_cast %132 : vector<1x1x4x128xbf16> to vector<4x128xbf16>
      %134 = vector.shape_cast %131 : vector<4x128xbf16> to vector<1x1x4x128xbf16>
      tpu.vector_store %arg6[%c0_94, %c2_95, %c0_96, %c26_97], %134 {strides = array<i32>} : memref<1x6x4x256xbf16, #tpu.memory_space<vmem>>, vector<1x1x4x128xbf16>,
    } else {
    }
    %c6_i32_28 = arith.constant 6 : i32
    %40 = arith.muli %arg1, %c6_i32_28 : i32
    %c3_i32 = arith.constant 3 : i32
    %41 = arith.addi %40, %c3_i32 : i32
    %c2_i32_29 = arith.constant 2 : i32
    %42 = arith.cmpi sge, %41, %c2_i32_29 : i32
    %c10_i32_30 = arith.constant 10 : i32
    %43 = arith.cmpi slt, %41, %c10_i32_30 : i32
    %44 = arith.andi %42, %43 : i1
    %cst_31 = arith.constant 0.000000e+00 : bf16
    %45 = vector.broadcast %cst_31 : bf16 to vector<4x256xbf16>
    %c0_32 = arith.constant 0 : index
    %c3 = arith.constant 3 : index
    %c0_33 = arith.constant 0 : index
    %c0_34 = arith.constant 0 : index
    %46 = vector.load %arg6[%c0_32, %c3, %c0_33, %c0_34] : memref<1x6x4x256xbf16, #tpu.memory_space<vmem>>, vector<1x1x4x256xbf16>
    %47 = vector.shape_cast %46 : vector<1x1x4x256xbf16> to vector<4x256xbf16>
    %48 = vector.shape_cast %45 : vector<4x256xbf16> to vector<1x1x4x256xbf16>
    tpu.vector_store %arg6[%c0_32, %c3, %c0_33, %c0_34], %48 {strides = array<i32>} : memref<1x6x4x256xbf16, #tpu.memory_space<vmem>>, vector<1x1x4x256xbf16>,
    %49 = arith.extui %44 : i1 to i32
    %c0_i32_35 = arith.constant 0 : i32
    %50 = arith.cmpi ne, %49, %c0_i32_35 : i32
    scf.if %50 {
      %c2_i32_52 = arith.constant 2 : i32
      %73 = arith.subi %41, %c2_i32_52 : i32
      %cst_53 = arith.constant 0.000000e+00 : f32
      %74 = vector.broadcast %cst_53 : f32 to vector<4x128xf32>
      %c0_54 = arith.constant 0 : index
      %c0_55 = arith.constant 0 : index
      %c0_56 = arith.constant 0 : index
      %75 = vector.load %arg3[%c0_54, %c0_55, %c0_56] : memref<5x4x100xbf16, #tpu.memory_space<vmem>>, vector<1x4x100xbf16>
      %76 = vector.shape_cast %75 : vector<1x4x100xbf16> to vector<4x100xbf16>
      %c0_i32_57 = arith.constant 0 : i32
      %77 = arith.addi %73, %c0_i32_57 : i32
      %78 = arith.index_cast %77 : i32 to index
      %c0_58 = arith.constant 0 : index
      %c0_59 = arith.constant 0 : index
      %79 = vector.load %arg7[%78, %c0_58, %c0_59] : memref<12x100x128xbf16, #tpu.memory_space<vmem>>, vector<1x100x128xbf16>
      %80 = vector.shape_cast %79 : vector<1x100x128xbf16> to vector<100x128xbf16>
      %cst_60 = arith.constant dense<0.000000e+00> : vector<4x128xf32>
      %81 = tpu.matmul %76, %80, %cst_60 {dimension_numbers = #tpu.dot_dimension_numbers<[1], [0], [0], [1], [0, 0, 1, 1], [], []>} : vector<4x100xbf16>, vector<100x128xbf16>, vector<4x128xf32> -> vector<4x128xf32>
      %82 = arith.addf %74, %81 : vector<4x128xf32>
      %c1_61 = arith.constant 1 : index
      %c0_62 = arith.constant 0 : index
      %c0_63 = arith.constant 0 : index
      %83 = vector.load %arg3[%c1_61, %c0_62, %c0_63] : memref<5x4x100xbf16, #tpu.memory_space<vmem>>, vector<1x4x100xbf16>
      %84 = vector.shape_cast %83 : vector<1x4x100xbf16> to vector<4x100xbf16>
      %c1_i32_64 = arith.constant 1 : i32
      %85 = arith.addi %73, %c1_i32_64 : i32
      %86 = arith.index_cast %85 : i32 to index
      %c0_65 = arith.constant 0 : index
      %c0_66 = arith.constant 0 : index
      %87 = vector.load %arg7[%86, %c0_65, %c0_66] : memref<12x100x128xbf16, #tpu.memory_space<vmem>>, vector<1x100x128xbf16>
      %88 = vector.shape_cast %87 : vector<1x100x128xbf16> to vector<100x128xbf16>
      %cst_67 = arith.constant dense<0.000000e+00> : vector<4x128xf32>
      %89 = tpu.matmul %84, %88, %cst_67 {dimension_numbers = #tpu.dot_dimension_numbers<[1], [0], [0], [1], [0, 0, 1, 1], [], []>} : vector<4x100xbf16>, vector<100x128xbf16>, vector<4x128xf32> -> vector<4x128xf32>
      %90 = arith.addf %82, %89 : vector<4x128xf32>
      %c2_68 = arith.constant 2 : index
      %c0_69 = arith.constant 0 : index
      %c0_70 = arith.constant 0 : index
      %91 = vector.load %arg3[%c2_68, %c0_69, %c0_70] : memref<5x4x100xbf16, #tpu.memory_space<vmem>>, vector<1x4x100xbf16>
      %92 = vector.shape_cast %91 : vector<1x4x100xbf16> to vector<4x100xbf16>
      %c2_i32_71 = arith.constant 2 : i32
      %93 = arith.addi %73, %c2_i32_71 : i32
      %94 = arith.index_cast %93 : i32 to index
      %c0_72 = arith.constant 0 : index
      %c0_73 = arith.constant 0 : index
      %95 = vector.load %arg7[%94, %c0_72, %c0_73] : memref<12x100x128xbf16, #tpu.memory_space<vmem>>, vector<1x100x128xbf16>
      %96 = vector.shape_cast %95 : vector<1x100x128xbf16> to vector<100x128xbf16>
      %cst_74 = arith.constant dense<0.000000e+00> : vector<4x128xf32>
      %97 = tpu.matmul %92, %96, %cst_74 {dimension_numbers = #tpu.dot_dimension_numbers<[1], [0], [0], [1], [0, 0, 1, 1], [], []>} : vector<4x100xbf16>, vector<100x128xbf16>, vector<4x128xf32> -> vector<4x128xf32>
      %98 = arith.addf %90, %97 : vector<4x128xf32>
      %c3_75 = arith.constant 3 : index
      %c0_76 = arith.constant 0 : index
      %c0_77 = arith.constant 0 : index
      %99 = vector.load %arg3[%c3_75, %c0_76, %c0_77] : memref<5x4x100xbf16, #tpu.memory_space<vmem>>, vector<1x4x100xbf16>
      %100 = vector.shape_cast %99 : vector<1x4x100xbf16> to vector<4x100xbf16>
      %c3_i32_78 = arith.constant 3 : i32
      %101 = arith.addi %73, %c3_i32_78 : i32
      %102 = arith.index_cast %101 : i32 to index
      %c0_79 = arith.constant 0 : index
      %c0_80 = arith.constant 0 : index
      %103 = vector.load %arg7[%102, %c0_79, %c0_80] : memref<12x100x128xbf16, #tpu.memory_space<vmem>>, vector<1x100x128xbf16>
      %104 = vector.shape_cast %103 : vector<1x100x128xbf16> to vector<100x128xbf16>
      %cst_81 = arith.constant dense<0.000000e+00> : vector<4x128xf32>
      %105 = tpu.matmul %100, %104, %cst_81 {dimension_numbers = #tpu.dot_dimension_numbers<[1], [0], [0], [1], [0, 0, 1, 1], [], []>} : vector<4x100xbf16>, vector<100x128xbf16>, vector<4x128xf32> -> vector<4x128xf32>
      %106 = arith.addf %98, %105 : vector<4x128xf32>
      %c4_82 = arith.constant 4 : index
      %c0_83 = arith.constant 0 : index
      %c0_84 = arith.constant 0 : index
      %107 = vector.load %arg3[%c4_82, %c0_83, %c0_84] : memref<5x4x100xbf16, #tpu.memory_space<vmem>>, vector<1x4x100xbf16>
      %108 = vector.shape_cast %107 : vector<1x4x100xbf16> to vector<4x100xbf16>
      %c4_i32_85 = arith.constant 4 : i32
      %109 = arith.addi %73, %c4_i32_85 : i32
      %110 = arith.index_cast %109 : i32 to index
      %c0_86 = arith.constant 0 : index
      %c0_87 = arith.constant 0 : index
      %111 = vector.load %arg7[%110, %c0_86, %c0_87] : memref<12x100x128xbf16, #tpu.memory_space<vmem>>, vector<1x100x128xbf16>
      %112 = vector.shape_cast %111 : vector<1x100x128xbf16> to vector<100x128xbf16>
      %cst_88 = arith.constant dense<0.000000e+00> : vector<4x128xf32>
      %113 = tpu.matmul %108, %112, %cst_88 {dimension_numbers = #tpu.dot_dimension_numbers<[1], [0], [0], [1], [0, 0, 1, 1], [], []>} : vector<4x100xbf16>, vector<100x128xbf16>, vector<4x128xf32> -> vector<4x128xf32>
      %114 = arith.addf %106, %113 : vector<4x128xf32>
      %115 = vector.broadcast %6 : vector<4x1xf32> to vector<4x128xf32>
      %116 = arith.addf %114, %115 : vector<4x128xf32>
      %cst_89 = arith.constant 0.000000e+00 : f32
      %117 = vector.broadcast %cst_89 : f32 to vector<4x128xf32>
      %118 = arith.cmpf oge, %116, %117 : vector<4x128xf32>
      %cst_90 = arith.constant 1.000000e-01 : f32
      %119 = vector.broadcast %cst_90 : f32 to vector<4x128xf32>
      %120 = arith.mulf %119, %116 : vector<4x128xf32>
      %121 = arith.select %118, %116, %120 : vector<4x128xi1>, vector<4x128xf32>
      %c0_91 = arith.constant 0 : index
      %122 = arith.index_cast %41 : i32 to index
      %c0_92 = arith.constant 0 : index
      %c26 = arith.constant 26 : index
      %123 = vector.load %arg2[%c0_91, %122, %c0_92, %c26] : memref<1x12x4x256xbf16, #tpu.memory_space<vmem>>, vector<1x1x4x128xbf16>
      %124 = vector.shape_cast %123 : vector<1x1x4x128xbf16> to vector<4x128xbf16>
      %125 = arith.extf %124 : vector<4x128xbf16> to vector<4x128xf32>
      %126 = arith.addf %121, %125 : vector<4x128xf32>
      %cst_93 = arith.constant 0.000000e+00 : f32
      %127 = vector.shape_cast %5 : vector<1x128xi1> to vector<1x128xi1>
      %128 = vector.broadcast %127 : vector<1x128xi1> to vector<4x128xi1>
      %129 = vector.broadcast %cst_93 : f32 to vector<4x128xf32>
      %130 = arith.select %128, %126, %129 : vector<4x128xi1>, vector<4x128xf32>
      %131 = arith.truncf %130 : vector<4x128xf32> to vector<4x128xbf16>
      %c0_94 = arith.constant 0 : index
      %c3_95 = arith.constant 3 : index
      %c0_96 = arith.constant 0 : index
      %c26_97 = arith.constant 26 : index
      %132 = vector.load %arg6[%c0_94, %c3_95, %c0_96, %c26_97] : memref<1x6x4x256xbf16, #tpu.memory_space<vmem>>, vector<1x1x4x128xbf16>
      %133 = vector.shape_cast %132 : vector<1x1x4x128xbf16> to vector<4x128xbf16>
      %134 = vector.shape_cast %131 : vector<4x128xbf16> to vector<1x1x4x128xbf16>
      tpu.vector_store %arg6[%c0_94, %c3_95, %c0_96, %c26_97], %134 {strides = array<i32>} : memref<1x6x4x256xbf16, #tpu.memory_space<vmem>>, vector<1x1x4x128xbf16>,
    } else {
    }
    %c6_i32_36 = arith.constant 6 : i32
    %51 = arith.muli %arg1, %c6_i32_36 : i32
    %c4_i32 = arith.constant 4 : i32
    %52 = arith.addi %51, %c4_i32 : i32
    %c2_i32_37 = arith.constant 2 : i32
    %53 = arith.cmpi sge, %52, %c2_i32_37 : i32
    %c10_i32_38 = arith.constant 10 : i32
    %54 = arith.cmpi slt, %52, %c10_i32_38 : i32
    %55 = arith.andi %53, %54 : i1
    %cst_39 = arith.constant 0.000000e+00 : bf16
    %56 = vector.broadcast %cst_39 : bf16 to vector<4x256xbf16>
    %c0_40 = arith.constant 0 : index
    %c4 = arith.constant 4 : index
    %c0_41 = arith.constant 0 : index
    %c0_42 = arith.constant 0 : index
    %57 = vector.load %arg6[%c0_40, %c4, %c0_41, %c0_42] : memref<1x6x4x256xbf16, #tpu.memory_space<vmem>>, vector<1x1x4x256xbf16>
    %58 = vector.shape_cast %57 : vector<1x1x4x256xbf16> to vector<4x256xbf16>
    %59 = vector.shape_cast %56 : vector<4x256xbf16> to vector<1x1x4x256xbf16>
    tpu.vector_store %arg6[%c0_40, %c4, %c0_41, %c0_42], %59 {strides = array<i32>} : memref<1x6x4x256xbf16, #tpu.memory_space<vmem>>, vector<1x1x4x256xbf16>,
    %60 = arith.extui %55 : i1 to i32
    %c0_i32_43 = arith.constant 0 : i32
    %61 = arith.cmpi ne, %60, %c0_i32_43 : i32
    scf.if %61 {
      %c2_i32_52 = arith.constant 2 : i32
      %73 = arith.subi %52, %c2_i32_52 : i32
      %cst_53 = arith.constant 0.000000e+00 : f32
      %74 = vector.broadcast %cst_53 : f32 to vector<4x128xf32>
      %c0_54 = arith.constant 0 : index
      %c0_55 = arith.constant 0 : index
      %c0_56 = arith.constant 0 : index
      %75 = vector.load %arg3[%c0_54, %c0_55, %c0_56] : memref<5x4x100xbf16, #tpu.memory_space<vmem>>, vector<1x4x100xbf16>
      %76 = vector.shape_cast %75 : vector<1x4x100xbf16> to vector<4x100xbf16>
      %c0_i32_57 = arith.constant 0 : i32
      %77 = arith.addi %73, %c0_i32_57 : i32
      %78 = arith.index_cast %77 : i32 to index
      %c0_58 = arith.constant 0 : index
      %c0_59 = arith.constant 0 : index
      %79 = vector.load %arg7[%78, %c0_58, %c0_59] : memref<12x100x128xbf16, #tpu.memory_space<vmem>>, vector<1x100x128xbf16>
      %80 = vector.shape_cast %79 : vector<1x100x128xbf16> to vector<100x128xbf16>
      %cst_60 = arith.constant dense<0.000000e+00> : vector<4x128xf32>
      %81 = tpu.matmul %76, %80, %cst_60 {dimension_numbers = #tpu.dot_dimension_numbers<[1], [0], [0], [1], [0, 0, 1, 1], [], []>} : vector<4x100xbf16>, vector<100x128xbf16>, vector<4x128xf32> -> vector<4x128xf32>
      %82 = arith.addf %74, %81 : vector<4x128xf32>
      %c1_61 = arith.constant 1 : index
      %c0_62 = arith.constant 0 : index
      %c0_63 = arith.constant 0 : index
      %83 = vector.load %arg3[%c1_61, %c0_62, %c0_63] : memref<5x4x100xbf16, #tpu.memory_space<vmem>>, vector<1x4x100xbf16>
      %84 = vector.shape_cast %83 : vector<1x4x100xbf16> to vector<4x100xbf16>
      %c1_i32_64 = arith.constant 1 : i32
      %85 = arith.addi %73, %c1_i32_64 : i32
      %86 = arith.index_cast %85 : i32 to index
      %c0_65 = arith.constant 0 : index
      %c0_66 = arith.constant 0 : index
      %87 = vector.load %arg7[%86, %c0_65, %c0_66] : memref<12x100x128xbf16, #tpu.memory_space<vmem>>, vector<1x100x128xbf16>
      %88 = vector.shape_cast %87 : vector<1x100x128xbf16> to vector<100x128xbf16>
      %cst_67 = arith.constant dense<0.000000e+00> : vector<4x128xf32>
      %89 = tpu.matmul %84, %88, %cst_67 {dimension_numbers = #tpu.dot_dimension_numbers<[1], [0], [0], [1], [0, 0, 1, 1], [], []>} : vector<4x100xbf16>, vector<100x128xbf16>, vector<4x128xf32> -> vector<4x128xf32>
      %90 = arith.addf %82, %89 : vector<4x128xf32>
      %c2_68 = arith.constant 2 : index
      %c0_69 = arith.constant 0 : index
      %c0_70 = arith.constant 0 : index
      %91 = vector.load %arg3[%c2_68, %c0_69, %c0_70] : memref<5x4x100xbf16, #tpu.memory_space<vmem>>, vector<1x4x100xbf16>
      %92 = vector.shape_cast %91 : vector<1x4x100xbf16> to vector<4x100xbf16>
      %c2_i32_71 = arith.constant 2 : i32
      %93 = arith.addi %73, %c2_i32_71 : i32
      %94 = arith.index_cast %93 : i32 to index
      %c0_72 = arith.constant 0 : index
      %c0_73 = arith.constant 0 : index
      %95 = vector.load %arg7[%94, %c0_72, %c0_73] : memref<12x100x128xbf16, #tpu.memory_space<vmem>>, vector<1x100x128xbf16>
      %96 = vector.shape_cast %95 : vector<1x100x128xbf16> to vector<100x128xbf16>
      %cst_74 = arith.constant dense<0.000000e+00> : vector<4x128xf32>
      %97 = tpu.matmul %92, %96, %cst_74 {dimension_numbers = #tpu.dot_dimension_numbers<[1], [0], [0], [1], [0, 0, 1, 1], [], []>} : vector<4x100xbf16>, vector<100x128xbf16>, vector<4x128xf32> -> vector<4x128xf32>
      %98 = arith.addf %90, %97 : vector<4x128xf32>
      %c3_75 = arith.constant 3 : index
      %c0_76 = arith.constant 0 : index
      %c0_77 = arith.constant 0 : index
      %99 = vector.load %arg3[%c3_75, %c0_76, %c0_77] : memref<5x4x100xbf16, #tpu.memory_space<vmem>>, vector<1x4x100xbf16>
      %100 = vector.shape_cast %99 : vector<1x4x100xbf16> to vector<4x100xbf16>
      %c3_i32_78 = arith.constant 3 : i32
      %101 = arith.addi %73, %c3_i32_78 : i32
      %102 = arith.index_cast %101 : i32 to index
      %c0_79 = arith.constant 0 : index
      %c0_80 = arith.constant 0 : index
      %103 = vector.load %arg7[%102, %c0_79, %c0_80] : memref<12x100x128xbf16, #tpu.memory_space<vmem>>, vector<1x100x128xbf16>
      %104 = vector.shape_cast %103 : vector<1x100x128xbf16> to vector<100x128xbf16>
      %cst_81 = arith.constant dense<0.000000e+00> : vector<4x128xf32>
      %105 = tpu.matmul %100, %104, %cst_81 {dimension_numbers = #tpu.dot_dimension_numbers<[1], [0], [0], [1], [0, 0, 1, 1], [], []>} : vector<4x100xbf16>, vector<100x128xbf16>, vector<4x128xf32> -> vector<4x128xf32>
      %106 = arith.addf %98, %105 : vector<4x128xf32>
      %c4_82 = arith.constant 4 : index
      %c0_83 = arith.constant 0 : index
      %c0_84 = arith.constant 0 : index
      %107 = vector.load %arg3[%c4_82, %c0_83, %c0_84] : memref<5x4x100xbf16, #tpu.memory_space<vmem>>, vector<1x4x100xbf16>
      %108 = vector.shape_cast %107 : vector<1x4x100xbf16> to vector<4x100xbf16>
      %c4_i32_85 = arith.constant 4 : i32
      %109 = arith.addi %73, %c4_i32_85 : i32
      %110 = arith.index_cast %109 : i32 to index
      %c0_86 = arith.constant 0 : index
      %c0_87 = arith.constant 0 : index
      %111 = vector.load %arg7[%110, %c0_86, %c0_87] : memref<12x100x128xbf16, #tpu.memory_space<vmem>>, vector<1x100x128xbf16>
      %112 = vector.shape_cast %111 : vector<1x100x128xbf16> to vector<100x128xbf16>
      %cst_88 = arith.constant dense<0.000000e+00> : vector<4x128xf32>
      %113 = tpu.matmul %108, %112, %cst_88 {dimension_numbers = #tpu.dot_dimension_numbers<[1], [0], [0], [1], [0, 0, 1, 1], [], []>} : vector<4x100xbf16>, vector<100x128xbf16>, vector<4x128xf32> -> vector<4x128xf32>
      %114 = arith.addf %106, %113 : vector<4x128xf32>
      %115 = vector.broadcast %6 : vector<4x1xf32> to vector<4x128xf32>
      %116 = arith.addf %114, %115 : vector<4x128xf32>
      %cst_89 = arith.constant 0.000000e+00 : f32
      %117 = vector.broadcast %cst_89 : f32 to vector<4x128xf32>
      %118 = arith.cmpf oge, %116, %117 : vector<4x128xf32>
      %cst_90 = arith.constant 1.000000e-01 : f32
      %119 = vector.broadcast %cst_90 : f32 to vector<4x128xf32>
      %120 = arith.mulf %119, %116 : vector<4x128xf32>
      %121 = arith.select %118, %116, %120 : vector<4x128xi1>, vector<4x128xf32>
      %c0_91 = arith.constant 0 : index
      %122 = arith.index_cast %52 : i32 to index
      %c0_92 = arith.constant 0 : index
      %c26 = arith.constant 26 : index
      %123 = vector.load %arg2[%c0_91, %122, %c0_92, %c26] : memref<1x12x4x256xbf16, #tpu.memory_space<vmem>>, vector<1x1x4x128xbf16>
      %124 = vector.shape_cast %123 : vector<1x1x4x128xbf16> to vector<4x128xbf16>
      %125 = arith.extf %124 : vector<4x128xbf16> to vector<4x128xf32>
      %126 = arith.addf %121, %125 : vector<4x128xf32>
      %cst_93 = arith.constant 0.000000e+00 : f32
      %127 = vector.shape_cast %5 : vector<1x128xi1> to vector<1x128xi1>
      %128 = vector.broadcast %127 : vector<1x128xi1> to vector<4x128xi1>
      %129 = vector.broadcast %cst_93 : f32 to vector<4x128xf32>
      %130 = arith.select %128, %126, %129 : vector<4x128xi1>, vector<4x128xf32>
      %131 = arith.truncf %130 : vector<4x128xf32> to vector<4x128xbf16>
      %c0_94 = arith.constant 0 : index
      %c4_95 = arith.constant 4 : index
      %c0_96 = arith.constant 0 : index
      %c26_97 = arith.constant 26 : index
      %132 = vector.load %arg6[%c0_94, %c4_95, %c0_96, %c26_97] : memref<1x6x4x256xbf16, #tpu.memory_space<vmem>>, vector<1x1x4x128xbf16>
      %133 = vector.shape_cast %132 : vector<1x1x4x128xbf16> to vector<4x128xbf16>
      %134 = vector.shape_cast %131 : vector<4x128xbf16> to vector<1x1x4x128xbf16>
      tpu.vector_store %arg6[%c0_94, %c4_95, %c0_96, %c26_97], %134 {strides = array<i32>} : memref<1x6x4x256xbf16, #tpu.memory_space<vmem>>, vector<1x1x4x128xbf16>,
    } else {
    }
    %c6_i32_44 = arith.constant 6 : i32
    %62 = arith.muli %arg1, %c6_i32_44 : i32
    %c5_i32 = arith.constant 5 : i32
    %63 = arith.addi %62, %c5_i32 : i32
    %c2_i32_45 = arith.constant 2 : i32
    %64 = arith.cmpi sge, %63, %c2_i32_45 : i32
    %c10_i32_46 = arith.constant 10 : i32
    %65 = arith.cmpi slt, %63, %c10_i32_46 : i32
    %66 = arith.andi %64, %65 : i1
    %cst_47 = arith.constant 0.000000e+00 : bf16
    %67 = vector.broadcast %cst_47 : bf16 to vector<4x256xbf16>
    %c0_48 = arith.constant 0 : index
    %c5 = arith.constant 5 : index
    %c0_49 = arith.constant 0 : index
    %c0_50 = arith.constant 0 : index
    %68 = vector.load %arg6[%c0_48, %c5, %c0_49, %c0_50] : memref<1x6x4x256xbf16, #tpu.memory_space<vmem>>, vector<1x1x4x256xbf16>
    %69 = vector.shape_cast %68 : vector<1x1x4x256xbf16> to vector<4x256xbf16>
    %70 = vector.shape_cast %67 : vector<4x256xbf16> to vector<1x1x4x256xbf16>
    tpu.vector_store %arg6[%c0_48, %c5, %c0_49, %c0_50], %70 {strides = array<i32>} : memref<1x6x4x256xbf16, #tpu.memory_space<vmem>>, vector<1x1x4x256xbf16>,
    %71 = arith.extui %66 : i1 to i32
    %c0_i32_51 = arith.constant 0 : i32
    %72 = arith.cmpi ne, %71, %c0_i32_51 : i32
    scf.if %72 {
      %c2_i32_52 = arith.constant 2 : i32
      %73 = arith.subi %63, %c2_i32_52 : i32
      %cst_53 = arith.constant 0.000000e+00 : f32
      %74 = vector.broadcast %cst_53 : f32 to vector<4x128xf32>
      %c0_54 = arith.constant 0 : index
      %c0_55 = arith.constant 0 : index
      %c0_56 = arith.constant 0 : index
      %75 = vector.load %arg3[%c0_54, %c0_55, %c0_56] : memref<5x4x100xbf16, #tpu.memory_space<vmem>>, vector<1x4x100xbf16>
      %76 = vector.shape_cast %75 : vector<1x4x100xbf16> to vector<4x100xbf16>
      %c0_i32_57 = arith.constant 0 : i32
      %77 = arith.addi %73, %c0_i32_57 : i32
      %78 = arith.index_cast %77 : i32 to index
      %c0_58 = arith.constant 0 : index
      %c0_59 = arith.constant 0 : index
      %79 = vector.load %arg7[%78, %c0_58, %c0_59] : memref<12x100x128xbf16, #tpu.memory_space<vmem>>, vector<1x100x128xbf16>
      %80 = vector.shape_cast %79 : vector<1x100x128xbf16> to vector<100x128xbf16>
      %cst_60 = arith.constant dense<0.000000e+00> : vector<4x128xf32>
      %81 = tpu.matmul %76, %80, %cst_60 {dimension_numbers = #tpu.dot_dimension_numbers<[1], [0], [0], [1], [0, 0, 1, 1], [], []>} : vector<4x100xbf16>, vector<100x128xbf16>, vector<4x128xf32> -> vector<4x128xf32>
      %82 = arith.addf %74, %81 : vector<4x128xf32>
      %c1_61 = arith.constant 1 : index
      %c0_62 = arith.constant 0 : index
      %c0_63 = arith.constant 0 : index
      %83 = vector.load %arg3[%c1_61, %c0_62, %c0_63] : memref<5x4x100xbf16, #tpu.memory_space<vmem>>, vector<1x4x100xbf16>
      %84 = vector.shape_cast %83 : vector<1x4x100xbf16> to vector<4x100xbf16>
      %c1_i32_64 = arith.constant 1 : i32
      %85 = arith.addi %73, %c1_i32_64 : i32
      %86 = arith.index_cast %85 : i32 to index
      %c0_65 = arith.constant 0 : index
      %c0_66 = arith.constant 0 : index
      %87 = vector.load %arg7[%86, %c0_65, %c0_66] : memref<12x100x128xbf16, #tpu.memory_space<vmem>>, vector<1x100x128xbf16>
      %88 = vector.shape_cast %87 : vector<1x100x128xbf16> to vector<100x128xbf16>
      %cst_67 = arith.constant dense<0.000000e+00> : vector<4x128xf32>
      %89 = tpu.matmul %84, %88, %cst_67 {dimension_numbers = #tpu.dot_dimension_numbers<[1], [0], [0], [1], [0, 0, 1, 1], [], []>} : vector<4x100xbf16>, vector<100x128xbf16>, vector<4x128xf32> -> vector<4x128xf32>
      %90 = arith.addf %82, %89 : vector<4x128xf32>
      %c2_68 = arith.constant 2 : index
      %c0_69 = arith.constant 0 : index
      %c0_70 = arith.constant 0 : index
      %91 = vector.load %arg3[%c2_68, %c0_69, %c0_70] : memref<5x4x100xbf16, #tpu.memory_space<vmem>>, vector<1x4x100xbf16>
      %92 = vector.shape_cast %91 : vector<1x4x100xbf16> to vector<4x100xbf16>
      %c2_i32_71 = arith.constant 2 : i32
      %93 = arith.addi %73, %c2_i32_71 : i32
      %94 = arith.index_cast %93 : i32 to index
      %c0_72 = arith.constant 0 : index
      %c0_73 = arith.constant 0 : index
      %95 = vector.load %arg7[%94, %c0_72, %c0_73] : memref<12x100x128xbf16, #tpu.memory_space<vmem>>, vector<1x100x128xbf16>
      %96 = vector.shape_cast %95 : vector<1x100x128xbf16> to vector<100x128xbf16>
      %cst_74 = arith.constant dense<0.000000e+00> : vector<4x128xf32>
      %97 = tpu.matmul %92, %96, %cst_74 {dimension_numbers = #tpu.dot_dimension_numbers<[1], [0], [0], [1], [0, 0, 1, 1], [], []>} : vector<4x100xbf16>, vector<100x128xbf16>, vector<4x128xf32> -> vector<4x128xf32>
      %98 = arith.addf %90, %97 : vector<4x128xf32>
      %c3_75 = arith.constant 3 : index
      %c0_76 = arith.constant 0 : index
      %c0_77 = arith.constant 0 : index
      %99 = vector.load %arg3[%c3_75, %c0_76, %c0_77] : memref<5x4x100xbf16, #tpu.memory_space<vmem>>, vector<1x4x100xbf16>
      %100 = vector.shape_cast %99 : vector<1x4x100xbf16> to vector<4x100xbf16>
      %c3_i32_78 = arith.constant 3 : i32
      %101 = arith.addi %73, %c3_i32_78 : i32
      %102 = arith.index_cast %101 : i32 to index
      %c0_79 = arith.constant 0 : index
      %c0_80 = arith.constant 0 : index
      %103 = vector.load %arg7[%102, %c0_79, %c0_80] : memref<12x100x128xbf16, #tpu.memory_space<vmem>>, vector<1x100x128xbf16>
      %104 = vector.shape_cast %103 : vector<1x100x128xbf16> to vector<100x128xbf16>
      %cst_81 = arith.constant dense<0.000000e+00> : vector<4x128xf32>
      %105 = tpu.matmul %100, %104, %cst_81 {dimension_numbers = #tpu.dot_dimension_numbers<[1], [0], [0], [1], [0, 0, 1, 1], [], []>} : vector<4x100xbf16>, vector<100x128xbf16>, vector<4x128xf32> -> vector<4x128xf32>
      %106 = arith.addf %98, %105 : vector<4x128xf32>
      %c4_82 = arith.constant 4 : index
      %c0_83 = arith.constant 0 : index
      %c0_84 = arith.constant 0 : index
      %107 = vector.load %arg3[%c4_82, %c0_83, %c0_84] : memref<5x4x100xbf16, #tpu.memory_space<vmem>>, vector<1x4x100xbf16>
      %108 = vector.shape_cast %107 : vector<1x4x100xbf16> to vector<4x100xbf16>
      %c4_i32_85 = arith.constant 4 : i32
      %109 = arith.addi %73, %c4_i32_85 : i32
      %110 = arith.index_cast %109 : i32 to index
      %c0_86 = arith.constant 0 : index
      %c0_87 = arith.constant 0 : index
      %111 = vector.load %arg7[%110, %c0_86, %c0_87] : memref<12x100x128xbf16, #tpu.memory_space<vmem>>, vector<1x100x128xbf16>
      %112 = vector.shape_cast %111 : vector<1x100x128xbf16> to vector<100x128xbf16>
      %cst_88 = arith.constant dense<0.000000e+00> : vector<4x128xf32>
      %113 = tpu.matmul %108, %112, %cst_88 {dimension_numbers = #tpu.dot_dimension_numbers<[1], [0], [0], [1], [0, 0, 1, 1], [], []>} : vector<4x100xbf16>, vector<100x128xbf16>, vector<4x128xf32> -> vector<4x128xf32>
      %114 = arith.addf %106, %113 : vector<4x128xf32>
      %115 = vector.broadcast %6 : vector<4x1xf32> to vector<4x128xf32>
      %116 = arith.addf %114, %115 : vector<4x128xf32>
      %cst_89 = arith.constant 0.000000e+00 : f32
      %117 = vector.broadcast %cst_89 : f32 to vector<4x128xf32>
      %118 = arith.cmpf oge, %116, %117 : vector<4x128xf32>
      %cst_90 = arith.constant 1.000000e-01 : f32
      %119 = vector.broadcast %cst_90 : f32 to vector<4x128xf32>
      %120 = arith.mulf %119, %116 : vector<4x128xf32>
      %121 = arith.select %118, %116, %120 : vector<4x128xi1>, vector<4x128xf32>
      %c0_91 = arith.constant 0 : index
      %122 = arith.index_cast %63 : i32 to index
      %c0_92 = arith.constant 0 : index
      %c26 = arith.constant 26 : index
      %123 = vector.load %arg2[%c0_91, %122, %c0_92, %c26] : memref<1x12x4x256xbf16, #tpu.memory_space<vmem>>, vector<1x1x4x128xbf16>
      %124 = vector.shape_cast %123 : vector<1x1x4x128xbf16> to vector<4x128xbf16>
      %125 = arith.extf %124 : vector<4x128xbf16> to vector<4x128xf32>
      %126 = arith.addf %121, %125 : vector<4x128xf32>
      %cst_93 = arith.constant 0.000000e+00 : f32
      %127 = vector.shape_cast %5 : vector<1x128xi1> to vector<1x128xi1>
      %128 = vector.broadcast %127 : vector<1x128xi1> to vector<4x128xi1>
      %129 = vector.broadcast %cst_93 : f32 to vector<4x128xf32>
      %130 = arith.select %128, %126, %129 : vector<4x128xi1>, vector<4x128xf32>
      %131 = arith.truncf %130 : vector<4x128xf32> to vector<4x128xbf16>
      %c0_94 = arith.constant 0 : index
      %c5_95 = arith.constant 5 : index
      %c0_96 = arith.constant 0 : index
      %c26_97 = arith.constant 26 : index
      %132 = vector.load %arg6[%c0_94, %c5_95, %c0_96, %c26_97] : memref<1x6x4x256xbf16, #tpu.memory_space<vmem>>, vector<1x1x4x128xbf16>
      %133 = vector.shape_cast %132 : vector<1x1x4x128xbf16> to vector<4x128xbf16>
      %134 = vector.shape_cast %131 : vector<4x128xbf16> to vector<1x1x4x128xbf16>
      tpu.vector_store %arg6[%c0_94, %c5_95, %c0_96, %c26_97], %134 {strides = array<i32>} : memref<1x6x4x256xbf16, #tpu.memory_space<vmem>>, vector<1x1x4x128xbf16>,
    } else {
    }
    return
  }
  func.func @transform_0(%arg0: i32, %arg1: i32) -> (i32, i32, i32, i32) {
    %c0_i32 = arith.constant 0 : i32
    %c0_i32_0 = arith.constant 0 : i32
    %c0_i32_1 = arith.constant 0 : i32
    %c0_i32_2 = arith.constant 0 : i32
    return %arg0, %c0_i32, %c0_i32_0, %c0_i32_1 : i32, i32, i32, i32
  }
  func.func @transform_1(%arg0: i32, %arg1: i32) -> (i32, i32, i32) {
    %c0_i32 = arith.constant 0 : i32
    %c0_i32_0 = arith.constant 0 : i32
    %c0_i32_1 = arith.constant 0 : i32
    %c0_i32_2 = arith.constant 0 : i32
    return %c0_i32, %c0_i32_0, %c0_i32_1 : i32, i32, i32
  }
  func.func @transform_2(%arg0: i32, %arg1: i32) -> (i32, i32) {
    %c0_i32 = arith.constant 0 : i32
    %c0_i32_0 = arith.constant 0 : i32
    %c0_i32_1 = arith.constant 0 : i32
    return %c0_i32, %c0_i32_0 : i32, i32
  }
  func.func @transform_3(%arg0: i32, %arg1: i32) -> (i32, i32) {
    %c0_i32 = arith.constant 0 : i32
    %c0_i32_0 = arith.constant 0 : i32
    %c0_i32_1 = arith.constant 0 : i32
    return %c0_i32, %c0_i32_0 : i32, i32
  }
  func.func @transform_4(%arg0: i32, %arg1: i32) -> (i32, i32, i32, i32) {
    %c0_i32 = arith.constant 0 : i32
    %c0_i32_0 = arith.constant 0 : i32
    %c0_i32_1 = arith.constant 0 : i32
    return %arg0, %arg1, %c0_i32, %c0_i32_0 : i32, i32, i32, i32
  }
}

module attributes {stable_mosaic.version = 11 : i64} {
  func.func @kernel(%arg0: i32, %arg1: i32, %arg2: memref<1x12x4x256xbf16, #tpu.memory_space<vmem>>, %arg3: memref<5x1x100xbf16, #tpu.memory_space<vmem>>, %arg4: memref<1x1xf32, #tpu.memory_space<vmem>>, %arg5: memref<1x128xf32, #tpu.memory_space<vmem>>, %arg6: memref<1x6x1x256xf32, #tpu.memory_space<vmem>>, %arg7: memref<12x100x128xbf16, #tpu.memory_space<vmem>>) attributes {dimension_semantics = [#tpu.dimension_semantics<parallel>, #tpu.dimension_semantics<arbitrary>], iteration_bounds = array<i64: 2, 2>, scalar_prefetch = 0 : i64, scratch_operands = 1 : i64, tpu.core_type = #tpu.core_type<tc>, window_params = [{transform_indices = @transform_0, window_bounds = array<i64: 1, 12, 4, 256>}, {pipeline_mode = #tpu.pipeline_mode<synchronous>, transform_indices = @transform_1, window_bounds = array<i64: 5, 1, 100>}, {pipeline_mode = #tpu.pipeline_mode<synchronous>, transform_indices = @transform_2, window_bounds = array<i64: 1, 1>}, {pipeline_mode = #tpu.pipeline_mode<synchronous>, transform_indices = @transform_3, window_bounds = array<i64: 1, 128>}, {transform_indices = @transform_4, window_bounds = array<i64: 1, 6, 1, 256>}]} {
    %c0_i32 = arith.constant 0 : i32
    %0 = arith.cmpi eq, %arg1, %c0_i32 : i32
    %1 = arith.extui %0 : i1 to i32
    %c0_i32_0 = arith.constant 0 : i32
    %2 = arith.cmpi ne, %1, %c0_i32_0 : i32
    scf.if %2 {
      %c0_i32_52 = arith.constant 0 : i32
      %c12_i32 = arith.constant 12 : i32
      %73 = arith.addi %c0_i32_52, %c12_i32 : i32
      %c1_i32_53 = arith.constant 1 : i32
      scf.for %arg8 = %c0_i32_52 to %73 step %c1_i32_53  : i32 {
        %c0_55 = arith.constant 0 : index
        %74 = arith.index_cast %arg8 : i32 to index
        %c0_56 = arith.constant 0 : index
        %c0_57 = arith.constant 0 : index
        %75 = vector.load %arg2[%c0_55, %74, %c0_56, %c0_57] : memref<1x12x4x256xbf16, #tpu.memory_space<vmem>>, vector<1x1x4x128xbf16>
        %76 = vector.shape_cast %75 : vector<1x1x4x128xbf16> to vector<4x128xbf16>
        %77 = arith.index_cast %arg8 : i32 to index
        %c0_58 = arith.constant 0 : index
        %c0_59 = arith.constant 0 : index
        %78 = vector.load %arg7[%77, %c0_58, %c0_59] : memref<12x100x128xbf16, #tpu.memory_space<vmem>>, vector<1x4x128xbf16>
        %79 = vector.shape_cast %78 : vector<1x4x128xbf16> to vector<4x128xbf16>
        %80 = vector.shape_cast %76 : vector<4x128xbf16> to vector<1x4x128xbf16>
        tpu.vector_store %arg7[%77, %c0_58, %c0_59], %80 {strides = array<i32>} : memref<12x100x128xbf16, #tpu.memory_space<vmem>>, vector<1x4x128xbf16>,
        %c0_60 = arith.constant 0 : index
        %81 = arith.index_cast %arg8 : i32 to index
        %c0_61 = arith.constant 0 : index
        %c1_62 = arith.constant 1 : index
        %82 = vector.load %arg2[%c0_60, %81, %c0_61, %c1_62] : memref<1x12x4x256xbf16, #tpu.memory_space<vmem>>, vector<1x1x4x128xbf16>
        %83 = vector.shape_cast %82 : vector<1x1x4x128xbf16> to vector<4x128xbf16>
        %84 = arith.index_cast %arg8 : i32 to index
        %c4_63 = arith.constant 4 : index
        %c0_64 = arith.constant 0 : index
        %85 = vector.load %arg7[%84, %c4_63, %c0_64] : memref<12x100x128xbf16, #tpu.memory_space<vmem>>, vector<1x4x128xbf16>
        %86 = vector.shape_cast %85 : vector<1x4x128xbf16> to vector<4x128xbf16>
        %87 = vector.shape_cast %83 : vector<4x128xbf16> to vector<1x4x128xbf16>
        tpu.vector_store %arg7[%84, %c4_63, %c0_64], %87 {strides = array<i32>} : memref<12x100x128xbf16, #tpu.memory_space<vmem>>, vector<1x4x128xbf16>,
        %c0_65 = arith.constant 0 : index
        %88 = arith.index_cast %arg8 : i32 to index
        %c0_66 = arith.constant 0 : index
        %c2_67 = arith.constant 2 : index
        %89 = vector.load %arg2[%c0_65, %88, %c0_66, %c2_67] : memref<1x12x4x256xbf16, #tpu.memory_space<vmem>>, vector<1x1x4x128xbf16>
        %90 = vector.shape_cast %89 : vector<1x1x4x128xbf16> to vector<4x128xbf16>
        %91 = arith.index_cast %arg8 : i32 to index
        %c8 = arith.constant 8 : index
        %c0_68 = arith.constant 0 : index
        %92 = vector.load %arg7[%91, %c8, %c0_68] : memref<12x100x128xbf16, #tpu.memory_space<vmem>>, vector<1x4x128xbf16>
        %93 = vector.shape_cast %92 : vector<1x4x128xbf16> to vector<4x128xbf16>
        %94 = vector.shape_cast %90 : vector<4x128xbf16> to vector<1x4x128xbf16>
        tpu.vector_store %arg7[%91, %c8, %c0_68], %94 {strides = array<i32>} : memref<12x100x128xbf16, #tpu.memory_space<vmem>>, vector<1x4x128xbf16>,
        %c0_69 = arith.constant 0 : index
        %95 = arith.index_cast %arg8 : i32 to index
        %c0_70 = arith.constant 0 : index
        %c3_71 = arith.constant 3 : index
        %96 = vector.load %arg2[%c0_69, %95, %c0_70, %c3_71] : memref<1x12x4x256xbf16, #tpu.memory_space<vmem>>, vector<1x1x4x128xbf16>
        %97 = vector.shape_cast %96 : vector<1x1x4x128xbf16> to vector<4x128xbf16>
        %98 = arith.index_cast %arg8 : i32 to index
        %c12 = arith.constant 12 : index
        %c0_72 = arith.constant 0 : index
        %99 = vector.load %arg7[%98, %c12, %c0_72] : memref<12x100x128xbf16, #tpu.memory_space<vmem>>, vector<1x4x128xbf16>
        %100 = vector.shape_cast %99 : vector<1x4x128xbf16> to vector<4x128xbf16>
        %101 = vector.shape_cast %97 : vector<4x128xbf16> to vector<1x4x128xbf16>
        tpu.vector_store %arg7[%98, %c12, %c0_72], %101 {strides = array<i32>} : memref<12x100x128xbf16, #tpu.memory_space<vmem>>, vector<1x4x128xbf16>,
        %c0_73 = arith.constant 0 : index
        %102 = arith.index_cast %arg8 : i32 to index
        %c0_74 = arith.constant 0 : index
        %c4_75 = arith.constant 4 : index
        %103 = vector.load %arg2[%c0_73, %102, %c0_74, %c4_75] : memref<1x12x4x256xbf16, #tpu.memory_space<vmem>>, vector<1x1x4x128xbf16>
        %104 = vector.shape_cast %103 : vector<1x1x4x128xbf16> to vector<4x128xbf16>
        %105 = arith.index_cast %arg8 : i32 to index
        %c16 = arith.constant 16 : index
        %c0_76 = arith.constant 0 : index
        %106 = vector.load %arg7[%105, %c16, %c0_76] : memref<12x100x128xbf16, #tpu.memory_space<vmem>>, vector<1x4x128xbf16>
        %107 = vector.shape_cast %106 : vector<1x4x128xbf16> to vector<4x128xbf16>
        %108 = vector.shape_cast %104 : vector<4x128xbf16> to vector<1x4x128xbf16>
        tpu.vector_store %arg7[%105, %c16, %c0_76], %108 {strides = array<i32>} : memref<12x100x128xbf16, #tpu.memory_space<vmem>>, vector<1x4x128xbf16>,
        %c0_77 = arith.constant 0 : index
        %109 = arith.index_cast %arg8 : i32 to index
        %c0_78 = arith.constant 0 : index
        %c12_79 = arith.constant 12 : index
        %110 = vector.load %arg2[%c0_77, %109, %c0_78, %c12_79] : memref<1x12x4x256xbf16, #tpu.memory_space<vmem>>, vector<1x1x4x128xbf16>
        %111 = vector.shape_cast %110 : vector<1x1x4x128xbf16> to vector<4x128xbf16>
        %112 = arith.index_cast %arg8 : i32 to index
        %c20 = arith.constant 20 : index
        %c0_80 = arith.constant 0 : index
        %113 = vector.load %arg7[%112, %c20, %c0_80] : memref<12x100x128xbf16, #tpu.memory_space<vmem>>, vector<1x4x128xbf16>
        %114 = vector.shape_cast %113 : vector<1x4x128xbf16> to vector<4x128xbf16>
        %115 = vector.shape_cast %111 : vector<4x128xbf16> to vector<1x4x128xbf16>
        tpu.vector_store %arg7[%112, %c20, %c0_80], %115 {strides = array<i32>} : memref<12x100x128xbf16, #tpu.memory_space<vmem>>, vector<1x4x128xbf16>,
        %c0_81 = arith.constant 0 : index
        %116 = arith.index_cast %arg8 : i32 to index
        %c0_82 = arith.constant 0 : index
        %c13 = arith.constant 13 : index
        %117 = vector.load %arg2[%c0_81, %116, %c0_82, %c13] : memref<1x12x4x256xbf16, #tpu.memory_space<vmem>>, vector<1x1x4x128xbf16>
        %118 = vector.shape_cast %117 : vector<1x1x4x128xbf16> to vector<4x128xbf16>
        %119 = arith.index_cast %arg8 : i32 to index
        %c24 = arith.constant 24 : index
        %c0_83 = arith.constant 0 : index
        %120 = vector.load %arg7[%119, %c24, %c0_83] : memref<12x100x128xbf16, #tpu.memory_space<vmem>>, vector<1x4x128xbf16>
        %121 = vector.shape_cast %120 : vector<1x4x128xbf16> to vector<4x128xbf16>
        %122 = vector.shape_cast %118 : vector<4x128xbf16> to vector<1x4x128xbf16>
        tpu.vector_store %arg7[%119, %c24, %c0_83], %122 {strides = array<i32>} : memref<12x100x128xbf16, #tpu.memory_space<vmem>>, vector<1x4x128xbf16>,
        %c0_84 = arith.constant 0 : index
        %123 = arith.index_cast %arg8 : i32 to index
        %c0_85 = arith.constant 0 : index
        %c14 = arith.constant 14 : index
        %124 = vector.load %arg2[%c0_84, %123, %c0_85, %c14] : memref<1x12x4x256xbf16, #tpu.memory_space<vmem>>, vector<1x1x4x128xbf16>
        %125 = vector.shape_cast %124 : vector<1x1x4x128xbf16> to vector<4x128xbf16>
        %126 = arith.index_cast %arg8 : i32 to index
        %c28 = arith.constant 28 : index
        %c0_86 = arith.constant 0 : index
        %127 = vector.load %arg7[%126, %c28, %c0_86] : memref<12x100x128xbf16, #tpu.memory_space<vmem>>, vector<1x4x128xbf16>
        %128 = vector.shape_cast %127 : vector<1x4x128xbf16> to vector<4x128xbf16>
        %129 = vector.shape_cast %125 : vector<4x128xbf16> to vector<1x4x128xbf16>
        tpu.vector_store %arg7[%126, %c28, %c0_86], %129 {strides = array<i32>} : memref<12x100x128xbf16, #tpu.memory_space<vmem>>, vector<1x4x128xbf16>,
        %c0_87 = arith.constant 0 : index
        %130 = arith.index_cast %arg8 : i32 to index
        %c0_88 = arith.constant 0 : index
        %c15 = arith.constant 15 : index
        %131 = vector.load %arg2[%c0_87, %130, %c0_88, %c15] : memref<1x12x4x256xbf16, #tpu.memory_space<vmem>>, vector<1x1x4x128xbf16>
        %132 = vector.shape_cast %131 : vector<1x1x4x128xbf16> to vector<4x128xbf16>
        %133 = arith.index_cast %arg8 : i32 to index
        %c32 = arith.constant 32 : index
        %c0_89 = arith.constant 0 : index
        %134 = vector.load %arg7[%133, %c32, %c0_89] : memref<12x100x128xbf16, #tpu.memory_space<vmem>>, vector<1x4x128xbf16>
        %135 = vector.shape_cast %134 : vector<1x4x128xbf16> to vector<4x128xbf16>
        %136 = vector.shape_cast %132 : vector<4x128xbf16> to vector<1x4x128xbf16>
        tpu.vector_store %arg7[%133, %c32, %c0_89], %136 {strides = array<i32>} : memref<12x100x128xbf16, #tpu.memory_space<vmem>>, vector<1x4x128xbf16>,
        %c0_90 = arith.constant 0 : index
        %137 = arith.index_cast %arg8 : i32 to index
        %c0_91 = arith.constant 0 : index
        %c16_92 = arith.constant 16 : index
        %138 = vector.load %arg2[%c0_90, %137, %c0_91, %c16_92] : memref<1x12x4x256xbf16, #tpu.memory_space<vmem>>, vector<1x1x4x128xbf16>
        %139 = vector.shape_cast %138 : vector<1x1x4x128xbf16> to vector<4x128xbf16>
        %140 = arith.index_cast %arg8 : i32 to index
        %c36 = arith.constant 36 : index
        %c0_93 = arith.constant 0 : index
        %141 = vector.load %arg7[%140, %c36, %c0_93] : memref<12x100x128xbf16, #tpu.memory_space<vmem>>, vector<1x4x128xbf16>
        %142 = vector.shape_cast %141 : vector<1x4x128xbf16> to vector<4x128xbf16>
        %143 = vector.shape_cast %139 : vector<4x128xbf16> to vector<1x4x128xbf16>
        tpu.vector_store %arg7[%140, %c36, %c0_93], %143 {strides = array<i32>} : memref<12x100x128xbf16, #tpu.memory_space<vmem>>, vector<1x4x128xbf16>,
        %c0_94 = arith.constant 0 : index
        %144 = arith.index_cast %arg8 : i32 to index
        %c0_95 = arith.constant 0 : index
        %c24_96 = arith.constant 24 : index
        %145 = vector.load %arg2[%c0_94, %144, %c0_95, %c24_96] : memref<1x12x4x256xbf16, #tpu.memory_space<vmem>>, vector<1x1x4x128xbf16>
        %146 = vector.shape_cast %145 : vector<1x1x4x128xbf16> to vector<4x128xbf16>
        %147 = arith.index_cast %arg8 : i32 to index
        %c40 = arith.constant 40 : index
        %c0_97 = arith.constant 0 : index
        %148 = vector.load %arg7[%147, %c40, %c0_97] : memref<12x100x128xbf16, #tpu.memory_space<vmem>>, vector<1x4x128xbf16>
        %149 = vector.shape_cast %148 : vector<1x4x128xbf16> to vector<4x128xbf16>
        %150 = vector.shape_cast %146 : vector<4x128xbf16> to vector<1x4x128xbf16>
        tpu.vector_store %arg7[%147, %c40, %c0_97], %150 {strides = array<i32>} : memref<12x100x128xbf16, #tpu.memory_space<vmem>>, vector<1x4x128xbf16>,
        %c0_98 = arith.constant 0 : index
        %151 = arith.index_cast %arg8 : i32 to index
        %c0_99 = arith.constant 0 : index
        %c25 = arith.constant 25 : index
        %152 = vector.load %arg2[%c0_98, %151, %c0_99, %c25] : memref<1x12x4x256xbf16, #tpu.memory_space<vmem>>, vector<1x1x4x128xbf16>
        %153 = vector.shape_cast %152 : vector<1x1x4x128xbf16> to vector<4x128xbf16>
        %154 = arith.index_cast %arg8 : i32 to index
        %c44 = arith.constant 44 : index
        %c0_100 = arith.constant 0 : index
        %155 = vector.load %arg7[%154, %c44, %c0_100] : memref<12x100x128xbf16, #tpu.memory_space<vmem>>, vector<1x4x128xbf16>
        %156 = vector.shape_cast %155 : vector<1x4x128xbf16> to vector<4x128xbf16>
        %157 = vector.shape_cast %153 : vector<4x128xbf16> to vector<1x4x128xbf16>
        tpu.vector_store %arg7[%154, %c44, %c0_100], %157 {strides = array<i32>} : memref<12x100x128xbf16, #tpu.memory_space<vmem>>, vector<1x4x128xbf16>,
        %c0_101 = arith.constant 0 : index
        %158 = arith.index_cast %arg8 : i32 to index
        %c0_102 = arith.constant 0 : index
        %c26 = arith.constant 26 : index
        %159 = vector.load %arg2[%c0_101, %158, %c0_102, %c26] : memref<1x12x4x256xbf16, #tpu.memory_space<vmem>>, vector<1x1x4x128xbf16>
        %160 = vector.shape_cast %159 : vector<1x1x4x128xbf16> to vector<4x128xbf16>
        %161 = arith.index_cast %arg8 : i32 to index
        %c48 = arith.constant 48 : index
        %c0_103 = arith.constant 0 : index
        %162 = vector.load %arg7[%161, %c48, %c0_103] : memref<12x100x128xbf16, #tpu.memory_space<vmem>>, vector<1x4x128xbf16>
        %163 = vector.shape_cast %162 : vector<1x4x128xbf16> to vector<4x128xbf16>
        %164 = vector.shape_cast %160 : vector<4x128xbf16> to vector<1x4x128xbf16>
        tpu.vector_store %arg7[%161, %c48, %c0_103], %164 {strides = array<i32>} : memref<12x100x128xbf16, #tpu.memory_space<vmem>>, vector<1x4x128xbf16>,
        %c0_104 = arith.constant 0 : index
        %165 = arith.index_cast %arg8 : i32 to index
        %c0_105 = arith.constant 0 : index
        %c27 = arith.constant 27 : index
        %166 = vector.load %arg2[%c0_104, %165, %c0_105, %c27] : memref<1x12x4x256xbf16, #tpu.memory_space<vmem>>, vector<1x1x4x128xbf16>
        %167 = vector.shape_cast %166 : vector<1x1x4x128xbf16> to vector<4x128xbf16>
        %168 = arith.index_cast %arg8 : i32 to index
        %c52 = arith.constant 52 : index
        %c0_106 = arith.constant 0 : index
        %169 = vector.load %arg7[%168, %c52, %c0_106] : memref<12x100x128xbf16, #tpu.memory_space<vmem>>, vector<1x4x128xbf16>
        %170 = vector.shape_cast %169 : vector<1x4x128xbf16> to vector<4x128xbf16>
        %171 = vector.shape_cast %167 : vector<4x128xbf16> to vector<1x4x128xbf16>
        tpu.vector_store %arg7[%168, %c52, %c0_106], %171 {strides = array<i32>} : memref<12x100x128xbf16, #tpu.memory_space<vmem>>, vector<1x4x128xbf16>,
        %c0_107 = arith.constant 0 : index
        %172 = arith.index_cast %arg8 : i32 to index
        %c0_108 = arith.constant 0 : index
        %c28_109 = arith.constant 28 : index
        %173 = vector.load %arg2[%c0_107, %172, %c0_108, %c28_109] : memref<1x12x4x256xbf16, #tpu.memory_space<vmem>>, vector<1x1x4x128xbf16>
        %174 = vector.shape_cast %173 : vector<1x1x4x128xbf16> to vector<4x128xbf16>
        %175 = arith.index_cast %arg8 : i32 to index
        %c56 = arith.constant 56 : index
        %c0_110 = arith.constant 0 : index
        %176 = vector.load %arg7[%175, %c56, %c0_110] : memref<12x100x128xbf16, #tpu.memory_space<vmem>>, vector<1x4x128xbf16>
        %177 = vector.shape_cast %176 : vector<1x4x128xbf16> to vector<4x128xbf16>
        %178 = vector.shape_cast %174 : vector<4x128xbf16> to vector<1x4x128xbf16>
        tpu.vector_store %arg7[%175, %c56, %c0_110], %178 {strides = array<i32>} : memref<12x100x128xbf16, #tpu.memory_space<vmem>>, vector<1x4x128xbf16>,
        %c0_111 = arith.constant 0 : index
        %179 = arith.index_cast %arg8 : i32 to index
        %c0_112 = arith.constant 0 : index
        %c36_113 = arith.constant 36 : index
        %180 = vector.load %arg2[%c0_111, %179, %c0_112, %c36_113] : memref<1x12x4x256xbf16, #tpu.memory_space<vmem>>, vector<1x1x4x128xbf16>
        %181 = vector.shape_cast %180 : vector<1x1x4x128xbf16> to vector<4x128xbf16>
        %182 = arith.index_cast %arg8 : i32 to index
        %c60 = arith.constant 60 : index
        %c0_114 = arith.constant 0 : index
        %183 = vector.load %arg7[%182, %c60, %c0_114] : memref<12x100x128xbf16, #tpu.memory_space<vmem>>, vector<1x4x128xbf16>
        %184 = vector.shape_cast %183 : vector<1x4x128xbf16> to vector<4x128xbf16>
        %185 = vector.shape_cast %181 : vector<4x128xbf16> to vector<1x4x128xbf16>
        tpu.vector_store %arg7[%182, %c60, %c0_114], %185 {strides = array<i32>} : memref<12x100x128xbf16, #tpu.memory_space<vmem>>, vector<1x4x128xbf16>,
        %c0_115 = arith.constant 0 : index
        %186 = arith.index_cast %arg8 : i32 to index
        %c0_116 = arith.constant 0 : index
        %c37 = arith.constant 37 : index
        %187 = vector.load %arg2[%c0_115, %186, %c0_116, %c37] : memref<1x12x4x256xbf16, #tpu.memory_space<vmem>>, vector<1x1x4x128xbf16>
        %188 = vector.shape_cast %187 : vector<1x1x4x128xbf16> to vector<4x128xbf16>
        %189 = arith.index_cast %arg8 : i32 to index
        %c64 = arith.constant 64 : index
        %c0_117 = arith.constant 0 : index
        %190 = vector.load %arg7[%189, %c64, %c0_117] : memref<12x100x128xbf16, #tpu.memory_space<vmem>>, vector<1x4x128xbf16>
        %191 = vector.shape_cast %190 : vector<1x4x128xbf16> to vector<4x128xbf16>
        %192 = vector.shape_cast %188 : vector<4x128xbf16> to vector<1x4x128xbf16>
        tpu.vector_store %arg7[%189, %c64, %c0_117], %192 {strides = array<i32>} : memref<12x100x128xbf16, #tpu.memory_space<vmem>>, vector<1x4x128xbf16>,
        %c0_118 = arith.constant 0 : index
        %193 = arith.index_cast %arg8 : i32 to index
        %c0_119 = arith.constant 0 : index
        %c38 = arith.constant 38 : index
        %194 = vector.load %arg2[%c0_118, %193, %c0_119, %c38] : memref<1x12x4x256xbf16, #tpu.memory_space<vmem>>, vector<1x1x4x128xbf16>
        %195 = vector.shape_cast %194 : vector<1x1x4x128xbf16> to vector<4x128xbf16>
        %196 = arith.index_cast %arg8 : i32 to index
        %c68 = arith.constant 68 : index
        %c0_120 = arith.constant 0 : index
        %197 = vector.load %arg7[%196, %c68, %c0_120] : memref<12x100x128xbf16, #tpu.memory_space<vmem>>, vector<1x4x128xbf16>
        %198 = vector.shape_cast %197 : vector<1x4x128xbf16> to vector<4x128xbf16>
        %199 = vector.shape_cast %195 : vector<4x128xbf16> to vector<1x4x128xbf16>
        tpu.vector_store %arg7[%196, %c68, %c0_120], %199 {strides = array<i32>} : memref<12x100x128xbf16, #tpu.memory_space<vmem>>, vector<1x4x128xbf16>,
        %c0_121 = arith.constant 0 : index
        %200 = arith.index_cast %arg8 : i32 to index
        %c0_122 = arith.constant 0 : index
        %c39 = arith.constant 39 : index
        %201 = vector.load %arg2[%c0_121, %200, %c0_122, %c39] : memref<1x12x4x256xbf16, #tpu.memory_space<vmem>>, vector<1x1x4x128xbf16>
        %202 = vector.shape_cast %201 : vector<1x1x4x128xbf16> to vector<4x128xbf16>
        %203 = arith.index_cast %arg8 : i32 to index
        %c72 = arith.constant 72 : index
        %c0_123 = arith.constant 0 : index
        %204 = vector.load %arg7[%203, %c72, %c0_123] : memref<12x100x128xbf16, #tpu.memory_space<vmem>>, vector<1x4x128xbf16>
        %205 = vector.shape_cast %204 : vector<1x4x128xbf16> to vector<4x128xbf16>
        %206 = vector.shape_cast %202 : vector<4x128xbf16> to vector<1x4x128xbf16>
        tpu.vector_store %arg7[%203, %c72, %c0_123], %206 {strides = array<i32>} : memref<12x100x128xbf16, #tpu.memory_space<vmem>>, vector<1x4x128xbf16>,
        %c0_124 = arith.constant 0 : index
        %207 = arith.index_cast %arg8 : i32 to index
        %c0_125 = arith.constant 0 : index
        %c40_126 = arith.constant 40 : index
        %208 = vector.load %arg2[%c0_124, %207, %c0_125, %c40_126] : memref<1x12x4x256xbf16, #tpu.memory_space<vmem>>, vector<1x1x4x128xbf16>
        %209 = vector.shape_cast %208 : vector<1x1x4x128xbf16> to vector<4x128xbf16>
        %210 = arith.index_cast %arg8 : i32 to index
        %c76 = arith.constant 76 : index
        %c0_127 = arith.constant 0 : index
        %211 = vector.load %arg7[%210, %c76, %c0_127] : memref<12x100x128xbf16, #tpu.memory_space<vmem>>, vector<1x4x128xbf16>
        %212 = vector.shape_cast %211 : vector<1x4x128xbf16> to vector<4x128xbf16>
        %213 = vector.shape_cast %209 : vector<4x128xbf16> to vector<1x4x128xbf16>
        tpu.vector_store %arg7[%210, %c76, %c0_127], %213 {strides = array<i32>} : memref<12x100x128xbf16, #tpu.memory_space<vmem>>, vector<1x4x128xbf16>,
        %c0_128 = arith.constant 0 : index
        %214 = arith.index_cast %arg8 : i32 to index
        %c0_129 = arith.constant 0 : index
        %c48_130 = arith.constant 48 : index
        %215 = vector.load %arg2[%c0_128, %214, %c0_129, %c48_130] : memref<1x12x4x256xbf16, #tpu.memory_space<vmem>>, vector<1x1x4x128xbf16>
        %216 = vector.shape_cast %215 : vector<1x1x4x128xbf16> to vector<4x128xbf16>
        %217 = arith.index_cast %arg8 : i32 to index
        %c80 = arith.constant 80 : index
        %c0_131 = arith.constant 0 : index
        %218 = vector.load %arg7[%217, %c80, %c0_131] : memref<12x100x128xbf16, #tpu.memory_space<vmem>>, vector<1x4x128xbf16>
        %219 = vector.shape_cast %218 : vector<1x4x128xbf16> to vector<4x128xbf16>
        %220 = vector.shape_cast %216 : vector<4x128xbf16> to vector<1x4x128xbf16>
        tpu.vector_store %arg7[%217, %c80, %c0_131], %220 {strides = array<i32>} : memref<12x100x128xbf16, #tpu.memory_space<vmem>>, vector<1x4x128xbf16>,
        %c0_132 = arith.constant 0 : index
        %221 = arith.index_cast %arg8 : i32 to index
        %c0_133 = arith.constant 0 : index
        %c49 = arith.constant 49 : index
        %222 = vector.load %arg2[%c0_132, %221, %c0_133, %c49] : memref<1x12x4x256xbf16, #tpu.memory_space<vmem>>, vector<1x1x4x128xbf16>
        %223 = vector.shape_cast %222 : vector<1x1x4x128xbf16> to vector<4x128xbf16>
        %224 = arith.index_cast %arg8 : i32 to index
        %c84 = arith.constant 84 : index
        %c0_134 = arith.constant 0 : index
        %225 = vector.load %arg7[%224, %c84, %c0_134] : memref<12x100x128xbf16, #tpu.memory_space<vmem>>, vector<1x4x128xbf16>
        %226 = vector.shape_cast %225 : vector<1x4x128xbf16> to vector<4x128xbf16>
        %227 = vector.shape_cast %223 : vector<4x128xbf16> to vector<1x4x128xbf16>
        tpu.vector_store %arg7[%224, %c84, %c0_134], %227 {strides = array<i32>} : memref<12x100x128xbf16, #tpu.memory_space<vmem>>, vector<1x4x128xbf16>,
        %c0_135 = arith.constant 0 : index
        %228 = arith.index_cast %arg8 : i32 to index
        %c0_136 = arith.constant 0 : index
        %c50 = arith.constant 50 : index
        %229 = vector.load %arg2[%c0_135, %228, %c0_136, %c50] : memref<1x12x4x256xbf16, #tpu.memory_space<vmem>>, vector<1x1x4x128xbf16>
        %230 = vector.shape_cast %229 : vector<1x1x4x128xbf16> to vector<4x128xbf16>
        %231 = arith.index_cast %arg8 : i32 to index
        %c88 = arith.constant 88 : index
        %c0_137 = arith.constant 0 : index
        %232 = vector.load %arg7[%231, %c88, %c0_137] : memref<12x100x128xbf16, #tpu.memory_space<vmem>>, vector<1x4x128xbf16>
        %233 = vector.shape_cast %232 : vector<1x4x128xbf16> to vector<4x128xbf16>
        %234 = vector.shape_cast %230 : vector<4x128xbf16> to vector<1x4x128xbf16>
        tpu.vector_store %arg7[%231, %c88, %c0_137], %234 {strides = array<i32>} : memref<12x100x128xbf16, #tpu.memory_space<vmem>>, vector<1x4x128xbf16>,
        %c0_138 = arith.constant 0 : index
        %235 = arith.index_cast %arg8 : i32 to index
        %c0_139 = arith.constant 0 : index
        %c51 = arith.constant 51 : index
        %236 = vector.load %arg2[%c0_138, %235, %c0_139, %c51] : memref<1x12x4x256xbf16, #tpu.memory_space<vmem>>, vector<1x1x4x128xbf16>
        %237 = vector.shape_cast %236 : vector<1x1x4x128xbf16> to vector<4x128xbf16>
        %238 = arith.index_cast %arg8 : i32 to index
        %c92 = arith.constant 92 : index
        %c0_140 = arith.constant 0 : index
        %239 = vector.load %arg7[%238, %c92, %c0_140] : memref<12x100x128xbf16, #tpu.memory_space<vmem>>, vector<1x4x128xbf16>
        %240 = vector.shape_cast %239 : vector<1x4x128xbf16> to vector<4x128xbf16>
        %241 = vector.shape_cast %237 : vector<4x128xbf16> to vector<1x4x128xbf16>
        tpu.vector_store %arg7[%238, %c92, %c0_140], %241 {strides = array<i32>} : memref<12x100x128xbf16, #tpu.memory_space<vmem>>, vector<1x4x128xbf16>,
        %c0_141 = arith.constant 0 : index
        %242 = arith.index_cast %arg8 : i32 to index
        %c0_142 = arith.constant 0 : index
        %c52_143 = arith.constant 52 : index
        %243 = vector.load %arg2[%c0_141, %242, %c0_142, %c52_143] : memref<1x12x4x256xbf16, #tpu.memory_space<vmem>>, vector<1x1x4x128xbf16>
        %244 = vector.shape_cast %243 : vector<1x1x4x128xbf16> to vector<4x128xbf16>
        %245 = arith.index_cast %arg8 : i32 to index
        %c96 = arith.constant 96 : index
        %c0_144 = arith.constant 0 : index
        %246 = vector.load %arg7[%245, %c96, %c0_144] : memref<12x100x128xbf16, #tpu.memory_space<vmem>>, vector<1x4x128xbf16>
        %247 = vector.shape_cast %246 : vector<1x4x128xbf16> to vector<4x128xbf16>
        %248 = vector.shape_cast %244 : vector<4x128xbf16> to vector<1x4x128xbf16>
        tpu.vector_store %arg7[%245, %c96, %c0_144], %248 {strides = array<i32>} : memref<12x100x128xbf16, #tpu.memory_space<vmem>>, vector<1x4x128xbf16>,
      }
      %c12_i32_54 = arith.constant 12 : i32
    } else {
    }
    %c0 = arith.constant 0 : index
    %c0_1 = arith.constant 0 : index
    %3 = vector.load %arg5[%c0, %c0_1] : memref<1x128xf32, #tpu.memory_space<vmem>>, vector<1x128xf32>
    %cst = arith.constant 5.000000e-01 : f32
    %4 = vector.broadcast %cst : f32 to vector<1x128xf32>
    %5 = arith.cmpf ogt, %3, %4 : vector<1x128xf32>
    %c0_2 = arith.constant 0 : index
    %c0_3 = arith.constant 0 : index
    %6 = vector.load %arg4[%c0_2, %c0_3] : memref<1x1xf32, #tpu.memory_space<vmem>>, vector<1x1xf32>
    %c6_i32 = arith.constant 6 : i32
    %7 = arith.muli %arg1, %c6_i32 : i32
    %c0_i32_4 = arith.constant 0 : i32
    %8 = arith.addi %7, %c0_i32_4 : i32
    %c2_i32 = arith.constant 2 : i32
    %9 = arith.cmpi sge, %8, %c2_i32 : i32
    %c10_i32 = arith.constant 10 : i32
    %10 = arith.cmpi slt, %8, %c10_i32 : i32
    %11 = arith.andi %9, %10 : i1
    %cst_5 = arith.constant 0.000000e+00 : f32
    %12 = vector.broadcast %cst_5 : f32 to vector<1x256xf32>
    %c0_6 = arith.constant 0 : index
    %c0_7 = arith.constant 0 : index
    %c0_8 = arith.constant 0 : index
    %c0_9 = arith.constant 0 : index
    %13 = vector.load %arg6[%c0_6, %c0_7, %c0_8, %c0_9] : memref<1x6x1x256xf32, #tpu.memory_space<vmem>>, vector<1x1x1x256xf32>
    %14 = vector.shape_cast %13 : vector<1x1x1x256xf32> to vector<1x256xf32>
    %15 = vector.shape_cast %12 : vector<1x256xf32> to vector<1x1x1x256xf32>
    tpu.vector_store %arg6[%c0_6, %c0_7, %c0_8, %c0_9], %15 {strides = array<i32>} : memref<1x6x1x256xf32, #tpu.memory_space<vmem>>, vector<1x1x1x256xf32>,
    %16 = arith.extui %11 : i1 to i32
    %c0_i32_10 = arith.constant 0 : i32
    %17 = arith.cmpi ne, %16, %c0_i32_10 : i32
    scf.if %17 {
      %c2_i32_52 = arith.constant 2 : i32
      %73 = arith.subi %8, %c2_i32_52 : i32
      %cst_53 = arith.constant 0.000000e+00 : f32
      %74 = vector.broadcast %cst_53 : f32 to vector<1x128xf32>
      %c0_54 = arith.constant 0 : index
      %c0_55 = arith.constant 0 : index
      %c0_56 = arith.constant 0 : index
      %75 = vector.load %arg3[%c0_54, %c0_55, %c0_56] : memref<5x1x100xbf16, #tpu.memory_space<vmem>>, vector<1x1x100xbf16>
      %76 = vector.shape_cast %75 : vector<1x1x100xbf16> to vector<1x100xbf16>
      %c0_i32_57 = arith.constant 0 : i32
      %77 = arith.addi %73, %c0_i32_57 : i32
      %78 = arith.index_cast %77 : i32 to index
      %c0_58 = arith.constant 0 : index
      %c0_59 = arith.constant 0 : index
      %79 = vector.load %arg7[%78, %c0_58, %c0_59] : memref<12x100x128xbf16, #tpu.memory_space<vmem>>, vector<1x100x128xbf16>
      %80 = vector.shape_cast %79 : vector<1x100x128xbf16> to vector<100x128xbf16>
      %cst_60 = arith.constant dense<0.000000e+00> : vector<1x128xf32>
      %81 = tpu.matmul %76, %80, %cst_60 {dimension_numbers = #tpu.dot_dimension_numbers<[1], [0], [0], [1], [0, 0, 1, 1], [], []>} : vector<1x100xbf16>, vector<100x128xbf16>, vector<1x128xf32> -> vector<1x128xf32>
      %82 = arith.addf %74, %81 : vector<1x128xf32>
      %c1_61 = arith.constant 1 : index
      %c0_62 = arith.constant 0 : index
      %c0_63 = arith.constant 0 : index
      %83 = vector.load %arg3[%c1_61, %c0_62, %c0_63] : memref<5x1x100xbf16, #tpu.memory_space<vmem>>, vector<1x1x100xbf16>
      %84 = vector.shape_cast %83 : vector<1x1x100xbf16> to vector<1x100xbf16>
      %c1_i32_64 = arith.constant 1 : i32
      %85 = arith.addi %73, %c1_i32_64 : i32
      %86 = arith.index_cast %85 : i32 to index
      %c0_65 = arith.constant 0 : index
      %c0_66 = arith.constant 0 : index
      %87 = vector.load %arg7[%86, %c0_65, %c0_66] : memref<12x100x128xbf16, #tpu.memory_space<vmem>>, vector<1x100x128xbf16>
      %88 = vector.shape_cast %87 : vector<1x100x128xbf16> to vector<100x128xbf16>
      %cst_67 = arith.constant dense<0.000000e+00> : vector<1x128xf32>
      %89 = tpu.matmul %84, %88, %cst_67 {dimension_numbers = #tpu.dot_dimension_numbers<[1], [0], [0], [1], [0, 0, 1, 1], [], []>} : vector<1x100xbf16>, vector<100x128xbf16>, vector<1x128xf32> -> vector<1x128xf32>
      %90 = arith.addf %82, %89 : vector<1x128xf32>
      %c2_68 = arith.constant 2 : index
      %c0_69 = arith.constant 0 : index
      %c0_70 = arith.constant 0 : index
      %91 = vector.load %arg3[%c2_68, %c0_69, %c0_70] : memref<5x1x100xbf16, #tpu.memory_space<vmem>>, vector<1x1x100xbf16>
      %92 = vector.shape_cast %91 : vector<1x1x100xbf16> to vector<1x100xbf16>
      %c2_i32_71 = arith.constant 2 : i32
      %93 = arith.addi %73, %c2_i32_71 : i32
      %94 = arith.index_cast %93 : i32 to index
      %c0_72 = arith.constant 0 : index
      %c0_73 = arith.constant 0 : index
      %95 = vector.load %arg7[%94, %c0_72, %c0_73] : memref<12x100x128xbf16, #tpu.memory_space<vmem>>, vector<1x100x128xbf16>
      %96 = vector.shape_cast %95 : vector<1x100x128xbf16> to vector<100x128xbf16>
      %cst_74 = arith.constant dense<0.000000e+00> : vector<1x128xf32>
      %97 = tpu.matmul %92, %96, %cst_74 {dimension_numbers = #tpu.dot_dimension_numbers<[1], [0], [0], [1], [0, 0, 1, 1], [], []>} : vector<1x100xbf16>, vector<100x128xbf16>, vector<1x128xf32> -> vector<1x128xf32>
      %98 = arith.addf %90, %97 : vector<1x128xf32>
      %c3_75 = arith.constant 3 : index
      %c0_76 = arith.constant 0 : index
      %c0_77 = arith.constant 0 : index
      %99 = vector.load %arg3[%c3_75, %c0_76, %c0_77] : memref<5x1x100xbf16, #tpu.memory_space<vmem>>, vector<1x1x100xbf16>
      %100 = vector.shape_cast %99 : vector<1x1x100xbf16> to vector<1x100xbf16>
      %c3_i32_78 = arith.constant 3 : i32
      %101 = arith.addi %73, %c3_i32_78 : i32
      %102 = arith.index_cast %101 : i32 to index
      %c0_79 = arith.constant 0 : index
      %c0_80 = arith.constant 0 : index
      %103 = vector.load %arg7[%102, %c0_79, %c0_80] : memref<12x100x128xbf16, #tpu.memory_space<vmem>>, vector<1x100x128xbf16>
      %104 = vector.shape_cast %103 : vector<1x100x128xbf16> to vector<100x128xbf16>
      %cst_81 = arith.constant dense<0.000000e+00> : vector<1x128xf32>
      %105 = tpu.matmul %100, %104, %cst_81 {dimension_numbers = #tpu.dot_dimension_numbers<[1], [0], [0], [1], [0, 0, 1, 1], [], []>} : vector<1x100xbf16>, vector<100x128xbf16>, vector<1x128xf32> -> vector<1x128xf32>
      %106 = arith.addf %98, %105 : vector<1x128xf32>
      %c4_82 = arith.constant 4 : index
      %c0_83 = arith.constant 0 : index
      %c0_84 = arith.constant 0 : index
      %107 = vector.load %arg3[%c4_82, %c0_83, %c0_84] : memref<5x1x100xbf16, #tpu.memory_space<vmem>>, vector<1x1x100xbf16>
      %108 = vector.shape_cast %107 : vector<1x1x100xbf16> to vector<1x100xbf16>
      %c4_i32_85 = arith.constant 4 : i32
      %109 = arith.addi %73, %c4_i32_85 : i32
      %110 = arith.index_cast %109 : i32 to index
      %c0_86 = arith.constant 0 : index
      %c0_87 = arith.constant 0 : index
      %111 = vector.load %arg7[%110, %c0_86, %c0_87] : memref<12x100x128xbf16, #tpu.memory_space<vmem>>, vector<1x100x128xbf16>
      %112 = vector.shape_cast %111 : vector<1x100x128xbf16> to vector<100x128xbf16>
      %cst_88 = arith.constant dense<0.000000e+00> : vector<1x128xf32>
      %113 = tpu.matmul %108, %112, %cst_88 {dimension_numbers = #tpu.dot_dimension_numbers<[1], [0], [0], [1], [0, 0, 1, 1], [], []>} : vector<1x100xbf16>, vector<100x128xbf16>, vector<1x128xf32> -> vector<1x128xf32>
      %114 = arith.addf %106, %113 : vector<1x128xf32>
      %115 = vector.broadcast %6 : vector<1x1xf32> to vector<1x128xf32>
      %116 = arith.addf %114, %115 : vector<1x128xf32>
      %cst_89 = arith.constant 0.000000e+00 : f32
      %117 = vector.broadcast %cst_89 : f32 to vector<1x128xf32>
      %118 = arith.select %5, %116, %117 : vector<1x128xi1>, vector<1x128xf32>
      %c0_90 = arith.constant 0 : index
      %c0_91 = arith.constant 0 : index
      %c0_92 = arith.constant 0 : index
      %c26 = arith.constant 26 : index
      %119 = vector.load %arg6[%c0_90, %c0_91, %c0_92, %c26] : memref<1x6x1x256xf32, #tpu.memory_space<vmem>>, vector<1x1x1x128xf32>
      %120 = vector.shape_cast %119 : vector<1x1x1x128xf32> to vector<1x128xf32>
      %121 = vector.shape_cast %118 : vector<1x128xf32> to vector<1x1x1x128xf32>
      tpu.vector_store %arg6[%c0_90, %c0_91, %c0_92, %c26], %121 {strides = array<i32>} : memref<1x6x1x256xf32, #tpu.memory_space<vmem>>, vector<1x1x1x128xf32>,
    } else {
    }
    %c6_i32_11 = arith.constant 6 : i32
    %18 = arith.muli %arg1, %c6_i32_11 : i32
    %c1_i32 = arith.constant 1 : i32
    %19 = arith.addi %18, %c1_i32 : i32
    %c2_i32_12 = arith.constant 2 : i32
    %20 = arith.cmpi sge, %19, %c2_i32_12 : i32
    %c10_i32_13 = arith.constant 10 : i32
    %21 = arith.cmpi slt, %19, %c10_i32_13 : i32
    %22 = arith.andi %20, %21 : i1
    %cst_14 = arith.constant 0.000000e+00 : f32
    %23 = vector.broadcast %cst_14 : f32 to vector<1x256xf32>
    %c0_15 = arith.constant 0 : index
    %c1 = arith.constant 1 : index
    %c0_16 = arith.constant 0 : index
    %c0_17 = arith.constant 0 : index
    %24 = vector.load %arg6[%c0_15, %c1, %c0_16, %c0_17] : memref<1x6x1x256xf32, #tpu.memory_space<vmem>>, vector<1x1x1x256xf32>
    %25 = vector.shape_cast %24 : vector<1x1x1x256xf32> to vector<1x256xf32>
    %26 = vector.shape_cast %23 : vector<1x256xf32> to vector<1x1x1x256xf32>
    tpu.vector_store %arg6[%c0_15, %c1, %c0_16, %c0_17], %26 {strides = array<i32>} : memref<1x6x1x256xf32, #tpu.memory_space<vmem>>, vector<1x1x1x256xf32>,
    %27 = arith.extui %22 : i1 to i32
    %c0_i32_18 = arith.constant 0 : i32
    %28 = arith.cmpi ne, %27, %c0_i32_18 : i32
    scf.if %28 {
      %c2_i32_52 = arith.constant 2 : i32
      %73 = arith.subi %19, %c2_i32_52 : i32
      %cst_53 = arith.constant 0.000000e+00 : f32
      %74 = vector.broadcast %cst_53 : f32 to vector<1x128xf32>
      %c0_54 = arith.constant 0 : index
      %c0_55 = arith.constant 0 : index
      %c0_56 = arith.constant 0 : index
      %75 = vector.load %arg3[%c0_54, %c0_55, %c0_56] : memref<5x1x100xbf16, #tpu.memory_space<vmem>>, vector<1x1x100xbf16>
      %76 = vector.shape_cast %75 : vector<1x1x100xbf16> to vector<1x100xbf16>
      %c0_i32_57 = arith.constant 0 : i32
      %77 = arith.addi %73, %c0_i32_57 : i32
      %78 = arith.index_cast %77 : i32 to index
      %c0_58 = arith.constant 0 : index
      %c0_59 = arith.constant 0 : index
      %79 = vector.load %arg7[%78, %c0_58, %c0_59] : memref<12x100x128xbf16, #tpu.memory_space<vmem>>, vector<1x100x128xbf16>
      %80 = vector.shape_cast %79 : vector<1x100x128xbf16> to vector<100x128xbf16>
      %cst_60 = arith.constant dense<0.000000e+00> : vector<1x128xf32>
      %81 = tpu.matmul %76, %80, %cst_60 {dimension_numbers = #tpu.dot_dimension_numbers<[1], [0], [0], [1], [0, 0, 1, 1], [], []>} : vector<1x100xbf16>, vector<100x128xbf16>, vector<1x128xf32> -> vector<1x128xf32>
      %82 = arith.addf %74, %81 : vector<1x128xf32>
      %c1_61 = arith.constant 1 : index
      %c0_62 = arith.constant 0 : index
      %c0_63 = arith.constant 0 : index
      %83 = vector.load %arg3[%c1_61, %c0_62, %c0_63] : memref<5x1x100xbf16, #tpu.memory_space<vmem>>, vector<1x1x100xbf16>
      %84 = vector.shape_cast %83 : vector<1x1x100xbf16> to vector<1x100xbf16>
      %c1_i32_64 = arith.constant 1 : i32
      %85 = arith.addi %73, %c1_i32_64 : i32
      %86 = arith.index_cast %85 : i32 to index
      %c0_65 = arith.constant 0 : index
      %c0_66 = arith.constant 0 : index
      %87 = vector.load %arg7[%86, %c0_65, %c0_66] : memref<12x100x128xbf16, #tpu.memory_space<vmem>>, vector<1x100x128xbf16>
      %88 = vector.shape_cast %87 : vector<1x100x128xbf16> to vector<100x128xbf16>
      %cst_67 = arith.constant dense<0.000000e+00> : vector<1x128xf32>
      %89 = tpu.matmul %84, %88, %cst_67 {dimension_numbers = #tpu.dot_dimension_numbers<[1], [0], [0], [1], [0, 0, 1, 1], [], []>} : vector<1x100xbf16>, vector<100x128xbf16>, vector<1x128xf32> -> vector<1x128xf32>
      %90 = arith.addf %82, %89 : vector<1x128xf32>
      %c2_68 = arith.constant 2 : index
      %c0_69 = arith.constant 0 : index
      %c0_70 = arith.constant 0 : index
      %91 = vector.load %arg3[%c2_68, %c0_69, %c0_70] : memref<5x1x100xbf16, #tpu.memory_space<vmem>>, vector<1x1x100xbf16>
      %92 = vector.shape_cast %91 : vector<1x1x100xbf16> to vector<1x100xbf16>
      %c2_i32_71 = arith.constant 2 : i32
      %93 = arith.addi %73, %c2_i32_71 : i32
      %94 = arith.index_cast %93 : i32 to index
      %c0_72 = arith.constant 0 : index
      %c0_73 = arith.constant 0 : index
      %95 = vector.load %arg7[%94, %c0_72, %c0_73] : memref<12x100x128xbf16, #tpu.memory_space<vmem>>, vector<1x100x128xbf16>
      %96 = vector.shape_cast %95 : vector<1x100x128xbf16> to vector<100x128xbf16>
      %cst_74 = arith.constant dense<0.000000e+00> : vector<1x128xf32>
      %97 = tpu.matmul %92, %96, %cst_74 {dimension_numbers = #tpu.dot_dimension_numbers<[1], [0], [0], [1], [0, 0, 1, 1], [], []>} : vector<1x100xbf16>, vector<100x128xbf16>, vector<1x128xf32> -> vector<1x128xf32>
      %98 = arith.addf %90, %97 : vector<1x128xf32>
      %c3_75 = arith.constant 3 : index
      %c0_76 = arith.constant 0 : index
      %c0_77 = arith.constant 0 : index
      %99 = vector.load %arg3[%c3_75, %c0_76, %c0_77] : memref<5x1x100xbf16, #tpu.memory_space<vmem>>, vector<1x1x100xbf16>
      %100 = vector.shape_cast %99 : vector<1x1x100xbf16> to vector<1x100xbf16>
      %c3_i32_78 = arith.constant 3 : i32
      %101 = arith.addi %73, %c3_i32_78 : i32
      %102 = arith.index_cast %101 : i32 to index
      %c0_79 = arith.constant 0 : index
      %c0_80 = arith.constant 0 : index
      %103 = vector.load %arg7[%102, %c0_79, %c0_80] : memref<12x100x128xbf16, #tpu.memory_space<vmem>>, vector<1x100x128xbf16>
      %104 = vector.shape_cast %103 : vector<1x100x128xbf16> to vector<100x128xbf16>
      %cst_81 = arith.constant dense<0.000000e+00> : vector<1x128xf32>
      %105 = tpu.matmul %100, %104, %cst_81 {dimension_numbers = #tpu.dot_dimension_numbers<[1], [0], [0], [1], [0, 0, 1, 1], [], []>} : vector<1x100xbf16>, vector<100x128xbf16>, vector<1x128xf32> -> vector<1x128xf32>
      %106 = arith.addf %98, %105 : vector<1x128xf32>
      %c4_82 = arith.constant 4 : index
      %c0_83 = arith.constant 0 : index
      %c0_84 = arith.constant 0 : index
      %107 = vector.load %arg3[%c4_82, %c0_83, %c0_84] : memref<5x1x100xbf16, #tpu.memory_space<vmem>>, vector<1x1x100xbf16>
      %108 = vector.shape_cast %107 : vector<1x1x100xbf16> to vector<1x100xbf16>
      %c4_i32_85 = arith.constant 4 : i32
      %109 = arith.addi %73, %c4_i32_85 : i32
      %110 = arith.index_cast %109 : i32 to index
      %c0_86 = arith.constant 0 : index
      %c0_87 = arith.constant 0 : index
      %111 = vector.load %arg7[%110, %c0_86, %c0_87] : memref<12x100x128xbf16, #tpu.memory_space<vmem>>, vector<1x100x128xbf16>
      %112 = vector.shape_cast %111 : vector<1x100x128xbf16> to vector<100x128xbf16>
      %cst_88 = arith.constant dense<0.000000e+00> : vector<1x128xf32>
      %113 = tpu.matmul %108, %112, %cst_88 {dimension_numbers = #tpu.dot_dimension_numbers<[1], [0], [0], [1], [0, 0, 1, 1], [], []>} : vector<1x100xbf16>, vector<100x128xbf16>, vector<1x128xf32> -> vector<1x128xf32>
      %114 = arith.addf %106, %113 : vector<1x128xf32>
      %115 = vector.broadcast %6 : vector<1x1xf32> to vector<1x128xf32>
      %116 = arith.addf %114, %115 : vector<1x128xf32>
      %cst_89 = arith.constant 0.000000e+00 : f32
      %117 = vector.broadcast %cst_89 : f32 to vector<1x128xf32>
      %118 = arith.select %5, %116, %117 : vector<1x128xi1>, vector<1x128xf32>
      %c0_90 = arith.constant 0 : index
      %c1_91 = arith.constant 1 : index
      %c0_92 = arith.constant 0 : index
      %c26 = arith.constant 26 : index
      %119 = vector.load %arg6[%c0_90, %c1_91, %c0_92, %c26] : memref<1x6x1x256xf32, #tpu.memory_space<vmem>>, vector<1x1x1x128xf32>
      %120 = vector.shape_cast %119 : vector<1x1x1x128xf32> to vector<1x128xf32>
      %121 = vector.shape_cast %118 : vector<1x128xf32> to vector<1x1x1x128xf32>
      tpu.vector_store %arg6[%c0_90, %c1_91, %c0_92, %c26], %121 {strides = array<i32>} : memref<1x6x1x256xf32, #tpu.memory_space<vmem>>, vector<1x1x1x128xf32>,
    } else {
    }
    %c6_i32_19 = arith.constant 6 : i32
    %29 = arith.muli %arg1, %c6_i32_19 : i32
    %c2_i32_20 = arith.constant 2 : i32
    %30 = arith.addi %29, %c2_i32_20 : i32
    %c2_i32_21 = arith.constant 2 : i32
    %31 = arith.cmpi sge, %30, %c2_i32_21 : i32
    %c10_i32_22 = arith.constant 10 : i32
    %32 = arith.cmpi slt, %30, %c10_i32_22 : i32
    %33 = arith.andi %31, %32 : i1
    %cst_23 = arith.constant 0.000000e+00 : f32
    %34 = vector.broadcast %cst_23 : f32 to vector<1x256xf32>
    %c0_24 = arith.constant 0 : index
    %c2 = arith.constant 2 : index
    %c0_25 = arith.constant 0 : index
    %c0_26 = arith.constant 0 : index
    %35 = vector.load %arg6[%c0_24, %c2, %c0_25, %c0_26] : memref<1x6x1x256xf32, #tpu.memory_space<vmem>>, vector<1x1x1x256xf32>
    %36 = vector.shape_cast %35 : vector<1x1x1x256xf32> to vector<1x256xf32>
    %37 = vector.shape_cast %34 : vector<1x256xf32> to vector<1x1x1x256xf32>
    tpu.vector_store %arg6[%c0_24, %c2, %c0_25, %c0_26], %37 {strides = array<i32>} : memref<1x6x1x256xf32, #tpu.memory_space<vmem>>, vector<1x1x1x256xf32>,
    %38 = arith.extui %33 : i1 to i32
    %c0_i32_27 = arith.constant 0 : i32
    %39 = arith.cmpi ne, %38, %c0_i32_27 : i32
    scf.if %39 {
      %c2_i32_52 = arith.constant 2 : i32
      %73 = arith.subi %30, %c2_i32_52 : i32
      %cst_53 = arith.constant 0.000000e+00 : f32
      %74 = vector.broadcast %cst_53 : f32 to vector<1x128xf32>
      %c0_54 = arith.constant 0 : index
      %c0_55 = arith.constant 0 : index
      %c0_56 = arith.constant 0 : index
      %75 = vector.load %arg3[%c0_54, %c0_55, %c0_56] : memref<5x1x100xbf16, #tpu.memory_space<vmem>>, vector<1x1x100xbf16>
      %76 = vector.shape_cast %75 : vector<1x1x100xbf16> to vector<1x100xbf16>
      %c0_i32_57 = arith.constant 0 : i32
      %77 = arith.addi %73, %c0_i32_57 : i32
      %78 = arith.index_cast %77 : i32 to index
      %c0_58 = arith.constant 0 : index
      %c0_59 = arith.constant 0 : index
      %79 = vector.load %arg7[%78, %c0_58, %c0_59] : memref<12x100x128xbf16, #tpu.memory_space<vmem>>, vector<1x100x128xbf16>
      %80 = vector.shape_cast %79 : vector<1x100x128xbf16> to vector<100x128xbf16>
      %cst_60 = arith.constant dense<0.000000e+00> : vector<1x128xf32>
      %81 = tpu.matmul %76, %80, %cst_60 {dimension_numbers = #tpu.dot_dimension_numbers<[1], [0], [0], [1], [0, 0, 1, 1], [], []>} : vector<1x100xbf16>, vector<100x128xbf16>, vector<1x128xf32> -> vector<1x128xf32>
      %82 = arith.addf %74, %81 : vector<1x128xf32>
      %c1_61 = arith.constant 1 : index
      %c0_62 = arith.constant 0 : index
      %c0_63 = arith.constant 0 : index
      %83 = vector.load %arg3[%c1_61, %c0_62, %c0_63] : memref<5x1x100xbf16, #tpu.memory_space<vmem>>, vector<1x1x100xbf16>
      %84 = vector.shape_cast %83 : vector<1x1x100xbf16> to vector<1x100xbf16>
      %c1_i32_64 = arith.constant 1 : i32
      %85 = arith.addi %73, %c1_i32_64 : i32
      %86 = arith.index_cast %85 : i32 to index
      %c0_65 = arith.constant 0 : index
      %c0_66 = arith.constant 0 : index
      %87 = vector.load %arg7[%86, %c0_65, %c0_66] : memref<12x100x128xbf16, #tpu.memory_space<vmem>>, vector<1x100x128xbf16>
      %88 = vector.shape_cast %87 : vector<1x100x128xbf16> to vector<100x128xbf16>
      %cst_67 = arith.constant dense<0.000000e+00> : vector<1x128xf32>
      %89 = tpu.matmul %84, %88, %cst_67 {dimension_numbers = #tpu.dot_dimension_numbers<[1], [0], [0], [1], [0, 0, 1, 1], [], []>} : vector<1x100xbf16>, vector<100x128xbf16>, vector<1x128xf32> -> vector<1x128xf32>
      %90 = arith.addf %82, %89 : vector<1x128xf32>
      %c2_68 = arith.constant 2 : index
      %c0_69 = arith.constant 0 : index
      %c0_70 = arith.constant 0 : index
      %91 = vector.load %arg3[%c2_68, %c0_69, %c0_70] : memref<5x1x100xbf16, #tpu.memory_space<vmem>>, vector<1x1x100xbf16>
      %92 = vector.shape_cast %91 : vector<1x1x100xbf16> to vector<1x100xbf16>
      %c2_i32_71 = arith.constant 2 : i32
      %93 = arith.addi %73, %c2_i32_71 : i32
      %94 = arith.index_cast %93 : i32 to index
      %c0_72 = arith.constant 0 : index
      %c0_73 = arith.constant 0 : index
      %95 = vector.load %arg7[%94, %c0_72, %c0_73] : memref<12x100x128xbf16, #tpu.memory_space<vmem>>, vector<1x100x128xbf16>
      %96 = vector.shape_cast %95 : vector<1x100x128xbf16> to vector<100x128xbf16>
      %cst_74 = arith.constant dense<0.000000e+00> : vector<1x128xf32>
      %97 = tpu.matmul %92, %96, %cst_74 {dimension_numbers = #tpu.dot_dimension_numbers<[1], [0], [0], [1], [0, 0, 1, 1], [], []>} : vector<1x100xbf16>, vector<100x128xbf16>, vector<1x128xf32> -> vector<1x128xf32>
      %98 = arith.addf %90, %97 : vector<1x128xf32>
      %c3_75 = arith.constant 3 : index
      %c0_76 = arith.constant 0 : index
      %c0_77 = arith.constant 0 : index
      %99 = vector.load %arg3[%c3_75, %c0_76, %c0_77] : memref<5x1x100xbf16, #tpu.memory_space<vmem>>, vector<1x1x100xbf16>
      %100 = vector.shape_cast %99 : vector<1x1x100xbf16> to vector<1x100xbf16>
      %c3_i32_78 = arith.constant 3 : i32
      %101 = arith.addi %73, %c3_i32_78 : i32
      %102 = arith.index_cast %101 : i32 to index
      %c0_79 = arith.constant 0 : index
      %c0_80 = arith.constant 0 : index
      %103 = vector.load %arg7[%102, %c0_79, %c0_80] : memref<12x100x128xbf16, #tpu.memory_space<vmem>>, vector<1x100x128xbf16>
      %104 = vector.shape_cast %103 : vector<1x100x128xbf16> to vector<100x128xbf16>
      %cst_81 = arith.constant dense<0.000000e+00> : vector<1x128xf32>
      %105 = tpu.matmul %100, %104, %cst_81 {dimension_numbers = #tpu.dot_dimension_numbers<[1], [0], [0], [1], [0, 0, 1, 1], [], []>} : vector<1x100xbf16>, vector<100x128xbf16>, vector<1x128xf32> -> vector<1x128xf32>
      %106 = arith.addf %98, %105 : vector<1x128xf32>
      %c4_82 = arith.constant 4 : index
      %c0_83 = arith.constant 0 : index
      %c0_84 = arith.constant 0 : index
      %107 = vector.load %arg3[%c4_82, %c0_83, %c0_84] : memref<5x1x100xbf16, #tpu.memory_space<vmem>>, vector<1x1x100xbf16>
      %108 = vector.shape_cast %107 : vector<1x1x100xbf16> to vector<1x100xbf16>
      %c4_i32_85 = arith.constant 4 : i32
      %109 = arith.addi %73, %c4_i32_85 : i32
      %110 = arith.index_cast %109 : i32 to index
      %c0_86 = arith.constant 0 : index
      %c0_87 = arith.constant 0 : index
      %111 = vector.load %arg7[%110, %c0_86, %c0_87] : memref<12x100x128xbf16, #tpu.memory_space<vmem>>, vector<1x100x128xbf16>
      %112 = vector.shape_cast %111 : vector<1x100x128xbf16> to vector<100x128xbf16>
      %cst_88 = arith.constant dense<0.000000e+00> : vector<1x128xf32>
      %113 = tpu.matmul %108, %112, %cst_88 {dimension_numbers = #tpu.dot_dimension_numbers<[1], [0], [0], [1], [0, 0, 1, 1], [], []>} : vector<1x100xbf16>, vector<100x128xbf16>, vector<1x128xf32> -> vector<1x128xf32>
      %114 = arith.addf %106, %113 : vector<1x128xf32>
      %115 = vector.broadcast %6 : vector<1x1xf32> to vector<1x128xf32>
      %116 = arith.addf %114, %115 : vector<1x128xf32>
      %cst_89 = arith.constant 0.000000e+00 : f32
      %117 = vector.broadcast %cst_89 : f32 to vector<1x128xf32>
      %118 = arith.select %5, %116, %117 : vector<1x128xi1>, vector<1x128xf32>
      %c0_90 = arith.constant 0 : index
      %c2_91 = arith.constant 2 : index
      %c0_92 = arith.constant 0 : index
      %c26 = arith.constant 26 : index
      %119 = vector.load %arg6[%c0_90, %c2_91, %c0_92, %c26] : memref<1x6x1x256xf32, #tpu.memory_space<vmem>>, vector<1x1x1x128xf32>
      %120 = vector.shape_cast %119 : vector<1x1x1x128xf32> to vector<1x128xf32>
      %121 = vector.shape_cast %118 : vector<1x128xf32> to vector<1x1x1x128xf32>
      tpu.vector_store %arg6[%c0_90, %c2_91, %c0_92, %c26], %121 {strides = array<i32>} : memref<1x6x1x256xf32, #tpu.memory_space<vmem>>, vector<1x1x1x128xf32>,
    } else {
    }
    %c6_i32_28 = arith.constant 6 : i32
    %40 = arith.muli %arg1, %c6_i32_28 : i32
    %c3_i32 = arith.constant 3 : i32
    %41 = arith.addi %40, %c3_i32 : i32
    %c2_i32_29 = arith.constant 2 : i32
    %42 = arith.cmpi sge, %41, %c2_i32_29 : i32
    %c10_i32_30 = arith.constant 10 : i32
    %43 = arith.cmpi slt, %41, %c10_i32_30 : i32
    %44 = arith.andi %42, %43 : i1
    %cst_31 = arith.constant 0.000000e+00 : f32
    %45 = vector.broadcast %cst_31 : f32 to vector<1x256xf32>
    %c0_32 = arith.constant 0 : index
    %c3 = arith.constant 3 : index
    %c0_33 = arith.constant 0 : index
    %c0_34 = arith.constant 0 : index
    %46 = vector.load %arg6[%c0_32, %c3, %c0_33, %c0_34] : memref<1x6x1x256xf32, #tpu.memory_space<vmem>>, vector<1x1x1x256xf32>
    %47 = vector.shape_cast %46 : vector<1x1x1x256xf32> to vector<1x256xf32>
    %48 = vector.shape_cast %45 : vector<1x256xf32> to vector<1x1x1x256xf32>
    tpu.vector_store %arg6[%c0_32, %c3, %c0_33, %c0_34], %48 {strides = array<i32>} : memref<1x6x1x256xf32, #tpu.memory_space<vmem>>, vector<1x1x1x256xf32>,
    %49 = arith.extui %44 : i1 to i32
    %c0_i32_35 = arith.constant 0 : i32
    %50 = arith.cmpi ne, %49, %c0_i32_35 : i32
    scf.if %50 {
      %c2_i32_52 = arith.constant 2 : i32
      %73 = arith.subi %41, %c2_i32_52 : i32
      %cst_53 = arith.constant 0.000000e+00 : f32
      %74 = vector.broadcast %cst_53 : f32 to vector<1x128xf32>
      %c0_54 = arith.constant 0 : index
      %c0_55 = arith.constant 0 : index
      %c0_56 = arith.constant 0 : index
      %75 = vector.load %arg3[%c0_54, %c0_55, %c0_56] : memref<5x1x100xbf16, #tpu.memory_space<vmem>>, vector<1x1x100xbf16>
      %76 = vector.shape_cast %75 : vector<1x1x100xbf16> to vector<1x100xbf16>
      %c0_i32_57 = arith.constant 0 : i32
      %77 = arith.addi %73, %c0_i32_57 : i32
      %78 = arith.index_cast %77 : i32 to index
      %c0_58 = arith.constant 0 : index
      %c0_59 = arith.constant 0 : index
      %79 = vector.load %arg7[%78, %c0_58, %c0_59] : memref<12x100x128xbf16, #tpu.memory_space<vmem>>, vector<1x100x128xbf16>
      %80 = vector.shape_cast %79 : vector<1x100x128xbf16> to vector<100x128xbf16>
      %cst_60 = arith.constant dense<0.000000e+00> : vector<1x128xf32>
      %81 = tpu.matmul %76, %80, %cst_60 {dimension_numbers = #tpu.dot_dimension_numbers<[1], [0], [0], [1], [0, 0, 1, 1], [], []>} : vector<1x100xbf16>, vector<100x128xbf16>, vector<1x128xf32> -> vector<1x128xf32>
      %82 = arith.addf %74, %81 : vector<1x128xf32>
      %c1_61 = arith.constant 1 : index
      %c0_62 = arith.constant 0 : index
      %c0_63 = arith.constant 0 : index
      %83 = vector.load %arg3[%c1_61, %c0_62, %c0_63] : memref<5x1x100xbf16, #tpu.memory_space<vmem>>, vector<1x1x100xbf16>
      %84 = vector.shape_cast %83 : vector<1x1x100xbf16> to vector<1x100xbf16>
      %c1_i32_64 = arith.constant 1 : i32
      %85 = arith.addi %73, %c1_i32_64 : i32
      %86 = arith.index_cast %85 : i32 to index
      %c0_65 = arith.constant 0 : index
      %c0_66 = arith.constant 0 : index
      %87 = vector.load %arg7[%86, %c0_65, %c0_66] : memref<12x100x128xbf16, #tpu.memory_space<vmem>>, vector<1x100x128xbf16>
      %88 = vector.shape_cast %87 : vector<1x100x128xbf16> to vector<100x128xbf16>
      %cst_67 = arith.constant dense<0.000000e+00> : vector<1x128xf32>
      %89 = tpu.matmul %84, %88, %cst_67 {dimension_numbers = #tpu.dot_dimension_numbers<[1], [0], [0], [1], [0, 0, 1, 1], [], []>} : vector<1x100xbf16>, vector<100x128xbf16>, vector<1x128xf32> -> vector<1x128xf32>
      %90 = arith.addf %82, %89 : vector<1x128xf32>
      %c2_68 = arith.constant 2 : index
      %c0_69 = arith.constant 0 : index
      %c0_70 = arith.constant 0 : index
      %91 = vector.load %arg3[%c2_68, %c0_69, %c0_70] : memref<5x1x100xbf16, #tpu.memory_space<vmem>>, vector<1x1x100xbf16>
      %92 = vector.shape_cast %91 : vector<1x1x100xbf16> to vector<1x100xbf16>
      %c2_i32_71 = arith.constant 2 : i32
      %93 = arith.addi %73, %c2_i32_71 : i32
      %94 = arith.index_cast %93 : i32 to index
      %c0_72 = arith.constant 0 : index
      %c0_73 = arith.constant 0 : index
      %95 = vector.load %arg7[%94, %c0_72, %c0_73] : memref<12x100x128xbf16, #tpu.memory_space<vmem>>, vector<1x100x128xbf16>
      %96 = vector.shape_cast %95 : vector<1x100x128xbf16> to vector<100x128xbf16>
      %cst_74 = arith.constant dense<0.000000e+00> : vector<1x128xf32>
      %97 = tpu.matmul %92, %96, %cst_74 {dimension_numbers = #tpu.dot_dimension_numbers<[1], [0], [0], [1], [0, 0, 1, 1], [], []>} : vector<1x100xbf16>, vector<100x128xbf16>, vector<1x128xf32> -> vector<1x128xf32>
      %98 = arith.addf %90, %97 : vector<1x128xf32>
      %c3_75 = arith.constant 3 : index
      %c0_76 = arith.constant 0 : index
      %c0_77 = arith.constant 0 : index
      %99 = vector.load %arg3[%c3_75, %c0_76, %c0_77] : memref<5x1x100xbf16, #tpu.memory_space<vmem>>, vector<1x1x100xbf16>
      %100 = vector.shape_cast %99 : vector<1x1x100xbf16> to vector<1x100xbf16>
      %c3_i32_78 = arith.constant 3 : i32
      %101 = arith.addi %73, %c3_i32_78 : i32
      %102 = arith.index_cast %101 : i32 to index
      %c0_79 = arith.constant 0 : index
      %c0_80 = arith.constant 0 : index
      %103 = vector.load %arg7[%102, %c0_79, %c0_80] : memref<12x100x128xbf16, #tpu.memory_space<vmem>>, vector<1x100x128xbf16>
      %104 = vector.shape_cast %103 : vector<1x100x128xbf16> to vector<100x128xbf16>
      %cst_81 = arith.constant dense<0.000000e+00> : vector<1x128xf32>
      %105 = tpu.matmul %100, %104, %cst_81 {dimension_numbers = #tpu.dot_dimension_numbers<[1], [0], [0], [1], [0, 0, 1, 1], [], []>} : vector<1x100xbf16>, vector<100x128xbf16>, vector<1x128xf32> -> vector<1x128xf32>
      %106 = arith.addf %98, %105 : vector<1x128xf32>
      %c4_82 = arith.constant 4 : index
      %c0_83 = arith.constant 0 : index
      %c0_84 = arith.constant 0 : index
      %107 = vector.load %arg3[%c4_82, %c0_83, %c0_84] : memref<5x1x100xbf16, #tpu.memory_space<vmem>>, vector<1x1x100xbf16>
      %108 = vector.shape_cast %107 : vector<1x1x100xbf16> to vector<1x100xbf16>
      %c4_i32_85 = arith.constant 4 : i32
      %109 = arith.addi %73, %c4_i32_85 : i32
      %110 = arith.index_cast %109 : i32 to index
      %c0_86 = arith.constant 0 : index
      %c0_87 = arith.constant 0 : index
      %111 = vector.load %arg7[%110, %c0_86, %c0_87] : memref<12x100x128xbf16, #tpu.memory_space<vmem>>, vector<1x100x128xbf16>
      %112 = vector.shape_cast %111 : vector<1x100x128xbf16> to vector<100x128xbf16>
      %cst_88 = arith.constant dense<0.000000e+00> : vector<1x128xf32>
      %113 = tpu.matmul %108, %112, %cst_88 {dimension_numbers = #tpu.dot_dimension_numbers<[1], [0], [0], [1], [0, 0, 1, 1], [], []>} : vector<1x100xbf16>, vector<100x128xbf16>, vector<1x128xf32> -> vector<1x128xf32>
      %114 = arith.addf %106, %113 : vector<1x128xf32>
      %115 = vector.broadcast %6 : vector<1x1xf32> to vector<1x128xf32>
      %116 = arith.addf %114, %115 : vector<1x128xf32>
      %cst_89 = arith.constant 0.000000e+00 : f32
      %117 = vector.broadcast %cst_89 : f32 to vector<1x128xf32>
      %118 = arith.select %5, %116, %117 : vector<1x128xi1>, vector<1x128xf32>
      %c0_90 = arith.constant 0 : index
      %c3_91 = arith.constant 3 : index
      %c0_92 = arith.constant 0 : index
      %c26 = arith.constant 26 : index
      %119 = vector.load %arg6[%c0_90, %c3_91, %c0_92, %c26] : memref<1x6x1x256xf32, #tpu.memory_space<vmem>>, vector<1x1x1x128xf32>
      %120 = vector.shape_cast %119 : vector<1x1x1x128xf32> to vector<1x128xf32>
      %121 = vector.shape_cast %118 : vector<1x128xf32> to vector<1x1x1x128xf32>
      tpu.vector_store %arg6[%c0_90, %c3_91, %c0_92, %c26], %121 {strides = array<i32>} : memref<1x6x1x256xf32, #tpu.memory_space<vmem>>, vector<1x1x1x128xf32>,
    } else {
    }
    %c6_i32_36 = arith.constant 6 : i32
    %51 = arith.muli %arg1, %c6_i32_36 : i32
    %c4_i32 = arith.constant 4 : i32
    %52 = arith.addi %51, %c4_i32 : i32
    %c2_i32_37 = arith.constant 2 : i32
    %53 = arith.cmpi sge, %52, %c2_i32_37 : i32
    %c10_i32_38 = arith.constant 10 : i32
    %54 = arith.cmpi slt, %52, %c10_i32_38 : i32
    %55 = arith.andi %53, %54 : i1
    %cst_39 = arith.constant 0.000000e+00 : f32
    %56 = vector.broadcast %cst_39 : f32 to vector<1x256xf32>
    %c0_40 = arith.constant 0 : index
    %c4 = arith.constant 4 : index
    %c0_41 = arith.constant 0 : index
    %c0_42 = arith.constant 0 : index
    %57 = vector.load %arg6[%c0_40, %c4, %c0_41, %c0_42] : memref<1x6x1x256xf32, #tpu.memory_space<vmem>>, vector<1x1x1x256xf32>
    %58 = vector.shape_cast %57 : vector<1x1x1x256xf32> to vector<1x256xf32>
    %59 = vector.shape_cast %56 : vector<1x256xf32> to vector<1x1x1x256xf32>
    tpu.vector_store %arg6[%c0_40, %c4, %c0_41, %c0_42], %59 {strides = array<i32>} : memref<1x6x1x256xf32, #tpu.memory_space<vmem>>, vector<1x1x1x256xf32>,
    %60 = arith.extui %55 : i1 to i32
    %c0_i32_43 = arith.constant 0 : i32
    %61 = arith.cmpi ne, %60, %c0_i32_43 : i32
    scf.if %61 {
      %c2_i32_52 = arith.constant 2 : i32
      %73 = arith.subi %52, %c2_i32_52 : i32
      %cst_53 = arith.constant 0.000000e+00 : f32
      %74 = vector.broadcast %cst_53 : f32 to vector<1x128xf32>
      %c0_54 = arith.constant 0 : index
      %c0_55 = arith.constant 0 : index
      %c0_56 = arith.constant 0 : index
      %75 = vector.load %arg3[%c0_54, %c0_55, %c0_56] : memref<5x1x100xbf16, #tpu.memory_space<vmem>>, vector<1x1x100xbf16>
      %76 = vector.shape_cast %75 : vector<1x1x100xbf16> to vector<1x100xbf16>
      %c0_i32_57 = arith.constant 0 : i32
      %77 = arith.addi %73, %c0_i32_57 : i32
      %78 = arith.index_cast %77 : i32 to index
      %c0_58 = arith.constant 0 : index
      %c0_59 = arith.constant 0 : index
      %79 = vector.load %arg7[%78, %c0_58, %c0_59] : memref<12x100x128xbf16, #tpu.memory_space<vmem>>, vector<1x100x128xbf16>
      %80 = vector.shape_cast %79 : vector<1x100x128xbf16> to vector<100x128xbf16>
      %cst_60 = arith.constant dense<0.000000e+00> : vector<1x128xf32>
      %81 = tpu.matmul %76, %80, %cst_60 {dimension_numbers = #tpu.dot_dimension_numbers<[1], [0], [0], [1], [0, 0, 1, 1], [], []>} : vector<1x100xbf16>, vector<100x128xbf16>, vector<1x128xf32> -> vector<1x128xf32>
      %82 = arith.addf %74, %81 : vector<1x128xf32>
      %c1_61 = arith.constant 1 : index
      %c0_62 = arith.constant 0 : index
      %c0_63 = arith.constant 0 : index
      %83 = vector.load %arg3[%c1_61, %c0_62, %c0_63] : memref<5x1x100xbf16, #tpu.memory_space<vmem>>, vector<1x1x100xbf16>
      %84 = vector.shape_cast %83 : vector<1x1x100xbf16> to vector<1x100xbf16>
      %c1_i32_64 = arith.constant 1 : i32
      %85 = arith.addi %73, %c1_i32_64 : i32
      %86 = arith.index_cast %85 : i32 to index
      %c0_65 = arith.constant 0 : index
      %c0_66 = arith.constant 0 : index
      %87 = vector.load %arg7[%86, %c0_65, %c0_66] : memref<12x100x128xbf16, #tpu.memory_space<vmem>>, vector<1x100x128xbf16>
      %88 = vector.shape_cast %87 : vector<1x100x128xbf16> to vector<100x128xbf16>
      %cst_67 = arith.constant dense<0.000000e+00> : vector<1x128xf32>
      %89 = tpu.matmul %84, %88, %cst_67 {dimension_numbers = #tpu.dot_dimension_numbers<[1], [0], [0], [1], [0, 0, 1, 1], [], []>} : vector<1x100xbf16>, vector<100x128xbf16>, vector<1x128xf32> -> vector<1x128xf32>
      %90 = arith.addf %82, %89 : vector<1x128xf32>
      %c2_68 = arith.constant 2 : index
      %c0_69 = arith.constant 0 : index
      %c0_70 = arith.constant 0 : index
      %91 = vector.load %arg3[%c2_68, %c0_69, %c0_70] : memref<5x1x100xbf16, #tpu.memory_space<vmem>>, vector<1x1x100xbf16>
      %92 = vector.shape_cast %91 : vector<1x1x100xbf16> to vector<1x100xbf16>
      %c2_i32_71 = arith.constant 2 : i32
      %93 = arith.addi %73, %c2_i32_71 : i32
      %94 = arith.index_cast %93 : i32 to index
      %c0_72 = arith.constant 0 : index
      %c0_73 = arith.constant 0 : index
      %95 = vector.load %arg7[%94, %c0_72, %c0_73] : memref<12x100x128xbf16, #tpu.memory_space<vmem>>, vector<1x100x128xbf16>
      %96 = vector.shape_cast %95 : vector<1x100x128xbf16> to vector<100x128xbf16>
      %cst_74 = arith.constant dense<0.000000e+00> : vector<1x128xf32>
      %97 = tpu.matmul %92, %96, %cst_74 {dimension_numbers = #tpu.dot_dimension_numbers<[1], [0], [0], [1], [0, 0, 1, 1], [], []>} : vector<1x100xbf16>, vector<100x128xbf16>, vector<1x128xf32> -> vector<1x128xf32>
      %98 = arith.addf %90, %97 : vector<1x128xf32>
      %c3_75 = arith.constant 3 : index
      %c0_76 = arith.constant 0 : index
      %c0_77 = arith.constant 0 : index
      %99 = vector.load %arg3[%c3_75, %c0_76, %c0_77] : memref<5x1x100xbf16, #tpu.memory_space<vmem>>, vector<1x1x100xbf16>
      %100 = vector.shape_cast %99 : vector<1x1x100xbf16> to vector<1x100xbf16>
      %c3_i32_78 = arith.constant 3 : i32
      %101 = arith.addi %73, %c3_i32_78 : i32
      %102 = arith.index_cast %101 : i32 to index
      %c0_79 = arith.constant 0 : index
      %c0_80 = arith.constant 0 : index
      %103 = vector.load %arg7[%102, %c0_79, %c0_80] : memref<12x100x128xbf16, #tpu.memory_space<vmem>>, vector<1x100x128xbf16>
      %104 = vector.shape_cast %103 : vector<1x100x128xbf16> to vector<100x128xbf16>
      %cst_81 = arith.constant dense<0.000000e+00> : vector<1x128xf32>
      %105 = tpu.matmul %100, %104, %cst_81 {dimension_numbers = #tpu.dot_dimension_numbers<[1], [0], [0], [1], [0, 0, 1, 1], [], []>} : vector<1x100xbf16>, vector<100x128xbf16>, vector<1x128xf32> -> vector<1x128xf32>
      %106 = arith.addf %98, %105 : vector<1x128xf32>
      %c4_82 = arith.constant 4 : index
      %c0_83 = arith.constant 0 : index
      %c0_84 = arith.constant 0 : index
      %107 = vector.load %arg3[%c4_82, %c0_83, %c0_84] : memref<5x1x100xbf16, #tpu.memory_space<vmem>>, vector<1x1x100xbf16>
      %108 = vector.shape_cast %107 : vector<1x1x100xbf16> to vector<1x100xbf16>
      %c4_i32_85 = arith.constant 4 : i32
      %109 = arith.addi %73, %c4_i32_85 : i32
      %110 = arith.index_cast %109 : i32 to index
      %c0_86 = arith.constant 0 : index
      %c0_87 = arith.constant 0 : index
      %111 = vector.load %arg7[%110, %c0_86, %c0_87] : memref<12x100x128xbf16, #tpu.memory_space<vmem>>, vector<1x100x128xbf16>
      %112 = vector.shape_cast %111 : vector<1x100x128xbf16> to vector<100x128xbf16>
      %cst_88 = arith.constant dense<0.000000e+00> : vector<1x128xf32>
      %113 = tpu.matmul %108, %112, %cst_88 {dimension_numbers = #tpu.dot_dimension_numbers<[1], [0], [0], [1], [0, 0, 1, 1], [], []>} : vector<1x100xbf16>, vector<100x128xbf16>, vector<1x128xf32> -> vector<1x128xf32>
      %114 = arith.addf %106, %113 : vector<1x128xf32>
      %115 = vector.broadcast %6 : vector<1x1xf32> to vector<1x128xf32>
      %116 = arith.addf %114, %115 : vector<1x128xf32>
      %cst_89 = arith.constant 0.000000e+00 : f32
      %117 = vector.broadcast %cst_89 : f32 to vector<1x128xf32>
      %118 = arith.select %5, %116, %117 : vector<1x128xi1>, vector<1x128xf32>
      %c0_90 = arith.constant 0 : index
      %c4_91 = arith.constant 4 : index
      %c0_92 = arith.constant 0 : index
      %c26 = arith.constant 26 : index
      %119 = vector.load %arg6[%c0_90, %c4_91, %c0_92, %c26] : memref<1x6x1x256xf32, #tpu.memory_space<vmem>>, vector<1x1x1x128xf32>
      %120 = vector.shape_cast %119 : vector<1x1x1x128xf32> to vector<1x128xf32>
      %121 = vector.shape_cast %118 : vector<1x128xf32> to vector<1x1x1x128xf32>
      tpu.vector_store %arg6[%c0_90, %c4_91, %c0_92, %c26], %121 {strides = array<i32>} : memref<1x6x1x256xf32, #tpu.memory_space<vmem>>, vector<1x1x1x128xf32>,
    } else {
    }
    %c6_i32_44 = arith.constant 6 : i32
    %62 = arith.muli %arg1, %c6_i32_44 : i32
    %c5_i32 = arith.constant 5 : i32
    %63 = arith.addi %62, %c5_i32 : i32
    %c2_i32_45 = arith.constant 2 : i32
    %64 = arith.cmpi sge, %63, %c2_i32_45 : i32
    %c10_i32_46 = arith.constant 10 : i32
    %65 = arith.cmpi slt, %63, %c10_i32_46 : i32
    %66 = arith.andi %64, %65 : i1
    %cst_47 = arith.constant 0.000000e+00 : f32
    %67 = vector.broadcast %cst_47 : f32 to vector<1x256xf32>
    %c0_48 = arith.constant 0 : index
    %c5 = arith.constant 5 : index
    %c0_49 = arith.constant 0 : index
    %c0_50 = arith.constant 0 : index
    %68 = vector.load %arg6[%c0_48, %c5, %c0_49, %c0_50] : memref<1x6x1x256xf32, #tpu.memory_space<vmem>>, vector<1x1x1x256xf32>
    %69 = vector.shape_cast %68 : vector<1x1x1x256xf32> to vector<1x256xf32>
    %70 = vector.shape_cast %67 : vector<1x256xf32> to vector<1x1x1x256xf32>
    tpu.vector_store %arg6[%c0_48, %c5, %c0_49, %c0_50], %70 {strides = array<i32>} : memref<1x6x1x256xf32, #tpu.memory_space<vmem>>, vector<1x1x1x256xf32>,
    %71 = arith.extui %66 : i1 to i32
    %c0_i32_51 = arith.constant 0 : i32
    %72 = arith.cmpi ne, %71, %c0_i32_51 : i32
    scf.if %72 {
      %c2_i32_52 = arith.constant 2 : i32
      %73 = arith.subi %63, %c2_i32_52 : i32
      %cst_53 = arith.constant 0.000000e+00 : f32
      %74 = vector.broadcast %cst_53 : f32 to vector<1x128xf32>
      %c0_54 = arith.constant 0 : index
      %c0_55 = arith.constant 0 : index
      %c0_56 = arith.constant 0 : index
      %75 = vector.load %arg3[%c0_54, %c0_55, %c0_56] : memref<5x1x100xbf16, #tpu.memory_space<vmem>>, vector<1x1x100xbf16>
      %76 = vector.shape_cast %75 : vector<1x1x100xbf16> to vector<1x100xbf16>
      %c0_i32_57 = arith.constant 0 : i32
      %77 = arith.addi %73, %c0_i32_57 : i32
      %78 = arith.index_cast %77 : i32 to index
      %c0_58 = arith.constant 0 : index
      %c0_59 = arith.constant 0 : index
      %79 = vector.load %arg7[%78, %c0_58, %c0_59] : memref<12x100x128xbf16, #tpu.memory_space<vmem>>, vector<1x100x128xbf16>
      %80 = vector.shape_cast %79 : vector<1x100x128xbf16> to vector<100x128xbf16>
      %cst_60 = arith.constant dense<0.000000e+00> : vector<1x128xf32>
      %81 = tpu.matmul %76, %80, %cst_60 {dimension_numbers = #tpu.dot_dimension_numbers<[1], [0], [0], [1], [0, 0, 1, 1], [], []>} : vector<1x100xbf16>, vector<100x128xbf16>, vector<1x128xf32> -> vector<1x128xf32>
      %82 = arith.addf %74, %81 : vector<1x128xf32>
      %c1_61 = arith.constant 1 : index
      %c0_62 = arith.constant 0 : index
      %c0_63 = arith.constant 0 : index
      %83 = vector.load %arg3[%c1_61, %c0_62, %c0_63] : memref<5x1x100xbf16, #tpu.memory_space<vmem>>, vector<1x1x100xbf16>
      %84 = vector.shape_cast %83 : vector<1x1x100xbf16> to vector<1x100xbf16>
      %c1_i32_64 = arith.constant 1 : i32
      %85 = arith.addi %73, %c1_i32_64 : i32
      %86 = arith.index_cast %85 : i32 to index
      %c0_65 = arith.constant 0 : index
      %c0_66 = arith.constant 0 : index
      %87 = vector.load %arg7[%86, %c0_65, %c0_66] : memref<12x100x128xbf16, #tpu.memory_space<vmem>>, vector<1x100x128xbf16>
      %88 = vector.shape_cast %87 : vector<1x100x128xbf16> to vector<100x128xbf16>
      %cst_67 = arith.constant dense<0.000000e+00> : vector<1x128xf32>
      %89 = tpu.matmul %84, %88, %cst_67 {dimension_numbers = #tpu.dot_dimension_numbers<[1], [0], [0], [1], [0, 0, 1, 1], [], []>} : vector<1x100xbf16>, vector<100x128xbf16>, vector<1x128xf32> -> vector<1x128xf32>
      %90 = arith.addf %82, %89 : vector<1x128xf32>
      %c2_68 = arith.constant 2 : index
      %c0_69 = arith.constant 0 : index
      %c0_70 = arith.constant 0 : index
      %91 = vector.load %arg3[%c2_68, %c0_69, %c0_70] : memref<5x1x100xbf16, #tpu.memory_space<vmem>>, vector<1x1x100xbf16>
      %92 = vector.shape_cast %91 : vector<1x1x100xbf16> to vector<1x100xbf16>
      %c2_i32_71 = arith.constant 2 : i32
      %93 = arith.addi %73, %c2_i32_71 : i32
      %94 = arith.index_cast %93 : i32 to index
      %c0_72 = arith.constant 0 : index
      %c0_73 = arith.constant 0 : index
      %95 = vector.load %arg7[%94, %c0_72, %c0_73] : memref<12x100x128xbf16, #tpu.memory_space<vmem>>, vector<1x100x128xbf16>
      %96 = vector.shape_cast %95 : vector<1x100x128xbf16> to vector<100x128xbf16>
      %cst_74 = arith.constant dense<0.000000e+00> : vector<1x128xf32>
      %97 = tpu.matmul %92, %96, %cst_74 {dimension_numbers = #tpu.dot_dimension_numbers<[1], [0], [0], [1], [0, 0, 1, 1], [], []>} : vector<1x100xbf16>, vector<100x128xbf16>, vector<1x128xf32> -> vector<1x128xf32>
      %98 = arith.addf %90, %97 : vector<1x128xf32>
      %c3_75 = arith.constant 3 : index
      %c0_76 = arith.constant 0 : index
      %c0_77 = arith.constant 0 : index
      %99 = vector.load %arg3[%c3_75, %c0_76, %c0_77] : memref<5x1x100xbf16, #tpu.memory_space<vmem>>, vector<1x1x100xbf16>
      %100 = vector.shape_cast %99 : vector<1x1x100xbf16> to vector<1x100xbf16>
      %c3_i32_78 = arith.constant 3 : i32
      %101 = arith.addi %73, %c3_i32_78 : i32
      %102 = arith.index_cast %101 : i32 to index
      %c0_79 = arith.constant 0 : index
      %c0_80 = arith.constant 0 : index
      %103 = vector.load %arg7[%102, %c0_79, %c0_80] : memref<12x100x128xbf16, #tpu.memory_space<vmem>>, vector<1x100x128xbf16>
      %104 = vector.shape_cast %103 : vector<1x100x128xbf16> to vector<100x128xbf16>
      %cst_81 = arith.constant dense<0.000000e+00> : vector<1x128xf32>
      %105 = tpu.matmul %100, %104, %cst_81 {dimension_numbers = #tpu.dot_dimension_numbers<[1], [0], [0], [1], [0, 0, 1, 1], [], []>} : vector<1x100xbf16>, vector<100x128xbf16>, vector<1x128xf32> -> vector<1x128xf32>
      %106 = arith.addf %98, %105 : vector<1x128xf32>
      %c4_82 = arith.constant 4 : index
      %c0_83 = arith.constant 0 : index
      %c0_84 = arith.constant 0 : index
      %107 = vector.load %arg3[%c4_82, %c0_83, %c0_84] : memref<5x1x100xbf16, #tpu.memory_space<vmem>>, vector<1x1x100xbf16>
      %108 = vector.shape_cast %107 : vector<1x1x100xbf16> to vector<1x100xbf16>
      %c4_i32_85 = arith.constant 4 : i32
      %109 = arith.addi %73, %c4_i32_85 : i32
      %110 = arith.index_cast %109 : i32 to index
      %c0_86 = arith.constant 0 : index
      %c0_87 = arith.constant 0 : index
      %111 = vector.load %arg7[%110, %c0_86, %c0_87] : memref<12x100x128xbf16, #tpu.memory_space<vmem>>, vector<1x100x128xbf16>
      %112 = vector.shape_cast %111 : vector<1x100x128xbf16> to vector<100x128xbf16>
      %cst_88 = arith.constant dense<0.000000e+00> : vector<1x128xf32>
      %113 = tpu.matmul %108, %112, %cst_88 {dimension_numbers = #tpu.dot_dimension_numbers<[1], [0], [0], [1], [0, 0, 1, 1], [], []>} : vector<1x100xbf16>, vector<100x128xbf16>, vector<1x128xf32> -> vector<1x128xf32>
      %114 = arith.addf %106, %113 : vector<1x128xf32>
      %115 = vector.broadcast %6 : vector<1x1xf32> to vector<1x128xf32>
      %116 = arith.addf %114, %115 : vector<1x128xf32>
      %cst_89 = arith.constant 0.000000e+00 : f32
      %117 = vector.broadcast %cst_89 : f32 to vector<1x128xf32>
      %118 = arith.select %5, %116, %117 : vector<1x128xi1>, vector<1x128xf32>
      %c0_90 = arith.constant 0 : index
      %c5_91 = arith.constant 5 : index
      %c0_92 = arith.constant 0 : index
      %c26 = arith.constant 26 : index
      %119 = vector.load %arg6[%c0_90, %c5_91, %c0_92, %c26] : memref<1x6x1x256xf32, #tpu.memory_space<vmem>>, vector<1x1x1x128xf32>
      %120 = vector.shape_cast %119 : vector<1x1x1x128xf32> to vector<1x128xf32>
      %121 = vector.shape_cast %118 : vector<1x128xf32> to vector<1x1x1x128xf32>
      tpu.vector_store %arg6[%c0_90, %c5_91, %c0_92, %c26], %121 {strides = array<i32>} : memref<1x6x1x256xf32, #tpu.memory_space<vmem>>, vector<1x1x1x128xf32>,
    } else {
    }
    return
  }
  func.func @transform_0(%arg0: i32, %arg1: i32) -> (i32, i32, i32, i32) {
    %c0_i32 = arith.constant 0 : i32
    %c0_i32_0 = arith.constant 0 : i32
    %c0_i32_1 = arith.constant 0 : i32
    %c0_i32_2 = arith.constant 0 : i32
    return %arg0, %c0_i32, %c0_i32_0, %c0_i32_1 : i32, i32, i32, i32
  }
  func.func @transform_1(%arg0: i32, %arg1: i32) -> (i32, i32, i32) {
    %c0_i32 = arith.constant 0 : i32
    %c0_i32_0 = arith.constant 0 : i32
    %c0_i32_1 = arith.constant 0 : i32
    %c0_i32_2 = arith.constant 0 : i32
    return %c0_i32, %c0_i32_0, %c0_i32_1 : i32, i32, i32
  }
  func.func @transform_2(%arg0: i32, %arg1: i32) -> (i32, i32) {
    %c0_i32 = arith.constant 0 : i32
    %c0_i32_0 = arith.constant 0 : i32
    %c0_i32_1 = arith.constant 0 : i32
    return %c0_i32, %c0_i32_0 : i32, i32
  }
  func.func @transform_3(%arg0: i32, %arg1: i32) -> (i32, i32) {
    %c0_i32 = arith.constant 0 : i32
    %c0_i32_0 = arith.constant 0 : i32
    %c0_i32_1 = arith.constant 0 : i32
    return %c0_i32, %c0_i32_0 : i32, i32
  }
  func.func @transform_4(%arg0: i32, %arg1: i32) -> (i32, i32, i32, i32) {
    %c0_i32 = arith.constant 0 : i32
    %c0_i32_0 = arith.constant 0 : i32
    %c0_i32_1 = arith.constant 0 : i32
    return %arg0, %arg1, %c0_i32, %c0_i32_0 : i32, i32, i32, i32
  }
}

</mosaic_0001>

<bundles_post_ra>
// kernel: resnet_forward_pallas.3
= control target key start
LH: loop header
LB: loop body
LE: loop exit
PB: predicated region body
PF: predicated region fallthrough
CT: control target
= control target key end

     0   :  { %s6345_s15 = smov 0   ;;  %s6347_s16 = smov 0   ;;  %s7216_s0 = inlined_call_operand.vmem [shape: bf16[2,12,4,256], index: 0, kind: input, shape index: {}]   ;;  %s7217_s1 = inlined_call_operand.vmem [shape: bf16[5,4,100], index: 1, kind: input, shape index: {}]   ;;  %s7218_s2 = inlined_call_operand.vmem [shape: f32[4,1], index: 2, kind: input, shape index: {}]   ;;  %s7219_s3 = inlined_call_operand.vmem [shape: f32[1,128], index: 3, kind: input, shape index: {}]   ;;  %s7220_s4 = inlined_call_operand.vmem [shape: bf16[2,12,4,256], index: 4, kind: output, shape index: {}]  }
   0x1   :  { %s6349_s17 = smov 0   ;;  %s6351_s18 = smov 0  }
   0x2   :  { %s6353_s19 = smov 0  }
   0x3 LB: > { %s23_s20 = sadd.s32 1, %s6244_s17  ;;  %s26_s21 = sadd.s32 1, %s6248_s18  ;;  %s6252_s19 = sphi %s6353_s19, %s14_s19   ;;  %s6248_s18 = sphi %s6351_s18, %s7224_s18   ;;  %s6244_s17 = sphi %s6349_s17, %s7223_s17   ;;  %s6240_s16 = sphi %s6347_s16, %s7222_s16   ;;  %s6236_s15 = sphi %s6345_s15, %s7221_s15  }
   0x4   : > { %p24_p0 = scmp.ge.s32.totalorder %s23_s20, 2  ;;  %p4362_p1 = scmp.ge.s32.totalorder %s6252_s19, 1 }
   0x5   : > { %p176_p2 = scmp.lt.s32.totalorder %s6252_s19, 5 }
   0x6   : > { %s7226_s20 = smov (%p24_p0, %s23_s20), 0  ;;  %s7228_s21 = smov (!%p24_p0, %s26_s21), %s6248_s18 }
   0x7   : > { %p177_p3 = pnand %p4362_p1, %p176_p2  ;;  %p28_p4 = scmp.ge.s32.totalorder %s7228_s21, 2 }
   0x8   : > { %p207_p5 = scmp.lt.s32.totalorder (!%p177_p3), %s6240_s16, 1  ;;  %s6378_s22 = smul.u32 (!%p177_p3), 6, %s6236_s15 }
   0x9   : > { %s7230_s21 = smov (%p28_p4, %s7228_s21), 0  ;;  %180 = sbr.rel (%p177_p3) target bundleno = 2810 (0xafa), region = 36 }
   0xa   : > { %p215_p6 = scmp.lt.s32.totalorder (!%p177_p3), %s6378_s22, 11  ;;  %p4366_p7 = scmp.ne.s32.totalorder (!%p177_p3), %s6236_s15, 0 }
  0x10   : > { %s7232_s16 = smov (!%p207_p5, %s6240_s16), 1  ;;  %s6393_s9 = smov (!%p4366_p7), 0  }
  0x11   : > { %s5840_s23 = smul.u32 48, %s7232_s16 }
  0x12   : > { %s216_s24 = scalar_select %p215_p6, %s6378_s22, 11 }
  0x13   : > { %s6385_s27 = scalar_lea.vmem %s7216_s0, %s5840_s23  ;;  %s5841_s28 = smul.u32 24, %s7232_s16 }
  0x14   : > { %s4364_s29 = sshll.u32 %s216_s24, 1  ;;  %227 = sbr.rel (%p4366_p7) target bundleno = 195 (0xc3), region = 40 }
  0x15   : > { %s219_s30 = sadd.s32 %s5841_s28, %s4364_s29 }
  0x16   : > { %s4365_s5 = sshll.u32 %s219_s30, 1 }
  0x17   : > { %s6390_s8 = scalar_lea.vmem %s7220_s4, %s4365_s5 }
  0x1b LB: >> { %v248_v0 = vlaneseq  ;;  %v6258_v1 = vmov 1983009808   ;;  %s5054_s10 = sshll.u32 %s6256_s9, 2  ;;  %s6259_s12 = smov 124   ;;  %vm304_vm0 = vcmask 1014784   ;;  %vm271_vm1 = vcmask 1031168   ;;  %s6256_s9 = sphi %s6393_s9, %s233_s9  }
  0x1c   : >> { %v246_v2 = vunpack.c.l.s4 %v6258_v1  ;;  %s6400_s11 = scalar_lea.vmem %s6385_s27, %s5054_s10  ;;  %s6260_s13 = smov 126   ;;  %vm337_vm2 = vcmask 941056   ;;  %vm255_vm3 = vcmask 1039360   ;;  %vm288_vm4 = vcmask 1022976  }
  0x1d   : >> { %v249_v3 = vshrl.u32 %v248_v0, 7  ;;  %v6403_v5 = vld.sshfl [vmem:[%s6400_s11] sm:$0x33 pattern:$0x76325410]  ;;  %s6261_s14 = smov 115  }
  0x1e   : >> { %v247_v4 = vunpack.c.0.s8 %v246_v2  ;;  %301 = vrot.lane.b32.xlu1 %v6403_v5, %s6259_s12  ;;  %268 = vrot.lane.b32.xlu0 %v6403_v5, %s6260_s13  ;;  %v5952_v6 = vld [vmem:[%s6400_s11] ss:$0 sps:$4 sm:$0xff]   ;;  %s6262_s16 = smov 127   ;;  %s5055_s23 = smul.u32 52, %s6256_s9  ;;  %vm321_vm5 = vcmask 949248   ;;  %vm370_vm6 = vcmask 924672  }
  0x1f   : >> { %v5953_v8 = vld [vmem:[%s6400_s11] ss:$0 sps:$4 sm:$0xff]   ;;  %s6263_s24 = smov 125   ;;  %s6264_s25 = smov 116   ;;  %vm354_vm7 = vcmask 932864   ;;  %vm403_vm8 = vcmask 850944  }
  0x20   : >> { %v6408_v7 = vsub.s32 %v247_v4, %v249_v3  ;;  %v5954_v10 = vld [vmem:[%s6400_s11] ss:$0 sps:$4 sm:$0xff]   ;;  %s6265_s26 = smov 113   ;;  %s6266_s28 = smov 114   ;;  %vm387_vm9 = vcmask 916480   ;;  %vm436_vm10 = vcmask 834560  }
  0x21   : >> { %v5955_v13 = vld [vmem:[%s6400_s11] ss:$0 sps:$4 sm:$0xff]   ;;  %s6424_s29 = scalar_lea.vmem [#allocation2], %s5055_s23  ;;  %s6267_s30 = smov 104   ;;  %vm420_vm11 = vcmask 842752   ;;  %vm469_vm12 = vcmask 818176  }
  0x22   : >> { %v251_v9 = vrot.slane %v5952_v6, %v6408_v7  ;;  %334 = vrot.lane.b32.xlu1 %v6403_v5, %s6261_s14  ;;  %v284_v11 = vrot.slane %v5953_v8, %v6408_v7  ;;  %v317_v12 = vrot.slane %v5954_v10, %v6408_v7  ;;  %v350_v14 = vrot.slane %v5955_v13, %v6408_v7  ;;  %v5956_v15 = vld [vmem:[%s6400_s11] ss:$0 sps:$4 sm:$0xff]   ;;  %s6268_s5 = smov 112   ;;  %s6269_s6 = smov 102  }
  0x23   : >> { %v237_v16 = vld [vmem:[%s6400_s11] sm:$0x3]  ;;  %v383_v17 = vrot.slane %v5956_v15, %v6408_v7  ;;  %s6270_s7 = smov 103   ;;  %s6271_s10 = smov 100   ;;  %vm453_vm13 = vcmask 826368   ;;  %vm502_vm14 = vcmask 744448  }
  0x24   : >> { %252 = vrot.lane.b32.xlu0 %v251_v9, %s6262_s16  ;;  %v5957_v18 = vld [vmem:[%s6400_s11] ss:$0 sps:$4 sm:$0xff]   ;;  %241 = vst [vmem:[%s6424_s29] sm:$0x3] %v237_v16  ;;  %s6272_s12 = smov 101   ;;  %s6273_s13 = smov 91   ;;  %vm486_vm15 = vcmask 752640  }
  0x25   : >> { %v416_v19 = vrot.slane %v5957_v18, %v6408_v7  ;;  %v5958_v20 = vld [vmem:[%s6400_s11] ss:$0 sps:$4 sm:$0xff]   ;;  %s6274_s14 = smov 92   ;;  %s6275_s16 = smov 89  }
  0x26   : >> { %285 = vrot.lane.b32.xlu1 %v284_v11, %s6263_s24  ;;  %v449_v21 = vrot.slane %v5958_v20, %v6408_v7  ;;  %v5959_v22 = vld [vmem:[%s6400_s11] ss:$0 sps:$4 sm:$0xff]   ;;  %s6276_s23 = smov 90   ;;  %s6277_s24 = smov 80  }
  0x27   : >> { %v482_v23 = vrot.slane %v5959_v22, %v6408_v7  ;;  %v5960_v24 = vld [vmem:[%s6400_s11] ss:$0 sps:$4 sm:$0xff]   ;;  %s233_s9 = sadd.s32 1, %s6256_s9  }
  0x28   : >> { %318 = vrot.lane.b32.xlu0 %v317_v12, %s6264_s25  ;;  %v515_v25 = vrot.slane %v5960_v24, %v6408_v7  ;;  %v5961_v26 = vld [vmem:[%s6400_s11] ss:$0 sps:$4 sm:$0xff]   ;;  %s6278_s25 = smov 88   ;;  %p230_p8 = scmp.ge.s32.totalorder %s233_s9, 12  }
  0x29   : >> { %v548_v27 = vrot.slane %v5961_v26, %v6408_v7  ;;  %v5962_v28 = vld [vmem:[%s6400_s11] ss:$0 sps:$4 sm:$0xff]  }
  0x2a   : >> { %367 = vrot.lane.b32.xlu1 %v6403_v5, %s6265_s26  ;;  %v581_v29 = vrot.slane %v5962_v28, %v6408_v7  ;;  %v5963_v30 = vld [vmem:[%s6400_s11] ss:$0 sps:$4 sm:$0xff]   ;;  %s6279_s26 = smov 78  }
  0x2b   : >> { %v614_v31 = vrot.slane %v5963_v30, %v6408_v7 }
  0x2c   : >> { %351 = vrot.lane.b32.xlu0 %v350_v14, %s6266_s28  ;;  %s6280_s28 = smov 79  }
  0x2e   : >> { %400 = vrot.lane.b32.xlu1 %v6403_v5, %s6267_s30  ;;  %s6281_s30 = smov 76  }
  0x30   : >> { %384 = vrot.lane.b32.xlu0 %v383_v17, %s6268_s5  ;;  %s6282_s5 = smov 77  }
  0x32   : >> { %433 = vrot.lane.b32.xlu1 %v6403_v5, %s6269_s6 }
  0x34   : >> { %417 = vrot.lane.b32.xlu0 %v416_v19, %s6270_s7 }
  0x36   : >> { %466 = vrot.lane.b32.xlu1 %v6403_v5, %s6271_s10 }
  0x38   : >> { %450 = vrot.lane.b32.xlu0 %v449_v21, %s6272_s12 }
  0x3a   : >> { %499 = vrot.lane.b32.xlu1 %v6403_v5, %s6273_s13 }
  0x3c   : >> { %483 = vrot.lane.b32.xlu0 %v482_v23, %s6274_s14 }
  0x3e   : >> { %532 = vrot.lane.b32.xlu1 %v6403_v5, %s6275_s16 }
  0x40   : >> { %516 = vrot.lane.b32.xlu0 %v515_v25, %s6276_s23 }
  0x42   : >> { %565 = vrot.lane.b32.xlu1 %v6403_v5, %s6277_s24 }
  0x44   : >> { %549 = vrot.lane.b32.xlu0 %v548_v27, %s6278_s25 }
  0x46   : >> { %598 = vrot.lane.b32.xlu1 %v6403_v5, %s6279_s26 }
  0x48   : >> { %582 = vrot.lane.b32.xlu0 %v581_v29, %s6280_s28 }
  0x4a   : >> { %631 = vrot.lane.b32.xlu1 %v6403_v5, %s6281_s30 }
  0x4c   : >> { %615 = vrot.lane.b32.xlu0 %v614_v31, %s6282_s5 }
  0x90   : >> { %v302_v32 = vpop.permute.xlu1 %301  ;;  %v269_v33 = vpop.permute.xlu0 %268 }
  0x91   : >> { %v303_v34 = vrot.slane %v302_v32, 4  ;;  %v270_v35 = vrot.slane %v269_v33, 4 }
  0x93   : >> { %v305_v36 = vsel %vm304_vm0, %v302_v32, %v303_v34  ;;  %v272_v37 = vsel %vm271_vm1, %v269_v33, %v270_v35  ;;  %vm535_vm0 = vcmask 728064   ;;  %vm519_vm1 = vcmask 736256  }
  0x94   : >> { %307 = vst [vmem:[%s6424_s29 + $0x8] sm:$0x3] %v305_v36  ;;  %274 = vst [vmem:[%s6424_s29 + $0x4] sm:$0x3] %v272_v37  ;;  %v335_v38 = vpop.permute.xlu1 %334 }
  0x95   : >> { %v336_v40 = vrot.slane %v335_v38, 4 }
  0x96   : >> { %v253_v39 = vpop.permute.xlu0 %252 }
  0x97   : >> { %v254_v41 = vrot.slane %v253_v39, 4  ;;  %v338_v42 = vsel %vm337_vm2, %v335_v38, %v336_v40  ;;  %vm568_vm2 = vcmask 654336  }
  0x98   : >> { %340 = vst [vmem:[%s6424_s29 + $0xc] sm:$0x3] %v338_v42  ;;  %v286_v44 = vpop.permute.xlu1 %285 }
  0x99   : >> { %v256_v43 = vsel %vm255_vm3, %v253_v39, %v254_v41  ;;  %v287_v46 = vrot.slane %v286_v44, 4  ;;  %vm552_vm3 = vcmask 719872  }
  0x9a   : >> { %258 = vst [vmem:[%s6424_s29] sm:$0xc] %v256_v43  ;;  %v319_v45 = vpop.permute.xlu0 %318 }
  0x9b   : >> { %v320_v47 = vrot.slane %v319_v45, 4  ;;  %v289_v48 = vsel %vm288_vm4, %v286_v44, %v287_v46  ;;  %vm601_vm4 = vcmask 637952  }
  0x9c   : >> { %291 = vst [vmem:[%s6424_s29 + $0x4] sm:$0xc] %v289_v48  ;;  %v368_v50 = vpop.permute.xlu1 %367 }
  0x9d   : >> { %v322_v49 = vsel %vm321_vm5, %v319_v45, %v320_v47  ;;  %v369_v52 = vrot.slane %v368_v50, 4  ;;  %vm585_vm5 = vcmask 646144  }
  0x9e   : >> { %324 = vst [vmem:[%s6424_s29 + $0x8] sm:$0xc] %v322_v49  ;;  %v352_v51 = vpop.permute.xlu0 %351 }
  0x9f   : >> { %v353_v53 = vrot.slane %v352_v51, 4  ;;  %v371_v54 = vsel %vm370_vm6, %v368_v50, %v369_v52  ;;  %vm634_vm6 = vcmask 621568  }
  0xa0   : >> { %373 = vst [vmem:[%s6424_s29 + $0x10] sm:$0x3] %v371_v54  ;;  %v401_v56 = vpop.permute.xlu1 %400 }
  0xa1   : >> { %v355_v55 = vsel %vm354_vm7, %v352_v51, %v353_v53  ;;  %v402_v58 = vrot.slane %v401_v56, 4  ;;  %vm618_vm7 = vcmask 629760  }
  0xa2   : >> { %357 = vst [vmem:[%s6424_s29 + $0xc] sm:$0xc] %v355_v55  ;;  %v385_v57 = vpop.permute.xlu0 %384 }
  0xa3   : >> { %v386_v59 = vrot.slane %v385_v57, 4  ;;  %v404_v60 = vsel %vm403_vm8, %v401_v56, %v402_v58 }
  0xa4   : >> { %406 = vst [vmem:[%s6424_s29 + $0x14] sm:$0x3] %v404_v60  ;;  %v434_v62 = vpop.permute.xlu1 %433 }
  0xa5   : >> { %v388_v61 = vsel %vm387_vm9, %v385_v57, %v386_v59  ;;  %v435_v0 = vrot.slane %v434_v62, 4 }
  0xa6   : >> { %390 = vst [vmem:[%s6424_s29 + $0x10] sm:$0xc] %v388_v61  ;;  %v418_v63 = vpop.permute.xlu0 %417 }
  0xa7   : >> { %v419_v1 = vrot.slane %v418_v63, 4  ;;  %v437_v2 = vsel %vm436_vm10, %v434_v62, %v435_v0 }
  0xa8   : >> { %439 = vst [vmem:[%s6424_s29 + $0x18] sm:$0x3] %v437_v2  ;;  %v467_v4 = vpop.permute.xlu1 %466 }
  0xa9   : >> { %v421_v3 = vsel %vm420_vm11, %v418_v63, %v419_v1  ;;  %v468_v6 = vrot.slane %v467_v4, 4 }
  0xaa   : >> { %423 = vst [vmem:[%s6424_s29 + $0x14] sm:$0xc] %v421_v3  ;;  %v451_v5 = vpop.permute.xlu0 %450 }
  0xab   : >> { %v452_v7 = vrot.slane %v451_v5, 4  ;;  %v470_v8 = vsel %vm469_vm12, %v467_v4, %v468_v6 }
  0xac   : >> { %472 = vst [vmem:[%s6424_s29 + $0x1c] sm:$0x3] %v470_v8  ;;  %v500_v10 = vpop.permute.xlu1 %499 }
  0xad   : >> { %v454_v9 = vsel %vm453_vm13, %v451_v5, %v452_v7  ;;  %v501_v12 = vrot.slane %v500_v10, 4 }
  0xae   : >> { %456 = vst [vmem:[%s6424_s29 + $0x18] sm:$0xc] %v454_v9  ;;  %v484_v11 = vpop.permute.xlu0 %483 }
  0xaf   : >> { %v485_v13 = vrot.slane %v484_v11, 4  ;;  %v503_v14 = vsel %vm502_vm14, %v500_v10, %v501_v12 }
  0xb0   : >> { %505 = vst [vmem:[%s6424_s29 + $0x20] sm:$0x3] %v503_v14  ;;  %v533_v16 = vpop.permute.xlu1 %532 }
  0xb1   : >> { %v487_v15 = vsel %vm486_vm15, %v484_v11, %v485_v13  ;;  %v534_v18 = vrot.slane %v533_v16, 4 }
  0xb2   : >> { %489 = vst [vmem:[%s6424_s29 + $0x1c] sm:$0xc] %v487_v15  ;;  %v517_v17 = vpop.permute.xlu0 %516 }
  0xb3   : >> { %v518_v19 = vrot.slane %v517_v17, 4  ;;  %v536_v20 = vsel %vm535_vm0, %v533_v16, %v534_v18 }
  0xb4   : >> { %538 = vst [vmem:[%s6424_s29 + $0x24] sm:$0x3] %v536_v20  ;;  %v566_v22 = vpop.permute.xlu1 %565 }
  0xb5   : >> { %v520_v21 = vsel %vm519_vm1, %v517_v17, %v518_v19  ;;  %v567_v24 = vrot.slane %v566_v22, 4 }
  0xb6   : >> { %522 = vst [vmem:[%s6424_s29 + $0x20] sm:$0xc] %v520_v21  ;;  %v550_v23 = vpop.permute.xlu0 %549 }
  0xb7   : >> { %v551_v25 = vrot.slane %v550_v23, 4  ;;  %v569_v26 = vsel %vm568_vm2, %v566_v22, %v567_v24 }
  0xb8   : >> { %571 = vst [vmem:[%s6424_s29 + $0x28] sm:$0x3] %v569_v26  ;;  %v599_v28 = vpop.permute.xlu1 %598 }
  0xb9   : >> { %v553_v27 = vsel %vm552_vm3, %v550_v23, %v551_v25  ;;  %v600_v30 = vrot.slane %v599_v28, 4 }
  0xba   : >> { %555 = vst [vmem:[%s6424_s29 + $0x24] sm:$0xc] %v553_v27  ;;  %v583_v29 = vpop.permute.xlu0 %582 }
  0xbb   : >> { %v584_v31 = vrot.slane %v583_v29, 4  ;;  %v602_v32 = vsel %vm601_vm4, %v599_v28, %v600_v30 }
  0xbc   : >> { %604 = vst [vmem:[%s6424_s29 + $0x2c] sm:$0x3] %v602_v32  ;;  %v632_v34 = vpop.permute.xlu1 %631  ;;  %232 = sbr.rel (!%p230_p8) target bundleno = 27 (0x1b), region = 168 }
  0xbd   : >> { %v586_v33 = vsel %vm585_vm5, %v583_v29, %v584_v31  ;;  %v633_v36 = vrot.slane %v632_v34, 4 }
  0xbe   : >> { %588 = vst [vmem:[%s6424_s29 + $0x28] sm:$0xc] %v586_v33  ;;  %v616_v35 = vpop.permute.xlu0 %615 }
  0xbf   : >> { %v617_v37 = vrot.slane %v616_v35, 4  ;;  %v635_v38 = vsel %vm634_vm6, %v632_v34, %v633_v36 }
  0xc0   : >> { %637 = vst [vmem:[%s6424_s29 + $0x30] sm:$0x3] %v635_v38 }
  0xc1   : >> { %v619_v39 = vsel %vm618_vm7, %v616_v35, %v617_v37 }
  0xc2   : >> { %621 = vst [vmem:[%s6424_s29 + $0x2c] sm:$0xc] %v619_v39 }
  0xc3 PF: > { %v6478_v40 = vld [vmem:[%s7219_s3] sm:$0x1]  ;;  %p642_p9 = scmp.ge.s32.totalorder %s6378_s22, 2  ;;  %p643_p10 = scmp.lt.s32.totalorder %s6378_s22, 10  ;;  %v6283_v42 = vmov 0  }
  0xc4   : > { %v6483_v41 = vld [vmem:[%s7218_s2] sm:$0xf]  ;;  %vm639_vm8 = vcmp.gt.f32.partialorder %v6478_v40, 0.5  ;;  %646 = vst [vmem:[%s6390_s8] sm:$0xf] %v6283_v42 }
  0xc5   : > { %p644_p11 = pnand %p643_p10, %p642_p9 }
  0xc6   : > { %s4382_s9 = smul.u32 (!%p644_p11), 312, %s6236_s15  ;;  %v6284_v43 = vmov (!%p644_p11), 0.0   ;;  %vm6285_vm9 = vmmov (!%p644_p11), 0   ;;  %v6286_v45 = vmov (!%p644_p11), 0   ;;  %vm729_vm10 = vcmask (!%p644_p11), 1041408   ;;  %s6287_s25 = smov (!%p644_p11), 102  }
  0xc7   : > { %648 = sbr.rel (%p644_p11) target bundleno = 630 (0x276), region = 51  ;;  %5300 = vmatprep.subr.bf16.mxu0 (!%p644_p11), %v6284_v43  ;;  %5318 = vmatprep.subr.bf16.mxu1 (!%p644_p11), %v6284_v43  ;;  %v4396_v61 = vld [vmem:[%s7217_s1 + $0x2] sm:$0x3] (!%p644_p11)  ;;  %vm725_vm11 = vcmask (!%p644_p11), 818176   ;;  %v650_v62 = vld [vmem:[%s7217_s1] sm:$0x3] (!%p644_p11) }
  0xc8   : > { %5314 = vmatprep.mubr.msk.bf16.mxu0 (!%p644_p11), %vm6285_vm9, %v6284_v43  ;;  %5332 = vmatprep.mubr.msk.bf16.mxu1 (!%p644_p11), %vm6285_vm9, %v6284_v43  ;;  %s6497_s29 = scalar_lea.vmem (!%p644_p11), [#allocation2], %s4382_s9  ;;  %s5057_s23 = smul.u32 (!%p644_p11), 24, %s6236_s15  ;;  %v4427_v19 = vld [vmem:[%s7217_s1 + $0x4] sm:$0x3] (!%p644_p11)  ;;  %v4438_v21 = vld [vmem:[%s7217_s1 + $0x6] sm:$0x3] (!%p644_p11) }
  0xc9   : > { %v5970_v44 = vld [vmem:[%s6497_s29 - $0x34] sm:$0xff] (!%p644_p11)   ;;  %5964 = vset.pattern.permute.xlu0 (!%p644_p11), %v6286_v45  ;;  %v5971_v46 = vld [vmem:[%s6497_s29 - $0x68] sm:$0xff] (!%p644_p11)   ;;  %v5973_v48 = vld [vmem:[%s6497_s29 - $0x60] sm:$0xff] (!%p644_p11)   ;;  %vm1192_vm12 = vcmask (!%p644_p11), 834560   ;;  %s6289_s7 = smov (!%p644_p11), 26   ;;  %vm1218_vm15 = vcmask (!%p644_p11), 1041616  }
  0xca   : > { %1174 = vperm.xlu0 (!%p644_p11), %5964, %v6483_v41   ;;  %5301 = vmatpush3.bf16.msra.mxu0 (!%p644_p11), %v5970_v44  ;;  %v5972_v47 = vld [vmem:[%s6497_s29 - $0x2c] sm:$0xff] (!%p644_p11)   ;;  %v5974_v49 = vld [vmem:[%s6497_s29 - $0x24] sm:$0xff] (!%p644_p11)   ;;  %v5975_v50 = vld [vmem:[%s6497_s29 - $0x58] sm:$0xff] (!%p644_p11)   ;;  %s1183_s24 = scalar_lea.vmem (!%p644_p11), %s6385_s27, %s5057_s23  ;;  %vm1219_vm0 = vcmask (!%p644_p11), 207874   ;;  %vm1215_vm1 = vcmask (!%p644_p11), 211968  }
  0xcb   : > { %5319 = vmatpush3.bf16.msra.mxu1 (!%p644_p11), %v5971_v46  ;;  %5302 = vmatprep.subr.bf16.mxu0 (!%p644_p11), %v6284_v43  ;;  %v5976_v51 = vld [vmem:[%s6497_s29 - $0x1c] sm:$0xff] (!%p644_p11)   ;;  %v5977_v52 = vld [vmem:[%s6497_s29 - $0x50] sm:$0xff] (!%p644_p11)   ;;  %v5979_v54 = vld [vmem:[%s6497_s29 - $0x48] sm:$0xff] (!%p644_p11)  }
  0xcc   : > { %5320 = vmatprep.subr.bf16.mxu1 (!%p644_p11), %v6284_v43  ;;  %v5978_v53 = vld [vmem:[%s6497_s29 - $0x14] sm:$0xff] (!%p644_p11)   ;;  %v5982_v55 = vld [vmem:[%s6497_s29 - $0x4] ss:$0 sps:$4 sm:$0x33] (!%p644_p11)   ;;  %v5980_v56 = vld [vmem:[%s6497_s29 - $0xc] sm:$0xff] (!%p644_p11)  }
  0xcd   : > { %v5983_v57 = vld [vmem:[%s6497_s29 - $0x38] ss:$0 sps:$4 sm:$0x33] (!%p644_p11)   ;;  %v5981_v58 = vld [vmem:[%s6497_s29 - $0x40] sm:$0xff] (!%p644_p11)   ;;  %v731_v59 = vsel (!%p644_p11), %vm729_vm10, %v5982_v55, 0  ;;  %v5985_v0 = vld [vmem:[%s6497_s29 + $0x34] sm:$0xff] (!%p644_p11)  }
  0xce   : > { %5303 = vmatpush3.bf16.msra.mxu0 %v5972_v47  ;;  %v816_v60 = vsel %vm729_vm10, %v5983_v57, 0  ;;  %v5984_v63 = vld [vmem:[%s6497_s29] sm:$0xff]   ;;  %v5986_v1 = vld [vmem:[%s6497_s29 + $0x8] sm:$0xff]   ;;  %v5988_v4 = vld [vmem:[%s6497_s29 + $0x10] sm:$0xff]  }
  0xcf   : > { %5321 = vmatpush3.bf16.msra.mxu1 %v5973_v48  ;;  %5304 = vmatprep.subr.bf16.mxu0 %v6284_v43  ;;  %v5987_v2 = vld [vmem:[%s6497_s29 + $0x3c] sm:$0xff]   ;;  %v5989_v6 = vld [vmem:[%s6497_s29 + $0x44] sm:$0xff]   ;;  %v5991_v10 = vld [vmem:[%s6497_s29 + $0x4c] sm:$0xff]  }
  0xd0   : > { %5322 = vmatprep.subr.bf16.mxu1 %v6284_v43  ;;  %v1184_v3 = vld [vmem:[%s1183_s24] sm:$0xf]  ;;  %v5990_v8 = vld [vmem:[%s6497_s29 + $0x18] sm:$0xff]   ;;  %v5994_v13 = vld [vmem:[%s6497_s29 + $0x28] sm:$0xff]  }
  0xd1   : > { %v1185_v5 = vunpack.c.l.bf16 %v1184_v3  ;;  %v5992_v11 = vld [vmem:[%s6497_s29 + $0x20] sm:$0xff]   ;;  %v5993_v12 = vld [vmem:[%s6497_s29 + $0x54] sm:$0xff]   ;;  %v5996_v15 = vld [vmem:[%s6497_s29 + $0x30] ss:$0 sps:$4 sm:$0x33]  }
  0xd2   : > { %5305 = vmatpush3.bf16.msra.mxu0 %v5974_v49  ;;  %v5995_v14 = vld [vmem:[%s6497_s29 + $0x5c] sm:$0xff]   ;;  %v5997_v16 = vld [vmem:[%s6497_s29 + $0x64] ss:$0 sps:$4 sm:$0x33]   ;;  %v919_v17 = vsel %vm729_vm10, %v5996_v15, 0  ;;  %v5998_v20 = vld [vmem:[%s6497_s29 + $0x68] sm:$0xff]  }
  0xd3   : > { %5323 = vmatpush3.bf16.msra.mxu1 %v5975_v50  ;;  %5306 = vmatprep.subr.bf16.mxu0 %v6284_v43  ;;  %v1187_v7 = vcombine.high %v1185_v5, %v1185_v5  ;;  %v1024_v18 = vsel %vm729_vm10, %v5997_v16, 0  ;;  %v5999_v22 = vld [vmem:[%s6497_s29 + $0x70] sm:$0xff]   ;;  %v6000_v23 = vld [vmem:[%s6497_s29 + $0x78] sm:$0xff]   ;;  %v6001_v24 = vld [vmem:[%s6497_s29 + $0x80] sm:$0xff]  }
  0xd4   : > { %5324 = vmatprep.subr.bf16.mxu1 %v6284_v43  ;;  %v6002_v25 = vld [vmem:[%s6497_s29 + $0x88] sm:$0xff]   ;;  %v6003_v26 = vld [vmem:[%s6497_s29 + $0x90] sm:$0xff]   ;;  %v6004_v27 = vld [vmem:[%s6497_s29 + $0x98] ss:$0 sps:$4 sm:$0x33]  }
  0xd5   : > { %v5965_v9 = vpack.i.bf16 %v1187_v7, %v1185_v5  ;;  %v1129_v28 = vsel %vm729_vm10, %v6004_v27, 0  ;;  %v4461_v29 = vld [vmem:[%s7217_s1 + $0x8] sm:$0x3]  ;;  %vm1220_vm2 = vmor %vm1219_vm0, %vm1218_vm15 }
  0xd6   : > { %5307 = vmatpush3.bf16.msra.mxu0 %v5976_v51 }
  0xd7   : > { %5325 = vmatpush3.bf16.msra.mxu1 %v5977_v52  ;;  %5308 = vmatprep.subr.bf16.mxu0 %v6284_v43 }
  0xd8   : > { %5326 = vmatprep.subr.bf16.mxu1 %v6284_v43  ;;  %5966 = vrot.lane.b32.xlu0 %v5965_v9, %s6287_s25 }
  0xda   : > { %5309 = vmatpush3.bf16.msra.mxu0 %v5978_v53  ;;  %v1197_v53 = vlaneseq }
  0xdb   : > { %5327 = vmatpush3.bf16.msra.mxu1 %v5979_v54  ;;  %5310 = vmatprep.subr.bf16.mxu0 %v6284_v43 }
  0xdc   : > { %5328 = vmatprep.subr.bf16.mxu1 %v6284_v43  ;;  %v1198_v55 = vshrl.u32 %v1197_v53, 7 }
  0xde   : > { %5311 = vmatpush3.bf16.msra.mxu0 %v5980_v56  ;;  %v1199_v57 = vsub.s32 0, %v1198_v55 }
  0xdf   : > { %5329 = vmatpush3.bf16.msra.mxu1 %v5981_v58  ;;  %5312 = vmatprep.subr.bf16.mxu0 %v6284_v43  ;;  %v1196_v58 = vsel %vm639_vm8, 1, %v6286_v45 }
  0xe0   : > { %5330 = vmatprep.subr.bf16.mxu1 %v6284_v43  ;;  %v1200_v3 = vrot.slane %v1196_v58, %v1199_v57 }
  0xe2   : > { %5313 = vmatpush3.bf16.msra.mxu0 %v731_v59  ;;  %vm1201_vm14 = vcmp.eq.s32.totalorder %v1200_v3, 1 }
  0xe3   : > { %5331 = vmatpush3.bf16.msra.mxu1 %v816_v60  ;;  %5336 = vmatprep.subr.bf16.mxu0 %v6284_v43 }
  0xe4   : > { %5354 = vmatprep.subr.bf16.mxu1 %v6284_v43 }
  0xe5   : > { %5315 = vmatmul.mubr.msk.bf16.vlgmr.msra.gmra.mrb[0].mxu0 %vm725_vm11, %v4396_v61 }
  0xe6   : > { %5333 = vmatmul.mubr.msk.bf16.vlgmr.msra.gmra.mrb[0].mxu1 %vm725_vm11, %v650_v62  ;;  %5337 = vmatpush3.bf16.msra.mxu0 %v5984_v63 }
  0xe7   : > { %5355 = vmatpush3.bf16.msra.mxu1 %v5985_v0  ;;  %5338 = vmatprep.subr.bf16.mxu0 %v6284_v43  ;;  %v6288_v0 = vmov 1983009808  }
  0xe8   : > { %5356 = vmatprep.subr.bf16.mxu1 %v6284_v43  ;;  %5350 = vmatprep.mubr.msk.bf16.mxu0 %vm6285_vm9, %v6284_v43 }
  0xe9   : > { %5368 = vmatprep.mubr.msk.bf16.mxu1 %vm6285_vm9, %v6284_v43 }
  0xea   : > { %5339 = vmatpush3.bf16.msra.mxu0 %v5986_v1  ;;  %v1206_v1 = vunpack.c.l.s4 %v6288_v0 }
  0xeb   : > { %5357 = vmatpush3.bf16.msra.mxu1 %v5987_v2  ;;  %5340 = vmatprep.subr.bf16.mxu0 %v6284_v43 }
  0xec   : > { %5358 = vmatprep.subr.bf16.mxu1 %v6284_v43 }
  0xee   : > { %5341 = vmatpush3.bf16.msra.mxu0 %v5988_v4 }
  0xef   : > { %5359 = vmatpush3.bf16.msra.mxu1 %v5989_v6  ;;  %5342 = vmatprep.subr.bf16.mxu0 %v6284_v43 }
  0xf0   : > { %5360 = vmatprep.subr.bf16.mxu1 %v6284_v43 }
  0xf2   : > { %5343 = vmatpush3.bf16.msra.mxu0 %v5990_v8  ;;  %v1207_v8 = vunpack.c.0.s8 %v1206_v1 }
  0xf3   : > { %5361 = vmatpush3.bf16.msra.mxu1 %v5991_v10  ;;  %5344 = vmatprep.subr.bf16.mxu0 %v6284_v43 }
  0xf4   : > { %5362 = vmatprep.subr.bf16.mxu1 %v6284_v43  ;;  %v1210_v10 = vsub.s32 %v1207_v8, %v1198_v55 }
  0xf6   : > { %5345 = vmatpush3.bf16.msra.mxu0 %v5992_v11 }
  0xf7   : > { %5363 = vmatpush3.bf16.msra.mxu1 %v5993_v12  ;;  %5346 = vmatprep.subr.bf16.mxu0 %v6284_v43 }
  0xf8   : > { %5364 = vmatprep.subr.bf16.mxu1 %v6284_v43 }
  0xfa   : > { %5347 = vmatpush3.bf16.msra.mxu0 %v5994_v13 }
  0xfb   : > { %5365 = vmatpush3.bf16.msra.mxu1 %v5995_v14  ;;  %5348 = vmatprep.subr.bf16.mxu0 %v6284_v43 }
  0xfc   : > { %5366 = vmatprep.subr.bf16.mxu1 %v6284_v43 }
  0xfe   : > { %5349 = vmatpush3.bf16.msra.mxu0 %v919_v17 }
  0xff   : > { %5367 = vmatpush3.bf16.msra.mxu1 %v1024_v18  ;;  %5372 = vmatprep.subr.bf16.mxu0 %v6284_v43 }
 0x101   : > { %5351 = vmatmul.mubr.msk.bf16.vlgmr.msra.gmra.mrb[4].mxu0 %vm725_vm11, %v4427_v19 }
 0x102   : > { %5373 = vmatpush3.bf16.msra.mxu0 %v5998_v20  ;;  %5369 = vmatmul.mubr.msk.bf16.vlgmr.msra.gmra.mrb[4].mxu1 %vm725_vm11, %v4438_v21 }
 0x103   : > { %5374 = vmatprep.subr.bf16.mxu0 %v6284_v43  ;;  %5386 = vmatprep.mubr.msk.bf16.mxu0 %vm6285_vm9, %v6284_v43 }
 0x106   : > { %5375 = vmatpush3.bf16.msra.mxu0 %v5999_v22 }
 0x107   : > { %5376 = vmatprep.subr.bf16.mxu0 %v6284_v43 }
 0x10a   : > { %5377 = vmatpush3.bf16.msra.mxu0 %v6000_v23 }
 0x10b   : > { %5378 = vmatprep.subr.bf16.mxu0 %v6284_v43 }
 0x10e   : > { %5379 = vmatpush3.bf16.msra.mxu0 %v6001_v24 }
 0x10f   : > { %5380 = vmatprep.subr.bf16.mxu0 %v6284_v43 }
 0x112   : > { %5381 = vmatpush3.bf16.msra.mxu0 %v6002_v25 }
 0x113   : > { %5382 = vmatprep.subr.bf16.mxu0 %v6284_v43 }
 0x116   : > { %5383 = vmatpush3.bf16.msra.mxu0 %v6003_v26 }
 0x117   : > { %5384 = vmatprep.subr.bf16.mxu0 %v6284_v43 }
 0x11a   : > { %5385 = vmatpush3.bf16.msra.mxu0 %v1129_v28 }
 0x11d   : > { %5387 = vmatmul.mubr.msk.bf16.vlgmr.msra.gmra.mrb[8].mxu0 %vm725_vm11, %v4461_v29 }
 0x149   : > { %v1175_v54 = vpop.permute.xlu0 %1174 }
 0x14d   : > { %v5967_v56 = vpop.permute.xlu0 %5966 }
 0x14e   : > { %v5969_v62 = vunpack.i.h.bf16 %v5967_v56  ;;  %v5968_v63 = vunpack.i.l.bf16 %v5967_v56 }
 0x150   : > { %v1193_v7 = vsel %vm1192_vm12, %v5968_v63, %v5969_v62 }
 0x1b8   : > { %v767_v30 = vpop.f32.mrb[0].mxu0 }
 0x1b9   : > { %v5316_v31 = vpop.f32.mrb[1].mxu0  ;;  %v852_v32 = vpop.f32.mrb[0].mxu1 }
 0x1ba   : > { %v853_v33 = vadd.f32 %v852_v32, %v767_v30  ;;  %v770_v34 = vpop.f32.mrb[2].mxu0  ;;  %v5334_v35 = vpop.f32.mrb[1].mxu1 }
 0x1bb   : > { %v5317_v36 = vpop.f32.mrb[3].mxu0  ;;  %v855_v37 = vpop.f32.mrb[2].mxu1 }
 0x1bc   : > { %v5335_v38 = vpop.f32.mrb[3].mxu1 }
 0x1d4   : > { %v955_v39 = vpop.f32.mrb[4].mxu0 }
 0x1d5   : > { %v961_v43 = vadd.f32 %v955_v39, %v853_v33  ;;  %v5352_v44 = vpop.f32.mrb[5].mxu0  ;;  %v1060_v46 = vpop.f32.mrb[4].mxu1 }
 0x1d6   : > { %v958_v47 = vpop.f32.mrb[6].mxu0  ;;  %v5370_v48 = vpop.f32.mrb[5].mxu1 }
 0x1d7   : > { %v1066_v49 = vadd.f32 %v1060_v46, %v961_v43  ;;  %v5353_v50 = vpop.f32.mrb[7].mxu0  ;;  %v1063_v51 = vpop.f32.mrb[6].mxu1 }
 0x1d8   : > { %v5371_v52 = vpop.f32.mrb[7].mxu1 }
 0x1f0   : > { %v1165_v59 = vpop.f32.mrb[8].mxu0 }
 0x1f1   : > { %v1171_v60 = vadd.f32 %v1165_v59, %v1066_v49  ;;  %v5388_v61 = vpop.f32.mrb[9].mxu0 }
 0x1f2   : > { %v1168_v2 = vpop.f32.mrb[10].mxu0 }
 0x1f3   : > { %v1177_v4 = vadd.f32 %v1175_v54, %v1171_v60  ;;  %v5389_v5 = vpop.f32.mrb[11].mxu0 }
 0x1f5   : > { %vm1178_vm13 = vcmp.ge.f32.partialorder %v1177_v4, 0.0  ;;  %v1179_v6 = vmul.f32 0.1, %v1177_v4 }
 0x1f7   : > { %v1180_v9 = vsel %vm1178_vm13, %v1177_v4, %v1179_v6 }
 0x1f8   : > { %v1195_v45 = vadd.f32 %v1193_v7, %v1180_v9 }
 0x1fa   : > { %v1202_v11 = vsel %vm1201_vm14, %v1195_v45, 0.0 }
 0x1fb   : > { %v1203_v12 = vpack.c.bf16 %v1202_v11, %v1202_v11 }
 0x1fd   : > { %v1211_v13 = vrot.slane %v1203_v12, %v1210_v10 }
 0x1ff   : > { %1212 = vrot.lane.b32.xlu1 %v1211_v13, %s6289_s7 }
 0x271   : > { %v1213_v14 = vpop.permute.xlu1 %1212 }
 0x272   : > { %v1214_v15 = vrot.slane %v1213_v14, 6 }
 0x274   : > { %v1216_v16 = vsel %vm1215_vm1, %v1214_v15, %v1213_v14 }
 0x275   : > { %1221 = vst.msk [vmem:[%s6390_s8] sm:$0xf] %vm1220_vm2, %v1216_v16 }
 0x276 PF: > { %s1222_s10 = sadd.s32 1, %s6378_s22  ;;  %4486 = vst [vmem:[%s6390_s8 + $0x4] sm:$0xf] %v6283_v42 }
 0x277   : > { %p1223_p12 = scmp.ge.s32.totalorder %s1222_s10, 2  ;;  %p1224_p13 = scmp.lt.s32.totalorder %s1222_s10, 10 }
 0x279   : > { %p1225_p0 = pnand %p1224_p13, %p1223_p12 }
 0x27a   : > { %s4487_s9 = smul.u32 (!%p1225_p0), 312, %s6236_s15  ;;  %v6290_v17 = vmov (!%p1225_p0), 0.0   ;;  %vm6291_vm3 = vmmov (!%p1225_p0), 0   ;;  %v6292_v19 = vmov (!%p1225_p0), 0   ;;  %vm1310_vm4 = vcmask (!%p1225_p0), 1041408   ;;  %s6293_s25 = smov (!%p1225_p0), 102  }
 0x27b   : > { %1230 = sbr.rel (%p1225_p0) target bundleno = 1066 (0x42a), region = 55  ;;  %5390 = vmatprep.subr.bf16.mxu0 (!%p1225_p0), %v6290_v17  ;;  %5408 = vmatprep.subr.bf16.mxu1 (!%p1225_p0), %v6290_v17  ;;  %v4501_v35 = vld [vmem:[%s7217_s1 + $0x2] sm:$0x3] (!%p1225_p0)  ;;  %vm1306_vm5 = vcmask (!%p1225_p0), 818176   ;;  %v1232_v36 = vld [vmem:[%s7217_s1] sm:$0x3] (!%p1225_p0) }
 0x27c   : > { %5404 = vmatprep.mubr.msk.bf16.mxu0 (!%p1225_p0), %vm6291_vm3, %v6290_v17  ;;  %5422 = vmatprep.mubr.msk.bf16.mxu1 (!%p1225_p0), %vm6291_vm3, %v6290_v17  ;;  %s6616_s29 = scalar_lea.vmem (!%p1225_p0), [#allocation2], %s4487_s9  ;;  %s4589_s23 = smul.u32 (!%p1225_p0), 24, %s6236_s15  ;;  %v4520_v61 = vld [vmem:[%s7217_s1 + $0x4] sm:$0x3] (!%p1225_p0)  ;;  %v4543_v63 = vld [vmem:[%s7217_s1 + $0x6] sm:$0x3] (!%p1225_p0) }
 0x27d   : > { %v6011_v18 = vld [vmem:[%s6616_s29] sm:$0xff] (!%p1225_p0)   ;;  %6005 = vset.pattern.permute.xlu0 (!%p1225_p0), %v6292_v19  ;;  %v6012_v20 = vld [vmem:[%s6616_s29 - $0x34] sm:$0xff] (!%p1225_p0)   ;;  %v6014_v22 = vld [vmem:[%s6616_s29 - $0x2c] sm:$0xff] (!%p1225_p0)   ;;  %vm1773_vm6 = vcmask (!%p1225_p0), 834560   ;;  %s6295_s7 = smov (!%p1225_p0), 26   ;;  %vm1799_vm10 = vcmask (!%p1225_p0), 1041616  }
 0x27e   : > { %1755 = vperm.xlu0 (!%p1225_p0), %6005, %v6483_v41   ;;  %5391 = vmatpush3.bf16.msra.mxu0 (!%p1225_p0), %v6011_v18  ;;  %v6013_v21 = vld [vmem:[%s6616_s29 + $0x8] sm:$0xff] (!%p1225_p0)   ;;  %v6015_v23 = vld [vmem:[%s6616_s29 + $0x10] sm:$0xff] (!%p1225_p0)   ;;  %v6016_v24 = vld [vmem:[%s6616_s29 - $0x24] sm:$0xff] (!%p1225_p0)   ;;  %s4215_s24 = scalar_lea.vmem (!%p1225_p0), %s6385_s27, %s4589_s23  ;;  %vm1800_vm11 = vcmask (!%p1225_p0), 207874   ;;  %vm1796_vm12 = vcmask (!%p1225_p0), 211968  }
 0x27f   : > { %5409 = vmatpush3.bf16.msra.mxu1 (!%p1225_p0), %v6012_v20  ;;  %5392 = vmatprep.subr.bf16.mxu0 (!%p1225_p0), %v6290_v17  ;;  %v6017_v25 = vld [vmem:[%s6616_s29 + $0x18] sm:$0xff] (!%p1225_p0)   ;;  %v6018_v26 = vld [vmem:[%s6616_s29 - $0x1c] sm:$0xff] (!%p1225_p0)   ;;  %v6020_v28 = vld [vmem:[%s6616_s29 - $0x14] sm:$0xff] (!%p1225_p0)  }
 0x280   : > { %5410 = vmatprep.subr.bf16.mxu1 (!%p1225_p0), %v6290_v17  ;;  %v6019_v27 = vld [vmem:[%s6616_s29 + $0x20] sm:$0xff] (!%p1225_p0)   ;;  %v6023_v29 = vld [vmem:[%s6616_s29 + $0x30] ss:$0 sps:$4 sm:$0x33] (!%p1225_p0)   ;;  %v6021_v30 = vld [vmem:[%s6616_s29 + $0x28] sm:$0xff] (!%p1225_p0)  }
 0x281   : > { %v6024_v31 = vld [vmem:[%s6616_s29 - $0x4] ss:$0 sps:$4 sm:$0x33] (!%p1225_p0)   ;;  %v6022_v32 = vld [vmem:[%s6616_s29 - $0xc] sm:$0xff] (!%p1225_p0)   ;;  %v1312_v33 = vsel (!%p1225_p0), %vm1310_vm4, %v6023_v29, 0  ;;  %v6026_v38 = vld [vmem:[%s6616_s29 + $0x68] sm:$0xff] (!%p1225_p0)  }
 0x282   : > { %5393 = vmatpush3.bf16.msra.mxu0 %v6013_v21  ;;  %v1397_v34 = vsel %vm1310_vm4, %v6024_v31, 0  ;;  %v6025_v37 = vld [vmem:[%s6616_s29 + $0x34] sm:$0xff]   ;;  %v6027_v39 = vld [vmem:[%s6616_s29 + $0x3c] sm:$0xff]   ;;  %v4590_v44 = vld [vmem:[%s4215_s24 + $0x4] sm:$0xf] }
 0x283   : > { %5411 = vmatpush3.bf16.msra.mxu1 %v6014_v22  ;;  %5394 = vmatprep.subr.bf16.mxu0 %v6290_v17  ;;  %v6028_v43 = vld [vmem:[%s6616_s29 + $0x70] sm:$0xff]   ;;  %v6029_v46 = vld [vmem:[%s6616_s29 + $0x44] sm:$0xff]   ;;  %v1766_v47 = vunpack.c.l.bf16 %v4590_v44  ;;  %v6030_v48 = vld [vmem:[%s6616_s29 + $0x78] sm:$0xff]  }
 0x284   : > { %5412 = vmatprep.subr.bf16.mxu1 %v6290_v17  ;;  %v6031_v50 = vld [vmem:[%s6616_s29 + $0x4c] sm:$0xff]   ;;  %v6032_v52 = vld [vmem:[%s6616_s29 + $0x80] sm:$0xff]   ;;  %v6033_v53 = vld [vmem:[%s6616_s29 + $0x54] sm:$0xff]  }
 0x285   : > { %v1768_v49 = vcombine.high %v1766_v47, %v1766_v47  ;;  %v6034_v54 = vld [vmem:[%s6616_s29 + $0x88] sm:$0xff]   ;;  %v6035_v55 = vld [vmem:[%s6616_s29 + $0x5c] sm:$0xff]   ;;  %v6036_v56 = vld [vmem:[%s6616_s29 + $0x90] sm:$0xff]  }
 0x286   : > { %5395 = vmatpush3.bf16.msra.mxu0 %v6015_v23  ;;  %v6037_v57 = vld [vmem:[%s6616_s29 + $0x64] ss:$0 sps:$4 sm:$0x33]   ;;  %v6038_v58 = vld [vmem:[%s6616_s29 + $0x98] ss:$0 sps:$4 sm:$0x33]   ;;  %vm1801_vm13 = vmor %vm1800_vm11, %vm1799_vm10 }
 0x287   : > { %5413 = vmatpush3.bf16.msra.mxu1 %v6016_v24  ;;  %5396 = vmatprep.subr.bf16.mxu0 %v6290_v17  ;;  %v6006_v51 = vpack.i.bf16 %v1768_v49, %v1766_v47  ;;  %v1500_v59 = vsel %vm1310_vm4, %v6037_v57, 0  ;;  %v1605_v60 = vsel %vm1310_vm4, %v6038_v58, 0  ;;  %v6039_v62 = vld [vmem:[%s6616_s29 + $0x9c] sm:$0xff]   ;;  %v6040_v0 = vld [vmem:[%s6616_s29 + $0xa4] sm:$0xff]   ;;  %v6041_v1 = vld [vmem:[%s6616_s29 + $0xac] sm:$0xff]  }
 0x288   : > { %5414 = vmatprep.subr.bf16.mxu1 %v6290_v17  ;;  %v6042_v2 = vld [vmem:[%s6616_s29 + $0xb4] sm:$0xff]   ;;  %v6043_v3 = vld [vmem:[%s6616_s29 + $0xbc] sm:$0xff]   ;;  %v6044_v4 = vld [vmem:[%s6616_s29 + $0xc4] sm:$0xff]  }
 0x289   : > { %6007 = vrot.lane.b32.xlu0 %v6006_v51, %s6293_s25  ;;  %v6045_v5 = vld [vmem:[%s6616_s29 + $0xcc] ss:$0 sps:$4 sm:$0x33]   ;;  %v4566_v7 = vld [vmem:[%s7217_s1 + $0x8] sm:$0x3] }
 0x28a   : > { %5397 = vmatpush3.bf16.msra.mxu0 %v6017_v25  ;;  %v1710_v6 = vsel %vm1310_vm4, %v6045_v5, 0 }
 0x28b   : > { %5415 = vmatpush3.bf16.msra.mxu1 %v6018_v26  ;;  %5398 = vmatprep.subr.bf16.mxu0 %v6290_v17 }
 0x28c   : > { %5416 = vmatprep.subr.bf16.mxu1 %v6290_v17 }
 0x28e   : > { %5399 = vmatpush3.bf16.msra.mxu0 %v6019_v27  ;;  %v1778_v27 = vlaneseq }
 0x28f   : > { %5417 = vmatpush3.bf16.msra.mxu1 %v6020_v28  ;;  %5400 = vmatprep.subr.bf16.mxu0 %v6290_v17 }
 0x290   : > { %5418 = vmatprep.subr.bf16.mxu1 %v6290_v17  ;;  %v1779_v29 = vshrl.u32 %v1778_v27, 7 }
 0x292   : > { %5401 = vmatpush3.bf16.msra.mxu0 %v6021_v30  ;;  %v1780_v31 = vsub.s32 0, %v1779_v29 }
 0x293   : > { %5419 = vmatpush3.bf16.msra.mxu1 %v6022_v32  ;;  %5402 = vmatprep.subr.bf16.mxu0 %v6290_v17  ;;  %v1777_v32 = vsel %vm639_vm8, 1, %v6292_v19 }
 0x294   : > { %5420 = vmatprep.subr.bf16.mxu1 %v6290_v17  ;;  %v1781_v44 = vrot.slane %v1777_v32, %v1780_v31 }
 0x296   : > { %5403 = vmatpush3.bf16.msra.mxu0 %v1312_v33  ;;  %vm1782_vm9 = vcmp.eq.s32.totalorder %v1781_v44, 1 }
 0x297   : > { %5421 = vmatpush3.bf16.msra.mxu1 %v1397_v34  ;;  %5426 = vmatprep.subr.bf16.mxu0 %v6290_v17 }
 0x298   : > { %5444 = vmatprep.subr.bf16.mxu1 %v6290_v17 }
 0x299   : > { %5405 = vmatmul.mubr.msk.bf16.vlgmr.msra.gmra.mrb[0].mxu0 %vm1306_vm5, %v4501_v35 }
 0x29a   : > { %5423 = vmatmul.mubr.msk.bf16.vlgmr.msra.gmra.mrb[0].mxu1 %vm1306_vm5, %v1232_v36  ;;  %5427 = vmatpush3.bf16.msra.mxu0 %v6025_v37 }
 0x29b   : > { %5445 = vmatpush3.bf16.msra.mxu1 %v6026_v38  ;;  %5428 = vmatprep.subr.bf16.mxu0 %v6290_v17  ;;  %v6294_v38 = vmov 1983009808  }
 0x29c   : > { %5446 = vmatprep.subr.bf16.mxu1 %v6290_v17  ;;  %5440 = vmatprep.mubr.msk.bf16.mxu0 %vm6291_vm3, %v6290_v17 }
 0x29d   : > { %5458 = vmatprep.mubr.msk.bf16.mxu1 %vm6291_vm3, %v6290_v17 }
 0x29e   : > { %5429 = vmatpush3.bf16.msra.mxu0 %v6027_v39  ;;  %v1787_v39 = vunpack.c.l.s4 %v6294_v38 }
 0x29f   : > { %5447 = vmatpush3.bf16.msra.mxu1 %v6028_v43  ;;  %5430 = vmatprep.subr.bf16.mxu0 %v6290_v17 }
 0x2a0   : > { %5448 = vmatprep.subr.bf16.mxu1 %v6290_v17 }
 0x2a2   : > { %5431 = vmatpush3.bf16.msra.mxu0 %v6029_v46 }
 0x2a3   : > { %5449 = vmatpush3.bf16.msra.mxu1 %v6030_v48  ;;  %5432 = vmatprep.subr.bf16.mxu0 %v6290_v17 }
 0x2a4   : > { %5450 = vmatprep.subr.bf16.mxu1 %v6290_v17 }
 0x2a6   : > { %5433 = vmatpush3.bf16.msra.mxu0 %v6031_v50  ;;  %v1788_v50 = vunpack.c.0.s8 %v1787_v39 }
 0x2a7   : > { %5451 = vmatpush3.bf16.msra.mxu1 %v6032_v52  ;;  %5434 = vmatprep.subr.bf16.mxu0 %v6290_v17 }
 0x2a8   : > { %5452 = vmatprep.subr.bf16.mxu1 %v6290_v17  ;;  %v1791_v52 = vsub.s32 %v1788_v50, %v1779_v29 }
 0x2aa   : > { %5435 = vmatpush3.bf16.msra.mxu0 %v6033_v53 }
 0x2ab   : > { %5453 = vmatpush3.bf16.msra.mxu1 %v6034_v54  ;;  %5436 = vmatprep.subr.bf16.mxu0 %v6290_v17 }
 0x2ac   : > { %5454 = vmatprep.subr.bf16.mxu1 %v6290_v17 }
 0x2ae   : > { %5437 = vmatpush3.bf16.msra.mxu0 %v6035_v55 }
 0x2af   : > { %5455 = vmatpush3.bf16.msra.mxu1 %v6036_v56  ;;  %5438 = vmatprep.subr.bf16.mxu0 %v6290_v17 }
 0x2b0   : > { %5456 = vmatprep.subr.bf16.mxu1 %v6290_v17 }
 0x2b2   : > { %5439 = vmatpush3.bf16.msra.mxu0 %v1500_v59 }
 0x2b3   : > { %5457 = vmatpush3.bf16.msra.mxu1 %v1605_v60  ;;  %5462 = vmatprep.subr.bf16.mxu0 %v6290_v17 }
 0x2b5   : > { %5441 = vmatmul.mubr.msk.bf16.vlgmr.msra.gmra.mrb[4].mxu0 %vm1306_vm5, %v4520_v61 }
 0x2b6   : > { %5463 = vmatpush3.bf16.msra.mxu0 %v6039_v62  ;;  %5459 = vmatmul.mubr.msk.bf16.vlgmr.msra.gmra.mrb[4].mxu1 %vm1306_vm5, %v4543_v63 }
 0x2b7   : > { %5464 = vmatprep.subr.bf16.mxu0 %v6290_v17  ;;  %5476 = vmatprep.mubr.msk.bf16.mxu0 %vm6291_vm3, %v6290_v17 }
 0x2ba   : > { %5465 = vmatpush3.bf16.msra.mxu0 %v6040_v0 }
 0x2bb   : > { %5466 = vmatprep.subr.bf16.mxu0 %v6290_v17 }
 0x2be   : > { %5467 = vmatpush3.bf16.msra.mxu0 %v6041_v1 }
 0x2bf   : > { %5468 = vmatprep.subr.bf16.mxu0 %v6290_v17 }
 0x2c2   : > { %5469 = vmatpush3.bf16.msra.mxu0 %v6042_v2 }
 0x2c3   : > { %5470 = vmatprep.subr.bf16.mxu0 %v6290_v17 }
 0x2c6   : > { %5471 = vmatpush3.bf16.msra.mxu0 %v6043_v3 }
 0x2c7   : > { %5472 = vmatprep.subr.bf16.mxu0 %v6290_v17 }
 0x2ca   : > { %5473 = vmatpush3.bf16.msra.mxu0 %v6044_v4 }
 0x2cb   : > { %5474 = vmatprep.subr.bf16.mxu0 %v6290_v17 }
 0x2ce   : > { %5475 = vmatpush3.bf16.msra.mxu0 %v1710_v6 }
 0x2d1   : > { %5477 = vmatmul.mubr.msk.bf16.vlgmr.msra.gmra.mrb[8].mxu0 %vm1306_vm5, %v4566_v7 }
 0x2fd   : > { %v1756_v28 = vpop.permute.xlu0 %1755 }
 0x301   : > { %v6008_v30 = vpop.permute.xlu0 %6007 }
 0x302   : > { %v6010_v36 = vunpack.i.h.bf16 %v6008_v30  ;;  %v6009_v37 = vunpack.i.l.bf16 %v6008_v30 }
 0x304   : > { %v1774_v49 = vsel %vm1773_vm6, %v6009_v37, %v6010_v36 }
 0x36c   : > { %v1348_v8 = vpop.f32.mrb[0].mxu0 }
 0x36d   : > { %v5406_v9 = vpop.f32.mrb[1].mxu0  ;;  %v1433_v45 = vpop.f32.mrb[0].mxu1 }
 0x36e   : > { %v1434_v10 = vadd.f32 %v1433_v45, %v1348_v8  ;;  %v1351_v11 = vpop.f32.mrb[2].mxu0  ;;  %v5424_v12 = vpop.f32.mrb[1].mxu1 }
 0x36f   : > { %v5407_v13 = vpop.f32.mrb[3].mxu0  ;;  %v1436_v14 = vpop.f32.mrb[2].mxu1 }
 0x370   : > { %v5425_v15 = vpop.f32.mrb[3].mxu1 }
 0x388   : > { %v1536_v16 = vpop.f32.mrb[4].mxu0 }
 0x389   : > { %v1542_v17 = vadd.f32 %v1536_v16, %v1434_v10  ;;  %v5442_v18 = vpop.f32.mrb[5].mxu0  ;;  %v1641_v20 = vpop.f32.mrb[4].mxu1 }
 0x38a   : > { %v1539_v21 = vpop.f32.mrb[6].mxu0  ;;  %v5460_v22 = vpop.f32.mrb[5].mxu1 }
 0x38b   : > { %v1647_v23 = vadd.f32 %v1641_v20, %v1542_v17  ;;  %v5443_v24 = vpop.f32.mrb[7].mxu0  ;;  %v1644_v25 = vpop.f32.mrb[6].mxu1 }
 0x38c   : > { %v5461_v26 = vpop.f32.mrb[7].mxu1 }
 0x3a4   : > { %v1746_v33 = vpop.f32.mrb[8].mxu0 }
 0x3a5   : > { %v1752_v34 = vadd.f32 %v1746_v33, %v1647_v23  ;;  %v5478_v35 = vpop.f32.mrb[9].mxu0 }
 0x3a6   : > { %v1749_v43 = vpop.f32.mrb[10].mxu0 }
 0x3a7   : > { %v1758_v46 = vadd.f32 %v1756_v28, %v1752_v34  ;;  %v5479_v47 = vpop.f32.mrb[11].mxu0 }
 0x3a9   : > { %vm1759_vm7 = vcmp.ge.f32.partialorder %v1758_v46, 0.0  ;;  %v1760_v48 = vmul.f32 0.1, %v1758_v46 }
 0x3ab   : > { %v1761_v51 = vsel %vm1759_vm7, %v1758_v46, %v1760_v48 }
 0x3ac   : > { %v1776_v19 = vadd.f32 %v1774_v49, %v1761_v51 }
 0x3ae   : > { %v1783_v53 = vsel %vm1782_vm9, %v1776_v19, 0.0 }
 0x3af   : > { %v1784_v54 = vpack.c.bf16 %v1783_v53, %v1783_v53 }
 0x3b1   : > { %v1792_v55 = vrot.slane %v1784_v54, %v1791_v52 }
 0x3b3   : > { %1793 = vrot.lane.b32.xlu1 %v1792_v55, %s6295_s7 }
 0x425   : > { %v1794_v56 = vpop.permute.xlu1 %1793 }
 0x426   : > { %v1795_v57 = vrot.slane %v1794_v56, 6 }
 0x428   : > { %v1797_v58 = vsel %vm1796_vm12, %v1795_v57, %v1794_v56 }
 0x429   : > { %4591 = vst.msk [vmem:[%s6390_s8 + $0x4] sm:$0xf] %vm1801_vm13, %v1797_v58 }
 0x42a PF: > { %s1803_s10 = sadd.s32 2, %s6378_s22  ;;  %4592 = vst [vmem:[%s6390_s8 + $0x8] sm:$0xf] %v6283_v42 }
 0x42b   : > { %p1804_p1 = scmp.ge.s32.totalorder %s1803_s10, 2  ;;  %p1805_p2 = scmp.lt.s32.totalorder %s1803_s10, 10 }
 0x42d   : > { %p1806_p3 = pnand %p1805_p2, %p1804_p1 }
 0x42e   : > { %s5059_s9 = smul.u32 (!%p1806_p3), 312, %s6236_s15  ;;  %v6296_v59 = vmov (!%p1806_p3), 0.0   ;;  %vm6297_vm14 = vmmov (!%p1806_p3), 0   ;;  %v6298_v61 = vmov (!%p1806_p3), 0   ;;  %vm1890_vm15 = vcmask (!%p1806_p3), 1041408   ;;  %s6299_s25 = smov (!%p1806_p3), 102  }
 0x42f   : > { %1811 = sbr.rel (%p1806_p3) target bundleno = 1502 (0x5de), region = 59  ;;  %5480 = vmatprep.subr.bf16.mxu0 (!%p1806_p3), %v6296_v59  ;;  %5498 = vmatprep.subr.bf16.mxu1 (!%p1806_p3), %v6296_v59  ;;  %v4595_v12 = vld [vmem:[%s7217_s1 + $0x2] sm:$0x3] (!%p1806_p3)  ;;  %vm1886_vm0 = vcmask (!%p1806_p3), 818176   ;;  %v1812_v13 = vld [vmem:[%s7217_s1] sm:$0x3] (!%p1806_p3) }
 0x430   : > { %5494 = vmatprep.mubr.msk.bf16.mxu0 (!%p1806_p3), %vm6297_vm14, %v6296_v59  ;;  %5512 = vmatprep.mubr.msk.bf16.mxu1 (!%p1806_p3), %vm6297_vm14, %v6296_v59  ;;  %s6735_s29 = scalar_lea.vmem (!%p1806_p3), [#allocation2], %s5059_s9  ;;  %s4695_s23 = smul.u32 (!%p1806_p3), 24, %s6236_s15  ;;  %v4626_v35 = vld [vmem:[%s7217_s1 + $0x4] sm:$0x3] (!%p1806_p3)  ;;  %v4649_v37 = vld [vmem:[%s7217_s1 + $0x6] sm:$0x3] (!%p1806_p3) }
 0x431   : > { %v6052_v60 = vld [vmem:[%s6735_s29 + $0x34] sm:$0xff] (!%p1806_p3)   ;;  %6046 = vset.pattern.permute.xlu0 (!%p1806_p3), %v6298_v61  ;;  %v6053_v62 = vld [vmem:[%s6735_s29] sm:$0xff] (!%p1806_p3)   ;;  %v6055_v0 = vld [vmem:[%s6735_s29 + $0x8] sm:$0xff] (!%p1806_p3)   ;;  %vm2353_vm1 = vcmask (!%p1806_p3), 834560   ;;  %s6301_s7 = smov (!%p1806_p3), 26   ;;  %vm2379_vm4 = vcmask (!%p1806_p3), 1041616  }
 0x432   : > { %2335 = vperm.xlu0 (!%p1806_p3), %6046, %v6483_v41   ;;  %5481 = vmatpush3.bf16.msra.mxu0 (!%p1806_p3), %v6052_v60  ;;  %v6054_v63 = vld [vmem:[%s6735_s29 + $0x3c] sm:$0xff] (!%p1806_p3)   ;;  %v6056_v1 = vld [vmem:[%s6735_s29 + $0x44] sm:$0xff] (!%p1806_p3)   ;;  %v6057_v2 = vld [vmem:[%s6735_s29 + $0x10] sm:$0xff] (!%p1806_p3)   ;;  %s4237_s24 = scalar_lea.vmem (!%p1806_p3), %s6385_s27, %s4695_s23  ;;  %vm2380_vm5 = vcmask (!%p1806_p3), 207874   ;;  %vm2376_vm6 = vcmask (!%p1806_p3), 211968  }
 0x433   : > { %5499 = vmatpush3.bf16.msra.mxu1 (!%p1806_p3), %v6053_v62  ;;  %5482 = vmatprep.subr.bf16.mxu0 (!%p1806_p3), %v6296_v59  ;;  %v6058_v3 = vld [vmem:[%s6735_s29 + $0x4c] sm:$0xff] (!%p1806_p3)   ;;  %v6059_v4 = vld [vmem:[%s6735_s29 + $0x18] sm:$0xff] (!%p1806_p3)   ;;  %v6061_v6 = vld [vmem:[%s6735_s29 + $0x20] sm:$0xff] (!%p1806_p3)  }
 0x434   : > { %5500 = vmatprep.subr.bf16.mxu1 (!%p1806_p3), %v6296_v59  ;;  %v6060_v5 = vld [vmem:[%s6735_s29 + $0x54] sm:$0xff] (!%p1806_p3)   ;;  %v6064_v7 = vld [vmem:[%s6735_s29 + $0x64] ss:$0 sps:$4 sm:$0x33] (!%p1806_p3)   ;;  %v6062_v8 = vld [vmem:[%s6735_s29 + $0x5c] sm:$0xff] (!%p1806_p3)  }
 0x435   : > { %v6065_v9 = vld [vmem:[%s6735_s29 + $0x30] ss:$0 sps:$4 sm:$0x33] (!%p1806_p3)   ;;  %v6063_v45 = vld [vmem:[%s6735_s29 + $0x28] sm:$0xff] (!%p1806_p3)   ;;  %v1892_v10 = vsel (!%p1806_p3), %vm1890_vm15, %v6064_v7, 0  ;;  %v6067_v15 = vld [vmem:[%s6735_s29 + $0x9c] sm:$0xff] (!%p1806_p3)  }
 0x436   : > { %5483 = vmatpush3.bf16.msra.mxu0 %v6054_v63  ;;  %v1977_v11 = vsel %vm1890_vm15, %v6065_v9, 0  ;;  %v6066_v14 = vld [vmem:[%s6735_s29 + $0x68] sm:$0xff]   ;;  %v6068_v16 = vld [vmem:[%s6735_s29 + $0x70] sm:$0xff]   ;;  %v6070_v20 = vld [vmem:[%s6735_s29 + $0x78] sm:$0xff]  }
 0x437   : > { %5501 = vmatpush3.bf16.msra.mxu1 %v6055_v0  ;;  %5484 = vmatprep.subr.bf16.mxu0 %v6296_v59  ;;  %v6069_v17 = vld [vmem:[%s6735_s29 + $0xa4] sm:$0xff]   ;;  %v6071_v22 = vld [vmem:[%s6735_s29 + $0xac] sm:$0xff]   ;;  %v6073_v26 = vld [vmem:[%s6735_s29 + $0xb4] sm:$0xff]  }
 0x438   : > { %5502 = vmatprep.subr.bf16.mxu1 %v6296_v59  ;;  %v4696_v18 = vld [vmem:[%s4237_s24 + $0x8] sm:$0xf]  ;;  %v6072_v24 = vld [vmem:[%s6735_s29 + $0x80] sm:$0xff]   ;;  %v6076_v29 = vld [vmem:[%s6735_s29 + $0x90] sm:$0xff]  }
 0x439   : > { %v2346_v21 = vunpack.c.l.bf16 %v4696_v18  ;;  %v6074_v27 = vld [vmem:[%s6735_s29 + $0x88] sm:$0xff]   ;;  %v6075_v28 = vld [vmem:[%s6735_s29 + $0xbc] sm:$0xff]   ;;  %v6078_v31 = vld [vmem:[%s6735_s29 + $0x98] ss:$0 sps:$4 sm:$0x33]  }
 0x43a   : > { %5485 = vmatpush3.bf16.msra.mxu0 %v6056_v1  ;;  %v6077_v30 = vld [vmem:[%s6735_s29 + $0xc4] sm:$0xff]   ;;  %v6079_v32 = vld [vmem:[%s6735_s29 + $0xcc] ss:$0 sps:$4 sm:$0x33]   ;;  %v2080_v33 = vsel %vm1890_vm15, %v6078_v31, 0  ;;  %v6080_v36 = vld [vmem:[%s6735_s29 + $0xd0] sm:$0xff]  }
 0x43b   : > { %5503 = vmatpush3.bf16.msra.mxu1 %v6057_v2  ;;  %5486 = vmatprep.subr.bf16.mxu0 %v6296_v59  ;;  %v2348_v23 = vcombine.high %v2346_v21, %v2346_v21  ;;  %v2185_v34 = vsel %vm1890_vm15, %v6079_v32, 0  ;;  %v6081_v38 = vld [vmem:[%s6735_s29 + $0xd8] sm:$0xff]   ;;  %v6082_v39 = vld [vmem:[%s6735_s29 + $0xe0] sm:$0xff]   ;;  %v6083_v43 = vld [vmem:[%s6735_s29 + $0xe8] sm:$0xff]  }
 0x43c   : > { %5504 = vmatprep.subr.bf16.mxu1 %v6296_v59  ;;  %v6084_v44 = vld [vmem:[%s6735_s29 + $0xf0] sm:$0xff]   ;;  %v6085_v46 = vld [vmem:[%s6735_s29 + $0xf8] sm:$0xff]   ;;  %v6086_v47 = vld [vmem:[%s6735_s29 + $0x100] ss:$0 sps:$4 sm:$0x33]  }
 0x43d   : > { %v6047_v25 = vpack.i.bf16 %v2348_v23, %v2346_v21  ;;  %v2290_v48 = vsel %vm1890_vm15, %v6086_v47, 0  ;;  %v4672_v49 = vld [vmem:[%s7217_s1 + $0x8] sm:$0x3]  ;;  %vm2381_vm7 = vmor %vm2380_vm5, %vm2379_vm4 }
 0x43e   : > { %5487 = vmatpush3.bf16.msra.mxu0 %v6058_v3 }
 0x43f   : > { %5505 = vmatpush3.bf16.msra.mxu1 %v6059_v4  ;;  %5488 = vmatprep.subr.bf16.mxu0 %v6296_v59 }
 0x440   : > { %5506 = vmatprep.subr.bf16.mxu1 %v6296_v59  ;;  %6048 = vrot.lane.b32.xlu0 %v6047_v25, %s6299_s25 }
 0x442   : > { %5489 = vmatpush3.bf16.msra.mxu0 %v6060_v5  ;;  %v2358_v5 = vlaneseq }
 0x443   : > { %5507 = vmatpush3.bf16.msra.mxu1 %v6061_v6  ;;  %5490 = vmatprep.subr.bf16.mxu0 %v6296_v59 }
 0x444   : > { %5508 = vmatprep.subr.bf16.mxu1 %v6296_v59  ;;  %v2359_v7 = vshrl.u32 %v2358_v5, 7 }
 0x446   : > { %5491 = vmatpush3.bf16.msra.mxu0 %v6062_v8  ;;  %v2360_v9 = vsub.s32 0, %v2359_v7 }
 0x447   : > { %5509 = vmatpush3.bf16.msra.mxu1 %v6063_v45  ;;  %5492 = vmatprep.subr.bf16.mxu0 %v6296_v59  ;;  %v2357_v45 = vsel %vm639_vm8, 1, %v6298_v61 }
 0x448   : > { %5510 = vmatprep.subr.bf16.mxu1 %v6296_v59  ;;  %v2361_v18 = vrot.slane %v2357_v45, %v2360_v9 }
 0x44a   : > { %5493 = vmatpush3.bf16.msra.mxu0 %v1892_v10  ;;  %vm2362_vm3 = vcmp.eq.s32.totalorder %v2361_v18, 1 }
 0x44b   : > { %5511 = vmatpush3.bf16.msra.mxu1 %v1977_v11  ;;  %5516 = vmatprep.subr.bf16.mxu0 %v6296_v59 }
 0x44c   : > { %5534 = vmatprep.subr.bf16.mxu1 %v6296_v59 }
 0x44d   : > { %5495 = vmatmul.mubr.msk.bf16.vlgmr.msra.gmra.mrb[0].mxu0 %vm1886_vm0, %v4595_v12 }
 0x44e   : > { %5513 = vmatmul.mubr.msk.bf16.vlgmr.msra.gmra.mrb[0].mxu1 %vm1886_vm0, %v1812_v13  ;;  %5517 = vmatpush3.bf16.msra.mxu0 %v6066_v14 }
 0x44f   : > { %5535 = vmatpush3.bf16.msra.mxu1 %v6067_v15  ;;  %5518 = vmatprep.subr.bf16.mxu0 %v6296_v59  ;;  %v6300_v15 = vmov 1983009808  }
 0x450   : > { %5536 = vmatprep.subr.bf16.mxu1 %v6296_v59  ;;  %5530 = vmatprep.mubr.msk.bf16.mxu0 %vm6297_vm14, %v6296_v59 }
 0x451   : > { %5548 = vmatprep.mubr.msk.bf16.mxu1 %vm6297_vm14, %v6296_v59 }
 0x452   : > { %5519 = vmatpush3.bf16.msra.mxu0 %v6068_v16  ;;  %v2367_v16 = vunpack.c.l.s4 %v6300_v15 }
 0x453   : > { %5537 = vmatpush3.bf16.msra.mxu1 %v6069_v17  ;;  %5520 = vmatprep.subr.bf16.mxu0 %v6296_v59 }
 0x454   : > { %5538 = vmatprep.subr.bf16.mxu1 %v6296_v59 }
 0x456   : > { %5521 = vmatpush3.bf16.msra.mxu0 %v6070_v20 }
 0x457   : > { %5539 = vmatpush3.bf16.msra.mxu1 %v6071_v22  ;;  %5522 = vmatprep.subr.bf16.mxu0 %v6296_v59 }
 0x458   : > { %5540 = vmatprep.subr.bf16.mxu1 %v6296_v59 }
 0x45a   : > { %5523 = vmatpush3.bf16.msra.mxu0 %v6072_v24  ;;  %v2368_v24 = vunpack.c.0.s8 %v2367_v16 }
 0x45b   : > { %5541 = vmatpush3.bf16.msra.mxu1 %v6073_v26  ;;  %5524 = vmatprep.subr.bf16.mxu0 %v6296_v59 }
 0x45c   : > { %5542 = vmatprep.subr.bf16.mxu1 %v6296_v59  ;;  %v2371_v26 = vsub.s32 %v2368_v24, %v2359_v7 }
 0x45e   : > { %5525 = vmatpush3.bf16.msra.mxu0 %v6074_v27 }
 0x45f   : > { %5543 = vmatpush3.bf16.msra.mxu1 %v6075_v28  ;;  %5526 = vmatprep.subr.bf16.mxu0 %v6296_v59 }
 0x460   : > { %5544 = vmatprep.subr.bf16.mxu1 %v6296_v59 }
 0x462   : > { %5527 = vmatpush3.bf16.msra.mxu0 %v6076_v29 }
 0x463   : > { %5545 = vmatpush3.bf16.msra.mxu1 %v6077_v30  ;;  %5528 = vmatprep.subr.bf16.mxu0 %v6296_v59 }
 0x464   : > { %5546 = vmatprep.subr.bf16.mxu1 %v6296_v59 }
 0x466   : > { %5529 = vmatpush3.bf16.msra.mxu0 %v2080_v33 }
 0x467   : > { %5547 = vmatpush3.bf16.msra.mxu1 %v2185_v34  ;;  %5552 = vmatprep.subr.bf16.mxu0 %v6296_v59 }
 0x469   : > { %5531 = vmatmul.mubr.msk.bf16.vlgmr.msra.gmra.mrb[4].mxu0 %vm1886_vm0, %v4626_v35 }
 0x46a   : > { %5553 = vmatpush3.bf16.msra.mxu0 %v6080_v36  ;;  %5549 = vmatmul.mubr.msk.bf16.vlgmr.msra.gmra.mrb[4].mxu1 %vm1886_vm0, %v4649_v37 }
 0x46b   : > { %5554 = vmatprep.subr.bf16.mxu0 %v6296_v59  ;;  %5566 = vmatprep.mubr.msk.bf16.mxu0 %vm6297_vm14, %v6296_v59 }
 0x46e   : > { %5555 = vmatpush3.bf16.msra.mxu0 %v6081_v38 }
 0x46f   : > { %5556 = vmatprep.subr.bf16.mxu0 %v6296_v59 }
 0x472   : > { %5557 = vmatpush3.bf16.msra.mxu0 %v6082_v39 }
 0x473   : > { %5558 = vmatprep.subr.bf16.mxu0 %v6296_v59 }
 0x476   : > { %5559 = vmatpush3.bf16.msra.mxu0 %v6083_v43 }
 0x477   : > { %5560 = vmatprep.subr.bf16.mxu0 %v6296_v59 }
 0x47a   : > { %5561 = vmatpush3.bf16.msra.mxu0 %v6084_v44 }
 0x47b   : > { %5562 = vmatprep.subr.bf16.mxu0 %v6296_v59 }
 0x47e   : > { %5563 = vmatpush3.bf16.msra.mxu0 %v6085_v46 }
 0x47f   : > { %5564 = vmatprep.subr.bf16.mxu0 %v6296_v59 }
 0x482   : > { %5565 = vmatpush3.bf16.msra.mxu0 %v2290_v48 }
 0x485   : > { %5567 = vmatmul.mubr.msk.bf16.vlgmr.msra.gmra.mrb[8].mxu0 %vm1886_vm0, %v4672_v49 }
 0x4b1   : > { %v2336_v6 = vpop.permute.xlu0 %2335 }
 0x4b5   : > { %v6049_v8 = vpop.permute.xlu0 %6048 }
 0x4b6   : > { %v6051_v13 = vunpack.i.h.bf16 %v6049_v8  ;;  %v6050_v14 = vunpack.i.l.bf16 %v6049_v8 }
 0x4b8   : > { %v2354_v23 = vsel %vm2353_vm1, %v6050_v14, %v6051_v13 }
 0x520   : > { %v1928_v50 = vpop.f32.mrb[0].mxu0 }
 0x521   : > { %v5496_v51 = vpop.f32.mrb[1].mxu0  ;;  %v2013_v19 = vpop.f32.mrb[0].mxu1 }
 0x522   : > { %v2014_v52 = vadd.f32 %v2013_v19, %v1928_v50  ;;  %v1931_v53 = vpop.f32.mrb[2].mxu0  ;;  %v5514_v54 = vpop.f32.mrb[1].mxu1 }
 0x523   : > { %v5497_v55 = vpop.f32.mrb[3].mxu0  ;;  %v2016_v56 = vpop.f32.mrb[2].mxu1 }
 0x524   : > { %v5515_v57 = vpop.f32.mrb[3].mxu1 }
 0x53c   : > { %v2116_v58 = vpop.f32.mrb[4].mxu0 }
 0x53d   : > { %v2122_v59 = vadd.f32 %v2116_v58, %v2014_v52  ;;  %v5532_v60 = vpop.f32.mrb[5].mxu0  ;;  %v2221_v62 = vpop.f32.mrb[4].mxu1 }
 0x53e   : > { %v2119_v63 = vpop.f32.mrb[6].mxu0  ;;  %v5550_v0 = vpop.f32.mrb[5].mxu1 }
 0x53f   : > { %v2227_v1 = vadd.f32 %v2221_v62, %v2122_v59  ;;  %v5533_v2 = vpop.f32.mrb[7].mxu0  ;;  %v2224_v3 = vpop.f32.mrb[6].mxu1 }
 0x540   : > { %v5551_v4 = vpop.f32.mrb[7].mxu1 }
 0x558   : > { %v2326_v10 = vpop.f32.mrb[8].mxu0 }
 0x559   : > { %v2332_v11 = vadd.f32 %v2326_v10, %v2227_v1  ;;  %v5568_v12 = vpop.f32.mrb[9].mxu0 }
 0x55a   : > { %v2329_v17 = vpop.f32.mrb[10].mxu0 }
 0x55b   : > { %v2338_v20 = vadd.f32 %v2336_v6, %v2332_v11  ;;  %v5569_v21 = vpop.f32.mrb[11].mxu0 }
 0x55d   : > { %vm2339_vm2 = vcmp.ge.f32.partialorder %v2338_v20, 0.0  ;;  %v2340_v22 = vmul.f32 0.1, %v2338_v20 }
 0x55f   : > { %v2341_v25 = vsel %vm2339_vm2, %v2338_v20, %v2340_v22 }
 0x560   : > { %v2356_v61 = vadd.f32 %v2354_v23, %v2341_v25 }
 0x562   : > { %v2363_v27 = vsel %vm2362_vm3, %v2356_v61, 0.0 }
 0x563   : > { %v2364_v28 = vpack.c.bf16 %v2363_v27, %v2363_v27 }
 0x565   : > { %v2372_v29 = vrot.slane %v2364_v28, %v2371_v26 }
 0x567   : > { %2373 = vrot.lane.b32.xlu1 %v2372_v29, %s6301_s7 }
 0x5d9   : > { %v2374_v30 = vpop.permute.xlu1 %2373 }
 0x5da   : > { %v2375_v31 = vrot.slane %v2374_v30, 6 }
 0x5dc   : > { %v2377_v32 = vsel %vm2376_vm6, %v2375_v31, %v2374_v30 }
 0x5dd   : > { %4697 = vst.msk [vmem:[%s6390_s8 + $0x8] sm:$0xf] %vm2381_vm7, %v2377_v32 }
 0x5de PF: > { %s2383_s10 = sadd.s32 3, %s6378_s22  ;;  %4698 = vst [vmem:[%s6390_s8 + $0xc] sm:$0xf] %v6283_v42 }
 0x5df   : > { %p2384_p4 = scmp.ge.s32.totalorder %s2383_s10, 2  ;;  %p2385_p5 = scmp.lt.s32.totalorder %s2383_s10, 10 }
 0x5e1   : > { %p2386_p6 = pnand %p2385_p5, %p2384_p4 }
 0x5e2   : > { %s4699_s9 = smul.u32 (!%p2386_p6), 312, %s6236_s15  ;;  %v6302_v33 = vmov (!%p2386_p6), 0.0   ;;  %vm6303_vm9 = vmmov (!%p2386_p6), 0   ;;  %v6304_v35 = vmov (!%p2386_p6), 0   ;;  %vm2470_vm10 = vcmask (!%p2386_p6), 1041408   ;;  %s6305_s25 = smov (!%p2386_p6), 102  }
 0x5e3   : > { %2391 = sbr.rel (%p2386_p6) target bundleno = 1938 (0x792), region = 63  ;;  %5570 = vmatprep.subr.bf16.mxu0 (!%p2386_p6), %v6302_v33  ;;  %5588 = vmatprep.subr.bf16.mxu1 (!%p2386_p6), %v6302_v33  ;;  %v4713_v54 = vld [vmem:[%s7217_s1 + $0x2] sm:$0x3] (!%p2386_p6)  ;;  %vm2466_vm11 = vcmask (!%p2386_p6), 818176   ;;  %v2392_v55 = vld [vmem:[%s7217_s1] sm:$0x3] (!%p2386_p6) }
 0x5e4   : > { %5584 = vmatprep.mubr.msk.bf16.mxu0 (!%p2386_p6), %vm6303_vm9, %v6302_v33  ;;  %5602 = vmatprep.mubr.msk.bf16.mxu1 (!%p2386_p6), %vm6303_vm9, %v6302_v33  ;;  %s6854_s29 = scalar_lea.vmem (!%p2386_p6), [#allocation2], %s4699_s9  ;;  %s4813_s23 = smul.u32 (!%p2386_p6), 24, %s6236_s15  ;;  %v4744_v12 = vld [vmem:[%s7217_s1 + $0x4] sm:$0x3] (!%p2386_p6)  ;;  %v4767_v14 = vld [vmem:[%s7217_s1 + $0x6] sm:$0x3] (!%p2386_p6) }
 0x5e5   : > { %v6093_v34 = vld [vmem:[%s6854_s29 + $0x68] sm:$0xff] (!%p2386_p6)   ;;  %6087 = vset.pattern.permute.xlu0 (!%p2386_p6), %v6304_v35  ;;  %v6094_v36 = vld [vmem:[%s6854_s29 + $0x34] sm:$0xff] (!%p2386_p6)   ;;  %v6096_v38 = vld [vmem:[%s6854_s29 + $0x3c] sm:$0xff] (!%p2386_p6)   ;;  %vm2933_vm12 = vcmask (!%p2386_p6), 834560   ;;  %s6307_s7 = smov (!%p2386_p6), 26   ;;  %vm2959_vm15 = vcmask (!%p2386_p6), 1041616  }
 0x5e6   : > { %2915 = vperm.xlu0 (!%p2386_p6), %6087, %v6483_v41   ;;  %5571 = vmatpush3.bf16.msra.mxu0 (!%p2386_p6), %v6093_v34  ;;  %v6095_v37 = vld [vmem:[%s6854_s29 + $0x70] sm:$0xff] (!%p2386_p6)   ;;  %v6097_v39 = vld [vmem:[%s6854_s29 + $0x78] sm:$0xff] (!%p2386_p6)   ;;  %v6098_v43 = vld [vmem:[%s6854_s29 + $0x44] sm:$0xff] (!%p2386_p6)   ;;  %s4261_s24 = scalar_lea.vmem (!%p2386_p6), %s6385_s27, %s4813_s23  ;;  %vm2960_vm0 = vcmask (!%p2386_p6), 207874   ;;  %vm2956_vm1 = vcmask (!%p2386_p6), 211968  }
 0x5e7   : > { %5589 = vmatpush3.bf16.msra.mxu1 (!%p2386_p6), %v6094_v36  ;;  %5572 = vmatprep.subr.bf16.mxu0 (!%p2386_p6), %v6302_v33  ;;  %v6099_v44 = vld [vmem:[%s6854_s29 + $0x80] sm:$0xff] (!%p2386_p6)   ;;  %v6100_v46 = vld [vmem:[%s6854_s29 + $0x4c] sm:$0xff] (!%p2386_p6)   ;;  %v6102_v48 = vld [vmem:[%s6854_s29 + $0x54] sm:$0xff] (!%p2386_p6)  }
 0x5e8   : > { %5590 = vmatprep.subr.bf16.mxu1 (!%p2386_p6), %v6302_v33  ;;  %v6101_v47 = vld [vmem:[%s6854_s29 + $0x88] sm:$0xff] (!%p2386_p6)   ;;  %v6105_v49 = vld [vmem:[%s6854_s29 + $0x98] ss:$0 sps:$4 sm:$0x33] (!%p2386_p6)   ;;  %v6103_v50 = vld [vmem:[%s6854_s29 + $0x90] sm:$0xff] (!%p2386_p6)  }
 0x5e9   : > { %v6106_v51 = vld [vmem:[%s6854_s29 + $0x64] ss:$0 sps:$4 sm:$0x33] (!%p2386_p6)   ;;  %v6104_v19 = vld [vmem:[%s6854_s29 + $0x5c] sm:$0xff] (!%p2386_p6)   ;;  %v2472_v52 = vsel (!%p2386_p6), %vm2470_vm10, %v6105_v49, 0  ;;  %v6108_v57 = vld [vmem:[%s6854_s29 + $0xd0] sm:$0xff] (!%p2386_p6)  }
 0x5ea   : > { %5573 = vmatpush3.bf16.msra.mxu0 %v6095_v37  ;;  %v2557_v53 = vsel %vm2470_vm10, %v6106_v51, 0  ;;  %v6107_v56 = vld [vmem:[%s6854_s29 + $0x9c] sm:$0xff]   ;;  %v6109_v58 = vld [vmem:[%s6854_s29 + $0xa4] sm:$0xff]   ;;  %v4814_v60 = vld [vmem:[%s4261_s24 + $0xc] sm:$0xf] }
 0x5eb   : > { %5591 = vmatpush3.bf16.msra.mxu1 %v6096_v38  ;;  %5574 = vmatprep.subr.bf16.mxu0 %v6302_v33  ;;  %v6110_v59 = vld [vmem:[%s6854_s29 + $0xd8] sm:$0xff]   ;;  %v6111_v62 = vld [vmem:[%s6854_s29 + $0xac] sm:$0xff]   ;;  %v2926_v63 = vunpack.c.l.bf16 %v4814_v60  ;;  %v6112_v0 = vld [vmem:[%s6854_s29 + $0xe0] sm:$0xff]  }
 0x5ec   : > { %5592 = vmatprep.subr.bf16.mxu1 %v6302_v33  ;;  %v6113_v2 = vld [vmem:[%s6854_s29 + $0xb4] sm:$0xff]   ;;  %v6114_v4 = vld [vmem:[%s6854_s29 + $0xe8] sm:$0xff]   ;;  %v6115_v5 = vld [vmem:[%s6854_s29 + $0xbc] sm:$0xff]  }
 0x5ed   : > { %v2928_v1 = vcombine.high %v2926_v63, %v2926_v63  ;;  %v6116_v6 = vld [vmem:[%s6854_s29 + $0xf0] sm:$0xff]   ;;  %v6117_v7 = vld [vmem:[%s6854_s29 + $0xc4] sm:$0xff]   ;;  %v6118_v8 = vld [vmem:[%s6854_s29 + $0xf8] sm:$0xff]  }
 0x5ee   : > { %5575 = vmatpush3.bf16.msra.mxu0 %v6097_v39  ;;  %v6119_v9 = vld [vmem:[%s6854_s29 + $0xcc] ss:$0 sps:$4 sm:$0x33]   ;;  %v6120_v45 = vld [vmem:[%s6854_s29 + $0x100] ss:$0 sps:$4 sm:$0x33]   ;;  %vm2961_vm2 = vmor %vm2960_vm0, %vm2959_vm15 }
 0x5ef   : > { %5593 = vmatpush3.bf16.msra.mxu1 %v6098_v43  ;;  %5576 = vmatprep.subr.bf16.mxu0 %v6302_v33  ;;  %v6088_v3 = vpack.i.bf16 %v2928_v1, %v2926_v63  ;;  %v2660_v10 = vsel %vm2470_vm10, %v6119_v9, 0  ;;  %v2765_v11 = vsel %vm2470_vm10, %v6120_v45, 0  ;;  %v6121_v13 = vld [vmem:[%s6854_s29 + $0x104] sm:$0xff]   ;;  %v6122_v15 = vld [vmem:[%s6854_s29 + $0x10c] sm:$0xff]   ;;  %v6123_v16 = vld [vmem:[%s6854_s29 + $0x114] sm:$0xff]  }
 0x5f0   : > { %5594 = vmatprep.subr.bf16.mxu1 %v6302_v33  ;;  %v6124_v17 = vld [vmem:[%s6854_s29 + $0x11c] sm:$0xff]   ;;  %v6125_v18 = vld [vmem:[%s6854_s29 + $0x124] sm:$0xff]   ;;  %v6126_v20 = vld [vmem:[%s6854_s29 + $0x12c] sm:$0xff]  }
 0x5f1   : > { %6089 = vrot.lane.b32.xlu0 %v6088_v3, %s6305_s25  ;;  %v6127_v21 = vld [vmem:[%s6854_s29 + $0x134] ss:$0 sps:$4 sm:$0x33]   ;;  %v4790_v23 = vld [vmem:[%s7217_s1 + $0x8] sm:$0x3] }
 0x5f2   : > { %5577 = vmatpush3.bf16.msra.mxu0 %v6099_v44  ;;  %v2870_v22 = vsel %vm2470_vm10, %v6127_v21, 0 }
 0x5f3   : > { %5595 = vmatpush3.bf16.msra.mxu1 %v6100_v46  ;;  %5578 = vmatprep.subr.bf16.mxu0 %v6302_v33 }
 0x5f4   : > { %5596 = vmatprep.subr.bf16.mxu1 %v6302_v33 }
 0x5f6   : > { %5579 = vmatpush3.bf16.msra.mxu0 %v6101_v47  ;;  %v2938_v47 = vlaneseq }
 0x5f7   : > { %5597 = vmatpush3.bf16.msra.mxu1 %v6102_v48  ;;  %5580 = vmatprep.subr.bf16.mxu0 %v6302_v33 }
 0x5f8   : > { %5598 = vmatprep.subr.bf16.mxu1 %v6302_v33  ;;  %v2939_v49 = vshrl.u32 %v2938_v47, 7 }
 0x5fa   : > { %5581 = vmatpush3.bf16.msra.mxu0 %v6103_v50  ;;  %v2940_v51 = vsub.s32 0, %v2939_v49 }
 0x5fb   : > { %5599 = vmatpush3.bf16.msra.mxu1 %v6104_v19  ;;  %5582 = vmatprep.subr.bf16.mxu0 %v6302_v33  ;;  %v2937_v19 = vsel %vm639_vm8, 1, %v6304_v35 }
 0x5fc   : > { %5600 = vmatprep.subr.bf16.mxu1 %v6302_v33  ;;  %v2941_v60 = vrot.slane %v2937_v19, %v2940_v51 }
 0x5fe   : > { %5583 = vmatpush3.bf16.msra.mxu0 %v2472_v52  ;;  %vm2942_vm14 = vcmp.eq.s32.totalorder %v2941_v60, 1 }
 0x5ff   : > { %5601 = vmatpush3.bf16.msra.mxu1 %v2557_v53  ;;  %5606 = vmatprep.subr.bf16.mxu0 %v6302_v33 }
 0x600   : > { %5624 = vmatprep.subr.bf16.mxu1 %v6302_v33 }
 0x601   : > { %5585 = vmatmul.mubr.msk.bf16.vlgmr.msra.gmra.mrb[0].mxu0 %vm2466_vm11, %v4713_v54 }
 0x602   : > { %5603 = vmatmul.mubr.msk.bf16.vlgmr.msra.gmra.mrb[0].mxu1 %vm2466_vm11, %v2392_v55  ;;  %5607 = vmatpush3.bf16.msra.mxu0 %v6107_v56 }
 0x603   : > { %5625 = vmatpush3.bf16.msra.mxu1 %v6108_v57  ;;  %5608 = vmatprep.subr.bf16.mxu0 %v6302_v33  ;;  %v6306_v57 = vmov 1983009808  }
 0x604   : > { %5626 = vmatprep.subr.bf16.mxu1 %v6302_v33  ;;  %5620 = vmatprep.mubr.msk.bf16.mxu0 %vm6303_vm9, %v6302_v33 }
 0x605   : > { %5638 = vmatprep.mubr.msk.bf16.mxu1 %vm6303_vm9, %v6302_v33 }
 0x606   : > { %5609 = vmatpush3.bf16.msra.mxu0 %v6109_v58  ;;  %v2947_v58 = vunpack.c.l.s4 %v6306_v57 }
 0x607   : > { %5627 = vmatpush3.bf16.msra.mxu1 %v6110_v59  ;;  %5610 = vmatprep.subr.bf16.mxu0 %v6302_v33 }
 0x608   : > { %5628 = vmatprep.subr.bf16.mxu1 %v6302_v33 }
 0x60a   : > { %5611 = vmatpush3.bf16.msra.mxu0 %v6111_v62 }
 0x60b   : > { %5629 = vmatpush3.bf16.msra.mxu1 %v6112_v0  ;;  %5612 = vmatprep.subr.bf16.mxu0 %v6302_v33 }
 0x60c   : > { %5630 = vmatprep.subr.bf16.mxu1 %v6302_v33 }
 0x60e   : > { %5613 = vmatpush3.bf16.msra.mxu0 %v6113_v2  ;;  %v2948_v2 = vunpack.c.0.s8 %v2947_v58 }
 0x60f   : > { %5631 = vmatpush3.bf16.msra.mxu1 %v6114_v4  ;;  %5614 = vmatprep.subr.bf16.mxu0 %v6302_v33 }
 0x610   : > { %5632 = vmatprep.subr.bf16.mxu1 %v6302_v33  ;;  %v2951_v4 = vsub.s32 %v2948_v2, %v2939_v49 }
 0x612   : > { %5615 = vmatpush3.bf16.msra.mxu0 %v6115_v5 }
 0x613   : > { %5633 = vmatpush3.bf16.msra.mxu1 %v6116_v6  ;;  %5616 = vmatprep.subr.bf16.mxu0 %v6302_v33 }
 0x614   : > { %5634 = vmatprep.subr.bf16.mxu1 %v6302_v33 }
 0x616   : > { %5617 = vmatpush3.bf16.msra.mxu0 %v6117_v7 }
 0x617   : > { %5635 = vmatpush3.bf16.msra.mxu1 %v6118_v8  ;;  %5618 = vmatprep.subr.bf16.mxu0 %v6302_v33 }
 0x618   : > { %5636 = vmatprep.subr.bf16.mxu1 %v6302_v33 }
 0x61a   : > { %5619 = vmatpush3.bf16.msra.mxu0 %v2660_v10 }
 0x61b   : > { %5637 = vmatpush3.bf16.msra.mxu1 %v2765_v11  ;;  %5642 = vmatprep.subr.bf16.mxu0 %v6302_v33 }
 0x61d   : > { %5621 = vmatmul.mubr.msk.bf16.vlgmr.msra.gmra.mrb[4].mxu0 %vm2466_vm11, %v4744_v12 }
 0x61e   : > { %5643 = vmatpush3.bf16.msra.mxu0 %v6121_v13  ;;  %5639 = vmatmul.mubr.msk.bf16.vlgmr.msra.gmra.mrb[4].mxu1 %vm2466_vm11, %v4767_v14 }
 0x61f   : > { %5644 = vmatprep.subr.bf16.mxu0 %v6302_v33  ;;  %5656 = vmatprep.mubr.msk.bf16.mxu0 %vm6303_vm9, %v6302_v33 }
 0x622   : > { %5645 = vmatpush3.bf16.msra.mxu0 %v6122_v15 }
 0x623   : > { %5646 = vmatprep.subr.bf16.mxu0 %v6302_v33 }
 0x626   : > { %5647 = vmatpush3.bf16.msra.mxu0 %v6123_v16 }
 0x627   : > { %5648 = vmatprep.subr.bf16.mxu0 %v6302_v33 }
 0x62a   : > { %5649 = vmatpush3.bf16.msra.mxu0 %v6124_v17 }
 0x62b   : > { %5650 = vmatprep.subr.bf16.mxu0 %v6302_v33 }
 0x62e   : > { %5651 = vmatpush3.bf16.msra.mxu0 %v6125_v18 }
 0x62f   : > { %5652 = vmatprep.subr.bf16.mxu0 %v6302_v33 }
 0x632   : > { %5653 = vmatpush3.bf16.msra.mxu0 %v6126_v20 }
 0x633   : > { %5654 = vmatprep.subr.bf16.mxu0 %v6302_v33 }
 0x636   : > { %5655 = vmatpush3.bf16.msra.mxu0 %v2870_v22 }
 0x639   : > { %5657 = vmatmul.mubr.msk.bf16.vlgmr.msra.gmra.mrb[8].mxu0 %vm2466_vm11, %v4790_v23 }
 0x665   : > { %v2916_v48 = vpop.permute.xlu0 %2915 }
 0x669   : > { %v6090_v50 = vpop.permute.xlu0 %6089 }
 0x66a   : > { %v6092_v55 = vunpack.i.h.bf16 %v6090_v50  ;;  %v6091_v56 = vunpack.i.l.bf16 %v6090_v50 }
 0x66c   : > { %v2934_v1 = vsel %vm2933_vm12, %v6091_v56, %v6092_v55 }
 0x6d4   : > { %v2508_v24 = vpop.f32.mrb[0].mxu0 }
 0x6d5   : > { %v5586_v25 = vpop.f32.mrb[1].mxu0  ;;  %v2593_v61 = vpop.f32.mrb[0].mxu1 }
 0x6d6   : > { %v2594_v26 = vadd.f32 %v2593_v61, %v2508_v24  ;;  %v2511_v27 = vpop.f32.mrb[2].mxu0  ;;  %v5604_v28 = vpop.f32.mrb[1].mxu1 }
 0x6d7   : > { %v5587_v29 = vpop.f32.mrb[3].mxu0  ;;  %v2596_v30 = vpop.f32.mrb[2].mxu1 }
 0x6d8   : > { %v5605_v31 = vpop.f32.mrb[3].mxu1 }
 0x6f0   : > { %v2696_v32 = vpop.f32.mrb[4].mxu0 }
 0x6f1   : > { %v2702_v33 = vadd.f32 %v2696_v32, %v2594_v26  ;;  %v5622_v34 = vpop.f32.mrb[5].mxu0  ;;  %v2801_v36 = vpop.f32.mrb[4].mxu1 }
 0x6f2   : > { %v2699_v37 = vpop.f32.mrb[6].mxu0  ;;  %v5640_v38 = vpop.f32.mrb[5].mxu1 }
 0x6f3   : > { %v2807_v39 = vadd.f32 %v2801_v36, %v2702_v33  ;;  %v5623_v43 = vpop.f32.mrb[7].mxu0  ;;  %v2804_v44 = vpop.f32.mrb[6].mxu1 }
 0x6f4   : > { %v5641_v46 = vpop.f32.mrb[7].mxu1 }
 0x70c   : > { %v2906_v52 = vpop.f32.mrb[8].mxu0 }
 0x70d   : > { %v2912_v53 = vadd.f32 %v2906_v52, %v2807_v39  ;;  %v5658_v54 = vpop.f32.mrb[9].mxu0 }
 0x70e   : > { %v2909_v59 = vpop.f32.mrb[10].mxu0 }
 0x70f   : > { %v2918_v62 = vadd.f32 %v2916_v48, %v2912_v53  ;;  %v5659_v63 = vpop.f32.mrb[11].mxu0 }
 0x711   : > { %vm2919_vm13 = vcmp.ge.f32.partialorder %v2918_v62, 0.0  ;;  %v2920_v0 = vmul.f32 0.1, %v2918_v62 }
 0x713   : > { %v2921_v3 = vsel %vm2919_vm13, %v2918_v62, %v2920_v0 }
 0x714   : > { %v2936_v35 = vadd.f32 %v2934_v1, %v2921_v3 }
 0x716   : > { %v2943_v5 = vsel %vm2942_vm14, %v2936_v35, 0.0 }
 0x717   : > { %v2944_v6 = vpack.c.bf16 %v2943_v5, %v2943_v5 }
 0x719   : > { %v2952_v7 = vrot.slane %v2944_v6, %v2951_v4 }
 0x71b   : > { %2953 = vrot.lane.b32.xlu1 %v2952_v7, %s6307_s7 }
 0x78d   : > { %v2954_v8 = vpop.permute.xlu1 %2953 }
 0x78e   : > { %v2955_v9 = vrot.slane %v2954_v8, 6 }
 0x790   : > { %v2957_v45 = vsel %vm2956_vm1, %v2955_v9, %v2954_v8 }
 0x791   : > { %4815 = vst.msk [vmem:[%s6390_s8 + $0xc] sm:$0xf] %vm2961_vm2, %v2957_v45 }
 0x792 PF: > { %s2963_s10 = sadd.s32 4, %s6378_s22  ;;  %4816 = vst [vmem:[%s6390_s8 + $0x10] sm:$0xf] %v6283_v42 }
 0x793   : > { %p2964_p7 = scmp.ge.s32.totalorder %s2963_s10, 2  ;;  %p2965_p8 = scmp.lt.s32.totalorder %s2963_s10, 10 }
 0x795   : > { %p2966_p9 = pnand %p2965_p8, %p2964_p7 }
 0x796   : > { %s4817_s9 = smul.u32 (!%p2966_p9), 312, %s6236_s15  ;;  %v6308_v10 = vmov (!%p2966_p9), 0.0   ;;  %vm6309_vm3 = vmmov (!%p2966_p9), 0   ;;  %v6310_v12 = vmov (!%p2966_p9), 0   ;;  %vm3050_vm4 = vcmask (!%p2966_p9), 1041408   ;;  %s6311_s25 = smov (!%p2966_p9), 102  }
 0x797   : > { %2971 = sbr.rel (%p2966_p9) target bundleno = 2374 (0x946), region = 67  ;;  %5660 = vmatprep.subr.bf16.mxu0 (!%p2966_p9), %v6308_v10  ;;  %5678 = vmatprep.subr.bf16.mxu1 (!%p2966_p9), %v6308_v10  ;;  %v4831_v28 = vld [vmem:[%s7217_s1 + $0x2] sm:$0x3] (!%p2966_p9)  ;;  %vm3046_vm5 = vcmask (!%p2966_p9), 818176   ;;  %v2972_v29 = vld [vmem:[%s7217_s1] sm:$0x3] (!%p2966_p9) }
 0x798   : > { %5674 = vmatprep.mubr.msk.bf16.mxu0 (!%p2966_p9), %vm6309_vm3, %v6308_v10  ;;  %5692 = vmatprep.mubr.msk.bf16.mxu1 (!%p2966_p9), %vm6309_vm3, %v6308_v10  ;;  %s6973_s29 = scalar_lea.vmem (!%p2966_p9), [#allocation2], %s4817_s9  ;;  %s4931_s23 = smul.u32 (!%p2966_p9), 24, %s6236_s15  ;;  %v4862_v54 = vld [vmem:[%s7217_s1 + $0x4] sm:$0x3] (!%p2966_p9)  ;;  %v4885_v56 = vld [vmem:[%s7217_s1 + $0x6] sm:$0x3] (!%p2966_p9) }
 0x799   : > { %v6134_v11 = vld [vmem:[%s6973_s29 + $0x9c] sm:$0xff] (!%p2966_p9)   ;;  %6128 = vset.pattern.permute.xlu0 (!%p2966_p9), %v6310_v12  ;;  %v6135_v13 = vld [vmem:[%s6973_s29 + $0x68] sm:$0xff] (!%p2966_p9)   ;;  %v6137_v15 = vld [vmem:[%s6973_s29 + $0x70] sm:$0xff] (!%p2966_p9)   ;;  %vm3513_vm6 = vcmask (!%p2966_p9), 834560   ;;  %s6313_s7 = smov (!%p2966_p9), 26   ;;  %vm3539_vm10 = vcmask (!%p2966_p9), 1041616  }
 0x79a   : > { %3495 = vperm.xlu0 (!%p2966_p9), %6128, %v6483_v41   ;;  %5661 = vmatpush3.bf16.msra.mxu0 (!%p2966_p9), %v6134_v11  ;;  %v6136_v14 = vld [vmem:[%s6973_s29 + $0xa4] sm:$0xff] (!%p2966_p9)   ;;  %v6138_v16 = vld [vmem:[%s6973_s29 + $0xac] sm:$0xff] (!%p2966_p9)   ;;  %v6139_v17 = vld [vmem:[%s6973_s29 + $0x78] sm:$0xff] (!%p2966_p9)   ;;  %s4285_s24 = scalar_lea.vmem (!%p2966_p9), %s6385_s27, %s4931_s23  ;;  %vm3540_vm11 = vcmask (!%p2966_p9), 207874   ;;  %vm3536_vm12 = vcmask (!%p2966_p9), 211968  }
 0x79b   : > { %5679 = vmatpush3.bf16.msra.mxu1 (!%p2966_p9), %v6135_v13  ;;  %5662 = vmatprep.subr.bf16.mxu0 (!%p2966_p9), %v6308_v10  ;;  %v6140_v18 = vld [vmem:[%s6973_s29 + $0xb4] sm:$0xff] (!%p2966_p9)   ;;  %v6141_v20 = vld [vmem:[%s6973_s29 + $0x80] sm:$0xff] (!%p2966_p9)   ;;  %v6143_v22 = vld [vmem:[%s6973_s29 + $0x88] sm:$0xff] (!%p2966_p9)  }
 0x79c   : > { %5680 = vmatprep.subr.bf16.mxu1 (!%p2966_p9), %v6308_v10  ;;  %v6142_v21 = vld [vmem:[%s6973_s29 + $0xbc] sm:$0xff] (!%p2966_p9)   ;;  %v6146_v23 = vld [vmem:[%s6973_s29 + $0xcc] ss:$0 sps:$4 sm:$0x33] (!%p2966_p9)   ;;  %v6144_v24 = vld [vmem:[%s6973_s29 + $0xc4] sm:$0xff] (!%p2966_p9)  }
 0x79d   : > { %v6147_v25 = vld [vmem:[%s6973_s29 + $0x98] ss:$0 sps:$4 sm:$0x33] (!%p2966_p9)   ;;  %v6145_v61 = vld [vmem:[%s6973_s29 + $0x90] sm:$0xff] (!%p2966_p9)   ;;  %v3052_v26 = vsel (!%p2966_p9), %vm3050_vm4, %v6146_v23, 0  ;;  %v6149_v31 = vld [vmem:[%s6973_s29 + $0x104] sm:$0xff] (!%p2966_p9)  }
 0x79e   : > { %5663 = vmatpush3.bf16.msra.mxu0 %v6136_v14  ;;  %v3137_v27 = vsel %vm3050_vm4, %v6147_v25, 0  ;;  %v6148_v30 = vld [vmem:[%s6973_s29 + $0xd0] sm:$0xff]   ;;  %v6150_v32 = vld [vmem:[%s6973_s29 + $0xd8] sm:$0xff]   ;;  %v6152_v36 = vld [vmem:[%s6973_s29 + $0xe0] sm:$0xff]  }
 0x79f   : > { %5681 = vmatpush3.bf16.msra.mxu1 %v6137_v15  ;;  %5664 = vmatprep.subr.bf16.mxu0 %v6308_v10  ;;  %v6151_v33 = vld [vmem:[%s6973_s29 + $0x10c] sm:$0xff]   ;;  %v6153_v38 = vld [vmem:[%s6973_s29 + $0x114] sm:$0xff]   ;;  %v6155_v46 = vld [vmem:[%s6973_s29 + $0x11c] sm:$0xff]  }
 0x7a0   : > { %5682 = vmatprep.subr.bf16.mxu1 %v6308_v10  ;;  %v4932_v34 = vld [vmem:[%s4285_s24 + $0x10] sm:$0xf]  ;;  %v6154_v43 = vld [vmem:[%s6973_s29 + $0xe8] sm:$0xff]   ;;  %v6158_v49 = vld [vmem:[%s6973_s29 + $0xf8] sm:$0xff]  }
 0x7a1   : > { %v3506_v37 = vunpack.c.l.bf16 %v4932_v34  ;;  %v6156_v47 = vld [vmem:[%s6973_s29 + $0xf0] sm:$0xff]   ;;  %v6157_v48 = vld [vmem:[%s6973_s29 + $0x124] sm:$0xff]   ;;  %v6160_v51 = vld [vmem:[%s6973_s29 + $0x100] ss:$0 sps:$4 sm:$0x33]  }
 0x7a2   : > { %5665 = vmatpush3.bf16.msra.mxu0 %v6138_v16  ;;  %v6159_v50 = vld [vmem:[%s6973_s29 + $0x12c] sm:$0xff]   ;;  %v6161_v19 = vld [vmem:[%s6973_s29 + $0x134] ss:$0 sps:$4 sm:$0x33]   ;;  %v3240_v52 = vsel %vm3050_vm4, %v6160_v51, 0  ;;  %v6162_v55 = vld [vmem:[%s6973_s29 + $0x138] sm:$0xff]  }
 0x7a3   : > { %5683 = vmatpush3.bf16.msra.mxu1 %v6139_v17  ;;  %5666 = vmatprep.subr.bf16.mxu0 %v6308_v10  ;;  %v3508_v39 = vcombine.high %v3506_v37, %v3506_v37  ;;  %v3345_v53 = vsel %vm3050_vm4, %v6161_v19, 0  ;;  %v6163_v57 = vld [vmem:[%s6973_s29 + $0x140] sm:$0xff]   ;;  %v6164_v58 = vld [vmem:[%s6973_s29 + $0x148] sm:$0xff]   ;;  %v6165_v59 = vld [vmem:[%s6973_s29 + $0x150] sm:$0xff]  }
 0x7a4   : > { %5684 = vmatprep.subr.bf16.mxu1 %v6308_v10  ;;  %v6166_v60 = vld [vmem:[%s6973_s29 + $0x158] sm:$0xff]   ;;  %v6167_v62 = vld [vmem:[%s6973_s29 + $0x160] sm:$0xff]   ;;  %v6168_v63 = vld [vmem:[%s6973_s29 + $0x168] ss:$0 sps:$4 sm:$0x33]  }
 0x7a5   : > { %v6129_v44 = vpack.i.bf16 %v3508_v39, %v3506_v37  ;;  %v3450_v0 = vsel %vm3050_vm4, %v6168_v63, 0  ;;  %v4908_v1 = vld [vmem:[%s7217_s1 + $0x8] sm:$0x3]  ;;  %vm3541_vm13 = vmor %vm3540_vm11, %vm3539_vm10 }
 0x7a6   : > { %5667 = vmatpush3.bf16.msra.mxu0 %v6140_v18 }
 0x7a7   : > { %5685 = vmatpush3.bf16.msra.mxu1 %v6141_v20  ;;  %5668 = vmatprep.subr.bf16.mxu0 %v6308_v10 }
 0x7a8   : > { %5686 = vmatprep.subr.bf16.mxu1 %v6308_v10  ;;  %6130 = vrot.lane.b32.xlu0 %v6129_v44, %s6311_s25 }
 0x7aa   : > { %5669 = vmatpush3.bf16.msra.mxu0 %v6142_v21  ;;  %v3518_v21 = vlaneseq }
 0x7ab   : > { %5687 = vmatpush3.bf16.msra.mxu1 %v6143_v22  ;;  %5670 = vmatprep.subr.bf16.mxu0 %v6308_v10 }
 0x7ac   : > { %5688 = vmatprep.subr.bf16.mxu1 %v6308_v10  ;;  %v3519_v23 = vshrl.u32 %v3518_v21, 7 }
 0x7ae   : > { %5671 = vmatpush3.bf16.msra.mxu0 %v6144_v24  ;;  %v3520_v25 = vsub.s32 0, %v3519_v23 }
 0x7af   : > { %5689 = vmatpush3.bf16.msra.mxu1 %v6145_v61  ;;  %5672 = vmatprep.subr.bf16.mxu0 %v6308_v10  ;;  %v3517_v61 = vsel %vm639_vm8, 1, %v6310_v12 }
 0x7b0   : > { %5690 = vmatprep.subr.bf16.mxu1 %v6308_v10  ;;  %v3521_v34 = vrot.slane %v3517_v61, %v3520_v25 }
 0x7b2   : > { %5673 = vmatpush3.bf16.msra.mxu0 %v3052_v26  ;;  %vm3522_vm9 = vcmp.eq.s32.totalorder %v3521_v34, 1 }
 0x7b3   : > { %5691 = vmatpush3.bf16.msra.mxu1 %v3137_v27  ;;  %5696 = vmatprep.subr.bf16.mxu0 %v6308_v10 }
 0x7b4   : > { %5714 = vmatprep.subr.bf16.mxu1 %v6308_v10 }
 0x7b5   : > { %5675 = vmatmul.mubr.msk.bf16.vlgmr.msra.gmra.mrb[0].mxu0 %vm3046_vm5, %v4831_v28 }
 0x7b6   : > { %5693 = vmatmul.mubr.msk.bf16.vlgmr.msra.gmra.mrb[0].mxu1 %vm3046_vm5, %v2972_v29  ;;  %5697 = vmatpush3.bf16.msra.mxu0 %v6148_v30 }
 0x7b7   : > { %5715 = vmatpush3.bf16.msra.mxu1 %v6149_v31  ;;  %5698 = vmatprep.subr.bf16.mxu0 %v6308_v10  ;;  %v6312_v31 = vmov 1983009808  }
 0x7b8   : > { %5716 = vmatprep.subr.bf16.mxu1 %v6308_v10  ;;  %5710 = vmatprep.mubr.msk.bf16.mxu0 %vm6309_vm3, %v6308_v10 }
 0x7b9   : > { %5728 = vmatprep.mubr.msk.bf16.mxu1 %vm6309_vm3, %v6308_v10 }
 0x7ba   : > { %5699 = vmatpush3.bf16.msra.mxu0 %v6150_v32  ;;  %v3527_v32 = vunpack.c.l.s4 %v6312_v31 }
 0x7bb   : > { %5717 = vmatpush3.bf16.msra.mxu1 %v6151_v33  ;;  %5700 = vmatprep.subr.bf16.mxu0 %v6308_v10 }
 0x7bc   : > { %5718 = vmatprep.subr.bf16.mxu1 %v6308_v10 }
 0x7be   : > { %5701 = vmatpush3.bf16.msra.mxu0 %v6152_v36 }
 0x7bf   : > { %5719 = vmatpush3.bf16.msra.mxu1 %v6153_v38  ;;  %5702 = vmatprep.subr.bf16.mxu0 %v6308_v10 }
 0x7c0   : > { %5720 = vmatprep.subr.bf16.mxu1 %v6308_v10 }
 0x7c2   : > { %5703 = vmatpush3.bf16.msra.mxu0 %v6154_v43  ;;  %v3528_v43 = vunpack.c.0.s8 %v3527_v32 }
 0x7c3   : > { %5721 = vmatpush3.bf16.msra.mxu1 %v6155_v46  ;;  %5704 = vmatprep.subr.bf16.mxu0 %v6308_v10 }
 0x7c4   : > { %5722 = vmatprep.subr.bf16.mxu1 %v6308_v10  ;;  %v3531_v46 = vsub.s32 %v3528_v43, %v3519_v23 }
 0x7c6   : > { %5705 = vmatpush3.bf16.msra.mxu0 %v6156_v47 }
 0x7c7   : > { %5723 = vmatpush3.bf16.msra.mxu1 %v6157_v48  ;;  %5706 = vmatprep.subr.bf16.mxu0 %v6308_v10 }
 0x7c8   : > { %5724 = vmatprep.subr.bf16.mxu1 %v6308_v10 }
 0x7ca   : > { %5707 = vmatpush3.bf16.msra.mxu0 %v6158_v49 }
 0x7cb   : > { %5725 = vmatpush3.bf16.msra.mxu1 %v6159_v50  ;;  %5708 = vmatprep.subr.bf16.mxu0 %v6308_v10 }
 0x7cc   : > { %5726 = vmatprep.subr.bf16.mxu1 %v6308_v10 }
 0x7ce   : > { %5709 = vmatpush3.bf16.msra.mxu0 %v3240_v52 }
 0x7cf   : > { %5727 = vmatpush3.bf16.msra.mxu1 %v3345_v53  ;;  %5732 = vmatprep.subr.bf16.mxu0 %v6308_v10 }
 0x7d1   : > { %5711 = vmatmul.mubr.msk.bf16.vlgmr.msra.gmra.mrb[4].mxu0 %vm3046_vm5, %v4862_v54 }
 0x7d2   : > { %5733 = vmatpush3.bf16.msra.mxu0 %v6162_v55  ;;  %5729 = vmatmul.mubr.msk.bf16.vlgmr.msra.gmra.mrb[4].mxu1 %vm3046_vm5, %v4885_v56 }
 0x7d3   : > { %5734 = vmatprep.subr.bf16.mxu0 %v6308_v10  ;;  %5746 = vmatprep.mubr.msk.bf16.mxu0 %vm6309_vm3, %v6308_v10 }
 0x7d6   : > { %5735 = vmatpush3.bf16.msra.mxu0 %v6163_v57 }
 0x7d7   : > { %5736 = vmatprep.subr.bf16.mxu0 %v6308_v10 }
 0x7da   : > { %5737 = vmatpush3.bf16.msra.mxu0 %v6164_v58 }
 0x7db   : > { %5738 = vmatprep.subr.bf16.mxu0 %v6308_v10 }
 0x7de   : > { %5739 = vmatpush3.bf16.msra.mxu0 %v6165_v59 }
 0x7df   : > { %5740 = vmatprep.subr.bf16.mxu0 %v6308_v10 }
 0x7e2   : > { %5741 = vmatpush3.bf16.msra.mxu0 %v6166_v60 }
 0x7e3   : > { %5742 = vmatprep.subr.bf16.mxu0 %v6308_v10 }
 0x7e6   : > { %5743 = vmatpush3.bf16.msra.mxu0 %v6167_v62 }
 0x7e7   : > { %5744 = vmatprep.subr.bf16.mxu0 %v6308_v10 }
 0x7ea   : > { %5745 = vmatpush3.bf16.msra.mxu0 %v3450_v0 }
 0x7ed   : > { %5747 = vmatmul.mubr.msk.bf16.vlgmr.msra.gmra.mrb[8].mxu0 %vm3046_vm5, %v4908_v1 }
 0x819   : > { %v3496_v22 = vpop.permute.xlu0 %3495 }
 0x81d   : > { %v6131_v24 = vpop.permute.xlu0 %6130 }
 0x81e   : > { %v6133_v29 = vunpack.i.h.bf16 %v6131_v24  ;;  %v6132_v30 = vunpack.i.l.bf16 %v6131_v24 }
 0x820   : > { %v3514_v39 = vsel %vm3513_vm6, %v6132_v30, %v6133_v29 }
 0x888   : > { %v3088_v2 = vpop.f32.mrb[0].mxu0 }
 0x889   : > { %v5676_v3 = vpop.f32.mrb[1].mxu0  ;;  %v3173_v35 = vpop.f32.mrb[0].mxu1 }
 0x88a   : > { %v3174_v4 = vadd.f32 %v3173_v35, %v3088_v2  ;;  %v3091_v5 = vpop.f32.mrb[2].mxu0  ;;  %v5694_v6 = vpop.f32.mrb[1].mxu1 }
 0x88b   : > { %v5677_v7 = vpop.f32.mrb[3].mxu0  ;;  %v3176_v8 = vpop.f32.mrb[2].mxu1 }
 0x88c   : > { %v5695_v9 = vpop.f32.mrb[3].mxu1 }
 0x8a4   : > { %v3276_v45 = vpop.f32.mrb[4].mxu0 }
 0x8a5   : > { %v3282_v10 = vadd.f32 %v3276_v45, %v3174_v4  ;;  %v5712_v11 = vpop.f32.mrb[5].mxu0  ;;  %v3381_v13 = vpop.f32.mrb[4].mxu1 }
 0x8a6   : > { %v3279_v14 = vpop.f32.mrb[6].mxu0  ;;  %v5730_v15 = vpop.f32.mrb[5].mxu1 }
 0x8a7   : > { %v3387_v16 = vadd.f32 %v3381_v13, %v3282_v10  ;;  %v5713_v17 = vpop.f32.mrb[7].mxu0  ;;  %v3384_v18 = vpop.f32.mrb[6].mxu1 }
 0x8a8   : > { %v5731_v20 = vpop.f32.mrb[7].mxu1 }
 0x8c0   : > { %v3486_v26 = vpop.f32.mrb[8].mxu0 }
 0x8c1   : > { %v3492_v27 = vadd.f32 %v3486_v26, %v3387_v16  ;;  %v5748_v28 = vpop.f32.mrb[9].mxu0 }
 0x8c2   : > { %v3489_v33 = vpop.f32.mrb[10].mxu0 }
 0x8c3   : > { %v3498_v36 = vadd.f32 %v3496_v22, %v3492_v27  ;;  %v5749_v37 = vpop.f32.mrb[11].mxu0 }
 0x8c5   : > { %vm3499_vm7 = vcmp.ge.f32.partialorder %v3498_v36, 0.0  ;;  %v3500_v38 = vmul.f32 0.1, %v3498_v36 }
 0x8c7   : > { %v3501_v44 = vsel %vm3499_vm7, %v3498_v36, %v3500_v38 }
 0x8c8   : > { %v3516_v12 = vadd.f32 %v3514_v39, %v3501_v44 }
 0x8ca   : > { %v3523_v47 = vsel %vm3522_vm9, %v3516_v12, 0.0 }
 0x8cb   : > { %v3524_v48 = vpack.c.bf16 %v3523_v47, %v3523_v47 }
 0x8cd   : > { %v3532_v49 = vrot.slane %v3524_v48, %v3531_v46 }
 0x8cf   : > { %3533 = vrot.lane.b32.xlu1 %v3532_v49, %s6313_s7 }
 0x941   : > { %v3534_v50 = vpop.permute.xlu1 %3533 }
 0x942   : > { %v3535_v51 = vrot.slane %v3534_v50, 6 }
 0x944   : > { %v3537_v19 = vsel %vm3536_vm12, %v3535_v51, %v3534_v50 }
 0x945   : > { %4933 = vst.msk [vmem:[%s6390_s8 + $0x10] sm:$0xf] %vm3541_vm13, %v3537_v19 }
 0x946 PF: > { %s3543_s10 = sadd.s32 5, %s6378_s22  ;;  %4934 = vst [vmem:[%s6390_s8 + $0x14] sm:$0xf] %v6283_v42 }
 0x947   : > { %p3544_p10 = scmp.ge.s32.totalorder %s3543_s10, 2  ;;  %p3545_p11 = scmp.lt.s32.totalorder %s3543_s10, 10 }
 0x949   : > { %p3546_p12 = pnand %p3545_p11, %p3544_p10 }
 0x94a   : > { %s4935_s9 = smul.u32 (!%p3546_p12), 312, %s6236_s15  ;;  %v6314_v52 = vmov (!%p3546_p12), 0.0   ;;  %vm6315_vm14 = vmmov (!%p3546_p12), 0   ;;  %v6316_v53 = vmov (!%p3546_p12), 0   ;;  %vm3630_vm15 = vcmask (!%p3546_p12), 1041408   ;;  %s6319_s5 = smov (!%p3546_p12), 26  }
 0x94b   : > { %3551 = sbr.rel (%p3546_p12) target bundleno = 2810 (0xafa), region = 71  ;;  %5750 = vmatprep.subr.bf16.mxu0 (!%p3546_p12), %v6314_v52  ;;  %5768 = vmatprep.subr.bf16.mxu1 (!%p3546_p12), %v6314_v52  ;;  %v4949_v4 = vld [vmem:[%s7217_s1 + $0x2] sm:$0x3] (!%p3546_p12)  ;;  %vm3626_vm0 = vcmask (!%p3546_p12), 818176   ;;  %v3552_v5 = vld [vmem:[%s7217_s1] sm:$0x3] (!%p3546_p12) }
 0x94c   : > { %5764 = vmatprep.mubr.msk.bf16.mxu0 (!%p3546_p12), %vm6315_vm14, %v6314_v52  ;;  %5782 = vmatprep.mubr.msk.bf16.mxu1 (!%p3546_p12), %vm6315_vm14, %v6314_v52  ;;  %s7092_s22 = scalar_lea.vmem (!%p3546_p12), [#allocation2], %s4935_s9  ;;  %s5049_s16 = smul.u32 (!%p3546_p12), 24, %s6236_s15  ;;  %v4980_v26 = vld [vmem:[%s7217_s1 + $0x4] sm:$0x3] (!%p3546_p12)  ;;  %v5003_v28 = vld [vmem:[%s7217_s1 + $0x6] sm:$0x3] (!%p3546_p12) }
 0x94d   : > { %v6175_v42 = vld [vmem:[%s7092_s22 + $0xd0] sm:$0xff] (!%p3546_p12)   ;;  %6169 = vset.pattern.permute.xlu0 (!%p3546_p12), %v6316_v53  ;;  %v6176_v54 = vld [vmem:[%s7092_s22 + $0x9c] sm:$0xff] (!%p3546_p12)   ;;  %v6178_v56 = vld [vmem:[%s7092_s22 + $0xa4] sm:$0xff] (!%p3546_p12)   ;;  %s6317_s15 = smov (!%p3546_p12), 102   ;;  %vm4093_vm1 = vcmask (!%p3546_p12), 834560   ;;  %vm4120_vm4 = vcmask (!%p3546_p12), 207874  }
 0x94e   : > { %4075 = vperm.xlu0 (!%p3546_p12), %6169, %v6483_v41   ;;  %5751 = vmatpush3.bf16.msra.mxu0 (!%p3546_p12), %v6175_v42  ;;  %v6177_v55 = vld [vmem:[%s7092_s22 + $0xd8] sm:$0xff] (!%p3546_p12)   ;;  %v6179_v57 = vld [vmem:[%s7092_s22 + $0xe0] sm:$0xff] (!%p3546_p12)   ;;  %v6180_v58 = vld [vmem:[%s7092_s22 + $0xac] sm:$0xff] (!%p3546_p12)   ;;  %s4309_s23 = scalar_lea.vmem (!%p3546_p12), %s6385_s27, %s5049_s16  ;;  %vm4116_vm5 = vcmask (!%p3546_p12), 211968  }
 0x94f   : > { %5769 = vmatpush3.bf16.msra.mxu1 (!%p3546_p12), %v6176_v54  ;;  %5752 = vmatprep.subr.bf16.mxu0 (!%p3546_p12), %v6314_v52  ;;  %v6181_v41 = vld [vmem:[%s7092_s22 + $0xe8] sm:$0xff] (!%p3546_p12)   ;;  %v6182_v59 = vld [vmem:[%s7092_s22 + $0xb4] sm:$0xff] (!%p3546_p12)   ;;  %v6184_v62 = vld [vmem:[%s7092_s22 + $0xbc] sm:$0xff] (!%p3546_p12)  }
 0x950   : > { %5770 = vmatprep.subr.bf16.mxu1 (!%p3546_p12), %v6314_v52  ;;  %v6183_v60 = vld [vmem:[%s7092_s22 + $0xf0] sm:$0xff] (!%p3546_p12)   ;;  %v6187_v63 = vld [vmem:[%s7092_s22 + $0x100] ss:$0 sps:$4 sm:$0x33] (!%p3546_p12)   ;;  %v6185_v0 = vld [vmem:[%s7092_s22 + $0xf8] sm:$0xff] (!%p3546_p12)  }
 0x951   : > { %v6188_v1 = vld [vmem:[%s7092_s22 + $0xcc] ss:$0 sps:$4 sm:$0x33] (!%p3546_p12)   ;;  %v6186_v2 = vld [vmem:[%s7092_s22 + $0xc4] sm:$0xff] (!%p3546_p12)   ;;  %v3632_v3 = vsel (!%p3546_p12), %vm3630_vm15, %v6187_v63, 0  ;;  %v6190_v7 = vld [vmem:[%s7092_s22 + $0x138] sm:$0xff] (!%p3546_p12)  }
 0x952   : > { %5753 = vmatpush3.bf16.msra.mxu0 %v6177_v55  ;;  %v3717_v35 = vsel %vm3630_vm15, %v6188_v1, 0  ;;  %v6189_v6 = vld [vmem:[%s7092_s22 + $0x104] sm:$0xff]   ;;  %v6191_v8 = vld [vmem:[%s7092_s22 + $0x10c] sm:$0xff]   ;;  %v5050_v45 = vld [vmem:[%s4309_s23 + $0x14] sm:$0xf] }
 0x953   : > { %5771 = vmatpush3.bf16.msra.mxu1 %v6178_v56  ;;  %5754 = vmatprep.subr.bf16.mxu0 %v6314_v52  ;;  %v6192_v9 = vld [vmem:[%s7092_s22 + $0x140] sm:$0xff]   ;;  %v6193_v10 = vld [vmem:[%s7092_s22 + $0x114] sm:$0xff]   ;;  %v4086_v11 = vunpack.c.l.bf16 %v5050_v45  ;;  %v6194_v13 = vld [vmem:[%s7092_s22 + $0x148] sm:$0xff]  }
 0x954   : > { %5772 = vmatprep.subr.bf16.mxu1 %v6314_v52  ;;  %v6195_v15 = vld [vmem:[%s7092_s22 + $0x11c] sm:$0xff]   ;;  %v6196_v17 = vld [vmem:[%s7092_s22 + $0x150] sm:$0xff]   ;;  %v6197_v18 = vld [vmem:[%s7092_s22 + $0x124] sm:$0xff]  }
 0x955   : > { %v4088_v14 = vcombine.high %v4086_v11, %v4086_v11  ;;  %v6198_v20 = vld [vmem:[%s7092_s22 + $0x158] sm:$0xff]   ;;  %v6199_v21 = vld [vmem:[%s7092_s22 + $0x12c] sm:$0xff]   ;;  %v6200_v22 = vld [vmem:[%s7092_s22 + $0x160] sm:$0xff]  }
 0x956   : > { %5755 = vmatpush3.bf16.msra.mxu0 %v6179_v57  ;;  %v6201_v23 = vld [vmem:[%s7092_s22 + $0x134] ss:$0 sps:$4 sm:$0x33]   ;;  %v6202_v24 = vld [vmem:[%s7092_s22 + $0x168] ss:$0 sps:$4 sm:$0x33]  }
 0x957   : > { %5773 = vmatpush3.bf16.msra.mxu1 %v6180_v58  ;;  %5756 = vmatprep.subr.bf16.mxu0 %v6314_v52  ;;  %v6170_v16 = vpack.i.bf16 %v4088_v14, %v4086_v11  ;;  %v3820_v25 = vsel %vm3630_vm15, %v6201_v23, 0  ;;  %v3925_v61 = vsel %vm3630_vm15, %v6202_v24, 0  ;;  %v6203_v27 = vld [vmem:[%s7092_s22 + $0x16c] sm:$0xff]   ;;  %v6204_v29 = vld [vmem:[%s7092_s22 + $0x174] sm:$0xff]   ;;  %v6205_v30 = vld [vmem:[%s7092_s22 + $0x17c] sm:$0xff]  }
 0x958   : > { %5774 = vmatprep.subr.bf16.mxu1 %v6314_v52  ;;  %v6206_v31 = vld [vmem:[%s7092_s22 + $0x184] sm:$0xff]   ;;  %v6207_v32 = vld [vmem:[%s7092_s22 + $0x18c] sm:$0xff]   ;;  %v6208_v33 = vld [vmem:[%s7092_s22 + $0x194] sm:$0xff]  }
 0x959   : > { %6171 = vrot.lane.b32.xlu0 %v6170_v16, %s6317_s15  ;;  %v6209_v34 = vld [vmem:[%s7092_s22 + $0x19c] ss:$0 sps:$4 sm:$0x33]   ;;  %v5026_v37 = vld [vmem:[%s7217_s1 + $0x8] sm:$0x3] }
 0x95a   : > { %5757 = vmatpush3.bf16.msra.mxu0 %v6181_v41  ;;  %v4030_v36 = vsel %vm3630_vm15, %v6209_v34, 0  ;;  %v4098_v41 = vlaneseq }
 0x95b   : > { %5775 = vmatpush3.bf16.msra.mxu1 %v6182_v59  ;;  %5758 = vmatprep.subr.bf16.mxu0 %v6314_v52 }
 0x95c   : > { %5776 = vmatprep.subr.bf16.mxu1 %v6314_v52 }
 0x95e   : > { %5759 = vmatpush3.bf16.msra.mxu0 %v6183_v60  ;;  %v4099_v60 = vshrl.u32 %v4098_v41, 7 }
 0x95f   : > { %5777 = vmatpush3.bf16.msra.mxu1 %v6184_v62  ;;  %5760 = vmatprep.subr.bf16.mxu0 %v6314_v52 }
 0x960   : > { %5778 = vmatprep.subr.bf16.mxu1 %v6314_v52  ;;  %v4100_v63 = vsub.s32 0, %v4099_v60 }
 0x962   : > { %5761 = vmatpush3.bf16.msra.mxu0 %v6185_v0  ;;  %v4097_v0 = vsel %vm639_vm8, 1, %v6316_v53  ;;  %vm4119_vm8 = vcmask 1041616  }
 0x963   : > { %5779 = vmatpush3.bf16.msra.mxu1 %v6186_v2  ;;  %5762 = vmatprep.subr.bf16.mxu0 %v6314_v52  ;;  %vm4121_vm6 = vmor %vm4120_vm4, %vm4119_vm8 }
 0x964   : > { %5780 = vmatprep.subr.bf16.mxu1 %v6314_v52 }
 0x966   : > { %5763 = vmatpush3.bf16.msra.mxu0 %v3632_v3 }
 0x967   : > { %5781 = vmatpush3.bf16.msra.mxu1 %v3717_v35  ;;  %5786 = vmatprep.subr.bf16.mxu0 %v6314_v52 }
 0x968   : > { %5804 = vmatprep.subr.bf16.mxu1 %v6314_v52 }
 0x969   : > { %5765 = vmatmul.mubr.msk.bf16.vlgmr.msra.gmra.mrb[0].mxu0 %vm3626_vm0, %v4949_v4 }
 0x96a   : > { %5783 = vmatmul.mubr.msk.bf16.vlgmr.msra.gmra.mrb[0].mxu1 %vm3626_vm0, %v3552_v5  ;;  %5787 = vmatpush3.bf16.msra.mxu0 %v6189_v6  ;;  %v6318_v5 = vmov 1983009808  }
 0x96b   : > { %5805 = vmatpush3.bf16.msra.mxu1 %v6190_v7  ;;  %5788 = vmatprep.subr.bf16.mxu0 %v6314_v52  ;;  %v4107_v6 = vunpack.c.l.s4 %v6318_v5 }
 0x96c   : > { %5806 = vmatprep.subr.bf16.mxu1 %v6314_v52  ;;  %5800 = vmatprep.mubr.msk.bf16.mxu0 %vm6315_vm14, %v6314_v52 }
 0x96d   : > { %5818 = vmatprep.mubr.msk.bf16.mxu1 %vm6315_vm14, %v6314_v52 }
 0x96e   : > { %5789 = vmatpush3.bf16.msra.mxu0 %v6191_v8  ;;  %v4101_v8 = vrot.slane %v4097_v0, %v4100_v63 }
 0x96f   : > { %5807 = vmatpush3.bf16.msra.mxu1 %v6192_v9  ;;  %5790 = vmatprep.subr.bf16.mxu0 %v6314_v52 }
 0x970   : > { %5808 = vmatprep.subr.bf16.mxu1 %v6314_v52  ;;  %vm4102_vm3 = vcmp.eq.s32.totalorder %v4101_v8, 1 }
 0x972   : > { %5791 = vmatpush3.bf16.msra.mxu0 %v6193_v10 }
 0x973   : > { %5809 = vmatpush3.bf16.msra.mxu1 %v6194_v13  ;;  %5792 = vmatprep.subr.bf16.mxu0 %v6314_v52  ;;  %v4108_v13 = vunpack.c.0.s8 %v4107_v6 }
 0x974   : > { %5810 = vmatprep.subr.bf16.mxu1 %v6314_v52 }
 0x975   : > { %v4111_v14 = vsub.s32 %v4108_v13, %v4099_v60 }
 0x976   : > { %5793 = vmatpush3.bf16.msra.mxu0 %v6195_v15 }
 0x977   : > { %5811 = vmatpush3.bf16.msra.mxu1 %v6196_v17  ;;  %5794 = vmatprep.subr.bf16.mxu0 %v6314_v52 }
 0x978   : > { %5812 = vmatprep.subr.bf16.mxu1 %v6314_v52 }
 0x97a   : > { %5795 = vmatpush3.bf16.msra.mxu0 %v6197_v18 }
 0x97b   : > { %5813 = vmatpush3.bf16.msra.mxu1 %v6198_v20  ;;  %5796 = vmatprep.subr.bf16.mxu0 %v6314_v52 }
 0x97c   : > { %5814 = vmatprep.subr.bf16.mxu1 %v6314_v52 }
 0x97e   : > { %5797 = vmatpush3.bf16.msra.mxu0 %v6199_v21 }
 0x97f   : > { %5815 = vmatpush3.bf16.msra.mxu1 %v6200_v22  ;;  %5798 = vmatprep.subr.bf16.mxu0 %v6314_v52 }
 0x980   : > { %5816 = vmatprep.subr.bf16.mxu1 %v6314_v52 }
 0x982   : > { %5799 = vmatpush3.bf16.msra.mxu0 %v3820_v25 }
 0x983   : > { %5817 = vmatpush3.bf16.msra.mxu1 %v3925_v61  ;;  %5822 = vmatprep.subr.bf16.mxu0 %v6314_v52 }
 0x985   : > { %5801 = vmatmul.mubr.msk.bf16.vlgmr.msra.gmra.mrb[4].mxu0 %vm3626_vm0, %v4980_v26 }
 0x986   : > { %5823 = vmatpush3.bf16.msra.mxu0 %v6203_v27  ;;  %5819 = vmatmul.mubr.msk.bf16.vlgmr.msra.gmra.mrb[4].mxu1 %vm3626_vm0, %v5003_v28 }
 0x987   : > { %5824 = vmatprep.subr.bf16.mxu0 %v6314_v52  ;;  %5836 = vmatprep.mubr.msk.bf16.mxu0 %vm6315_vm14, %v6314_v52 }
 0x98a   : > { %5825 = vmatpush3.bf16.msra.mxu0 %v6204_v29 }
 0x98b   : > { %5826 = vmatprep.subr.bf16.mxu0 %v6314_v52 }
 0x98e   : > { %5827 = vmatpush3.bf16.msra.mxu0 %v6205_v30 }
 0x98f   : > { %5828 = vmatprep.subr.bf16.mxu0 %v6314_v52 }
 0x992   : > { %5829 = vmatpush3.bf16.msra.mxu0 %v6206_v31 }
 0x993   : > { %5830 = vmatprep.subr.bf16.mxu0 %v6314_v52 }
 0x996   : > { %5831 = vmatpush3.bf16.msra.mxu0 %v6207_v32 }
 0x997   : > { %5832 = vmatprep.subr.bf16.mxu0 %v6314_v52 }
 0x99a   : > { %5833 = vmatpush3.bf16.msra.mxu0 %v6208_v33 }
 0x99b   : > { %5834 = vmatprep.subr.bf16.mxu0 %v6314_v52 }
 0x99e   : > { %5835 = vmatpush3.bf16.msra.mxu0 %v4030_v36 }
 0x9a1   : > { %5837 = vmatmul.mubr.msk.bf16.vlgmr.msra.gmra.mrb[8].mxu0 %vm3626_vm0, %v5026_v37 }
 0x9cd   : > { %v4076_v59 = vpop.permute.xlu0 %4075 }
 0x9d1   : > { %v6172_v62 = vpop.permute.xlu0 %6171 }
 0x9d2   : > { %v6174_v35 = vunpack.i.h.bf16 %v6172_v62  ;;  %v6173_v4 = vunpack.i.l.bf16 %v6172_v62 }
 0x9d4   : > { %v4094_v11 = vsel %vm4093_vm1, %v6173_v4, %v6174_v35 }
 0xa3c   : > { %v3668_v38 = vpop.f32.mrb[0].mxu0 }
 0xa3d   : > { %v5766_v39 = vpop.f32.mrb[1].mxu0  ;;  %v3753_v43 = vpop.f32.mrb[0].mxu1 }
 0xa3e   : > { %v3754_v44 = vadd.f32 %v3753_v43, %v3668_v38  ;;  %v3671_v12 = vpop.f32.mrb[2].mxu0  ;;  %v5784_v46 = vpop.f32.mrb[1].mxu1 }
 0xa3f   : > { %v5767_v47 = vpop.f32.mrb[3].mxu0  ;;  %v3756_v48 = vpop.f32.mrb[2].mxu1 }
 0xa40   : > { %v5785_v49 = vpop.f32.mrb[3].mxu1 }
 0xa58   : > { %v3856_v50 = vpop.f32.mrb[4].mxu0 }
 0xa59   : > { %v3862_v51 = vadd.f32 %v3856_v50, %v3754_v44  ;;  %v5802_v19 = vpop.f32.mrb[5].mxu0  ;;  %v3961_v52 = vpop.f32.mrb[4].mxu1 }
 0xa5a   : > { %v3859_v42 = vpop.f32.mrb[6].mxu0  ;;  %v5820_v54 = vpop.f32.mrb[5].mxu1 }
 0xa5b   : > { %v3967_v55 = vadd.f32 %v3961_v52, %v3862_v51  ;;  %v5803_v56 = vpop.f32.mrb[7].mxu0  ;;  %v3964_v57 = vpop.f32.mrb[6].mxu1 }
 0xa5c   : > { %v5821_v58 = vpop.f32.mrb[7].mxu1 }
 0xa74   : > { %v4066_v1 = vpop.f32.mrb[8].mxu0 }
 0xa75   : > { %v4072_v2 = vadd.f32 %v4066_v1, %v3967_v55  ;;  %v5838_v3 = vpop.f32.mrb[9].mxu0 }
 0xa76   : > { %v4069_v7 = vpop.f32.mrb[10].mxu0 }
 0xa77   : > { %v4078_v9 = vadd.f32 %v4076_v59, %v4072_v2  ;;  %v5839_v45 = vpop.f32.mrb[11].mxu0 }
 0xa79   : > { %vm4079_vm2 = vcmp.ge.f32.partialorder %v4078_v9, 0.0  ;;  %v4080_v10 = vmul.f32 0.1, %v4078_v9 }
 0xa7b   : > { %v4081_v40 = vsel %vm4079_vm2, %v4078_v9, %v4080_v10 }
 0xa7c   : > { %v4096_v53 = vadd.f32 %v4094_v11, %v4081_v40 }
 0xa7e   : > { %v4103_v15 = vsel %vm4102_vm3, %v4096_v53, 0.0 }
 0xa7f   : > { %v4104_v16 = vpack.c.bf16 %v4103_v15, %v4103_v15 }
 0xa81   : > { %v4112_v17 = vrot.slane %v4104_v16, %v4111_v14 }
 0xa83   : > { %4113 = vrot.lane.b32.xlu1 %v4112_v17, %s6319_s5 }
 0xaf5   : > { %v4114_v18 = vpop.permute.xlu1 %4113 }
 0xaf6   : > { %v4115_v20 = vrot.slane %v4114_v18, 6 }
 0xaf8   : > { %v4117_v21 = vsel %vm4116_vm5, %v4115_v20, %v4114_v18 }
 0xaf9   : > { %5051 = vst.msk [vmem:[%s6390_s8 + $0x14] sm:$0xf] %vm4121_vm6, %v4117_v21 }
 0xafa PF: > { %s14_s19 = sadd.s32 1, %s6252_s19   ;;  %s7221_s15 = smov %s6244_s17 }
 0xafb   : > { %p11_p13 = scmp.ge.s32.totalorder %s14_s19, 6   ;;  %s7222_s16 = smov %s6248_s18 }
 0xafc   : > { %s7223_s17 = smov %s7226_s20  ;;  %s7224_s18 = smov %s7230_s21 }
 0xafd   :  { %13 = sbr.rel (!%p11_p13) target bundleno = 3 (0x3), region = 179 }

// kernel: resnet_forward_pallas.5
= control target key start
LH: loop header
LB: loop body
LE: loop exit
PB: predicated region body
PF: predicated region fallthrough
CT: control target
= control target key end

     0   :  { %s6088_s17 = smov 0   ;;  %s6090_s18 = smov 0   ;;  %s6967_s0 = inlined_call_operand.vmem [shape: bf16[2,12,4,256], index: 0, kind: input, shape index: {}]   ;;  %s6968_s1 = inlined_call_operand.vmem [shape: bf16[5,1,100], index: 1, kind: input, shape index: {}]   ;;  %s6969_s2 = inlined_call_operand.<no memory space> [shape: f32[1,1], index: 2, kind: input, shape index: {}]   ;;  %s6970_s3 = inlined_call_operand.vmem [shape: f32[1,128], index: 3, kind: input, shape index: {}]   ;;  %s6971_s4 = inlined_call_operand.vmem [shape: f32[2,12,1,256], index: 4, kind: output, shape index: {}]  }
   0x1   :  { %v9_v0 = vstv %s6969_s2  ;;  %s6092_s19 = smov 0   ;;  %s6094_s20 = smov 0  }
   0x2   :  { %10 = vst [vmem:[#allocation3] sm:$0x1] %v9_v0  ;;  %s6096_s21 = smov 0  }
   0x3 LB: > { %s25_s2 = sadd.s32 1, %s5996_s19  ;;  %s28_s22 = sadd.s32 1, %s6000_s20  ;;  %s6004_s21 = sphi %s6096_s21, %s16_s21   ;;  %s6000_s20 = sphi %s6094_s20, %s6977_s20   ;;  %s5996_s19 = sphi %s6092_s19, %s6976_s19   ;;  %s5992_s18 = sphi %s6090_s18, %s6975_s18   ;;  %s5988_s17 = sphi %s6088_s17, %s6974_s17  }
   0x4   : > { %p26_p0 = scmp.ge.s32.totalorder %s25_s2, 2  ;;  %p4170_p1 = scmp.ge.s32.totalorder %s6004_s21, 1 }
   0x5   : > { %p178_p2 = scmp.lt.s32.totalorder %s6004_s21, 5 }
   0x6   : > { %s6979_s2 = smov (%p26_p0, %s25_s2), 0  ;;  %s6981_s22 = smov (!%p26_p0, %s28_s22), %s6000_s20 }
   0x7   : > { %p179_p3 = pnand %p4170_p1, %p178_p2  ;;  %p30_p4 = scmp.ge.s32.totalorder %s6981_s22, 2 }
   0x8   : > { %p208_p5 = scmp.lt.s32.totalorder (!%p179_p3), %s5992_s18, 1  ;;  %s6121_s23 = smul.u32 (!%p179_p3), 6, %s5988_s17 }
   0x9   : > { %s6983_s22 = smov (%p30_p4, %s6981_s22), 0  ;;  %182 = sbr.rel (%p179_p3) target bundleno = 2752 (0xac0), region = 36 }
   0xa   : > { %p216_p6 = scmp.lt.s32.totalorder (!%p179_p3), %s6121_s23, 11  ;;  %p4173_p7 = scmp.ne.s32.totalorder (!%p179_p3), %s5988_s17, 0 }
  0x10   : > { %s6985_s18 = smov (!%p208_p5, %s5992_s18), 1  ;;  %227 = sbr.rel (%p4173_p7) target bundleno = 191 (0xbf), region = 40 }
  0x11   : > { %s5634_s24 = smul.u32 48, %s6985_s18  ;;  %s6136_s9 = smov (!%p4173_p7), 0  }
  0x12   : > { %s217_s25 = scalar_select %p216_p6, %s6121_s23, 11 }
  0x13   : > { %s6128_s28 = scalar_lea.vmem %s6967_s0, %s5634_s24  ;;  %s5635_s29 = smul.u32 24, %s6985_s18 }
  0x14   : > { %s4172_s30 = sshll.u32 %s217_s25, 1 }
  0x15   : > { %s220_s5 = sadd.s32 %s5635_s29, %s4172_s30 }
  0x16   : > { %s6133_s8 = scalar_lea.vmem %s6971_s4, %s220_s5 }
  0x17 LB: >> { %v248_v1 = vlaneseq  ;;  %v6010_v2 = vmov 1983009808   ;;  %s4849_s10 = sshll.u32 %s6008_s9, 2  ;;  %s6011_s12 = smov 124   ;;  %vm304_vm0 = vcmask 1014784   ;;  %vm271_vm1 = vcmask 1031168   ;;  %s6008_s9 = sphi %s6136_s9, %s233_s9  }
  0x18   : >> { %v246_v3 = vunpack.c.l.s4 %v6010_v2  ;;  %s6143_s11 = scalar_lea.vmem %s6128_s28, %s4849_s10  ;;  %s6012_s13 = smov 126   ;;  %vm337_vm2 = vcmask 941056   ;;  %vm255_vm3 = vcmask 1039360   ;;  %vm288_vm4 = vcmask 1022976  }
  0x19   : >> { %v249_v4 = vshrl.u32 %v248_v1, 7  ;;  %v6146_v6 = vld.sshfl [vmem:[%s6143_s11] sm:$0x33 pattern:$0x76325410]  ;;  %s6013_s14 = smov 115  }
  0x1a   : >> { %v247_v5 = vunpack.c.0.s8 %v246_v3  ;;  %301 = vrot.lane.b32.xlu1 %v6146_v6, %s6011_s12  ;;  %268 = vrot.lane.b32.xlu0 %v6146_v6, %s6012_s13  ;;  %v5734_v7 = vld [vmem:[%s6143_s11] ss:$0 sps:$4 sm:$0xff]   ;;  %s6014_s15 = smov 127   ;;  %s4850_s16 = smul.u32 52, %s6008_s9  ;;  %vm321_vm5 = vcmask 949248   ;;  %vm370_vm6 = vcmask 924672  }
  0x1b   : >> { %v5735_v9 = vld [vmem:[%s6143_s11] ss:$0 sps:$4 sm:$0xff]   ;;  %s6015_s18 = smov 125   ;;  %s6016_s24 = smov 116   ;;  %vm354_vm7 = vcmask 932864   ;;  %vm403_vm8 = vcmask 850944  }
  0x1c   : >> { %v6151_v8 = vsub.s32 %v247_v5, %v249_v4  ;;  %v5736_v11 = vld [vmem:[%s6143_s11] ss:$0 sps:$4 sm:$0xff]   ;;  %s6017_s25 = smov 113   ;;  %s6018_s26 = smov 114   ;;  %vm387_vm9 = vcmask 916480   ;;  %vm436_vm10 = vcmask 834560  }
  0x1d   : >> { %v5737_v14 = vld [vmem:[%s6143_s11] ss:$0 sps:$4 sm:$0xff]   ;;  %s6167_s27 = scalar_lea.vmem [#allocation2], %s4850_s16  ;;  %s6019_s29 = smov 104   ;;  %vm420_vm11 = vcmask 842752   ;;  %vm469_vm12 = vcmask 818176  }
  0x1e   : >> { %v251_v10 = vrot.slane %v5734_v7, %v6151_v8  ;;  %334 = vrot.lane.b32.xlu1 %v6146_v6, %s6013_s14  ;;  %v284_v12 = vrot.slane %v5735_v9, %v6151_v8  ;;  %v317_v13 = vrot.slane %v5736_v11, %v6151_v8  ;;  %v350_v15 = vrot.slane %v5737_v14, %v6151_v8  ;;  %v5738_v16 = vld [vmem:[%s6143_s11] ss:$0 sps:$4 sm:$0xff]   ;;  %s6020_s30 = smov 112   ;;  %s6021_s5 = smov 102  }
  0x1f   : >> { %v237_v17 = vld [vmem:[%s6143_s11] sm:$0x3]  ;;  %v383_v18 = vrot.slane %v5738_v16, %v6151_v8  ;;  %s6022_s6 = smov 103   ;;  %s6023_s7 = smov 100   ;;  %vm453_vm13 = vcmask 826368   ;;  %vm502_vm14 = vcmask 744448  }
  0x20   : >> { %252 = vrot.lane.b32.xlu0 %v251_v10, %s6014_s15  ;;  %v5739_v19 = vld [vmem:[%s6143_s11] ss:$0 sps:$4 sm:$0xff]   ;;  %241 = vst [vmem:[%s6167_s27] sm:$0x3] %v237_v17  ;;  %s6024_s10 = smov 101   ;;  %s6025_s12 = smov 91   ;;  %vm486_vm15 = vcmask 752640  }
  0x21   : >> { %v416_v20 = vrot.slane %v5739_v19, %v6151_v8  ;;  %v5740_v21 = vld [vmem:[%s6143_s11] ss:$0 sps:$4 sm:$0xff]   ;;  %s6026_s13 = smov 92   ;;  %s6027_s14 = smov 89  }
  0x22   : >> { %285 = vrot.lane.b32.xlu1 %v284_v12, %s6015_s18  ;;  %v449_v22 = vrot.slane %v5740_v21, %v6151_v8  ;;  %v5741_v23 = vld [vmem:[%s6143_s11] ss:$0 sps:$4 sm:$0xff]   ;;  %s6028_s15 = smov 90   ;;  %s6029_s16 = smov 80  }
  0x23   : >> { %v482_v24 = vrot.slane %v5741_v23, %v6151_v8  ;;  %v5742_v25 = vld [vmem:[%s6143_s11] ss:$0 sps:$4 sm:$0xff]   ;;  %s6030_s18 = smov 88   ;;  %s233_s9 = sadd.s32 1, %s6008_s9  }
  0x24   : >> { %318 = vrot.lane.b32.xlu0 %v317_v13, %s6016_s24  ;;  %v515_v26 = vrot.slane %v5742_v25, %v6151_v8  ;;  %v5743_v27 = vld [vmem:[%s6143_s11] ss:$0 sps:$4 sm:$0xff]   ;;  %s6031_s24 = smov 78   ;;  %p230_p8 = scmp.ge.s32.totalorder %s233_s9, 12  }
  0x25   : >> { %v548_v28 = vrot.slane %v5743_v27, %v6151_v8  ;;  %v5744_v29 = vld [vmem:[%s6143_s11] ss:$0 sps:$4 sm:$0xff]  }
  0x26   : >> { %367 = vrot.lane.b32.xlu1 %v6146_v6, %s6017_s25  ;;  %v581_v30 = vrot.slane %v5744_v29, %v6151_v8  ;;  %v5745_v31 = vld [vmem:[%s6143_s11] ss:$0 sps:$4 sm:$0xff]   ;;  %s6032_s25 = smov 79  }
  0x27   : >> { %v614_v32 = vrot.slane %v5745_v31, %v6151_v8 }
  0x28   : >> { %351 = vrot.lane.b32.xlu0 %v350_v15, %s6018_s26  ;;  %s6033_s26 = smov 76  }
  0x2a   : >> { %400 = vrot.lane.b32.xlu1 %v6146_v6, %s6019_s29  ;;  %s6034_s29 = smov 77  }
  0x2c   : >> { %384 = vrot.lane.b32.xlu0 %v383_v18, %s6020_s30 }
  0x2e   : >> { %433 = vrot.lane.b32.xlu1 %v6146_v6, %s6021_s5 }
  0x30   : >> { %417 = vrot.lane.b32.xlu0 %v416_v20, %s6022_s6 }
  0x32   : >> { %466 = vrot.lane.b32.xlu1 %v6146_v6, %s6023_s7 }
  0x34   : >> { %450 = vrot.lane.b32.xlu0 %v449_v22, %s6024_s10 }
  0x36   : >> { %499 = vrot.lane.b32.xlu1 %v6146_v6, %s6025_s12 }
  0x38   : >> { %483 = vrot.lane.b32.xlu0 %v482_v24, %s6026_s13 }
  0x3a   : >> { %532 = vrot.lane.b32.xlu1 %v6146_v6, %s6027_s14 }
  0x3c   : >> { %516 = vrot.lane.b32.xlu0 %v515_v26, %s6028_s15 }
  0x3e   : >> { %565 = vrot.lane.b32.xlu1 %v6146_v6, %s6029_s16 }
  0x40   : >> { %549 = vrot.lane.b32.xlu0 %v548_v28, %s6030_s18 }
  0x42   : >> { %598 = vrot.lane.b32.xlu1 %v6146_v6, %s6031_s24 }
  0x44   : >> { %582 = vrot.lane.b32.xlu0 %v581_v30, %s6032_s25 }
  0x46   : >> { %631 = vrot.lane.b32.xlu1 %v6146_v6, %s6033_s26 }
  0x48   : >> { %615 = vrot.lane.b32.xlu0 %v614_v32, %s6034_s29 }
  0x8c   : >> { %v302_v33 = vpop.permute.xlu1 %301  ;;  %v269_v34 = vpop.permute.xlu0 %268 }
  0x8d   : >> { %v303_v35 = vrot.slane %v302_v33, 4  ;;  %v270_v36 = vrot.slane %v269_v34, 4 }
  0x8f   : >> { %v305_v37 = vsel %vm304_vm0, %v302_v33, %v303_v35  ;;  %v272_v38 = vsel %vm271_vm1, %v269_v34, %v270_v36  ;;  %vm535_vm0 = vcmask 728064   ;;  %vm519_vm1 = vcmask 736256  }
  0x90   : >> { %307 = vst [vmem:[%s6167_s27 + $0x8] sm:$0x3] %v305_v37  ;;  %274 = vst [vmem:[%s6167_s27 + $0x4] sm:$0x3] %v272_v38  ;;  %v335_v39 = vpop.permute.xlu1 %334 }
  0x91   : >> { %v336_v41 = vrot.slane %v335_v39, 4 }
  0x92   : >> { %v253_v40 = vpop.permute.xlu0 %252 }
  0x93   : >> { %v254_v42 = vrot.slane %v253_v40, 4  ;;  %v338_v43 = vsel %vm337_vm2, %v335_v39, %v336_v41  ;;  %vm568_vm2 = vcmask 654336  }
  0x94   : >> { %340 = vst [vmem:[%s6167_s27 + $0xc] sm:$0x3] %v338_v43  ;;  %v286_v45 = vpop.permute.xlu1 %285 }
  0x95   : >> { %v256_v44 = vsel %vm255_vm3, %v253_v40, %v254_v42  ;;  %v287_v47 = vrot.slane %v286_v45, 4  ;;  %vm552_vm3 = vcmask 719872  }
  0x96   : >> { %258 = vst [vmem:[%s6167_s27] sm:$0xc] %v256_v44  ;;  %v319_v46 = vpop.permute.xlu0 %318 }
  0x97   : >> { %v320_v48 = vrot.slane %v319_v46, 4  ;;  %v289_v49 = vsel %vm288_vm4, %v286_v45, %v287_v47  ;;  %vm601_vm4 = vcmask 637952  }
  0x98   : >> { %291 = vst [vmem:[%s6167_s27 + $0x4] sm:$0xc] %v289_v49  ;;  %v368_v51 = vpop.permute.xlu1 %367 }
  0x99   : >> { %v322_v50 = vsel %vm321_vm5, %v319_v46, %v320_v48  ;;  %v369_v53 = vrot.slane %v368_v51, 4  ;;  %vm585_vm5 = vcmask 646144  }
  0x9a   : >> { %324 = vst [vmem:[%s6167_s27 + $0x8] sm:$0xc] %v322_v50  ;;  %v352_v52 = vpop.permute.xlu0 %351 }
  0x9b   : >> { %v353_v54 = vrot.slane %v352_v52, 4  ;;  %v371_v55 = vsel %vm370_vm6, %v368_v51, %v369_v53  ;;  %vm634_vm6 = vcmask 621568  }
  0x9c   : >> { %373 = vst [vmem:[%s6167_s27 + $0x10] sm:$0x3] %v371_v55  ;;  %v401_v57 = vpop.permute.xlu1 %400 }
  0x9d   : >> { %v355_v56 = vsel %vm354_vm7, %v352_v52, %v353_v54  ;;  %v402_v59 = vrot.slane %v401_v57, 4  ;;  %vm618_vm7 = vcmask 629760  }
  0x9e   : >> { %357 = vst [vmem:[%s6167_s27 + $0xc] sm:$0xc] %v355_v56  ;;  %v385_v58 = vpop.permute.xlu0 %384 }
  0x9f   : >> { %v386_v60 = vrot.slane %v385_v58, 4  ;;  %v404_v61 = vsel %vm403_vm8, %v401_v57, %v402_v59 }
  0xa0   : >> { %406 = vst [vmem:[%s6167_s27 + $0x14] sm:$0x3] %v404_v61  ;;  %v434_v63 = vpop.permute.xlu1 %433 }
  0xa1   : >> { %v388_v62 = vsel %vm387_vm9, %v385_v58, %v386_v60  ;;  %v435_v1 = vrot.slane %v434_v63, 4 }
  0xa2   : >> { %390 = vst [vmem:[%s6167_s27 + $0x10] sm:$0xc] %v388_v62  ;;  %v418_v0 = vpop.permute.xlu0 %417 }
  0xa3   : >> { %v419_v2 = vrot.slane %v418_v0, 4  ;;  %v437_v3 = vsel %vm436_vm10, %v434_v63, %v435_v1 }
  0xa4   : >> { %439 = vst [vmem:[%s6167_s27 + $0x18] sm:$0x3] %v437_v3  ;;  %v467_v5 = vpop.permute.xlu1 %466 }
  0xa5   : >> { %v421_v4 = vsel %vm420_vm11, %v418_v0, %v419_v2  ;;  %v468_v7 = vrot.slane %v467_v5, 4 }
  0xa6   : >> { %423 = vst [vmem:[%s6167_s27 + $0x14] sm:$0xc] %v421_v4  ;;  %v451_v6 = vpop.permute.xlu0 %450 }
  0xa7   : >> { %v452_v8 = vrot.slane %v451_v6, 4  ;;  %v470_v9 = vsel %vm469_vm12, %v467_v5, %v468_v7 }
  0xa8   : >> { %472 = vst [vmem:[%s6167_s27 + $0x1c] sm:$0x3] %v470_v9  ;;  %v500_v11 = vpop.permute.xlu1 %499 }
  0xa9   : >> { %v454_v10 = vsel %vm453_vm13, %v451_v6, %v452_v8  ;;  %v501_v13 = vrot.slane %v500_v11, 4 }
  0xaa   : >> { %456 = vst [vmem:[%s6167_s27 + $0x18] sm:$0xc] %v454_v10  ;;  %v484_v12 = vpop.permute.xlu0 %483 }
  0xab   : >> { %v485_v14 = vrot.slane %v484_v12, 4  ;;  %v503_v15 = vsel %vm502_vm14, %v500_v11, %v501_v13 }
  0xac   : >> { %505 = vst [vmem:[%s6167_s27 + $0x20] sm:$0x3] %v503_v15  ;;  %v533_v17 = vpop.permute.xlu1 %532 }
  0xad   : >> { %v487_v16 = vsel %vm486_vm15, %v484_v12, %v485_v14  ;;  %v534_v19 = vrot.slane %v533_v17, 4 }
  0xae   : >> { %489 = vst [vmem:[%s6167_s27 + $0x1c] sm:$0xc] %v487_v16  ;;  %v517_v18 = vpop.permute.xlu0 %516 }
  0xaf   : >> { %v518_v20 = vrot.slane %v517_v18, 4  ;;  %v536_v21 = vsel %vm535_vm0, %v533_v17, %v534_v19 }
  0xb0   : >> { %538 = vst [vmem:[%s6167_s27 + $0x24] sm:$0x3] %v536_v21  ;;  %v566_v23 = vpop.permute.xlu1 %565 }
  0xb1   : >> { %v520_v22 = vsel %vm519_vm1, %v517_v18, %v518_v20  ;;  %v567_v25 = vrot.slane %v566_v23, 4 }
  0xb2   : >> { %522 = vst [vmem:[%s6167_s27 + $0x20] sm:$0xc] %v520_v22  ;;  %v550_v24 = vpop.permute.xlu0 %549 }
  0xb3   : >> { %v551_v26 = vrot.slane %v550_v24, 4  ;;  %v569_v27 = vsel %vm568_vm2, %v566_v23, %v567_v25 }
  0xb4   : >> { %571 = vst [vmem:[%s6167_s27 + $0x28] sm:$0x3] %v569_v27  ;;  %v599_v29 = vpop.permute.xlu1 %598 }
  0xb5   : >> { %v553_v28 = vsel %vm552_vm3, %v550_v24, %v551_v26  ;;  %v600_v31 = vrot.slane %v599_v29, 4 }
  0xb6   : >> { %555 = vst [vmem:[%s6167_s27 + $0x24] sm:$0xc] %v553_v28  ;;  %v583_v30 = vpop.permute.xlu0 %582 }
  0xb7   : >> { %v584_v32 = vrot.slane %v583_v30, 4  ;;  %v602_v33 = vsel %vm601_vm4, %v599_v29, %v600_v31 }
  0xb8   : >> { %604 = vst [vmem:[%s6167_s27 + $0x2c] sm:$0x3] %v602_v33  ;;  %v632_v35 = vpop.permute.xlu1 %631  ;;  %232 = sbr.rel (!%p230_p8) target bundleno = 23 (0x17), region = 162 }
  0xb9   : >> { %v586_v34 = vsel %vm585_vm5, %v583_v30, %v584_v32  ;;  %v633_v37 = vrot.slane %v632_v35, 4 }
  0xba   : >> { %588 = vst [vmem:[%s6167_s27 + $0x28] sm:$0xc] %v586_v34  ;;  %v616_v36 = vpop.permute.xlu0 %615 }
  0xbb   : >> { %v617_v38 = vrot.slane %v616_v36, 4  ;;  %v635_v39 = vsel %vm634_vm6, %v632_v35, %v633_v37 }
  0xbc   : >> { %637 = vst [vmem:[%s6167_s27 + $0x30] sm:$0x3] %v635_v39 }
  0xbd   : >> { %v619_v40 = vsel %vm618_vm7, %v616_v36, %v617_v38 }
  0xbe   : >> { %621 = vst [vmem:[%s6167_s27 + $0x2c] sm:$0xc] %v619_v40 }
  0xbf PF: > { %v6221_v41 = vld [vmem:[%s6970_s3] sm:$0x1]  ;;  %v6223_v42 = vld [vmem:[#allocation3] sm:$0x1]  ;;  %p642_p9 = scmp.ge.s32.totalorder %s6121_s23, 2  ;;  %p643_p10 = scmp.lt.s32.totalorder %s6121_s23, 10  ;;  %v646_v43 = vlaneseq }
  0xc0   : > { %vm639_vm8 = vcmp.gt.f32.partialorder %v6221_v41, 0.5  ;;  %v6035_v45 = vmov 0.0  }
  0xc1   : > { %p644_p11 = pnand %p643_p10, %p642_p9  ;;  %vm6229_vm9 = vcmp.lt.s32.totalorder %v646_v43, 256 }
  0xc2   : > { %650 = vst.msk [vmem:[%s6133_s8] sm:$0x3] %vm6229_vm9, %v6035_v45  ;;  %s4189_s28 = smul.u32 (!%p644_p11), 312, %s5988_s17  ;;  %v6036_v46 = vmov (!%p644_p11), 0.0   ;;  %vm6037_vm10 = vmmov (!%p644_p11), 0   ;;  %v6038_v48 = vmov (!%p644_p11), 0  }
  0xc3   : > { %652 = sbr.rel (%p644_p11) target bundleno = 617 (0x269), region = 51  ;;  %5094 = vmatprep.subr.bf16.mxu0 (!%p644_p11), %v6036_v46  ;;  %5112 = vmatprep.subr.bf16.mxu1 (!%p644_p11), %v6036_v46  ;;  %vm733_vm11 = vcmask (!%p644_p11), 1041408   ;;  %v4203_v0 = vld [vmem:[%s6968_s1 + $0x1] sm:$0x1] (!%p644_p11)  ;;  %vm729_vm12 = vcmask (!%p644_p11), 818176   ;;  %s6039_s18 = smov (!%p644_p11), 26  }
  0xc4   : > { %5108 = vmatprep.mubr.msk.bf16.mxu0 (!%p644_p11), %vm6037_vm10, %v6036_v46  ;;  %5126 = vmatprep.mubr.msk.bf16.mxu1 (!%p644_p11), %vm6037_vm10, %v6036_v46  ;;  %s6244_s9 = scalar_lea.vmem (!%p644_p11), [#allocation2], %s4189_s28  ;;  %v654_v1 = vld [vmem:[%s6968_s1] sm:$0x1] (!%p644_p11)  ;;  %v4234_v18 = vld [vmem:[%s6968_s1 + $0x2] sm:$0x1] (!%p644_p11)  ;;  %vm1194_vm13 = vcmp.ge.s32.totalorder (!%p644_p11), %v646_v43, 26 }
  0xc5   : > { %v5747_v47 = vld [vmem:[%s6244_s9 - $0x34] sm:$0xff] (!%p644_p11)   ;;  %5746 = vset.pattern.permute.xlu0 (!%p644_p11), %v6038_v48  ;;  %v5748_v49 = vld [vmem:[%s6244_s9 - $0x68] sm:$0xff] (!%p644_p11)   ;;  %v5750_v51 = vld [vmem:[%s6244_s9 - $0x60] sm:$0xff] (!%p644_p11)   ;;  %vm1195_vm14 = vcmp.lt.s32.totalorder (!%p644_p11), %v646_v43, 154  ;;  %vm1191_vm15 = vcmask (!%p644_p11), 211968  }
  0xc6   : > { %1178 = vperm.xlu0 (!%p644_p11), %5746, %v6223_v42   ;;  %5095 = vmatpush3.bf16.msra.mxu0 (!%p644_p11), %v5747_v47  ;;  %v5749_v50 = vld [vmem:[%s6244_s9 - $0x2c] sm:$0xff] (!%p644_p11)   ;;  %v5751_v52 = vld [vmem:[%s6244_s9 - $0x24] sm:$0xff] (!%p644_p11)   ;;  %v5752_v53 = vld [vmem:[%s6244_s9 - $0x58] sm:$0xff] (!%p644_p11)  }
  0xc7   : > { %5113 = vmatpush3.bf16.msra.mxu1 (!%p644_p11), %v5748_v49  ;;  %5096 = vmatprep.subr.bf16.mxu0 (!%p644_p11), %v6036_v46  ;;  %v5753_v54 = vld [vmem:[%s6244_s9 - $0x1c] sm:$0xff] (!%p644_p11)   ;;  %v5754_v55 = vld [vmem:[%s6244_s9 - $0x50] sm:$0xff] (!%p644_p11)   ;;  %v5756_v57 = vld [vmem:[%s6244_s9 - $0x48] sm:$0xff] (!%p644_p11)  }
  0xc8   : > { %5114 = vmatprep.subr.bf16.mxu1 (!%p644_p11), %v6036_v46  ;;  %v5755_v56 = vld [vmem:[%s6244_s9 - $0x14] sm:$0xff] (!%p644_p11)   ;;  %v5759_v58 = vld [vmem:[%s6244_s9 - $0x4] ss:$0 sps:$4 sm:$0x33] (!%p644_p11)   ;;  %v5757_v59 = vld [vmem:[%s6244_s9 - $0xc] sm:$0xff] (!%p644_p11)  }
  0xc9   : > { %v5760_v60 = vld [vmem:[%s6244_s9 - $0x38] ss:$0 sps:$4 sm:$0x33] (!%p644_p11)   ;;  %v5758_v61 = vld [vmem:[%s6244_s9 - $0x40] sm:$0xff] (!%p644_p11)   ;;  %v735_v62 = vsel (!%p644_p11), %vm733_vm11, %v5759_v58, 0  ;;  %v5762_v3 = vld [vmem:[%s6244_s9 + $0x34] sm:$0xff] (!%p644_p11)  }
  0xca   : > { %5097 = vmatpush3.bf16.msra.mxu0 %v5749_v50  ;;  %v820_v63 = vsel %vm733_vm11, %v5760_v60, 0  ;;  %v5761_v2 = vld [vmem:[%s6244_s9] sm:$0xff]   ;;  %v5763_v4 = vld [vmem:[%s6244_s9 + $0x8] sm:$0xff]   ;;  %v5765_v6 = vld [vmem:[%s6244_s9 + $0x10] sm:$0xff]  }
  0xcb   : > { %5115 = vmatpush3.bf16.msra.mxu1 %v5750_v51  ;;  %5098 = vmatprep.subr.bf16.mxu0 %v6036_v46  ;;  %v5764_v5 = vld [vmem:[%s6244_s9 + $0x3c] sm:$0xff]   ;;  %v5766_v7 = vld [vmem:[%s6244_s9 + $0x44] sm:$0xff]   ;;  %v5768_v9 = vld [vmem:[%s6244_s9 + $0x4c] sm:$0xff]  }
  0xcc   : > { %5116 = vmatprep.subr.bf16.mxu1 %v6036_v46  ;;  %v5767_v8 = vld [vmem:[%s6244_s9 + $0x18] sm:$0xff]   ;;  %v5769_v10 = vld [vmem:[%s6244_s9 + $0x20] sm:$0xff]   ;;  %v5771_v12 = vld [vmem:[%s6244_s9 + $0x28] sm:$0xff]  }
  0xcd   : > { %v5770_v11 = vld [vmem:[%s6244_s9 + $0x54] sm:$0xff]   ;;  %v5772_v13 = vld [vmem:[%s6244_s9 + $0x5c] sm:$0xff]   ;;  %v5773_v14 = vld [vmem:[%s6244_s9 + $0x30] ss:$0 sps:$4 sm:$0x33]  }
  0xce   : > { %5099 = vmatpush3.bf16.msra.mxu0 %v5751_v52  ;;  %v5774_v15 = vld [vmem:[%s6244_s9 + $0x64] ss:$0 sps:$4 sm:$0x33]   ;;  %v923_v16 = vsel %vm733_vm11, %v5773_v14, 0  ;;  %v5775_v19 = vld [vmem:[%s6244_s9 + $0x68] sm:$0xff]   ;;  %v5776_v21 = vld [vmem:[%s6244_s9 + $0x70] sm:$0xff]  }
  0xcf   : > { %5117 = vmatpush3.bf16.msra.mxu1 %v5752_v53  ;;  %5100 = vmatprep.subr.bf16.mxu0 %v6036_v46  ;;  %v1028_v17 = vsel %vm733_vm11, %v5774_v15, 0  ;;  %v4245_v20 = vld [vmem:[%s6968_s1 + $0x3] sm:$0x1]  ;;  %v5777_v22 = vld [vmem:[%s6244_s9 + $0x78] sm:$0xff]   ;;  %v5779_v24 = vld [vmem:[%s6244_s9 + $0x88] sm:$0xff]   ;;  %v1182_v53 = vshrl.u32 %v646_v43, 7 }
  0xd0   : > { %5118 = vmatprep.subr.bf16.mxu1 %v6036_v46  ;;  %v5778_v23 = vld [vmem:[%s6244_s9 + $0x80] sm:$0xff]   ;;  %v5780_v25 = vld [vmem:[%s6244_s9 + $0x90] sm:$0xff]   ;;  %v5781_v26 = vld [vmem:[%s6244_s9 + $0x98] ss:$0 sps:$4 sm:$0x33]  }
  0xd1   : > { %v1133_v27 = vsel %vm733_vm11, %v5781_v26, 0  ;;  %v4268_v28 = vld [vmem:[%s6968_s1 + $0x4] sm:$0x1]  ;;  %vm1196_vm0 = vmand %vm1194_vm13, %vm1195_vm14 }
  0xd2   : > { %5101 = vmatpush3.bf16.msra.mxu0 %v5753_v54  ;;  %v1183_v54 = vsub.s32 0, %v1182_v53 }
  0xd3   : > { %5119 = vmatpush3.bf16.msra.mxu1 %v5754_v55  ;;  %5102 = vmatprep.subr.bf16.mxu0 %v6036_v46 }
  0xd4   : > { %5120 = vmatprep.subr.bf16.mxu1 %v6036_v46 }
  0xd6   : > { %5103 = vmatpush3.bf16.msra.mxu0 %v5755_v56 }
  0xd7   : > { %5121 = vmatpush3.bf16.msra.mxu1 %v5756_v57  ;;  %5104 = vmatprep.subr.bf16.mxu0 %v6036_v46 }
  0xd8   : > { %5122 = vmatprep.subr.bf16.mxu1 %v6036_v46 }
  0xda   : > { %5105 = vmatpush3.bf16.msra.mxu0 %v5757_v59 }
  0xdb   : > { %5123 = vmatpush3.bf16.msra.mxu1 %v5758_v61  ;;  %5106 = vmatprep.subr.bf16.mxu0 %v6036_v46 }
  0xdc   : > { %5124 = vmatprep.subr.bf16.mxu1 %v6036_v46 }
  0xde   : > { %5107 = vmatpush3.bf16.msra.mxu0 %v735_v62 }
  0xdf   : > { %5125 = vmatpush3.bf16.msra.mxu1 %v820_v63  ;;  %5130 = vmatprep.subr.bf16.mxu0 %v6036_v46 }
  0xe0   : > { %5148 = vmatprep.subr.bf16.mxu1 %v6036_v46 }
  0xe1   : > { %5109 = vmatmul.mubr.msk.bf16.vlgmr.msra.gmra.mrb[0].mxu0 %vm729_vm12, %v4203_v0 }
  0xe2   : > { %5127 = vmatmul.mubr.msk.bf16.vlgmr.msra.gmra.mrb[0].mxu1 %vm729_vm12, %v654_v1  ;;  %5131 = vmatpush3.bf16.msra.mxu0 %v5761_v2 }
  0xe3   : > { %5149 = vmatpush3.bf16.msra.mxu1 %v5762_v3  ;;  %5132 = vmatprep.subr.bf16.mxu0 %v6036_v46 }
  0xe4   : > { %5150 = vmatprep.subr.bf16.mxu1 %v6036_v46  ;;  %5144 = vmatprep.mubr.msk.bf16.mxu0 %vm6037_vm10, %v6036_v46 }
  0xe5   : > { %5162 = vmatprep.mubr.msk.bf16.mxu1 %vm6037_vm10, %v6036_v46 }
  0xe6   : > { %5133 = vmatpush3.bf16.msra.mxu0 %v5763_v4 }
  0xe7   : > { %5151 = vmatpush3.bf16.msra.mxu1 %v5764_v5  ;;  %5134 = vmatprep.subr.bf16.mxu0 %v6036_v46 }
  0xe8   : > { %5152 = vmatprep.subr.bf16.mxu1 %v6036_v46 }
  0xea   : > { %5135 = vmatpush3.bf16.msra.mxu0 %v5765_v6 }
  0xeb   : > { %5153 = vmatpush3.bf16.msra.mxu1 %v5766_v7  ;;  %5136 = vmatprep.subr.bf16.mxu0 %v6036_v46 }
  0xec   : > { %5154 = vmatprep.subr.bf16.mxu1 %v6036_v46 }
  0xee   : > { %5137 = vmatpush3.bf16.msra.mxu0 %v5767_v8 }
  0xef   : > { %5155 = vmatpush3.bf16.msra.mxu1 %v5768_v9  ;;  %5138 = vmatprep.subr.bf16.mxu0 %v6036_v46 }
  0xf0   : > { %5156 = vmatprep.subr.bf16.mxu1 %v6036_v46 }
  0xf2   : > { %5139 = vmatpush3.bf16.msra.mxu0 %v5769_v10 }
  0xf3   : > { %5157 = vmatpush3.bf16.msra.mxu1 %v5770_v11  ;;  %5140 = vmatprep.subr.bf16.mxu0 %v6036_v46 }
  0xf4   : > { %5158 = vmatprep.subr.bf16.mxu1 %v6036_v46 }
  0xf6   : > { %5141 = vmatpush3.bf16.msra.mxu0 %v5771_v12 }
  0xf7   : > { %5159 = vmatpush3.bf16.msra.mxu1 %v5772_v13  ;;  %5142 = vmatprep.subr.bf16.mxu0 %v6036_v46 }
  0xf8   : > { %5160 = vmatprep.subr.bf16.mxu1 %v6036_v46 }
  0xfa   : > { %5143 = vmatpush3.bf16.msra.mxu0 %v923_v16 }
  0xfb   : > { %5161 = vmatpush3.bf16.msra.mxu1 %v1028_v17  ;;  %5166 = vmatprep.subr.bf16.mxu0 %v6036_v46 }
  0xfd   : > { %5145 = vmatmul.mubr.msk.bf16.vlgmr.msra.gmra.mrb[4].mxu0 %vm729_vm12, %v4234_v18 }
  0xfe   : > { %5167 = vmatpush3.bf16.msra.mxu0 %v5775_v19  ;;  %5163 = vmatmul.mubr.msk.bf16.vlgmr.msra.gmra.mrb[4].mxu1 %vm729_vm12, %v4245_v20 }
  0xff   : > { %5168 = vmatprep.subr.bf16.mxu0 %v6036_v46  ;;  %5180 = vmatprep.mubr.msk.bf16.mxu0 %vm6037_vm10, %v6036_v46 }
 0x102   : > { %5169 = vmatpush3.bf16.msra.mxu0 %v5776_v21 }
 0x103   : > { %5170 = vmatprep.subr.bf16.mxu0 %v6036_v46 }
 0x106   : > { %5171 = vmatpush3.bf16.msra.mxu0 %v5777_v22 }
 0x107   : > { %5172 = vmatprep.subr.bf16.mxu0 %v6036_v46 }
 0x10a   : > { %5173 = vmatpush3.bf16.msra.mxu0 %v5778_v23 }
 0x10b   : > { %5174 = vmatprep.subr.bf16.mxu0 %v6036_v46 }
 0x10e   : > { %5175 = vmatpush3.bf16.msra.mxu0 %v5779_v24 }
 0x10f   : > { %5176 = vmatprep.subr.bf16.mxu0 %v6036_v46 }
 0x112   : > { %5177 = vmatpush3.bf16.msra.mxu0 %v5780_v25 }
 0x113   : > { %5178 = vmatprep.subr.bf16.mxu0 %v6036_v46 }
 0x116   : > { %5179 = vmatpush3.bf16.msra.mxu0 %v1133_v27 }
 0x119   : > { %5181 = vmatmul.mubr.msk.bf16.vlgmr.msra.gmra.mrb[8].mxu0 %vm729_vm12, %v4268_v28 }
 0x145   : > { %v1179_v55 = vpop.permute.xlu0 %1178 }
 0x146   : > { %v1184_v56 = vrot.slane %v1179_v55, %v1183_v54 }
 0x1b4   : > { %v771_v29 = vpop.f32.mrb[0].mxu0 }
 0x1b5   : > { %v5110_v30 = vpop.f32.mrb[1].mxu0  ;;  %v856_v31 = vpop.f32.mrb[0].mxu1 }
 0x1b6   : > { %v857_v32 = vadd.f32 %v856_v31, %v771_v29  ;;  %v774_v33 = vpop.f32.mrb[2].mxu0  ;;  %v5128_v34 = vpop.f32.mrb[1].mxu1 }
 0x1b7   : > { %v5111_v35 = vpop.f32.mrb[3].mxu0  ;;  %v859_v36 = vpop.f32.mrb[2].mxu1 }
 0x1b8   : > { %v5129_v37 = vpop.f32.mrb[3].mxu1 }
 0x1d0   : > { %v959_v38 = vpop.f32.mrb[4].mxu0 }
 0x1d1   : > { %v965_v39 = vadd.f32 %v959_v38, %v857_v32  ;;  %v5146_v40 = vpop.f32.mrb[5].mxu0  ;;  %v1064_v46 = vpop.f32.mrb[4].mxu1 }
 0x1d2   : > { %v962_v47 = vpop.f32.mrb[6].mxu0  ;;  %v5164_v48 = vpop.f32.mrb[5].mxu1 }
 0x1d3   : > { %v1070_v49 = vadd.f32 %v1064_v46, %v965_v39  ;;  %v5147_v50 = vpop.f32.mrb[7].mxu0  ;;  %v1067_v51 = vpop.f32.mrb[6].mxu1 }
 0x1d4   : > { %v5165_v52 = vpop.f32.mrb[7].mxu1 }
 0x1ec   : > { %v1169_v57 = vpop.f32.mrb[8].mxu0 }
 0x1ed   : > { %v1175_v58 = vadd.f32 %v1169_v57, %v1070_v49  ;;  %v5182_v59 = vpop.f32.mrb[9].mxu0 }
 0x1ee   : > { %v1172_v60 = vpop.f32.mrb[10].mxu0 }
 0x1ef   : > { %v5183_v61 = vpop.f32.mrb[11].mxu0  ;;  %v1185_v62 = vadd.f32 %v1184_v56, %v1175_v58 }
 0x1f1   : > { %v1186_v63 = vsel %vm639_vm8, %v1185_v62, 0.0 }
 0x1f2   : > { %1188 = vrot.lane.b32.xlu0 %v1186_v63, %s6039_s18 }
 0x264   : > { %v1189_v0 = vpop.permute.xlu0 %1188 }
 0x265   : > { %v1190_v1 = vrot.slane %v1189_v0, 7 }
 0x267   : > { %v1192_v2 = vsel %vm1191_vm15, %v1190_v1, %v1189_v0 }
 0x268   : > { %1197 = vst.msk [vmem:[%s6133_s8] sm:$0x3] %vm1196_vm0, %v1192_v2 }
 0x269 PF: > { %s1198_s24 = sadd.s32 1, %s6121_s23  ;;  %4291 = vst.msk [vmem:[%s6133_s8 + $0x2] sm:$0x3] %vm6229_vm9, %v6035_v45 }
 0x26a   : > { %p1199_p12 = scmp.ge.s32.totalorder %s1198_s24, 2  ;;  %p1200_p13 = scmp.lt.s32.totalorder %s1198_s24, 10 }
 0x26c   : > { %p1201_p0 = pnand %p1200_p13, %p1199_p12 }
 0x26d   : > { %s4292_s25 = smul.u32 (!%p1201_p0), 312, %s5988_s17  ;;  %v6040_v3 = vmov (!%p1201_p0), 0.0   ;;  %vm6041_vm1 = vmmov (!%p1201_p0), 0   ;;  %v6042_v5 = vmov (!%p1201_p0), 0   ;;  %vm1286_vm2 = vcmask (!%p1201_p0), 1041408   ;;  %s6043_s12 = smov (!%p1201_p0), 26  }
 0x26e   : > { %1206 = sbr.rel (%p1201_p0) target bundleno = 1044 (0x414), region = 55  ;;  %5184 = vmatprep.subr.bf16.mxu0 (!%p1201_p0), %v6040_v3  ;;  %5202 = vmatprep.subr.bf16.mxu1 (!%p1201_p0), %v6040_v3  ;;  %v4306_v21 = vld [vmem:[%s6968_s1 + $0x1] sm:$0x1] (!%p1201_p0)  ;;  %vm1282_vm3 = vcmask (!%p1201_p0), 818176   ;;  %v1208_v22 = vld [vmem:[%s6968_s1] sm:$0x1] (!%p1201_p0) }
 0x26f   : > { %5198 = vmatprep.mubr.msk.bf16.mxu0 (!%p1201_p0), %vm6041_vm1, %v6040_v3  ;;  %5216 = vmatprep.mubr.msk.bf16.mxu1 (!%p1201_p0), %vm6041_vm1, %v6040_v3  ;;  %s6364_s26 = scalar_lea.vmem (!%p1201_p0), [#allocation2], %s4292_s25  ;;  %v4325_v39 = vld [vmem:[%s6968_s1 + $0x2] sm:$0x1] (!%p1201_p0)  ;;  %v4348_v46 = vld [vmem:[%s6968_s1 + $0x3] sm:$0x1] (!%p1201_p0)  ;;  %vm1747_vm4 = vcmp.ge.s32.totalorder (!%p1201_p0), %v646_v43, 26 }
 0x270   : > { %v5783_v4 = vld [vmem:[%s6364_s26] sm:$0xff] (!%p1201_p0)   ;;  %5782 = vset.pattern.permute.xlu0 (!%p1201_p0), %v6042_v5  ;;  %v5784_v6 = vld [vmem:[%s6364_s26 - $0x34] sm:$0xff] (!%p1201_p0)   ;;  %v5786_v8 = vld [vmem:[%s6364_s26 - $0x2c] sm:$0xff] (!%p1201_p0)   ;;  %vm1748_vm5 = vcmp.lt.s32.totalorder (!%p1201_p0), %v646_v43, 154  ;;  %vm1744_vm6 = vcmask (!%p1201_p0), 211968  }
 0x271   : > { %1731 = vperm.xlu0 (!%p1201_p0), %5782, %v6223_v42   ;;  %5185 = vmatpush3.bf16.msra.mxu0 (!%p1201_p0), %v5783_v4  ;;  %v5785_v7 = vld [vmem:[%s6364_s26 + $0x8] sm:$0xff] (!%p1201_p0)   ;;  %v5787_v9 = vld [vmem:[%s6364_s26 + $0x10] sm:$0xff] (!%p1201_p0)   ;;  %v5788_v10 = vld [vmem:[%s6364_s26 - $0x24] sm:$0xff] (!%p1201_p0)  }
 0x272   : > { %5203 = vmatpush3.bf16.msra.mxu1 (!%p1201_p0), %v5784_v6  ;;  %5186 = vmatprep.subr.bf16.mxu0 (!%p1201_p0), %v6040_v3  ;;  %v5789_v11 = vld [vmem:[%s6364_s26 + $0x18] sm:$0xff] (!%p1201_p0)   ;;  %v5790_v12 = vld [vmem:[%s6364_s26 - $0x1c] sm:$0xff] (!%p1201_p0)   ;;  %v5792_v14 = vld [vmem:[%s6364_s26 - $0x14] sm:$0xff] (!%p1201_p0)  }
 0x273   : > { %5204 = vmatprep.subr.bf16.mxu1 (!%p1201_p0), %v6040_v3  ;;  %v5791_v13 = vld [vmem:[%s6364_s26 + $0x20] sm:$0xff] (!%p1201_p0)   ;;  %v5795_v15 = vld [vmem:[%s6364_s26 + $0x30] ss:$0 sps:$4 sm:$0x33] (!%p1201_p0)   ;;  %v5793_v16 = vld [vmem:[%s6364_s26 + $0x28] sm:$0xff] (!%p1201_p0)  }
 0x274   : > { %v5796_v17 = vld [vmem:[%s6364_s26 - $0x4] ss:$0 sps:$4 sm:$0x33] (!%p1201_p0)   ;;  %v5794_v18 = vld [vmem:[%s6364_s26 - $0xc] sm:$0xff] (!%p1201_p0)   ;;  %v1288_v19 = vsel (!%p1201_p0), %vm1286_vm2, %v5795_v15, 0  ;;  %v5798_v24 = vld [vmem:[%s6364_s26 + $0x68] sm:$0xff] (!%p1201_p0)  }
 0x275   : > { %5187 = vmatpush3.bf16.msra.mxu0 %v5785_v7  ;;  %v1373_v20 = vsel %vm1286_vm2, %v5796_v17, 0  ;;  %v5797_v23 = vld [vmem:[%s6364_s26 + $0x34] sm:$0xff]   ;;  %v5799_v25 = vld [vmem:[%s6364_s26 + $0x3c] sm:$0xff]   ;;  %v5801_v27 = vld [vmem:[%s6364_s26 + $0x44] sm:$0xff]  }
 0x276   : > { %5205 = vmatpush3.bf16.msra.mxu1 %v5786_v8  ;;  %5188 = vmatprep.subr.bf16.mxu0 %v6040_v3  ;;  %v5800_v26 = vld [vmem:[%s6364_s26 + $0x70] sm:$0xff]   ;;  %v5802_v28 = vld [vmem:[%s6364_s26 + $0x78] sm:$0xff]   ;;  %v5804_v30 = vld [vmem:[%s6364_s26 + $0x80] sm:$0xff]  }
 0x277   : > { %5206 = vmatprep.subr.bf16.mxu1 %v6040_v3  ;;  %v5803_v29 = vld [vmem:[%s6364_s26 + $0x4c] sm:$0xff]   ;;  %v5805_v31 = vld [vmem:[%s6364_s26 + $0x54] sm:$0xff]   ;;  %v5807_v33 = vld [vmem:[%s6364_s26 + $0x5c] sm:$0xff]  }
 0x278   : > { %v5806_v32 = vld [vmem:[%s6364_s26 + $0x88] sm:$0xff]   ;;  %v5808_v34 = vld [vmem:[%s6364_s26 + $0x90] sm:$0xff]   ;;  %v5809_v35 = vld [vmem:[%s6364_s26 + $0x64] ss:$0 sps:$4 sm:$0x33]  }
 0x279   : > { %5189 = vmatpush3.bf16.msra.mxu0 %v5787_v9  ;;  %v5810_v36 = vld [vmem:[%s6364_s26 + $0x98] ss:$0 sps:$4 sm:$0x33]   ;;  %v1476_v37 = vsel %vm1286_vm2, %v5809_v35, 0  ;;  %v5811_v40 = vld [vmem:[%s6364_s26 + $0x9c] sm:$0xff]   ;;  %v5812_v47 = vld [vmem:[%s6364_s26 + $0xa4] sm:$0xff]  }
 0x27a   : > { %5207 = vmatpush3.bf16.msra.mxu1 %v5788_v10  ;;  %5190 = vmatprep.subr.bf16.mxu0 %v6040_v3  ;;  %v1581_v38 = vsel %vm1286_vm2, %v5810_v36, 0  ;;  %v5813_v48 = vld [vmem:[%s6364_s26 + $0xac] sm:$0xff]   ;;  %v5814_v49 = vld [vmem:[%s6364_s26 + $0xb4] sm:$0xff]   ;;  %v5815_v50 = vld [vmem:[%s6364_s26 + $0xbc] sm:$0xff]   ;;  %v1735_v10 = vshrl.u32 %v646_v43, 7 }
 0x27b   : > { %5208 = vmatprep.subr.bf16.mxu1 %v6040_v3  ;;  %v5816_v51 = vld [vmem:[%s6364_s26 + $0xc4] sm:$0xff]   ;;  %v5817_v52 = vld [vmem:[%s6364_s26 + $0xcc] ss:$0 sps:$4 sm:$0x33]   ;;  %vm1749_vm7 = vmand %vm1747_vm4, %vm1748_vm5 }
 0x27c   : > { %v1686_v53 = vsel %vm1286_vm2, %v5817_v52, 0  ;;  %v4371_v54 = vld [vmem:[%s6968_s1 + $0x4] sm:$0x1] }
 0x27d   : > { %5191 = vmatpush3.bf16.msra.mxu0 %v5789_v11  ;;  %v1736_v11 = vsub.s32 0, %v1735_v10 }
 0x27e   : > { %5209 = vmatpush3.bf16.msra.mxu1 %v5790_v12  ;;  %5192 = vmatprep.subr.bf16.mxu0 %v6040_v3 }
 0x27f   : > { %5210 = vmatprep.subr.bf16.mxu1 %v6040_v3 }
 0x281   : > { %5193 = vmatpush3.bf16.msra.mxu0 %v5791_v13 }
 0x282   : > { %5211 = vmatpush3.bf16.msra.mxu1 %v5792_v14  ;;  %5194 = vmatprep.subr.bf16.mxu0 %v6040_v3 }
 0x283   : > { %5212 = vmatprep.subr.bf16.mxu1 %v6040_v3 }
 0x285   : > { %5195 = vmatpush3.bf16.msra.mxu0 %v5793_v16 }
 0x286   : > { %5213 = vmatpush3.bf16.msra.mxu1 %v5794_v18  ;;  %5196 = vmatprep.subr.bf16.mxu0 %v6040_v3 }
 0x287   : > { %5214 = vmatprep.subr.bf16.mxu1 %v6040_v3 }
 0x289   : > { %5197 = vmatpush3.bf16.msra.mxu0 %v1288_v19 }
 0x28a   : > { %5215 = vmatpush3.bf16.msra.mxu1 %v1373_v20  ;;  %5220 = vmatprep.subr.bf16.mxu0 %v6040_v3 }
 0x28b   : > { %5238 = vmatprep.subr.bf16.mxu1 %v6040_v3 }
 0x28c   : > { %5199 = vmatmul.mubr.msk.bf16.vlgmr.msra.gmra.mrb[0].mxu0 %vm1282_vm3, %v4306_v21 }
 0x28d   : > { %5217 = vmatmul.mubr.msk.bf16.vlgmr.msra.gmra.mrb[0].mxu1 %vm1282_vm3, %v1208_v22  ;;  %5221 = vmatpush3.bf16.msra.mxu0 %v5797_v23 }
 0x28e   : > { %5239 = vmatpush3.bf16.msra.mxu1 %v5798_v24  ;;  %5222 = vmatprep.subr.bf16.mxu0 %v6040_v3 }
 0x28f   : > { %5240 = vmatprep.subr.bf16.mxu1 %v6040_v3  ;;  %5234 = vmatprep.mubr.msk.bf16.mxu0 %vm6041_vm1, %v6040_v3 }
 0x290   : > { %5252 = vmatprep.mubr.msk.bf16.mxu1 %vm6041_vm1, %v6040_v3 }
 0x291   : > { %5223 = vmatpush3.bf16.msra.mxu0 %v5799_v25 }
 0x292   : > { %5241 = vmatpush3.bf16.msra.mxu1 %v5800_v26  ;;  %5224 = vmatprep.subr.bf16.mxu0 %v6040_v3 }
 0x293   : > { %5242 = vmatprep.subr.bf16.mxu1 %v6040_v3 }
 0x295   : > { %5225 = vmatpush3.bf16.msra.mxu0 %v5801_v27 }
 0x296   : > { %5243 = vmatpush3.bf16.msra.mxu1 %v5802_v28  ;;  %5226 = vmatprep.subr.bf16.mxu0 %v6040_v3 }
 0x297   : > { %5244 = vmatprep.subr.bf16.mxu1 %v6040_v3 }
 0x299   : > { %5227 = vmatpush3.bf16.msra.mxu0 %v5803_v29 }
 0x29a   : > { %5245 = vmatpush3.bf16.msra.mxu1 %v5804_v30  ;;  %5228 = vmatprep.subr.bf16.mxu0 %v6040_v3 }
 0x29b   : > { %5246 = vmatprep.subr.bf16.mxu1 %v6040_v3 }
 0x29d   : > { %5229 = vmatpush3.bf16.msra.mxu0 %v5805_v31 }
 0x29e   : > { %5247 = vmatpush3.bf16.msra.mxu1 %v5806_v32  ;;  %5230 = vmatprep.subr.bf16.mxu0 %v6040_v3 }
 0x29f   : > { %5248 = vmatprep.subr.bf16.mxu1 %v6040_v3 }
 0x2a1   : > { %5231 = vmatpush3.bf16.msra.mxu0 %v5807_v33 }
 0x2a2   : > { %5249 = vmatpush3.bf16.msra.mxu1 %v5808_v34  ;;  %5232 = vmatprep.subr.bf16.mxu0 %v6040_v3 }
 0x2a3   : > { %5250 = vmatprep.subr.bf16.mxu1 %v6040_v3 }
 0x2a5   : > { %5233 = vmatpush3.bf16.msra.mxu0 %v1476_v37 }
 0x2a6   : > { %5251 = vmatpush3.bf16.msra.mxu1 %v1581_v38  ;;  %5256 = vmatprep.subr.bf16.mxu0 %v6040_v3 }
 0x2a8   : > { %5235 = vmatmul.mubr.msk.bf16.vlgmr.msra.gmra.mrb[4].mxu0 %vm1282_vm3, %v4325_v39 }
 0x2a9   : > { %5257 = vmatpush3.bf16.msra.mxu0 %v5811_v40  ;;  %5253 = vmatmul.mubr.msk.bf16.vlgmr.msra.gmra.mrb[4].mxu1 %vm1282_vm3, %v4348_v46 }
 0x2aa   : > { %5258 = vmatprep.subr.bf16.mxu0 %v6040_v3  ;;  %5270 = vmatprep.mubr.msk.bf16.mxu0 %vm6041_vm1, %v6040_v3 }
 0x2ad   : > { %5259 = vmatpush3.bf16.msra.mxu0 %v5812_v47 }
 0x2ae   : > { %5260 = vmatprep.subr.bf16.mxu0 %v6040_v3 }
 0x2b1   : > { %5261 = vmatpush3.bf16.msra.mxu0 %v5813_v48 }
 0x2b2   : > { %5262 = vmatprep.subr.bf16.mxu0 %v6040_v3 }
 0x2b5   : > { %5263 = vmatpush3.bf16.msra.mxu0 %v5814_v49 }
 0x2b6   : > { %5264 = vmatprep.subr.bf16.mxu0 %v6040_v3 }
 0x2b9   : > { %5265 = vmatpush3.bf16.msra.mxu0 %v5815_v50 }
 0x2ba   : > { %5266 = vmatprep.subr.bf16.mxu0 %v6040_v3 }
 0x2bd   : > { %5267 = vmatpush3.bf16.msra.mxu0 %v5816_v51 }
 0x2be   : > { %5268 = vmatprep.subr.bf16.mxu0 %v6040_v3 }
 0x2c1   : > { %5269 = vmatpush3.bf16.msra.mxu0 %v1686_v53 }
 0x2c4   : > { %5271 = vmatmul.mubr.msk.bf16.vlgmr.msra.gmra.mrb[8].mxu0 %vm1282_vm3, %v4371_v54 }
 0x2f0   : > { %v1732_v12 = vpop.permute.xlu0 %1731 }
 0x2f1   : > { %v1737_v13 = vrot.slane %v1732_v12, %v1736_v11 }
 0x35f   : > { %v1324_v55 = vpop.f32.mrb[0].mxu0 }
 0x360   : > { %v5200_v56 = vpop.f32.mrb[1].mxu0  ;;  %v1409_v57 = vpop.f32.mrb[0].mxu1 }
 0x361   : > { %v1410_v58 = vadd.f32 %v1409_v57, %v1324_v55  ;;  %v1327_v59 = vpop.f32.mrb[2].mxu0  ;;  %v5218_v60 = vpop.f32.mrb[1].mxu1 }
 0x362   : > { %v5201_v61 = vpop.f32.mrb[3].mxu0  ;;  %v1412_v62 = vpop.f32.mrb[2].mxu1 }
 0x363   : > { %v5219_v63 = vpop.f32.mrb[3].mxu1 }
 0x37b   : > { %v1512_v0 = vpop.f32.mrb[4].mxu0 }
 0x37c   : > { %v1518_v1 = vadd.f32 %v1512_v0, %v1410_v58  ;;  %v5236_v2 = vpop.f32.mrb[5].mxu0  ;;  %v1617_v3 = vpop.f32.mrb[4].mxu1 }
 0x37d   : > { %v1515_v4 = vpop.f32.mrb[6].mxu0  ;;  %v5254_v5 = vpop.f32.mrb[5].mxu1 }
 0x37e   : > { %v1623_v6 = vadd.f32 %v1617_v3, %v1518_v1  ;;  %v5237_v7 = vpop.f32.mrb[7].mxu0  ;;  %v1620_v8 = vpop.f32.mrb[6].mxu1 }
 0x37f   : > { %v5255_v9 = vpop.f32.mrb[7].mxu1 }
 0x397   : > { %v1722_v14 = vpop.f32.mrb[8].mxu0 }
 0x398   : > { %v1728_v15 = vadd.f32 %v1722_v14, %v1623_v6  ;;  %v5272_v16 = vpop.f32.mrb[9].mxu0 }
 0x399   : > { %v1725_v17 = vpop.f32.mrb[10].mxu0 }
 0x39a   : > { %v5273_v18 = vpop.f32.mrb[11].mxu0  ;;  %v1738_v19 = vadd.f32 %v1737_v13, %v1728_v15 }
 0x39c   : > { %v1739_v20 = vsel %vm639_vm8, %v1738_v19, 0.0 }
 0x39d   : > { %1741 = vrot.lane.b32.xlu0 %v1739_v20, %s6043_s12 }
 0x40f   : > { %v1742_v21 = vpop.permute.xlu0 %1741 }
 0x410   : > { %v1743_v22 = vrot.slane %v1742_v21, 7 }
 0x412   : > { %v1745_v23 = vsel %vm1744_vm6, %v1743_v22, %v1742_v21 }
 0x413   : > { %4394 = vst.msk [vmem:[%s6133_s8 + $0x2] sm:$0x3] %vm1749_vm7, %v1745_v23 }
 0x414 PF: > { %s1751_s13 = sadd.s32 2, %s6121_s23  ;;  %4395 = vst.msk [vmem:[%s6133_s8 + $0x4] sm:$0x3] %vm6229_vm9, %v6035_v45 }
 0x415   : > { %p1752_p1 = scmp.ge.s32.totalorder %s1751_s13, 2  ;;  %p1753_p2 = scmp.lt.s32.totalorder %s1751_s13, 10 }
 0x417   : > { %p1754_p3 = pnand %p1753_p2, %p1752_p1 }
 0x418   : > { %s4853_s14 = smul.u32 (!%p1754_p3), 312, %s5988_s17  ;;  %v6044_v24 = vmov (!%p1754_p3), 0.0   ;;  %vm6045_vm10 = vmmov (!%p1754_p3), 0   ;;  %v6046_v26 = vmov (!%p1754_p3), 0   ;;  %vm1838_vm11 = vcmask (!%p1754_p3), 1041408   ;;  %s6047_s27 = smov (!%p1754_p3), 26  }
 0x419   : > { %1759 = sbr.rel (%p1754_p3) target bundleno = 1471 (0x5bf), region = 59  ;;  %5274 = vmatprep.subr.bf16.mxu0 (!%p1754_p3), %v6044_v24  ;;  %5292 = vmatprep.subr.bf16.mxu1 (!%p1754_p3), %v6044_v24  ;;  %v4398_v47 = vld [vmem:[%s6968_s1 + $0x1] sm:$0x1] (!%p1754_p3)  ;;  %vm1834_vm12 = vcmask (!%p1754_p3), 818176   ;;  %v1760_v48 = vld [vmem:[%s6968_s1] sm:$0x1] (!%p1754_p3) }
 0x41a   : > { %5288 = vmatprep.mubr.msk.bf16.mxu0 (!%p1754_p3), %vm6045_vm10, %v6044_v24  ;;  %5306 = vmatprep.mubr.msk.bf16.mxu1 (!%p1754_p3), %vm6045_vm10, %v6044_v24  ;;  %s6484_s15 = scalar_lea.vmem (!%p1754_p3), [#allocation2], %s4853_s14  ;;  %v4429_v1 = vld [vmem:[%s6968_s1 + $0x2] sm:$0x1] (!%p1754_p3)  ;;  %v4452_v3 = vld [vmem:[%s6968_s1 + $0x3] sm:$0x1] (!%p1754_p3)  ;;  %vm2299_vm13 = vcmp.ge.s32.totalorder (!%p1754_p3), %v646_v43, 26 }
 0x41b   : > { %v5819_v25 = vld [vmem:[%s6484_s15 + $0x34] sm:$0xff] (!%p1754_p3)   ;;  %5818 = vset.pattern.permute.xlu0 (!%p1754_p3), %v6046_v26  ;;  %v5820_v27 = vld [vmem:[%s6484_s15] sm:$0xff] (!%p1754_p3)   ;;  %v5822_v29 = vld [vmem:[%s6484_s15 + $0x8] sm:$0xff] (!%p1754_p3)   ;;  %vm2300_vm14 = vcmp.lt.s32.totalorder (!%p1754_p3), %v646_v43, 154  ;;  %vm2296_vm15 = vcmask (!%p1754_p3), 211968  }
 0x41c   : > { %2283 = vperm.xlu0 (!%p1754_p3), %5818, %v6223_v42   ;;  %5275 = vmatpush3.bf16.msra.mxu0 (!%p1754_p3), %v5819_v25  ;;  %v5821_v28 = vld [vmem:[%s6484_s15 + $0x3c] sm:$0xff] (!%p1754_p3)   ;;  %v5823_v30 = vld [vmem:[%s6484_s15 + $0x44] sm:$0xff] (!%p1754_p3)   ;;  %v5824_v31 = vld [vmem:[%s6484_s15 + $0x10] sm:$0xff] (!%p1754_p3)  }
 0x41d   : > { %5293 = vmatpush3.bf16.msra.mxu1 (!%p1754_p3), %v5820_v27  ;;  %5276 = vmatprep.subr.bf16.mxu0 (!%p1754_p3), %v6044_v24  ;;  %v5825_v32 = vld [vmem:[%s6484_s15 + $0x4c] sm:$0xff] (!%p1754_p3)   ;;  %v5826_v33 = vld [vmem:[%s6484_s15 + $0x18] sm:$0xff] (!%p1754_p3)   ;;  %v5828_v35 = vld [vmem:[%s6484_s15 + $0x20] sm:$0xff] (!%p1754_p3)  }
 0x41e   : > { %5294 = vmatprep.subr.bf16.mxu1 (!%p1754_p3), %v6044_v24  ;;  %v5827_v34 = vld [vmem:[%s6484_s15 + $0x54] sm:$0xff] (!%p1754_p3)   ;;  %v5831_v36 = vld [vmem:[%s6484_s15 + $0x64] ss:$0 sps:$4 sm:$0x33] (!%p1754_p3)   ;;  %v5829_v37 = vld [vmem:[%s6484_s15 + $0x5c] sm:$0xff] (!%p1754_p3)  }
 0x41f   : > { %v5832_v38 = vld [vmem:[%s6484_s15 + $0x30] ss:$0 sps:$4 sm:$0x33] (!%p1754_p3)   ;;  %v5830_v39 = vld [vmem:[%s6484_s15 + $0x28] sm:$0xff] (!%p1754_p3)   ;;  %v1840_v40 = vsel (!%p1754_p3), %vm1838_vm11, %v5831_v36, 0  ;;  %v5834_v50 = vld [vmem:[%s6484_s15 + $0x9c] sm:$0xff] (!%p1754_p3)  }
 0x420   : > { %5277 = vmatpush3.bf16.msra.mxu0 %v5821_v28  ;;  %v1925_v46 = vsel %vm1838_vm11, %v5832_v38, 0  ;;  %v5833_v49 = vld [vmem:[%s6484_s15 + $0x68] sm:$0xff]   ;;  %v5835_v51 = vld [vmem:[%s6484_s15 + $0x70] sm:$0xff]   ;;  %v5837_v53 = vld [vmem:[%s6484_s15 + $0x78] sm:$0xff]  }
 0x421   : > { %5295 = vmatpush3.bf16.msra.mxu1 %v5822_v29  ;;  %5278 = vmatprep.subr.bf16.mxu0 %v6044_v24  ;;  %v5836_v52 = vld [vmem:[%s6484_s15 + $0xa4] sm:$0xff]   ;;  %v5838_v54 = vld [vmem:[%s6484_s15 + $0xac] sm:$0xff]   ;;  %v5840_v56 = vld [vmem:[%s6484_s15 + $0xb4] sm:$0xff]  }
 0x422   : > { %5296 = vmatprep.subr.bf16.mxu1 %v6044_v24  ;;  %v5839_v55 = vld [vmem:[%s6484_s15 + $0x80] sm:$0xff]   ;;  %v5841_v57 = vld [vmem:[%s6484_s15 + $0x88] sm:$0xff]   ;;  %v5843_v59 = vld [vmem:[%s6484_s15 + $0x90] sm:$0xff]  }
 0x423   : > { %v5842_v58 = vld [vmem:[%s6484_s15 + $0xbc] sm:$0xff]   ;;  %v5844_v60 = vld [vmem:[%s6484_s15 + $0xc4] sm:$0xff]   ;;  %v5845_v61 = vld [vmem:[%s6484_s15 + $0x98] ss:$0 sps:$4 sm:$0x33]  }
 0x424   : > { %5279 = vmatpush3.bf16.msra.mxu0 %v5823_v30  ;;  %v5846_v62 = vld [vmem:[%s6484_s15 + $0xcc] ss:$0 sps:$4 sm:$0x33]   ;;  %v2028_v63 = vsel %vm1838_vm11, %v5845_v61, 0  ;;  %v5847_v2 = vld [vmem:[%s6484_s15 + $0xd0] sm:$0xff]   ;;  %v5848_v4 = vld [vmem:[%s6484_s15 + $0xd8] sm:$0xff]  }
 0x425   : > { %5297 = vmatpush3.bf16.msra.mxu1 %v5824_v31  ;;  %5280 = vmatprep.subr.bf16.mxu0 %v6044_v24  ;;  %v2133_v0 = vsel %vm1838_vm11, %v5846_v62, 0  ;;  %v5849_v5 = vld [vmem:[%s6484_s15 + $0xe0] sm:$0xff]   ;;  %v5850_v6 = vld [vmem:[%s6484_s15 + $0xe8] sm:$0xff]   ;;  %v5851_v7 = vld [vmem:[%s6484_s15 + $0xf0] sm:$0xff]   ;;  %v2287_v31 = vshrl.u32 %v646_v43, 7 }
 0x426   : > { %5298 = vmatprep.subr.bf16.mxu1 %v6044_v24  ;;  %v5852_v8 = vld [vmem:[%s6484_s15 + $0xf8] sm:$0xff]   ;;  %v5853_v9 = vld [vmem:[%s6484_s15 + $0x100] ss:$0 sps:$4 sm:$0x33]   ;;  %v4475_v11 = vld [vmem:[%s6968_s1 + $0x4] sm:$0x1] }
 0x427   : > { %v2238_v10 = vsel %vm1838_vm11, %v5853_v9, 0  ;;  %vm2301_vm0 = vmand %vm2299_vm13, %vm2300_vm14 }
 0x428   : > { %5281 = vmatpush3.bf16.msra.mxu0 %v5825_v32  ;;  %v2288_v32 = vsub.s32 0, %v2287_v31 }
 0x429   : > { %5299 = vmatpush3.bf16.msra.mxu1 %v5826_v33  ;;  %5282 = vmatprep.subr.bf16.mxu0 %v6044_v24 }
 0x42a   : > { %5300 = vmatprep.subr.bf16.mxu1 %v6044_v24 }
 0x42c   : > { %5283 = vmatpush3.bf16.msra.mxu0 %v5827_v34 }
 0x42d   : > { %5301 = vmatpush3.bf16.msra.mxu1 %v5828_v35  ;;  %5284 = vmatprep.subr.bf16.mxu0 %v6044_v24 }
 0x42e   : > { %5302 = vmatprep.subr.bf16.mxu1 %v6044_v24 }
 0x430   : > { %5285 = vmatpush3.bf16.msra.mxu0 %v5829_v37 }
 0x431   : > { %5303 = vmatpush3.bf16.msra.mxu1 %v5830_v39  ;;  %5286 = vmatprep.subr.bf16.mxu0 %v6044_v24 }
 0x432   : > { %5304 = vmatprep.subr.bf16.mxu1 %v6044_v24 }
 0x434   : > { %5287 = vmatpush3.bf16.msra.mxu0 %v1840_v40 }
 0x435   : > { %5305 = vmatpush3.bf16.msra.mxu1 %v1925_v46  ;;  %5310 = vmatprep.subr.bf16.mxu0 %v6044_v24 }
 0x436   : > { %5328 = vmatprep.subr.bf16.mxu1 %v6044_v24 }
 0x437   : > { %5289 = vmatmul.mubr.msk.bf16.vlgmr.msra.gmra.mrb[0].mxu0 %vm1834_vm12, %v4398_v47 }
 0x438   : > { %5307 = vmatmul.mubr.msk.bf16.vlgmr.msra.gmra.mrb[0].mxu1 %vm1834_vm12, %v1760_v48  ;;  %5311 = vmatpush3.bf16.msra.mxu0 %v5833_v49 }
 0x439   : > { %5329 = vmatpush3.bf16.msra.mxu1 %v5834_v50  ;;  %5312 = vmatprep.subr.bf16.mxu0 %v6044_v24 }
 0x43a   : > { %5330 = vmatprep.subr.bf16.mxu1 %v6044_v24  ;;  %5324 = vmatprep.mubr.msk.bf16.mxu0 %vm6045_vm10, %v6044_v24 }
 0x43b   : > { %5342 = vmatprep.mubr.msk.bf16.mxu1 %vm6045_vm10, %v6044_v24 }
 0x43c   : > { %5313 = vmatpush3.bf16.msra.mxu0 %v5835_v51 }
 0x43d   : > { %5331 = vmatpush3.bf16.msra.mxu1 %v5836_v52  ;;  %5314 = vmatprep.subr.bf16.mxu0 %v6044_v24 }
 0x43e   : > { %5332 = vmatprep.subr.bf16.mxu1 %v6044_v24 }
 0x440   : > { %5315 = vmatpush3.bf16.msra.mxu0 %v5837_v53 }
 0x441   : > { %5333 = vmatpush3.bf16.msra.mxu1 %v5838_v54  ;;  %5316 = vmatprep.subr.bf16.mxu0 %v6044_v24 }
 0x442   : > { %5334 = vmatprep.subr.bf16.mxu1 %v6044_v24 }
 0x444   : > { %5317 = vmatpush3.bf16.msra.mxu0 %v5839_v55 }
 0x445   : > { %5335 = vmatpush3.bf16.msra.mxu1 %v5840_v56  ;;  %5318 = vmatprep.subr.bf16.mxu0 %v6044_v24 }
 0x446   : > { %5336 = vmatprep.subr.bf16.mxu1 %v6044_v24 }
 0x448   : > { %5319 = vmatpush3.bf16.msra.mxu0 %v5841_v57 }
 0x449   : > { %5337 = vmatpush3.bf16.msra.mxu1 %v5842_v58  ;;  %5320 = vmatprep.subr.bf16.mxu0 %v6044_v24 }
 0x44a   : > { %5338 = vmatprep.subr.bf16.mxu1 %v6044_v24 }
 0x44c   : > { %5321 = vmatpush3.bf16.msra.mxu0 %v5843_v59 }
 0x44d   : > { %5339 = vmatpush3.bf16.msra.mxu1 %v5844_v60  ;;  %5322 = vmatprep.subr.bf16.mxu0 %v6044_v24 }
 0x44e   : > { %5340 = vmatprep.subr.bf16.mxu1 %v6044_v24 }
 0x450   : > { %5323 = vmatpush3.bf16.msra.mxu0 %v2028_v63 }
 0x451   : > { %5341 = vmatpush3.bf16.msra.mxu1 %v2133_v0  ;;  %5346 = vmatprep.subr.bf16.mxu0 %v6044_v24 }
 0x453   : > { %5325 = vmatmul.mubr.msk.bf16.vlgmr.msra.gmra.mrb[4].mxu0 %vm1834_vm12, %v4429_v1 }
 0x454   : > { %5347 = vmatpush3.bf16.msra.mxu0 %v5847_v2  ;;  %5343 = vmatmul.mubr.msk.bf16.vlgmr.msra.gmra.mrb[4].mxu1 %vm1834_vm12, %v4452_v3 }
 0x455   : > { %5348 = vmatprep.subr.bf16.mxu0 %v6044_v24  ;;  %5360 = vmatprep.mubr.msk.bf16.mxu0 %vm6045_vm10, %v6044_v24 }
 0x458   : > { %5349 = vmatpush3.bf16.msra.mxu0 %v5848_v4 }
 0x459   : > { %5350 = vmatprep.subr.bf16.mxu0 %v6044_v24 }
 0x45c   : > { %5351 = vmatpush3.bf16.msra.mxu0 %v5849_v5 }
 0x45d   : > { %5352 = vmatprep.subr.bf16.mxu0 %v6044_v24 }
 0x460   : > { %5353 = vmatpush3.bf16.msra.mxu0 %v5850_v6 }
 0x461   : > { %5354 = vmatprep.subr.bf16.mxu0 %v6044_v24 }
 0x464   : > { %5355 = vmatpush3.bf16.msra.mxu0 %v5851_v7 }
 0x465   : > { %5356 = vmatprep.subr.bf16.mxu0 %v6044_v24 }
 0x468   : > { %5357 = vmatpush3.bf16.msra.mxu0 %v5852_v8 }
 0x469   : > { %5358 = vmatprep.subr.bf16.mxu0 %v6044_v24 }
 0x46c   : > { %5359 = vmatpush3.bf16.msra.mxu0 %v2238_v10 }
 0x46f   : > { %5361 = vmatmul.mubr.msk.bf16.vlgmr.msra.gmra.mrb[8].mxu0 %vm1834_vm12, %v4475_v11 }
 0x49b   : > { %v2284_v33 = vpop.permute.xlu0 %2283 }
 0x49c   : > { %v2289_v34 = vrot.slane %v2284_v33, %v2288_v32 }
 0x50a   : > { %v1876_v12 = vpop.f32.mrb[0].mxu0 }
 0x50b   : > { %v5290_v13 = vpop.f32.mrb[1].mxu0  ;;  %v1961_v14 = vpop.f32.mrb[0].mxu1 }
 0x50c   : > { %v1962_v15 = vadd.f32 %v1961_v14, %v1876_v12  ;;  %v1879_v16 = vpop.f32.mrb[2].mxu0  ;;  %v5308_v17 = vpop.f32.mrb[1].mxu1 }
 0x50d   : > { %v5291_v18 = vpop.f32.mrb[3].mxu0  ;;  %v1964_v19 = vpop.f32.mrb[2].mxu1 }
 0x50e   : > { %v5309_v20 = vpop.f32.mrb[3].mxu1 }
 0x526   : > { %v2064_v21 = vpop.f32.mrb[4].mxu0 }
 0x527   : > { %v2070_v22 = vadd.f32 %v2064_v21, %v1962_v15  ;;  %v5326_v23 = vpop.f32.mrb[5].mxu0  ;;  %v2169_v24 = vpop.f32.mrb[4].mxu1 }
 0x528   : > { %v2067_v25 = vpop.f32.mrb[6].mxu0  ;;  %v5344_v26 = vpop.f32.mrb[5].mxu1 }
 0x529   : > { %v2175_v27 = vadd.f32 %v2169_v24, %v2070_v22  ;;  %v5327_v28 = vpop.f32.mrb[7].mxu0  ;;  %v2172_v29 = vpop.f32.mrb[6].mxu1 }
 0x52a   : > { %v5345_v30 = vpop.f32.mrb[7].mxu1 }
 0x542   : > { %v2274_v35 = vpop.f32.mrb[8].mxu0 }
 0x543   : > { %v2280_v36 = vadd.f32 %v2274_v35, %v2175_v27  ;;  %v5362_v37 = vpop.f32.mrb[9].mxu0 }
 0x544   : > { %v2277_v38 = vpop.f32.mrb[10].mxu0 }
 0x545   : > { %v5363_v39 = vpop.f32.mrb[11].mxu0  ;;  %v2290_v40 = vadd.f32 %v2289_v34, %v2280_v36 }
 0x547   : > { %v2291_v46 = vsel %vm639_vm8, %v2290_v40, 0.0 }
 0x548   : > { %2293 = vrot.lane.b32.xlu0 %v2291_v46, %s6047_s27 }
 0x5ba   : > { %v2294_v47 = vpop.permute.xlu0 %2293 }
 0x5bb   : > { %v2295_v48 = vrot.slane %v2294_v47, 7 }
 0x5bd   : > { %v2297_v49 = vsel %vm2296_vm15, %v2295_v48, %v2294_v47 }
 0x5be   : > { %4498 = vst.msk [vmem:[%s6133_s8 + $0x4] sm:$0x3] %vm2301_vm0, %v2297_v49 }
 0x5bf PF: > { %s2303_s5 = sadd.s32 3, %s6121_s23  ;;  %4499 = vst.msk [vmem:[%s6133_s8 + $0x6] sm:$0x3] %vm6229_vm9, %v6035_v45 }
 0x5c0   : > { %p2304_p4 = scmp.ge.s32.totalorder %s2303_s5, 2  ;;  %p2305_p5 = scmp.lt.s32.totalorder %s2303_s5, 10 }
 0x5c2   : > { %p2306_p6 = pnand %p2305_p5, %p2304_p4 }
 0x5c3   : > { %s4500_s6 = smul.u32 (!%p2306_p6), 312, %s5988_s17  ;;  %v6048_v50 = vmov (!%p2306_p6), 0.0   ;;  %vm6049_vm1 = vmmov (!%p2306_p6), 0   ;;  %v6050_v52 = vmov (!%p2306_p6), 0   ;;  %vm2390_vm2 = vcmask (!%p2306_p6), 1041408   ;;  %s6051_s29 = smov (!%p2306_p6), 26  }
 0x5c4   : > { %2311 = sbr.rel (%p2306_p6) target bundleno = 1898 (0x76a), region = 63  ;;  %5364 = vmatprep.subr.bf16.mxu0 (!%p2306_p6), %v6048_v50  ;;  %5382 = vmatprep.subr.bf16.mxu1 (!%p2306_p6), %v6048_v50  ;;  %v4514_v4 = vld [vmem:[%s6968_s1 + $0x1] sm:$0x1] (!%p2306_p6)  ;;  %vm2386_vm3 = vcmask (!%p2306_p6), 818176   ;;  %v2312_v5 = vld [vmem:[%s6968_s1] sm:$0x1] (!%p2306_p6) }
 0x5c5   : > { %5378 = vmatprep.mubr.msk.bf16.mxu0 (!%p2306_p6), %vm6049_vm1, %v6048_v50  ;;  %5396 = vmatprep.mubr.msk.bf16.mxu1 (!%p2306_p6), %vm6049_vm1, %v6048_v50  ;;  %s6604_s7 = scalar_lea.vmem (!%p2306_p6), [#allocation2], %s4500_s6  ;;  %v4545_v22 = vld [vmem:[%s6968_s1 + $0x2] sm:$0x1] (!%p2306_p6)  ;;  %v4568_v24 = vld [vmem:[%s6968_s1 + $0x3] sm:$0x1] (!%p2306_p6)  ;;  %vm2851_vm4 = vcmp.ge.s32.totalorder (!%p2306_p6), %v646_v43, 26 }
 0x5c6   : > { %v5855_v51 = vld [vmem:[%s6604_s7 + $0x68] sm:$0xff] (!%p2306_p6)   ;;  %5854 = vset.pattern.permute.xlu0 (!%p2306_p6), %v6050_v52  ;;  %v5856_v53 = vld [vmem:[%s6604_s7 + $0x34] sm:$0xff] (!%p2306_p6)   ;;  %v5858_v55 = vld [vmem:[%s6604_s7 + $0x3c] sm:$0xff] (!%p2306_p6)   ;;  %vm2852_vm5 = vcmp.lt.s32.totalorder (!%p2306_p6), %v646_v43, 154  ;;  %vm2848_vm6 = vcmask (!%p2306_p6), 211968  }
 0x5c7   : > { %2835 = vperm.xlu0 (!%p2306_p6), %5854, %v6223_v42   ;;  %5365 = vmatpush3.bf16.msra.mxu0 (!%p2306_p6), %v5855_v51  ;;  %v5857_v54 = vld [vmem:[%s6604_s7 + $0x70] sm:$0xff] (!%p2306_p6)   ;;  %v5859_v56 = vld [vmem:[%s6604_s7 + $0x78] sm:$0xff] (!%p2306_p6)   ;;  %v5860_v57 = vld [vmem:[%s6604_s7 + $0x44] sm:$0xff] (!%p2306_p6)  }
 0x5c8   : > { %5383 = vmatpush3.bf16.msra.mxu1 (!%p2306_p6), %v5856_v53  ;;  %5366 = vmatprep.subr.bf16.mxu0 (!%p2306_p6), %v6048_v50  ;;  %v5861_v58 = vld [vmem:[%s6604_s7 + $0x80] sm:$0xff] (!%p2306_p6)   ;;  %v5862_v59 = vld [vmem:[%s6604_s7 + $0x4c] sm:$0xff] (!%p2306_p6)   ;;  %v5864_v61 = vld [vmem:[%s6604_s7 + $0x54] sm:$0xff] (!%p2306_p6)  }
 0x5c9   : > { %5384 = vmatprep.subr.bf16.mxu1 (!%p2306_p6), %v6048_v50  ;;  %v5863_v60 = vld [vmem:[%s6604_s7 + $0x88] sm:$0xff] (!%p2306_p6)   ;;  %v5867_v62 = vld [vmem:[%s6604_s7 + $0x98] ss:$0 sps:$4 sm:$0x33] (!%p2306_p6)   ;;  %v5865_v63 = vld [vmem:[%s6604_s7 + $0x90] sm:$0xff] (!%p2306_p6)  }
 0x5ca   : > { %v5868_v0 = vld [vmem:[%s6604_s7 + $0x64] ss:$0 sps:$4 sm:$0x33] (!%p2306_p6)   ;;  %v5866_v1 = vld [vmem:[%s6604_s7 + $0x5c] sm:$0xff] (!%p2306_p6)   ;;  %v2392_v2 = vsel (!%p2306_p6), %vm2390_vm2, %v5867_v62, 0  ;;  %v5870_v7 = vld [vmem:[%s6604_s7 + $0xd0] sm:$0xff] (!%p2306_p6)  }
 0x5cb   : > { %5367 = vmatpush3.bf16.msra.mxu0 %v5857_v54  ;;  %v2477_v3 = vsel %vm2390_vm2, %v5868_v0, 0  ;;  %v5869_v6 = vld [vmem:[%s6604_s7 + $0x9c] sm:$0xff]   ;;  %v5871_v8 = vld [vmem:[%s6604_s7 + $0xa4] sm:$0xff]   ;;  %v5873_v10 = vld [vmem:[%s6604_s7 + $0xac] sm:$0xff]  }
 0x5cc   : > { %5385 = vmatpush3.bf16.msra.mxu1 %v5858_v55  ;;  %5368 = vmatprep.subr.bf16.mxu0 %v6048_v50  ;;  %v5872_v9 = vld [vmem:[%s6604_s7 + $0xd8] sm:$0xff]   ;;  %v5874_v11 = vld [vmem:[%s6604_s7 + $0xe0] sm:$0xff]   ;;  %v5876_v13 = vld [vmem:[%s6604_s7 + $0xe8] sm:$0xff]  }
 0x5cd   : > { %5386 = vmatprep.subr.bf16.mxu1 %v6048_v50  ;;  %v5875_v12 = vld [vmem:[%s6604_s7 + $0xb4] sm:$0xff]   ;;  %v5877_v14 = vld [vmem:[%s6604_s7 + $0xbc] sm:$0xff]   ;;  %v5879_v16 = vld [vmem:[%s6604_s7 + $0xc4] sm:$0xff]  }
 0x5ce   : > { %v5878_v15 = vld [vmem:[%s6604_s7 + $0xf0] sm:$0xff]   ;;  %v5880_v17 = vld [vmem:[%s6604_s7 + $0xf8] sm:$0xff]   ;;  %v5881_v18 = vld [vmem:[%s6604_s7 + $0xcc] ss:$0 sps:$4 sm:$0x33]  }
 0x5cf   : > { %5369 = vmatpush3.bf16.msra.mxu0 %v5859_v56  ;;  %v5882_v19 = vld [vmem:[%s6604_s7 + $0x100] ss:$0 sps:$4 sm:$0x33]   ;;  %v2580_v20 = vsel %vm2390_vm2, %v5881_v18, 0  ;;  %v5883_v23 = vld [vmem:[%s6604_s7 + $0x104] sm:$0xff]   ;;  %v5884_v25 = vld [vmem:[%s6604_s7 + $0x10c] sm:$0xff]  }
 0x5d0   : > { %5387 = vmatpush3.bf16.msra.mxu1 %v5860_v57  ;;  %5370 = vmatprep.subr.bf16.mxu0 %v6048_v50  ;;  %v2685_v21 = vsel %vm2390_vm2, %v5882_v19, 0  ;;  %v5885_v26 = vld [vmem:[%s6604_s7 + $0x114] sm:$0xff]   ;;  %v5886_v27 = vld [vmem:[%s6604_s7 + $0x11c] sm:$0xff]   ;;  %v5887_v28 = vld [vmem:[%s6604_s7 + $0x124] sm:$0xff]   ;;  %v2839_v57 = vshrl.u32 %v646_v43, 7 }
 0x5d1   : > { %5388 = vmatprep.subr.bf16.mxu1 %v6048_v50  ;;  %v5888_v29 = vld [vmem:[%s6604_s7 + $0x12c] sm:$0xff]   ;;  %v5889_v30 = vld [vmem:[%s6604_s7 + $0x134] ss:$0 sps:$4 sm:$0x33]   ;;  %v4591_v32 = vld [vmem:[%s6968_s1 + $0x4] sm:$0x1] }
 0x5d2   : > { %v2790_v31 = vsel %vm2390_vm2, %v5889_v30, 0  ;;  %vm2853_vm7 = vmand %vm2851_vm4, %vm2852_vm5 }
 0x5d3   : > { %5371 = vmatpush3.bf16.msra.mxu0 %v5861_v58  ;;  %v2840_v58 = vsub.s32 0, %v2839_v57 }
 0x5d4   : > { %5389 = vmatpush3.bf16.msra.mxu1 %v5862_v59  ;;  %5372 = vmatprep.subr.bf16.mxu0 %v6048_v50 }
 0x5d5   : > { %5390 = vmatprep.subr.bf16.mxu1 %v6048_v50 }
 0x5d7   : > { %5373 = vmatpush3.bf16.msra.mxu0 %v5863_v60 }
 0x5d8   : > { %5391 = vmatpush3.bf16.msra.mxu1 %v5864_v61  ;;  %5374 = vmatprep.subr.bf16.mxu0 %v6048_v50 }
 0x5d9   : > { %5392 = vmatprep.subr.bf16.mxu1 %v6048_v50 }
 0x5db   : > { %5375 = vmatpush3.bf16.msra.mxu0 %v5865_v63 }
 0x5dc   : > { %5393 = vmatpush3.bf16.msra.mxu1 %v5866_v1  ;;  %5376 = vmatprep.subr.bf16.mxu0 %v6048_v50 }
 0x5dd   : > { %5394 = vmatprep.subr.bf16.mxu1 %v6048_v50 }
 0x5df   : > { %5377 = vmatpush3.bf16.msra.mxu0 %v2392_v2 }
 0x5e0   : > { %5395 = vmatpush3.bf16.msra.mxu1 %v2477_v3  ;;  %5400 = vmatprep.subr.bf16.mxu0 %v6048_v50 }
 0x5e1   : > { %5418 = vmatprep.subr.bf16.mxu1 %v6048_v50 }
 0x5e2   : > { %5379 = vmatmul.mubr.msk.bf16.vlgmr.msra.gmra.mrb[0].mxu0 %vm2386_vm3, %v4514_v4 }
 0x5e3   : > { %5397 = vmatmul.mubr.msk.bf16.vlgmr.msra.gmra.mrb[0].mxu1 %vm2386_vm3, %v2312_v5  ;;  %5401 = vmatpush3.bf16.msra.mxu0 %v5869_v6 }
 0x5e4   : > { %5419 = vmatpush3.bf16.msra.mxu1 %v5870_v7  ;;  %5402 = vmatprep.subr.bf16.mxu0 %v6048_v50 }
 0x5e5   : > { %5420 = vmatprep.subr.bf16.mxu1 %v6048_v50  ;;  %5414 = vmatprep.mubr.msk.bf16.mxu0 %vm6049_vm1, %v6048_v50 }
 0x5e6   : > { %5432 = vmatprep.mubr.msk.bf16.mxu1 %vm6049_vm1, %v6048_v50 }
 0x5e7   : > { %5403 = vmatpush3.bf16.msra.mxu0 %v5871_v8 }
 0x5e8   : > { %5421 = vmatpush3.bf16.msra.mxu1 %v5872_v9  ;;  %5404 = vmatprep.subr.bf16.mxu0 %v6048_v50 }
 0x5e9   : > { %5422 = vmatprep.subr.bf16.mxu1 %v6048_v50 }
 0x5eb   : > { %5405 = vmatpush3.bf16.msra.mxu0 %v5873_v10 }
 0x5ec   : > { %5423 = vmatpush3.bf16.msra.mxu1 %v5874_v11  ;;  %5406 = vmatprep.subr.bf16.mxu0 %v6048_v50 }
 0x5ed   : > { %5424 = vmatprep.subr.bf16.mxu1 %v6048_v50 }
 0x5ef   : > { %5407 = vmatpush3.bf16.msra.mxu0 %v5875_v12 }
 0x5f0   : > { %5425 = vmatpush3.bf16.msra.mxu1 %v5876_v13  ;;  %5408 = vmatprep.subr.bf16.mxu0 %v6048_v50 }
 0x5f1   : > { %5426 = vmatprep.subr.bf16.mxu1 %v6048_v50 }
 0x5f3   : > { %5409 = vmatpush3.bf16.msra.mxu0 %v5877_v14 }
 0x5f4   : > { %5427 = vmatpush3.bf16.msra.mxu1 %v5878_v15  ;;  %5410 = vmatprep.subr.bf16.mxu0 %v6048_v50 }
 0x5f5   : > { %5428 = vmatprep.subr.bf16.mxu1 %v6048_v50 }
 0x5f7   : > { %5411 = vmatpush3.bf16.msra.mxu0 %v5879_v16 }
 0x5f8   : > { %5429 = vmatpush3.bf16.msra.mxu1 %v5880_v17  ;;  %5412 = vmatprep.subr.bf16.mxu0 %v6048_v50 }
 0x5f9   : > { %5430 = vmatprep.subr.bf16.mxu1 %v6048_v50 }
 0x5fb   : > { %5413 = vmatpush3.bf16.msra.mxu0 %v2580_v20 }
 0x5fc   : > { %5431 = vmatpush3.bf16.msra.mxu1 %v2685_v21  ;;  %5436 = vmatprep.subr.bf16.mxu0 %v6048_v50 }
 0x5fe   : > { %5415 = vmatmul.mubr.msk.bf16.vlgmr.msra.gmra.mrb[4].mxu0 %vm2386_vm3, %v4545_v22 }
 0x5ff   : > { %5437 = vmatpush3.bf16.msra.mxu0 %v5883_v23  ;;  %5433 = vmatmul.mubr.msk.bf16.vlgmr.msra.gmra.mrb[4].mxu1 %vm2386_vm3, %v4568_v24 }
 0x600   : > { %5438 = vmatprep.subr.bf16.mxu0 %v6048_v50  ;;  %5450 = vmatprep.mubr.msk.bf16.mxu0 %vm6049_vm1, %v6048_v50 }
 0x603   : > { %5439 = vmatpush3.bf16.msra.mxu0 %v5884_v25 }
 0x604   : > { %5440 = vmatprep.subr.bf16.mxu0 %v6048_v50 }
 0x607   : > { %5441 = vmatpush3.bf16.msra.mxu0 %v5885_v26 }
 0x608   : > { %5442 = vmatprep.subr.bf16.mxu0 %v6048_v50 }
 0x60b   : > { %5443 = vmatpush3.bf16.msra.mxu0 %v5886_v27 }
 0x60c   : > { %5444 = vmatprep.subr.bf16.mxu0 %v6048_v50 }
 0x60f   : > { %5445 = vmatpush3.bf16.msra.mxu0 %v5887_v28 }
 0x610   : > { %5446 = vmatprep.subr.bf16.mxu0 %v6048_v50 }
 0x613   : > { %5447 = vmatpush3.bf16.msra.mxu0 %v5888_v29 }
 0x614   : > { %5448 = vmatprep.subr.bf16.mxu0 %v6048_v50 }
 0x617   : > { %5449 = vmatpush3.bf16.msra.mxu0 %v2790_v31 }
 0x61a   : > { %5451 = vmatmul.mubr.msk.bf16.vlgmr.msra.gmra.mrb[8].mxu0 %vm2386_vm3, %v4591_v32 }
 0x646   : > { %v2836_v59 = vpop.permute.xlu0 %2835 }
 0x647   : > { %v2841_v60 = vrot.slane %v2836_v59, %v2840_v58 }
 0x6b5   : > { %v2428_v33 = vpop.f32.mrb[0].mxu0 }
 0x6b6   : > { %v5380_v34 = vpop.f32.mrb[1].mxu0  ;;  %v2513_v35 = vpop.f32.mrb[0].mxu1 }
 0x6b7   : > { %v2514_v36 = vadd.f32 %v2513_v35, %v2428_v33  ;;  %v2431_v37 = vpop.f32.mrb[2].mxu0  ;;  %v5398_v38 = vpop.f32.mrb[1].mxu1 }
 0x6b8   : > { %v5381_v39 = vpop.f32.mrb[3].mxu0  ;;  %v2516_v40 = vpop.f32.mrb[2].mxu1 }
 0x6b9   : > { %v5399_v46 = vpop.f32.mrb[3].mxu1 }
 0x6d1   : > { %v2616_v47 = vpop.f32.mrb[4].mxu0 }
 0x6d2   : > { %v2622_v48 = vadd.f32 %v2616_v47, %v2514_v36  ;;  %v5416_v49 = vpop.f32.mrb[5].mxu0  ;;  %v2721_v50 = vpop.f32.mrb[4].mxu1 }
 0x6d3   : > { %v2619_v51 = vpop.f32.mrb[6].mxu0  ;;  %v5434_v52 = vpop.f32.mrb[5].mxu1 }
 0x6d4   : > { %v2727_v53 = vadd.f32 %v2721_v50, %v2622_v48  ;;  %v5417_v54 = vpop.f32.mrb[7].mxu0  ;;  %v2724_v55 = vpop.f32.mrb[6].mxu1 }
 0x6d5   : > { %v5435_v56 = vpop.f32.mrb[7].mxu1 }
 0x6ed   : > { %v2826_v61 = vpop.f32.mrb[8].mxu0 }
 0x6ee   : > { %v2832_v62 = vadd.f32 %v2826_v61, %v2727_v53  ;;  %v5452_v63 = vpop.f32.mrb[9].mxu0 }
 0x6ef   : > { %v2829_v0 = vpop.f32.mrb[10].mxu0 }
 0x6f0   : > { %v5453_v1 = vpop.f32.mrb[11].mxu0  ;;  %v2842_v2 = vadd.f32 %v2841_v60, %v2832_v62 }
 0x6f2   : > { %v2843_v3 = vsel %vm639_vm8, %v2842_v2, 0.0 }
 0x6f3   : > { %2845 = vrot.lane.b32.xlu0 %v2843_v3, %s6051_s29 }
 0x765   : > { %v2846_v4 = vpop.permute.xlu0 %2845 }
 0x766   : > { %v2847_v5 = vrot.slane %v2846_v4, 7 }
 0x768   : > { %v2849_v6 = vsel %vm2848_vm6, %v2847_v5, %v2846_v4 }
 0x769   : > { %4614 = vst.msk [vmem:[%s6133_s8 + $0x6] sm:$0x3] %vm2853_vm7, %v2849_v6 }
 0x76a PF: > { %s2855_s11 = sadd.s32 4, %s6121_s23  ;;  %4615 = vst.msk [vmem:[%s6133_s8 + $0x8] sm:$0x3] %vm6229_vm9, %v6035_v45 }
 0x76b   : > { %p2856_p7 = scmp.ge.s32.totalorder %s2855_s11, 2  ;;  %p2857_p8 = scmp.lt.s32.totalorder %s2855_s11, 10 }
 0x76d   : > { %p2858_p9 = pnand %p2857_p8, %p2856_p7 }
 0x76e   : > { %s4616_s30 = smul.u32 (!%p2858_p9), 312, %s5988_s17  ;;  %v6052_v7 = vmov (!%p2858_p9), 0.0   ;;  %vm6053_vm10 = vmmov (!%p2858_p9), 0   ;;  %v6054_v9 = vmov (!%p2858_p9), 0   ;;  %vm2942_vm11 = vcmask (!%p2858_p9), 1041408   ;;  %s6055_s16 = smov (!%p2858_p9), 26  }
 0x76f   : > { %2863 = sbr.rel (%p2858_p9) target bundleno = 2325 (0x915), region = 67  ;;  %5454 = vmatprep.subr.bf16.mxu0 (!%p2858_p9), %v6052_v7  ;;  %5472 = vmatprep.subr.bf16.mxu1 (!%p2858_p9), %v6052_v7  ;;  %v4630_v25 = vld [vmem:[%s6968_s1 + $0x1] sm:$0x1] (!%p2858_p9)  ;;  %vm2938_vm12 = vcmask (!%p2858_p9), 818176   ;;  %v2864_v26 = vld [vmem:[%s6968_s1] sm:$0x1] (!%p2858_p9) }
 0x770   : > { %5468 = vmatprep.mubr.msk.bf16.mxu0 (!%p2858_p9), %vm6053_vm10, %v6052_v7  ;;  %5486 = vmatprep.mubr.msk.bf16.mxu1 (!%p2858_p9), %vm6053_vm10, %v6052_v7  ;;  %s6724_s28 = scalar_lea.vmem (!%p2858_p9), [#allocation2], %s4616_s30  ;;  %v4661_v48 = vld [vmem:[%s6968_s1 + $0x2] sm:$0x1] (!%p2858_p9)  ;;  %v4684_v50 = vld [vmem:[%s6968_s1 + $0x3] sm:$0x1] (!%p2858_p9)  ;;  %vm3403_vm13 = vcmp.ge.s32.totalorder (!%p2858_p9), %v646_v43, 26 }
 0x771   : > { %v5891_v8 = vld [vmem:[%s6724_s28 + $0x9c] sm:$0xff] (!%p2858_p9)   ;;  %5890 = vset.pattern.permute.xlu0 (!%p2858_p9), %v6054_v9  ;;  %v5892_v10 = vld [vmem:[%s6724_s28 + $0x68] sm:$0xff] (!%p2858_p9)   ;;  %v5894_v12 = vld [vmem:[%s6724_s28 + $0x70] sm:$0xff] (!%p2858_p9)   ;;  %vm3404_vm14 = vcmp.lt.s32.totalorder (!%p2858_p9), %v646_v43, 154  ;;  %vm3400_vm15 = vcmask (!%p2858_p9), 211968  }
 0x772   : > { %3387 = vperm.xlu0 (!%p2858_p9), %5890, %v6223_v42   ;;  %5455 = vmatpush3.bf16.msra.mxu0 (!%p2858_p9), %v5891_v8  ;;  %v5893_v11 = vld [vmem:[%s6724_s28 + $0xa4] sm:$0xff] (!%p2858_p9)   ;;  %v5895_v13 = vld [vmem:[%s6724_s28 + $0xac] sm:$0xff] (!%p2858_p9)   ;;  %v5896_v14 = vld [vmem:[%s6724_s28 + $0x78] sm:$0xff] (!%p2858_p9)  }
 0x773   : > { %5473 = vmatpush3.bf16.msra.mxu1 (!%p2858_p9), %v5892_v10  ;;  %5456 = vmatprep.subr.bf16.mxu0 (!%p2858_p9), %v6052_v7  ;;  %v5897_v15 = vld [vmem:[%s6724_s28 + $0xb4] sm:$0xff] (!%p2858_p9)   ;;  %v5898_v16 = vld [vmem:[%s6724_s28 + $0x80] sm:$0xff] (!%p2858_p9)   ;;  %v5900_v18 = vld [vmem:[%s6724_s28 + $0x88] sm:$0xff] (!%p2858_p9)  }
 0x774   : > { %5474 = vmatprep.subr.bf16.mxu1 (!%p2858_p9), %v6052_v7  ;;  %v5899_v17 = vld [vmem:[%s6724_s28 + $0xbc] sm:$0xff] (!%p2858_p9)   ;;  %v5903_v19 = vld [vmem:[%s6724_s28 + $0xcc] ss:$0 sps:$4 sm:$0x33] (!%p2858_p9)   ;;  %v5901_v20 = vld [vmem:[%s6724_s28 + $0xc4] sm:$0xff] (!%p2858_p9)  }
 0x775   : > { %v5904_v21 = vld [vmem:[%s6724_s28 + $0x98] ss:$0 sps:$4 sm:$0x33] (!%p2858_p9)   ;;  %v5902_v22 = vld [vmem:[%s6724_s28 + $0x90] sm:$0xff] (!%p2858_p9)   ;;  %v2944_v23 = vsel (!%p2858_p9), %vm2942_vm11, %v5903_v19, 0  ;;  %v5906_v28 = vld [vmem:[%s6724_s28 + $0x104] sm:$0xff] (!%p2858_p9)  }
 0x776   : > { %5457 = vmatpush3.bf16.msra.mxu0 %v5893_v11  ;;  %v3029_v24 = vsel %vm2942_vm11, %v5904_v21, 0  ;;  %v5905_v27 = vld [vmem:[%s6724_s28 + $0xd0] sm:$0xff]   ;;  %v5907_v29 = vld [vmem:[%s6724_s28 + $0xd8] sm:$0xff]   ;;  %v5909_v31 = vld [vmem:[%s6724_s28 + $0xe0] sm:$0xff]  }
 0x777   : > { %5475 = vmatpush3.bf16.msra.mxu1 %v5894_v12  ;;  %5458 = vmatprep.subr.bf16.mxu0 %v6052_v7  ;;  %v5908_v30 = vld [vmem:[%s6724_s28 + $0x10c] sm:$0xff]   ;;  %v5910_v32 = vld [vmem:[%s6724_s28 + $0x114] sm:$0xff]   ;;  %v5912_v34 = vld [vmem:[%s6724_s28 + $0x11c] sm:$0xff]  }
 0x778   : > { %5476 = vmatprep.subr.bf16.mxu1 %v6052_v7  ;;  %v5911_v33 = vld [vmem:[%s6724_s28 + $0xe8] sm:$0xff]   ;;  %v5913_v35 = vld [vmem:[%s6724_s28 + $0xf0] sm:$0xff]   ;;  %v5915_v37 = vld [vmem:[%s6724_s28 + $0xf8] sm:$0xff]  }
 0x779   : > { %v5914_v36 = vld [vmem:[%s6724_s28 + $0x124] sm:$0xff]   ;;  %v5916_v38 = vld [vmem:[%s6724_s28 + $0x12c] sm:$0xff]   ;;  %v5917_v39 = vld [vmem:[%s6724_s28 + $0x100] ss:$0 sps:$4 sm:$0x33]  }
 0x77a   : > { %5459 = vmatpush3.bf16.msra.mxu0 %v5895_v13  ;;  %v5918_v40 = vld [vmem:[%s6724_s28 + $0x134] ss:$0 sps:$4 sm:$0x33]   ;;  %v3132_v46 = vsel %vm2942_vm11, %v5917_v39, 0  ;;  %v5919_v49 = vld [vmem:[%s6724_s28 + $0x138] sm:$0xff]   ;;  %v5920_v51 = vld [vmem:[%s6724_s28 + $0x140] sm:$0xff]  }
 0x77b   : > { %5477 = vmatpush3.bf16.msra.mxu1 %v5896_v14  ;;  %5460 = vmatprep.subr.bf16.mxu0 %v6052_v7  ;;  %v3237_v47 = vsel %vm2942_vm11, %v5918_v40, 0  ;;  %v5921_v52 = vld [vmem:[%s6724_s28 + $0x148] sm:$0xff]   ;;  %v5922_v53 = vld [vmem:[%s6724_s28 + $0x150] sm:$0xff]   ;;  %v5923_v54 = vld [vmem:[%s6724_s28 + $0x158] sm:$0xff]   ;;  %v3391_v14 = vshrl.u32 %v646_v43, 7 }
 0x77c   : > { %5478 = vmatprep.subr.bf16.mxu1 %v6052_v7  ;;  %v5924_v55 = vld [vmem:[%s6724_s28 + $0x160] sm:$0xff]   ;;  %v5925_v56 = vld [vmem:[%s6724_s28 + $0x168] ss:$0 sps:$4 sm:$0x33]   ;;  %vm3405_vm0 = vmand %vm3403_vm13, %vm3404_vm14 }
 0x77d   : > { %v3342_v57 = vsel %vm2942_vm11, %v5925_v56, 0  ;;  %v4707_v58 = vld [vmem:[%s6968_s1 + $0x4] sm:$0x1] }
 0x77e   : > { %5461 = vmatpush3.bf16.msra.mxu0 %v5897_v15  ;;  %v3392_v15 = vsub.s32 0, %v3391_v14 }
 0x77f   : > { %5479 = vmatpush3.bf16.msra.mxu1 %v5898_v16  ;;  %5462 = vmatprep.subr.bf16.mxu0 %v6052_v7 }
 0x780   : > { %5480 = vmatprep.subr.bf16.mxu1 %v6052_v7 }
 0x782   : > { %5463 = vmatpush3.bf16.msra.mxu0 %v5899_v17 }
 0x783   : > { %5481 = vmatpush3.bf16.msra.mxu1 %v5900_v18  ;;  %5464 = vmatprep.subr.bf16.mxu0 %v6052_v7 }
 0x784   : > { %5482 = vmatprep.subr.bf16.mxu1 %v6052_v7 }
 0x786   : > { %5465 = vmatpush3.bf16.msra.mxu0 %v5901_v20 }
 0x787   : > { %5483 = vmatpush3.bf16.msra.mxu1 %v5902_v22  ;;  %5466 = vmatprep.subr.bf16.mxu0 %v6052_v7 }
 0x788   : > { %5484 = vmatprep.subr.bf16.mxu1 %v6052_v7 }
 0x78a   : > { %5467 = vmatpush3.bf16.msra.mxu0 %v2944_v23 }
 0x78b   : > { %5485 = vmatpush3.bf16.msra.mxu1 %v3029_v24  ;;  %5490 = vmatprep.subr.bf16.mxu0 %v6052_v7 }
 0x78c   : > { %5508 = vmatprep.subr.bf16.mxu1 %v6052_v7 }
 0x78d   : > { %5469 = vmatmul.mubr.msk.bf16.vlgmr.msra.gmra.mrb[0].mxu0 %vm2938_vm12, %v4630_v25 }
 0x78e   : > { %5487 = vmatmul.mubr.msk.bf16.vlgmr.msra.gmra.mrb[0].mxu1 %vm2938_vm12, %v2864_v26  ;;  %5491 = vmatpush3.bf16.msra.mxu0 %v5905_v27 }
 0x78f   : > { %5509 = vmatpush3.bf16.msra.mxu1 %v5906_v28  ;;  %5492 = vmatprep.subr.bf16.mxu0 %v6052_v7 }
 0x790   : > { %5510 = vmatprep.subr.bf16.mxu1 %v6052_v7  ;;  %5504 = vmatprep.mubr.msk.bf16.mxu0 %vm6053_vm10, %v6052_v7 }
 0x791   : > { %5522 = vmatprep.mubr.msk.bf16.mxu1 %vm6053_vm10, %v6052_v7 }
 0x792   : > { %5493 = vmatpush3.bf16.msra.mxu0 %v5907_v29 }
 0x793   : > { %5511 = vmatpush3.bf16.msra.mxu1 %v5908_v30  ;;  %5494 = vmatprep.subr.bf16.mxu0 %v6052_v7 }
 0x794   : > { %5512 = vmatprep.subr.bf16.mxu1 %v6052_v7 }
 0x796   : > { %5495 = vmatpush3.bf16.msra.mxu0 %v5909_v31 }
 0x797   : > { %5513 = vmatpush3.bf16.msra.mxu1 %v5910_v32  ;;  %5496 = vmatprep.subr.bf16.mxu0 %v6052_v7 }
 0x798   : > { %5514 = vmatprep.subr.bf16.mxu1 %v6052_v7 }
 0x79a   : > { %5497 = vmatpush3.bf16.msra.mxu0 %v5911_v33 }
 0x79b   : > { %5515 = vmatpush3.bf16.msra.mxu1 %v5912_v34  ;;  %5498 = vmatprep.subr.bf16.mxu0 %v6052_v7 }
 0x79c   : > { %5516 = vmatprep.subr.bf16.mxu1 %v6052_v7 }
 0x79e   : > { %5499 = vmatpush3.bf16.msra.mxu0 %v5913_v35 }
 0x79f   : > { %5517 = vmatpush3.bf16.msra.mxu1 %v5914_v36  ;;  %5500 = vmatprep.subr.bf16.mxu0 %v6052_v7 }
 0x7a0   : > { %5518 = vmatprep.subr.bf16.mxu1 %v6052_v7 }
 0x7a2   : > { %5501 = vmatpush3.bf16.msra.mxu0 %v5915_v37 }
 0x7a3   : > { %5519 = vmatpush3.bf16.msra.mxu1 %v5916_v38  ;;  %5502 = vmatprep.subr.bf16.mxu0 %v6052_v7 }
 0x7a4   : > { %5520 = vmatprep.subr.bf16.mxu1 %v6052_v7 }
 0x7a6   : > { %5503 = vmatpush3.bf16.msra.mxu0 %v3132_v46 }
 0x7a7   : > { %5521 = vmatpush3.bf16.msra.mxu1 %v3237_v47  ;;  %5526 = vmatprep.subr.bf16.mxu0 %v6052_v7 }
 0x7a9   : > { %5505 = vmatmul.mubr.msk.bf16.vlgmr.msra.gmra.mrb[4].mxu0 %vm2938_vm12, %v4661_v48 }
 0x7aa   : > { %5527 = vmatpush3.bf16.msra.mxu0 %v5919_v49  ;;  %5523 = vmatmul.mubr.msk.bf16.vlgmr.msra.gmra.mrb[4].mxu1 %vm2938_vm12, %v4684_v50 }
 0x7ab   : > { %5528 = vmatprep.subr.bf16.mxu0 %v6052_v7  ;;  %5540 = vmatprep.mubr.msk.bf16.mxu0 %vm6053_vm10, %v6052_v7 }
 0x7ae   : > { %5529 = vmatpush3.bf16.msra.mxu0 %v5920_v51 }
 0x7af   : > { %5530 = vmatprep.subr.bf16.mxu0 %v6052_v7 }
 0x7b2   : > { %5531 = vmatpush3.bf16.msra.mxu0 %v5921_v52 }
 0x7b3   : > { %5532 = vmatprep.subr.bf16.mxu0 %v6052_v7 }
 0x7b6   : > { %5533 = vmatpush3.bf16.msra.mxu0 %v5922_v53 }
 0x7b7   : > { %5534 = vmatprep.subr.bf16.mxu0 %v6052_v7 }
 0x7ba   : > { %5535 = vmatpush3.bf16.msra.mxu0 %v5923_v54 }
 0x7bb   : > { %5536 = vmatprep.subr.bf16.mxu0 %v6052_v7 }
 0x7be   : > { %5537 = vmatpush3.bf16.msra.mxu0 %v5924_v55 }
 0x7bf   : > { %5538 = vmatprep.subr.bf16.mxu0 %v6052_v7 }
 0x7c2   : > { %5539 = vmatpush3.bf16.msra.mxu0 %v3342_v57 }
 0x7c5   : > { %5541 = vmatmul.mubr.msk.bf16.vlgmr.msra.gmra.mrb[8].mxu0 %vm2938_vm12, %v4707_v58 }
 0x7f1   : > { %v3388_v16 = vpop.permute.xlu0 %3387 }
 0x7f2   : > { %v3393_v17 = vrot.slane %v3388_v16, %v3392_v15 }
 0x860   : > { %v2980_v59 = vpop.f32.mrb[0].mxu0 }
 0x861   : > { %v5470_v60 = vpop.f32.mrb[1].mxu0  ;;  %v3065_v61 = vpop.f32.mrb[0].mxu1 }
 0x862   : > { %v3066_v62 = vadd.f32 %v3065_v61, %v2980_v59  ;;  %v2983_v63 = vpop.f32.mrb[2].mxu0  ;;  %v5488_v0 = vpop.f32.mrb[1].mxu1 }
 0x863   : > { %v5471_v1 = vpop.f32.mrb[3].mxu0  ;;  %v3068_v2 = vpop.f32.mrb[2].mxu1 }
 0x864   : > { %v5489_v3 = vpop.f32.mrb[3].mxu1 }
 0x87c   : > { %v3168_v4 = vpop.f32.mrb[4].mxu0 }
 0x87d   : > { %v3174_v5 = vadd.f32 %v3168_v4, %v3066_v62  ;;  %v5506_v6 = vpop.f32.mrb[5].mxu0  ;;  %v3273_v7 = vpop.f32.mrb[4].mxu1 }
 0x87e   : > { %v3171_v8 = vpop.f32.mrb[6].mxu0  ;;  %v5524_v9 = vpop.f32.mrb[5].mxu1 }
 0x87f   : > { %v3279_v10 = vadd.f32 %v3273_v7, %v3174_v5  ;;  %v5507_v11 = vpop.f32.mrb[7].mxu0  ;;  %v3276_v12 = vpop.f32.mrb[6].mxu1 }
 0x880   : > { %v5525_v13 = vpop.f32.mrb[7].mxu1 }
 0x898   : > { %v3378_v18 = vpop.f32.mrb[8].mxu0 }
 0x899   : > { %v3384_v19 = vadd.f32 %v3378_v18, %v3279_v10  ;;  %v5542_v20 = vpop.f32.mrb[9].mxu0 }
 0x89a   : > { %v3381_v21 = vpop.f32.mrb[10].mxu0 }
 0x89b   : > { %v5543_v22 = vpop.f32.mrb[11].mxu0  ;;  %v3394_v23 = vadd.f32 %v3393_v17, %v3384_v19 }
 0x89d   : > { %v3395_v24 = vsel %vm639_vm8, %v3394_v23, 0.0 }
 0x89e   : > { %3397 = vrot.lane.b32.xlu0 %v3395_v24, %s6055_s16 }
 0x910   : > { %v3398_v25 = vpop.permute.xlu0 %3397 }
 0x911   : > { %v3399_v26 = vrot.slane %v3398_v25, 7 }
 0x913   : > { %v3401_v27 = vsel %vm3400_vm15, %v3399_v26, %v3398_v25 }
 0x914   : > { %4730 = vst.msk [vmem:[%s6133_s8 + $0x8] sm:$0x3] %vm3405_vm0, %v3401_v27 }
 0x915 PF: > { %s3407_s18 = sadd.s32 5, %s6121_s23  ;;  %4731 = vst.msk [vmem:[%s6133_s8 + $0xa] sm:$0x3] %vm6229_vm9, %v6035_v45 }
 0x916   : > { %p3408_p10 = scmp.ge.s32.totalorder %s3407_s18, 2  ;;  %p3409_p11 = scmp.lt.s32.totalorder %s3407_s18, 10 }
 0x918   : > { %p3410_p12 = pnand %p3409_p11, %p3408_p10 }
 0x919   : > { %s4732_s24 = smul.u32 (!%p3410_p12), 312, %s5988_s17  ;;  %v6056_v28 = vmov (!%p3410_p12), 0.0   ;;  %vm6057_vm1 = vmmov (!%p3410_p12), 0   ;;  %v6058_v45 = vmov (!%p3410_p12), 0   ;;  %vm3494_vm9 = vcmask (!%p3410_p12), 1041408   ;;  %s6059_s6 = smov (!%p3410_p12), 26  }
 0x91a   : > { %3415 = sbr.rel (%p3410_p12) target bundleno = 2752 (0xac0), region = 71  ;;  %5544 = vmatprep.subr.bf16.mxu0 (!%p3410_p12), %v6056_v28  ;;  %5562 = vmatprep.subr.bf16.mxu1 (!%p3410_p12), %v6056_v28  ;;  %v4746_v48 = vld [vmem:[%s6968_s1 + $0x1] sm:$0x1] (!%p3410_p12)  ;;  %vm3490_vm2 = vcmask (!%p3410_p12), 818176   ;;  %v3416_v49 = vld [vmem:[%s6968_s1] sm:$0x1] (!%p3410_p12) }
 0x91b   : > { %5558 = vmatprep.mubr.msk.bf16.mxu0 (!%p3410_p12), %vm6057_vm1, %v6056_v28  ;;  %5576 = vmatprep.mubr.msk.bf16.mxu1 (!%p3410_p12), %vm6057_vm1, %v6056_v28  ;;  %s6844_s23 = scalar_lea.vmem (!%p3410_p12), [#allocation2], %s4732_s24  ;;  %v4777_v2 = vld [vmem:[%s6968_s1 + $0x2] sm:$0x1] (!%p3410_p12)  ;;  %v4800_v4 = vld [vmem:[%s6968_s1 + $0x3] sm:$0x1] (!%p3410_p12)  ;;  %vm3955_vm3 = vcmp.ge.s32.totalorder (!%p3410_p12), %v646_v43, 26 }
 0x91c   : > { %v5927_v44 = vld [vmem:[%s6844_s23 + $0xd0] sm:$0xff] (!%p3410_p12)   ;;  %5926 = vset.pattern.permute.xlu0 (!%p3410_p12), %v6058_v45  ;;  %v5928_v29 = vld [vmem:[%s6844_s23 + $0x9c] sm:$0xff] (!%p3410_p12)   ;;  %v5930_v31 = vld [vmem:[%s6844_s23 + $0xa4] sm:$0xff] (!%p3410_p12)   ;;  %vm3956_vm4 = vcmp.lt.s32.totalorder (!%p3410_p12), %v646_v43, 154  ;;  %vm3952_vm5 = vcmask (!%p3410_p12), 211968  }
 0x91d   : > { %3939 = vperm.xlu0 (!%p3410_p12), %5926, %v6223_v42   ;;  %5545 = vmatpush3.bf16.msra.mxu0 (!%p3410_p12), %v5927_v44  ;;  %v5929_v30 = vld [vmem:[%s6844_s23 + $0xd8] sm:$0xff] (!%p3410_p12)   ;;  %v5931_v32 = vld [vmem:[%s6844_s23 + $0xe0] sm:$0xff] (!%p3410_p12)   ;;  %v5932_v33 = vld [vmem:[%s6844_s23 + $0xac] sm:$0xff] (!%p3410_p12)  }
 0x91e   : > { %5563 = vmatpush3.bf16.msra.mxu1 (!%p3410_p12), %v5928_v29  ;;  %5546 = vmatprep.subr.bf16.mxu0 (!%p3410_p12), %v6056_v28  ;;  %v5933_v42 = vld [vmem:[%s6844_s23 + $0xe8] sm:$0xff] (!%p3410_p12)   ;;  %v5934_v34 = vld [vmem:[%s6844_s23 + $0xb4] sm:$0xff] (!%p3410_p12)   ;;  %v5936_v36 = vld [vmem:[%s6844_s23 + $0xbc] sm:$0xff] (!%p3410_p12)  }
 0x91f   : > { %5564 = vmatprep.subr.bf16.mxu1 (!%p3410_p12), %v6056_v28  ;;  %v5935_v35 = vld [vmem:[%s6844_s23 + $0xf0] sm:$0xff] (!%p3410_p12)   ;;  %v5939_v37 = vld [vmem:[%s6844_s23 + $0x100] ss:$0 sps:$4 sm:$0x33] (!%p3410_p12)   ;;  %v5937_v38 = vld [vmem:[%s6844_s23 + $0xf8] sm:$0xff] (!%p3410_p12)  }
 0x920   : > { %v5940_v39 = vld [vmem:[%s6844_s23 + $0xcc] ss:$0 sps:$4 sm:$0x33] (!%p3410_p12)   ;;  %v5938_v40 = vld [vmem:[%s6844_s23 + $0xc4] sm:$0xff] (!%p3410_p12)   ;;  %v3496_v46 = vsel (!%p3410_p12), %vm3494_vm9, %v5939_v37, 0  ;;  %v5942_v51 = vld [vmem:[%s6844_s23 + $0x138] sm:$0xff] (!%p3410_p12)  }
 0x921   : > { %5547 = vmatpush3.bf16.msra.mxu0 %v5929_v30  ;;  %v3581_v47 = vsel %vm3494_vm9, %v5940_v39, 0  ;;  %v5941_v50 = vld [vmem:[%s6844_s23 + $0x104] sm:$0xff]   ;;  %v5943_v52 = vld [vmem:[%s6844_s23 + $0x10c] sm:$0xff]   ;;  %v5945_v54 = vld [vmem:[%s6844_s23 + $0x114] sm:$0xff]   ;;  %v3943_v30 = vshrl.u32 %v646_v43, 7 }
 0x922   : > { %5565 = vmatpush3.bf16.msra.mxu1 %v5930_v31  ;;  %5548 = vmatprep.subr.bf16.mxu0 %v6056_v28  ;;  %v5944_v53 = vld [vmem:[%s6844_s23 + $0x140] sm:$0xff]   ;;  %v5946_v55 = vld [vmem:[%s6844_s23 + $0x148] sm:$0xff]   ;;  %v5948_v57 = vld [vmem:[%s6844_s23 + $0x150] sm:$0xff]  }
 0x923   : > { %5566 = vmatprep.subr.bf16.mxu1 %v6056_v28  ;;  %v5947_v56 = vld [vmem:[%s6844_s23 + $0x11c] sm:$0xff]   ;;  %v5949_v58 = vld [vmem:[%s6844_s23 + $0x124] sm:$0xff]   ;;  %v5951_v60 = vld [vmem:[%s6844_s23 + $0x12c] sm:$0xff]   ;;  %v3944_v31 = vsub.s32 0, %v3943_v30 }
 0x924   : > { %v5950_v59 = vld [vmem:[%s6844_s23 + $0x158] sm:$0xff]   ;;  %v5952_v61 = vld [vmem:[%s6844_s23 + $0x160] sm:$0xff]   ;;  %v5953_v62 = vld [vmem:[%s6844_s23 + $0x134] ss:$0 sps:$4 sm:$0x33]  }
 0x925   : > { %5549 = vmatpush3.bf16.msra.mxu0 %v5931_v32  ;;  %v5954_v63 = vld [vmem:[%s6844_s23 + $0x168] ss:$0 sps:$4 sm:$0x33]   ;;  %v3684_v0 = vsel %vm3494_vm9, %v5953_v62, 0  ;;  %v5955_v3 = vld [vmem:[%s6844_s23 + $0x16c] sm:$0xff]   ;;  %v5956_v5 = vld [vmem:[%s6844_s23 + $0x174] sm:$0xff]  }
 0x926   : > { %5567 = vmatpush3.bf16.msra.mxu1 %v5932_v33  ;;  %5550 = vmatprep.subr.bf16.mxu0 %v6056_v28  ;;  %v3789_v1 = vsel %vm3494_vm9, %v5954_v63, 0  ;;  %v5957_v6 = vld [vmem:[%s6844_s23 + $0x17c] sm:$0xff]   ;;  %v5958_v7 = vld [vmem:[%s6844_s23 + $0x184] sm:$0xff]   ;;  %v5959_v8 = vld [vmem:[%s6844_s23 + $0x18c] sm:$0xff]  }
 0x927   : > { %5568 = vmatprep.subr.bf16.mxu1 %v6056_v28  ;;  %v5960_v9 = vld [vmem:[%s6844_s23 + $0x194] sm:$0xff]   ;;  %v5961_v10 = vld [vmem:[%s6844_s23 + $0x19c] ss:$0 sps:$4 sm:$0x33]   ;;  %v4823_v12 = vld [vmem:[%s6968_s1 + $0x4] sm:$0x1] }
 0x928   : > { %v3894_v11 = vsel %vm3494_vm9, %v5961_v10, 0  ;;  %vm3957_vm6 = vmand %vm3955_vm3, %vm3956_vm4 }
 0x929   : > { %5551 = vmatpush3.bf16.msra.mxu0 %v5933_v42 }
 0x92a   : > { %5569 = vmatpush3.bf16.msra.mxu1 %v5934_v34  ;;  %5552 = vmatprep.subr.bf16.mxu0 %v6056_v28 }
 0x92b   : > { %5570 = vmatprep.subr.bf16.mxu1 %v6056_v28 }
 0x92d   : > { %5553 = vmatpush3.bf16.msra.mxu0 %v5935_v35 }
 0x92e   : > { %5571 = vmatpush3.bf16.msra.mxu1 %v5936_v36  ;;  %5554 = vmatprep.subr.bf16.mxu0 %v6056_v28 }
 0x92f   : > { %5572 = vmatprep.subr.bf16.mxu1 %v6056_v28 }
 0x931   : > { %5555 = vmatpush3.bf16.msra.mxu0 %v5937_v38 }
 0x932   : > { %5573 = vmatpush3.bf16.msra.mxu1 %v5938_v40  ;;  %5556 = vmatprep.subr.bf16.mxu0 %v6056_v28 }
 0x933   : > { %5574 = vmatprep.subr.bf16.mxu1 %v6056_v28 }
 0x935   : > { %5557 = vmatpush3.bf16.msra.mxu0 %v3496_v46 }
 0x936   : > { %5575 = vmatpush3.bf16.msra.mxu1 %v3581_v47  ;;  %5580 = vmatprep.subr.bf16.mxu0 %v6056_v28 }
 0x937   : > { %5598 = vmatprep.subr.bf16.mxu1 %v6056_v28 }
 0x938   : > { %5559 = vmatmul.mubr.msk.bf16.vlgmr.msra.gmra.mrb[0].mxu0 %vm3490_vm2, %v4746_v48 }
 0x939   : > { %5577 = vmatmul.mubr.msk.bf16.vlgmr.msra.gmra.mrb[0].mxu1 %vm3490_vm2, %v3416_v49  ;;  %5581 = vmatpush3.bf16.msra.mxu0 %v5941_v50 }
 0x93a   : > { %5599 = vmatpush3.bf16.msra.mxu1 %v5942_v51  ;;  %5582 = vmatprep.subr.bf16.mxu0 %v6056_v28 }
 0x93b   : > { %5600 = vmatprep.subr.bf16.mxu1 %v6056_v28  ;;  %5594 = vmatprep.mubr.msk.bf16.mxu0 %vm6057_vm1, %v6056_v28 }
 0x93c   : > { %5612 = vmatprep.mubr.msk.bf16.mxu1 %vm6057_vm1, %v6056_v28 }
 0x93d   : > { %5583 = vmatpush3.bf16.msra.mxu0 %v5943_v52 }
 0x93e   : > { %5601 = vmatpush3.bf16.msra.mxu1 %v5944_v53  ;;  %5584 = vmatprep.subr.bf16.mxu0 %v6056_v28 }
 0x93f   : > { %5602 = vmatprep.subr.bf16.mxu1 %v6056_v28 }
 0x941   : > { %5585 = vmatpush3.bf16.msra.mxu0 %v5945_v54 }
 0x942   : > { %5603 = vmatpush3.bf16.msra.mxu1 %v5946_v55  ;;  %5586 = vmatprep.subr.bf16.mxu0 %v6056_v28 }
 0x943   : > { %5604 = vmatprep.subr.bf16.mxu1 %v6056_v28 }
 0x945   : > { %5587 = vmatpush3.bf16.msra.mxu0 %v5947_v56 }
 0x946   : > { %5605 = vmatpush3.bf16.msra.mxu1 %v5948_v57  ;;  %5588 = vmatprep.subr.bf16.mxu0 %v6056_v28 }
 0x947   : > { %5606 = vmatprep.subr.bf16.mxu1 %v6056_v28 }
 0x949   : > { %5589 = vmatpush3.bf16.msra.mxu0 %v5949_v58 }
 0x94a   : > { %5607 = vmatpush3.bf16.msra.mxu1 %v5950_v59  ;;  %5590 = vmatprep.subr.bf16.mxu0 %v6056_v28 }
 0x94b   : > { %5608 = vmatprep.subr.bf16.mxu1 %v6056_v28 }
 0x94d   : > { %5591 = vmatpush3.bf16.msra.mxu0 %v5951_v60 }
 0x94e   : > { %5609 = vmatpush3.bf16.msra.mxu1 %v5952_v61  ;;  %5592 = vmatprep.subr.bf16.mxu0 %v6056_v28 }
 0x94f   : > { %5610 = vmatprep.subr.bf16.mxu1 %v6056_v28 }
 0x951   : > { %5593 = vmatpush3.bf16.msra.mxu0 %v3684_v0 }
 0x952   : > { %5611 = vmatpush3.bf16.msra.mxu1 %v3789_v1  ;;  %5616 = vmatprep.subr.bf16.mxu0 %v6056_v28 }
 0x954   : > { %5595 = vmatmul.mubr.msk.bf16.vlgmr.msra.gmra.mrb[4].mxu0 %vm3490_vm2, %v4777_v2 }
 0x955   : > { %5617 = vmatpush3.bf16.msra.mxu0 %v5955_v3  ;;  %5613 = vmatmul.mubr.msk.bf16.vlgmr.msra.gmra.mrb[4].mxu1 %vm3490_vm2, %v4800_v4 }
 0x956   : > { %5618 = vmatprep.subr.bf16.mxu0 %v6056_v28  ;;  %5630 = vmatprep.mubr.msk.bf16.mxu0 %vm6057_vm1, %v6056_v28 }
 0x959   : > { %5619 = vmatpush3.bf16.msra.mxu0 %v5956_v5 }
 0x95a   : > { %5620 = vmatprep.subr.bf16.mxu0 %v6056_v28 }
 0x95d   : > { %5621 = vmatpush3.bf16.msra.mxu0 %v5957_v6 }
 0x95e   : > { %5622 = vmatprep.subr.bf16.mxu0 %v6056_v28 }
 0x961   : > { %5623 = vmatpush3.bf16.msra.mxu0 %v5958_v7 }
 0x962   : > { %5624 = vmatprep.subr.bf16.mxu0 %v6056_v28 }
 0x965   : > { %5625 = vmatpush3.bf16.msra.mxu0 %v5959_v8 }
 0x966   : > { %5626 = vmatprep.subr.bf16.mxu0 %v6056_v28 }
 0x969   : > { %5627 = vmatpush3.bf16.msra.mxu0 %v5960_v9 }
 0x96a   : > { %5628 = vmatprep.subr.bf16.mxu0 %v6056_v28 }
 0x96d   : > { %5629 = vmatpush3.bf16.msra.mxu0 %v3894_v11 }
 0x970   : > { %5631 = vmatmul.mubr.msk.bf16.vlgmr.msra.gmra.mrb[8].mxu0 %vm3490_vm2, %v4823_v12 }
 0x99c   : > { %v3940_v32 = vpop.permute.xlu0 %3939 }
 0x99d   : > { %v3945_v33 = vrot.slane %v3940_v32, %v3944_v31 }
 0xa0b   : > { %v3532_v13 = vpop.f32.mrb[0].mxu0 }
 0xa0c   : > { %v5560_v14 = vpop.f32.mrb[1].mxu0  ;;  %v3617_v15 = vpop.f32.mrb[0].mxu1 }
 0xa0d   : > { %v3618_v16 = vadd.f32 %v3617_v15, %v3532_v13  ;;  %v3535_v17 = vpop.f32.mrb[2].mxu0  ;;  %v5578_v18 = vpop.f32.mrb[1].mxu1 }
 0xa0e   : > { %v5561_v19 = vpop.f32.mrb[3].mxu0  ;;  %v3620_v20 = vpop.f32.mrb[2].mxu1 }
 0xa0f   : > { %v5579_v21 = vpop.f32.mrb[3].mxu1 }
 0xa27   : > { %v3720_v22 = vpop.f32.mrb[4].mxu0 }
 0xa28   : > { %v3726_v23 = vadd.f32 %v3720_v22, %v3618_v16  ;;  %v5596_v24 = vpop.f32.mrb[5].mxu0  ;;  %v3825_v25 = vpop.f32.mrb[4].mxu1 }
 0xa29   : > { %v3723_v26 = vpop.f32.mrb[6].mxu0  ;;  %v5614_v27 = vpop.f32.mrb[5].mxu1 }
 0xa2a   : > { %v3831_v28 = vadd.f32 %v3825_v25, %v3726_v23  ;;  %v5597_v44 = vpop.f32.mrb[7].mxu0  ;;  %v3828_v45 = vpop.f32.mrb[6].mxu1 }
 0xa2b   : > { %v5615_v29 = vpop.f32.mrb[7].mxu1 }
 0xa43   : > { %v3930_v42 = vpop.f32.mrb[8].mxu0 }
 0xa44   : > { %v3936_v34 = vadd.f32 %v3930_v42, %v3831_v28  ;;  %v5632_v35 = vpop.f32.mrb[9].mxu0 }
 0xa45   : > { %v3933_v36 = vpop.f32.mrb[10].mxu0 }
 0xa46   : > { %v5633_v37 = vpop.f32.mrb[11].mxu0  ;;  %v3946_v38 = vadd.f32 %v3945_v33, %v3936_v34 }
 0xa48   : > { %v3947_v39 = vsel %vm639_vm8, %v3946_v38, 0.0 }
 0xa49   : > { %3949 = vrot.lane.b32.xlu0 %v3947_v39, %s6059_s6 }
 0xabb   : > { %v3950_v40 = vpop.permute.xlu0 %3949 }
 0xabc   : > { %v3951_v46 = vrot.slane %v3950_v40, 7 }
 0xabe   : > { %v3953_v47 = vsel %vm3952_vm5, %v3951_v46, %v3950_v40 }
 0xabf   : > { %4846 = vst.msk [vmem:[%s6133_s8 + $0xa] sm:$0x3] %vm3957_vm6, %v3953_v47 }
 0xac0 PF: > { %s16_s21 = sadd.s32 1, %s6004_s21   ;;  %s6974_s17 = smov %s5996_s19 }
 0xac1   : > { %p13_p13 = scmp.ge.s32.totalorder %s16_s21, 6   ;;  %s6975_s18 = smov %s6000_s20 }
 0xac2   : > { %s6976_s19 = smov %s6979_s2  ;;  %s6977_s20 = smov %s6983_s22 }
 0xac3   :  { %15 = sbr.rel (!%p13_p13) target bundleno = 3 (0x3), region = 173 }

</bundles_post_ra>
